<compile_context>
chip_gen: v7x
topology: tpu7x:2x2x1
jax: 0.10.0
libtpu: 0.0.40
codegen_flags: <defaults>
</compile_context>

<pallas_src>
import functools

import jax
import jax.numpy as jnp
from jax.experimental import pallas as pl
from jax.experimental.pallas import tpu as pltpu


# ---------------------------------------------------------------------------
# Fused forward kernel
# ---------------------------------------------------------------------------
def _fused_mnist_kernel(patches1_ref, w1_ref, b1_ref, w2_ref, b2_ref,
                        w3_hbm_ref, b3_ref, w4_ref, b4_ref,
                        out_ref,
                        w3_vmem, p1_ref, act2_ref, dma_sem,
                        *, n_batch):
    n = n_batch

    # Prefetch the largest weight (fc1, 2 MiB / 1 MiB bf16) HBM -> VMEM so the
    # DMA overlaps the conv compute below.
    w3_copy = pltpu.make_async_copy(w3_hbm_ref, w3_vmem, dma_sem.at[0])
    w3_copy.start()

    # ---- conv1 (GEMM on pre-built patches) + bias + ReLU + 2x2 max-pool ----
    # patches1 rows are ordered (pool parity, n, ph, pw[0:16)); the 4 parity
    # blocks are the 4 members of every 2x2 pooling window, so pool1 is a max
    # over 4 contiguous row blocks (bias/ReLU commute with max).
    rows_p = n * 12 * 16
    w1 = w1_ref[...]                                        # (32, 32), K padded 25->32
    m = None
    for par in range(4):
        blk = patches1_ref[par * rows_p:(par + 1) * rows_p, :]
        y = jnp.dot(blk, w1, preferred_element_type=jnp.float32)
        m = y if m is None else jnp.maximum(m, y)
    p1 = jnp.maximum(m + b1_ref[...], 0.0)                  # (rows_p, 32), rows (n, ph, pw)
    # Scatter into the NHWC scratch with tile-aligned (16, 32) stores.
    for b in range(n):
        for ph in range(12):
            r0 = (b * 12 + ph) * 16
            p1_ref[b, ph] = p1[r0:r0 + 16, :]

    # ---- conv2 as an implicit GEMM over the 25 taps + bias + ReLU ----------
    acc2 = jnp.zeros((n * 64, 64), jnp.float32)
    for t in range(25):
        i, j = divmod(t, 5)
        xs = p1_ref[:, i:i + 8, j:j + 8, :]                 # (n, 8, 8, 32) NHWC window
        acc2 = acc2 + jnp.dot(xs.reshape(n * 64, 32), w2_ref[t],
                              preferred_element_type=jnp.float32)
    y2 = jnp.maximum(acc2 + b2_ref[...], 0.0)               # rows (n, ho, wo), cols Cout
    for b in range(n):
        for h in range(8):
            r0 = (b * 8 + h) * 8
            act2_ref[b, h] = y2[r0:r0 + 8, :]

    # ---- fc1: fused 2x2 max-pool + block-wise (n,1024)x(1024,512) GEMM -----
    w3_copy.wait()                                          # fc1 weights now in VMEM
    acc3 = jnp.zeros((n, 512), jnp.float32)
    for qh in range(4):
        for qw in range(4):
            q = jnp.maximum(
                jnp.maximum(act2_ref[:, 2 * qh, 2 * qw, :],
                            act2_ref[:, 2 * qh, 2 * qw + 1, :]),
                jnp.maximum(act2_ref[:, 2 * qh + 1, 2 * qw, :],
                            act2_ref[:, 2 * qh + 1, 2 * qw + 1, :]))   # (n, 64) pooled block
            blk = qh * 4 + qw
            wblk = w3_vmem[blk * 64:(blk + 1) * 64, :]      # (64, 512) weight rows for this block
            acc3 = acc3 + jnp.dot(q.astype(wblk.dtype), wblk,
                                  preferred_element_type=jnp.float32)
    h1 = jnp.maximum(acc3 + b3_ref[...], 0.0)               # (n, 512)

    # ---- fc2 (raw logits, matching the torch module) ------------------------
    logits = jnp.dot(h1.astype(w4_ref.dtype), w4_ref[...],
                     preferred_element_type=jnp.float32) + b4_ref[...]
    out_ref[...] = logits.astype(out_ref.dtype)


# ---------------------------------------------------------------------------
# Wrapper glue (conv1 patch build, weight re-layout, forward)
# ---------------------------------------------------------------------------
def _conv1_patches(x):
    """x: (N, 1, 28, 28) -> (4*N*12*16, 32) patch matrix.

    Rows ordered (pool parity dh*2+dw, n, ph, pw) with pw padded 12->16 so the
    in-kernel reshape stays sublane-tile aligned; columns (kh*5+kw) padded
    25->32.  A few fused XLA ops on ~150 KB; the conv itself runs in-kernel.
    """
    n = x.shape[0]
    x2 = x[:, 0]                                            # (N, 28, 28)
    taps = [x2[:, i:i + 24, j:j + 24] for i in range(5) for j in range(5)]
    cols = jnp.stack(taps, axis=-1)                         # (N, 24, 24, 25)
    cols = cols.reshape(n, 12, 2, 12, 2, 25)                # ho=(ph,dh), wo=(pw,dw)
    cols = cols.transpose(2, 4, 0, 1, 3, 5)                 # (dh, dw, N, ph, pw, 25)
    cols = jnp.pad(cols, ((0, 0), (0, 0), (0, 0), (0, 0), (0, 4), (0, 7)))
    return cols.reshape(4 * n * 12 * 16, 32)


def _vmem_full(shape):
    zeros = (0,) * len(shape)
    return pl.BlockSpec(shape, lambda: zeros)


def prepare_params(params, fc_dtype=jnp.float32):
    """One-time conversion of torch-layout params to the kernel layout.

    Hoisted out of the forward (per review): no per-call weight transposes.
    Use fc_dtype=jnp.bfloat16 on v6e/v7x to halve the dominant fc1 weight DMA.
    """
    w1 = params["conv1_w"].reshape(32, 25).T                # (25, 32), rows (kh, kw)
    w1 = jnp.pad(w1, ((0, 7), (0, 0)))                      # K 25 -> 32
    w2 = params["conv2_w"].transpose(2, 3, 1, 0).reshape(25, 32, 64)   # [tap, Cin, Cout]
    w3 = params["fc1_w"].reshape(512, 64, 4, 4).transpose(2, 3, 1, 0)  # rows ordered (h, w, c)
    w3 = w3.reshape(1024, 512).astype(fc_dtype)
    w4 = params["fc2_w"].T.astype(fc_dtype)                 # (512, 10)
    return {
        "w1": w1, "b1": params["conv1_b"].reshape(1, 32),
        "w2": w2, "b2": params["conv2_b"].reshape(1, 64),
        "w3": w3, "b3": params["fc1_b"].reshape(1, 512),
        "w4": w4, "b4": params["fc2_b"].reshape(1, 10),
    }


def mnist_net_forward(kparams, x):
    """x: (N, 1, 28, 28) f32 NCHW (as in MnistNet.forward); kparams from prepare_params."""
    assert x.shape[1:] == (1, 28, 28)
    n = x.shape[0]
    patches1 = _conv1_patches(x)

    kernel = functools.partial(_fused_mnist_kernel, n_batch=n)
    in_specs = [
        _vmem_full(patches1.shape),
        _vmem_full(kparams["w1"].shape),
        _vmem_full(kparams["b1"].shape),
        _vmem_full(kparams["w2"].shape),
        _vmem_full(kparams["b2"].shape),
        pl.BlockSpec(memory_space=pl.ANY),                  # fc1 weight stays in HBM (manual DMA)
        _vmem_full(kparams["b3"].shape),
        _vmem_full(kparams["w4"].shape),
        _vmem_full(kparams["b4"].shape),
    ]
    return pl.pallas_call(
        kernel,
        out_shape=jax.ShapeDtypeStruct((n, 10), jnp.float32),
        in_specs=in_specs,
        out_specs=pl.BlockSpec((n, 10), lambda: (0, 0)),
        scratch_shapes=[
            pltpu.VMEM((1024, 512), kparams["w3"].dtype),   # fc1 weight landing buffer
            pltpu.VMEM((n, 12, 16, 32), jnp.float32),       # pooled conv1 activation (NHWC)
            pltpu.VMEM((n, 8, 8, 64), jnp.float32),         # conv2 activation (NHWC)
            pltpu.SemaphoreType.DMA((1,)),
        ],
    )(patches1, kparams["w1"], kparams["b1"], kparams["w2"], kparams["b2"],
      kparams["w3"], kparams["b3"], kparams["w4"], kparams["b4"])


# ---------------------------------------------------------------------------
# Torch-style init and a pure-JAX reference (for verification)
# ---------------------------------------------------------------------------
def init_params(key):
    """Torch-layout params with torch's default uniform(-1/sqrt(fan_in), ...) init."""
    ks = jax.random.split(key, 8)

    def u(k, shape, fan_in):
        bound = 1.0 / jnp.sqrt(float(fan_in))
        return jax.random.uniform(k, shape, jnp.float32, -bound, bound)

    return {
        "conv1_w": u(ks[0], (32, 1, 5, 5), 1 * 5 * 5),
        "conv1_b": u(ks[1], (32,), 1 * 5 * 5),
        "conv2_w": u(ks[2], (64, 32, 5, 5), 32 * 5 * 5),
        "conv2_b": u(ks[3], (64,), 32 * 5 * 5),
        "fc1_w": u(ks[4], (512, 64 * 4 * 4), 64 * 4 * 4),   # torch Linear: (out, in)
        "fc1_b": u(ks[5], (512,), 64 * 4 * 4),
        "fc2_w": u(ks[6], (10, 512), 512),
        "fc2_b": u(ks[7], (10,), 512),
    }


def _reference_forward(params, x):
    """Plain-JAX reference with exactly the torch MnistNet.forward semantics."""
    dn = ("NCHW", "OIHW", "NCHW")
    y = jax.lax.conv_general_dilated(x, params["conv1_w"], (1, 1), "VALID",
                                     dimension_numbers=dn)
    y = jax.nn.relu(y + params["conv1_b"][None, :, None, None])
    y = jax.lax.reduce_window(y, -jnp.inf, jax.lax.max, (1, 1, 2, 2), (1, 1, 2, 2), "VALID")
    y = jax.lax.conv_general_dilated(y, params["conv2_w"], (1, 1), "VALID",
                                     dimension_numbers=dn)
    y = jax.nn.relu(y + params["conv2_b"][None, :, None, None])
    y = jax.lax.reduce_window(y, -jnp.inf, jax.lax.max, (1, 1, 2, 2), (1, 1, 2, 2), "VALID")
    y = y.reshape(y.shape[0], -1)                           # (N, 1024), torch .view order
    y = jax.nn.relu(y @ params["fc1_w"].T + params["fc1_b"])
    return y @ params["fc2_w"].T + params["fc2_b"]


if __name__ == "__main__":
    key = jax.random.PRNGKey(0)
    k_x, k_p = jax.random.split(key)

    # MNIST-shaped input (batch=2, 1 channel, 28x28), required so the flatten
    # is exactly 64*4*4 = 1024 as in the module.
    x = jax.random.normal(k_x, (2, 1, 28, 28), dtype=jnp.float32)
    params = init_params(k_p)                # torch-layout params (the nn.Module spec)
    kparams = prepare_params(params)         # one-time re-layout, hoisted out of the forward
                                             # (fc_dtype=jnp.bfloat16 halves fc1 DMA on v6e/v7x)

    out = jax.block_until_ready(jax.jit(mnist_net_forward)(kparams, x))
    assert out.shape == (2, 10) and out.dtype == jnp.float32

    ref = jax.block_until_ready(jax.jit(_reference_forward)(params, x))
    assert jnp.allclose(out, ref, atol=1e-3, rtol=1e-3), "mismatch vs pure-JAX reference"

    print("KERNEL_OK")
</pallas_src>

<mosaic_0001>
module attributes {stable_mosaic.version = 11 : i64} {
  func.func @_fused_mnist_kernel(%arg0: memref<1536x32xf32, #tpu.memory_space<vmem>>, %arg1: memref<32x32xf32, #tpu.memory_space<vmem>>, %arg2: memref<1x32xf32, #tpu.memory_space<vmem>>, %arg3: memref<25x32x64xf32, #tpu.memory_space<vmem>>, %arg4: memref<1x64xf32, #tpu.memory_space<vmem>>, %arg5: memref<1024x512xf32, #tpu.memory_space<any>>, %arg6: memref<1x512xf32, #tpu.memory_space<vmem>>, %arg7: memref<512x10xf32, #tpu.memory_space<vmem>>, %arg8: memref<1x10xf32, #tpu.memory_space<vmem>>, %arg9: memref<2x10xf32, #tpu.memory_space<vmem>>, %arg10: memref<1024x512xf32, #tpu.memory_space<vmem>>, %arg11: memref<2x12x16x32xf32, #tpu.memory_space<vmem>>, %arg12: memref<2x8x8x64xf32, #tpu.memory_space<vmem>>, %arg13: memref<1x!tpu.dma_semaphore, #tpu.memory_space<semaphore_mem>>) attributes {dimension_semantics = [], scalar_prefetch = 0 : i64, scratch_operands = 4 : i64, tpu.core_type = #tpu.core_type<tc>} {
    %c0_i32 = arith.constant 0 : i32
    %0 = tpu.memref_slice %arg13[%c0_i32] : memref<1x!tpu.dma_semaphore, #tpu.memory_space<semaphore_mem>> -> memref<1x!tpu.dma_semaphore, #tpu.memory_space<semaphore_mem>>
    %1 = tpu.memref_squeeze %0 : memref<1x!tpu.dma_semaphore, #tpu.memory_space<semaphore_mem>> -> memref<!tpu.dma_semaphore, #tpu.memory_space<semaphore_mem>>
    tpu.enqueue_dma source(%arg5 : memref<1024x512xf32, #tpu.memory_space<any>>) target(%arg10 : memref<1024x512xf32, #tpu.memory_space<vmem>>) target_semaphore(%1 : memref<!tpu.dma_semaphore, #tpu.memory_space<semaphore_mem>>)
    %c0 = arith.constant 0 : index
    %c0_0 = arith.constant 0 : index
    %2 = vector.load %arg1[%c0, %c0_0] : memref<32x32xf32, #tpu.memory_space<vmem>>, vector<32x32xf32>
    %c0_1 = arith.constant 0 : index
    %c0_2 = arith.constant 0 : index
    %3 = vector.load %arg0[%c0_1, %c0_2] : memref<1536x32xf32, #tpu.memory_space<vmem>>, vector<384x32xf32>
    %cst = arith.constant dense<0.000000e+00> : vector<384x32xf32>
    %4 = tpu.matmul %3, %2, %cst {dimension_numbers = #tpu.dot_dimension_numbers<[1], [0], [0], [1], [0, 0, 1, 1], [], []>} : vector<384x32xf32>, vector<32x32xf32>, vector<384x32xf32> -> vector<384x32xf32>
    %c384 = arith.constant 384 : index
    %c0_3 = arith.constant 0 : index
    %5 = vector.load %arg0[%c384, %c0_3] : memref<1536x32xf32, #tpu.memory_space<vmem>>, vector<384x32xf32>
    %cst_4 = arith.constant dense<0.000000e+00> : vector<384x32xf32>
    %6 = tpu.matmul %5, %2, %cst_4 {dimension_numbers = #tpu.dot_dimension_numbers<[1], [0], [0], [1], [0, 0, 1, 1], [], []>} : vector<384x32xf32>, vector<32x32xf32>, vector<384x32xf32> -> vector<384x32xf32>
    %7 = arith.maximumf %4, %6 : vector<384x32xf32>
    %c768 = arith.constant 768 : index
    %c0_5 = arith.constant 0 : index
    %8 = vector.load %arg0[%c768, %c0_5] : memref<1536x32xf32, #tpu.memory_space<vmem>>, vector<384x32xf32>
    %cst_6 = arith.constant dense<0.000000e+00> : vector<384x32xf32>
    %9 = tpu.matmul %8, %2, %cst_6 {dimension_numbers = #tpu.dot_dimension_numbers<[1], [0], [0], [1], [0, 0, 1, 1], [], []>} : vector<384x32xf32>, vector<32x32xf32>, vector<384x32xf32> -> vector<384x32xf32>
    %10 = arith.maximumf %7, %9 : vector<384x32xf32>
    %c1152 = arith.constant 1152 : index
    %c0_7 = arith.constant 0 : index
    %11 = vector.load %arg0[%c1152, %c0_7] : memref<1536x32xf32, #tpu.memory_space<vmem>>, vector<384x32xf32>
    %cst_8 = arith.constant dense<0.000000e+00> : vector<384x32xf32>
    %12 = tpu.matmul %11, %2, %cst_8 {dimension_numbers = #tpu.dot_dimension_numbers<[1], [0], [0], [1], [0, 0, 1, 1], [], []>} : vector<384x32xf32>, vector<32x32xf32>, vector<384x32xf32> -> vector<384x32xf32>
    %13 = arith.maximumf %10, %12 : vector<384x32xf32>
    %c0_9 = arith.constant 0 : index
    %c0_10 = arith.constant 0 : index
    %14 = vector.load %arg2[%c0_9, %c0_10] : memref<1x32xf32, #tpu.memory_space<vmem>>, vector<1x32xf32>
    %15 = vector.broadcast %14 : vector<1x32xf32> to vector<384x32xf32>
    %16 = arith.addf %13, %15 : vector<384x32xf32>
    %cst_11 = arith.constant 0.000000e+00 : f32
    %17 = vector.broadcast %cst_11 : f32 to vector<384x32xf32>
    %18 = arith.maximumf %16, %17 : vector<384x32xf32>
    %19 = vector.extract_strided_slice %18 {offsets = [0, 0], sizes = [16, 32], strides = [1, 1]} : vector<384x32xf32> to vector<16x32xf32>
    %c0_12 = arith.constant 0 : index
    %c0_13 = arith.constant 0 : index
    %c0_14 = arith.constant 0 : index
    %c0_15 = arith.constant 0 : index
    %20 = vector.load %arg11[%c0_12, %c0_13, %c0_14, %c0_15] : memref<2x12x16x32xf32, #tpu.memory_space<vmem>>, vector<1x1x16x32xf32>
    %21 = vector.shape_cast %20 : vector<1x1x16x32xf32> to vector<16x32xf32>
    %22 = vector.shape_cast %19 : vector<16x32xf32> to vector<1x1x16x32xf32>
    tpu.vector_store %arg11[%c0_12, %c0_13, %c0_14, %c0_15], %22 {strides = array<i32>} : memref<2x12x16x32xf32, #tpu.memory_space<vmem>>, vector<1x1x16x32xf32>,
    %23 = vector.extract_strided_slice %18 {offsets = [16, 0], sizes = [16, 32], strides = [1, 1]} : vector<384x32xf32> to vector<16x32xf32>
    %c0_16 = arith.constant 0 : index
    %c1 = arith.constant 1 : index
    %c0_17 = arith.constant 0 : index
    %c0_18 = arith.constant 0 : index
    %24 = vector.load %arg11[%c0_16, %c1, %c0_17, %c0_18] : memref<2x12x16x32xf32, #tpu.memory_space<vmem>>, vector<1x1x16x32xf32>
    %25 = vector.shape_cast %24 : vector<1x1x16x32xf32> to vector<16x32xf32>
    %26 = vector.shape_cast %23 : vector<16x32xf32> to vector<1x1x16x32xf32>
    tpu.vector_store %arg11[%c0_16, %c1, %c0_17, %c0_18], %26 {strides = array<i32>} : memref<2x12x16x32xf32, #tpu.memory_space<vmem>>, vector<1x1x16x32xf32>,
    %27 = vector.extract_strided_slice %18 {offsets = [32, 0], sizes = [16, 32], strides = [1, 1]} : vector<384x32xf32> to vector<16x32xf32>
    %c0_19 = arith.constant 0 : index
    %c2 = arith.constant 2 : index
    %c0_20 = arith.constant 0 : index
    %c0_21 = arith.constant 0 : index
    %28 = vector.load %arg11[%c0_19, %c2, %c0_20, %c0_21] : memref<2x12x16x32xf32, #tpu.memory_space<vmem>>, vector<1x1x16x32xf32>
    %29 = vector.shape_cast %28 : vector<1x1x16x32xf32> to vector<16x32xf32>
    %30 = vector.shape_cast %27 : vector<16x32xf32> to vector<1x1x16x32xf32>
    tpu.vector_store %arg11[%c0_19, %c2, %c0_20, %c0_21], %30 {strides = array<i32>} : memref<2x12x16x32xf32, #tpu.memory_space<vmem>>, vector<1x1x16x32xf32>,
    %31 = vector.extract_strided_slice %18 {offsets = [48, 0], sizes = [16, 32], strides = [1, 1]} : vector<384x32xf32> to vector<16x32xf32>
    %c0_22 = arith.constant 0 : index
    %c3 = arith.constant 3 : index
    %c0_23 = arith.constant 0 : index
    %c0_24 = arith.constant 0 : index
    %32 = vector.load %arg11[%c0_22, %c3, %c0_23, %c0_24] : memref<2x12x16x32xf32, #tpu.memory_space<vmem>>, vector<1x1x16x32xf32>
    %33 = vector.shape_cast %32 : vector<1x1x16x32xf32> to vector<16x32xf32>
    %34 = vector.shape_cast %31 : vector<16x32xf32> to vector<1x1x16x32xf32>
    tpu.vector_store %arg11[%c0_22, %c3, %c0_23, %c0_24], %34 {strides = array<i32>} : memref<2x12x16x32xf32, #tpu.memory_space<vmem>>, vector<1x1x16x32xf32>,
    %35 = vector.extract_strided_slice %18 {offsets = [64, 0], sizes = [16, 32], strides = [1, 1]} : vector<384x32xf32> to vector<16x32xf32>
    %c0_25 = arith.constant 0 : index
    %c4 = arith.constant 4 : index
    %c0_26 = arith.constant 0 : index
    %c0_27 = arith.constant 0 : index
    %36 = vector.load %arg11[%c0_25, %c4, %c0_26, %c0_27] : memref<2x12x16x32xf32, #tpu.memory_space<vmem>>, vector<1x1x16x32xf32>
    %37 = vector.shape_cast %36 : vector<1x1x16x32xf32> to vector<16x32xf32>
    %38 = vector.shape_cast %35 : vector<16x32xf32> to vector<1x1x16x32xf32>
    tpu.vector_store %arg11[%c0_25, %c4, %c0_26, %c0_27], %38 {strides = array<i32>} : memref<2x12x16x32xf32, #tpu.memory_space<vmem>>, vector<1x1x16x32xf32>,
    %39 = vector.extract_strided_slice %18 {offsets = [80, 0], sizes = [16, 32], strides = [1, 1]} : vector<384x32xf32> to vector<16x32xf32>
    %c0_28 = arith.constant 0 : index
    %c5 = arith.constant 5 : index
    %c0_29 = arith.constant 0 : index
    %c0_30 = arith.constant 0 : index
    %40 = vector.load %arg11[%c0_28, %c5, %c0_29, %c0_30] : memref<2x12x16x32xf32, #tpu.memory_space<vmem>>, vector<1x1x16x32xf32>
    %41 = vector.shape_cast %40 : vector<1x1x16x32xf32> to vector<16x32xf32>
    %42 = vector.shape_cast %39 : vector<16x32xf32> to vector<1x1x16x32xf32>
    tpu.vector_store %arg11[%c0_28, %c5, %c0_29, %c0_30], %42 {strides = array<i32>} : memref<2x12x16x32xf32, #tpu.memory_space<vmem>>, vector<1x1x16x32xf32>,
    %43 = vector.extract_strided_slice %18 {offsets = [96, 0], sizes = [16, 32], strides = [1, 1]} : vector<384x32xf32> to vector<16x32xf32>
    %c0_31 = arith.constant 0 : index
    %c6 = arith.constant 6 : index
    %c0_32 = arith.constant 0 : index
    %c0_33 = arith.constant 0 : index
    %44 = vector.load %arg11[%c0_31, %c6, %c0_32, %c0_33] : memref<2x12x16x32xf32, #tpu.memory_space<vmem>>, vector<1x1x16x32xf32>
    %45 = vector.shape_cast %44 : vector<1x1x16x32xf32> to vector<16x32xf32>
    %46 = vector.shape_cast %43 : vector<16x32xf32> to vector<1x1x16x32xf32>
    tpu.vector_store %arg11[%c0_31, %c6, %c0_32, %c0_33], %46 {strides = array<i32>} : memref<2x12x16x32xf32, #tpu.memory_space<vmem>>, vector<1x1x16x32xf32>,
    %47 = vector.extract_strided_slice %18 {offsets = [112, 0], sizes = [16, 32], strides = [1, 1]} : vector<384x32xf32> to vector<16x32xf32>
    %c0_34 = arith.constant 0 : index
    %c7 = arith.constant 7 : index
    %c0_35 = arith.constant 0 : index
    %c0_36 = arith.constant 0 : index
    %48 = vector.load %arg11[%c0_34, %c7, %c0_35, %c0_36] : memref<2x12x16x32xf32, #tpu.memory_space<vmem>>, vector<1x1x16x32xf32>
    %49 = vector.shape_cast %48 : vector<1x1x16x32xf32> to vector<16x32xf32>
    %50 = vector.shape_cast %47 : vector<16x32xf32> to vector<1x1x16x32xf32>
    tpu.vector_store %arg11[%c0_34, %c7, %c0_35, %c0_36], %50 {strides = array<i32>} : memref<2x12x16x32xf32, #tpu.memory_space<vmem>>, vector<1x1x16x32xf32>,
    %51 = vector.extract_strided_slice %18 {offsets = [128, 0], sizes = [16, 32], strides = [1, 1]} : vector<384x32xf32> to vector<16x32xf32>
    %c0_37 = arith.constant 0 : index
    %c8 = arith.constant 8 : index
    %c0_38 = arith.constant 0 : index
    %c0_39 = arith.constant 0 : index
    %52 = vector.load %arg11[%c0_37, %c8, %c0_38, %c0_39] : memref<2x12x16x32xf32, #tpu.memory_space<vmem>>, vector<1x1x16x32xf32>
    %53 = vector.shape_cast %52 : vector<1x1x16x32xf32> to vector<16x32xf32>
    %54 = vector.shape_cast %51 : vector<16x32xf32> to vector<1x1x16x32xf32>
    tpu.vector_store %arg11[%c0_37, %c8, %c0_38, %c0_39], %54 {strides = array<i32>} : memref<2x12x16x32xf32, #tpu.memory_space<vmem>>, vector<1x1x16x32xf32>,
    %55 = vector.extract_strided_slice %18 {offsets = [144, 0], sizes = [16, 32], strides = [1, 1]} : vector<384x32xf32> to vector<16x32xf32>
    %c0_40 = arith.constant 0 : index
    %c9 = arith.constant 9 : index
    %c0_41 = arith.constant 0 : index
    %c0_42 = arith.constant 0 : index
    %56 = vector.load %arg11[%c0_40, %c9, %c0_41, %c0_42] : memref<2x12x16x32xf32, #tpu.memory_space<vmem>>, vector<1x1x16x32xf32>
    %57 = vector.shape_cast %56 : vector<1x1x16x32xf32> to vector<16x32xf32>
    %58 = vector.shape_cast %55 : vector<16x32xf32> to vector<1x1x16x32xf32>
    tpu.vector_store %arg11[%c0_40, %c9, %c0_41, %c0_42], %58 {strides = array<i32>} : memref<2x12x16x32xf32, #tpu.memory_space<vmem>>, vector<1x1x16x32xf32>,
    %59 = vector.extract_strided_slice %18 {offsets = [160, 0], sizes = [16, 32], strides = [1, 1]} : vector<384x32xf32> to vector<16x32xf32>
    %c0_43 = arith.constant 0 : index
    %c10 = arith.constant 10 : index
    %c0_44 = arith.constant 0 : index
    %c0_45 = arith.constant 0 : index
    %60 = vector.load %arg11[%c0_43, %c10, %c0_44, %c0_45] : memref<2x12x16x32xf32, #tpu.memory_space<vmem>>, vector<1x1x16x32xf32>
    %61 = vector.shape_cast %60 : vector<1x1x16x32xf32> to vector<16x32xf32>
    %62 = vector.shape_cast %59 : vector<16x32xf32> to vector<1x1x16x32xf32>
    tpu.vector_store %arg11[%c0_43, %c10, %c0_44, %c0_45], %62 {strides = array<i32>} : memref<2x12x16x32xf32, #tpu.memory_space<vmem>>, vector<1x1x16x32xf32>,
    %63 = vector.extract_strided_slice %18 {offsets = [176, 0], sizes = [16, 32], strides = [1, 1]} : vector<384x32xf32> to vector<16x32xf32>
    %c0_46 = arith.constant 0 : index
    %c11 = arith.constant 11 : index
    %c0_47 = arith.constant 0 : index
    %c0_48 = arith.constant 0 : index
    %64 = vector.load %arg11[%c0_46, %c11, %c0_47, %c0_48] : memref<2x12x16x32xf32, #tpu.memory_space<vmem>>, vector<1x1x16x32xf32>
    %65 = vector.shape_cast %64 : vector<1x1x16x32xf32> to vector<16x32xf32>
    %66 = vector.shape_cast %63 : vector<16x32xf32> to vector<1x1x16x32xf32>
    tpu.vector_store %arg11[%c0_46, %c11, %c0_47, %c0_48], %66 {strides = array<i32>} : memref<2x12x16x32xf32, #tpu.memory_space<vmem>>, vector<1x1x16x32xf32>,
    %67 = vector.extract_strided_slice %18 {offsets = [192, 0], sizes = [16, 32], strides = [1, 1]} : vector<384x32xf32> to vector<16x32xf32>
    %c1_49 = arith.constant 1 : index
    %c0_50 = arith.constant 0 : index
    %c0_51 = arith.constant 0 : index
    %c0_52 = arith.constant 0 : index
    %68 = vector.load %arg11[%c1_49, %c0_50, %c0_51, %c0_52] : memref<2x12x16x32xf32, #tpu.memory_space<vmem>>, vector<1x1x16x32xf32>
    %69 = vector.shape_cast %68 : vector<1x1x16x32xf32> to vector<16x32xf32>
    %70 = vector.shape_cast %67 : vector<16x32xf32> to vector<1x1x16x32xf32>
    tpu.vector_store %arg11[%c1_49, %c0_50, %c0_51, %c0_52], %70 {strides = array<i32>} : memref<2x12x16x32xf32, #tpu.memory_space<vmem>>, vector<1x1x16x32xf32>,
    %71 = vector.extract_strided_slice %18 {offsets = [208, 0], sizes = [16, 32], strides = [1, 1]} : vector<384x32xf32> to vector<16x32xf32>
    %c1_53 = arith.constant 1 : index
    %c1_54 = arith.constant 1 : index
    %c0_55 = arith.constant 0 : index
    %c0_56 = arith.constant 0 : index
    %72 = vector.load %arg11[%c1_53, %c1_54, %c0_55, %c0_56] : memref<2x12x16x32xf32, #tpu.memory_space<vmem>>, vector<1x1x16x32xf32>
    %73 = vector.shape_cast %72 : vector<1x1x16x32xf32> to vector<16x32xf32>
    %74 = vector.shape_cast %71 : vector<16x32xf32> to vector<1x1x16x32xf32>
    tpu.vector_store %arg11[%c1_53, %c1_54, %c0_55, %c0_56], %74 {strides = array<i32>} : memref<2x12x16x32xf32, #tpu.memory_space<vmem>>, vector<1x1x16x32xf32>,
    %75 = vector.extract_strided_slice %18 {offsets = [224, 0], sizes = [16, 32], strides = [1, 1]} : vector<384x32xf32> to vector<16x32xf32>
    %c1_57 = arith.constant 1 : index
    %c2_58 = arith.constant 2 : index
    %c0_59 = arith.constant 0 : index
    %c0_60 = arith.constant 0 : index
    %76 = vector.load %arg11[%c1_57, %c2_58, %c0_59, %c0_60] : memref<2x12x16x32xf32, #tpu.memory_space<vmem>>, vector<1x1x16x32xf32>
    %77 = vector.shape_cast %76 : vector<1x1x16x32xf32> to vector<16x32xf32>
    %78 = vector.shape_cast %75 : vector<16x32xf32> to vector<1x1x16x32xf32>
    tpu.vector_store %arg11[%c1_57, %c2_58, %c0_59, %c0_60], %78 {strides = array<i32>} : memref<2x12x16x32xf32, #tpu.memory_space<vmem>>, vector<1x1x16x32xf32>,
    %79 = vector.extract_strided_slice %18 {offsets = [240, 0], sizes = [16, 32], strides = [1, 1]} : vector<384x32xf32> to vector<16x32xf32>
    %c1_61 = arith.constant 1 : index
    %c3_62 = arith.constant 3 : index
    %c0_63 = arith.constant 0 : index
    %c0_64 = arith.constant 0 : index
    %80 = vector.load %arg11[%c1_61, %c3_62, %c0_63, %c0_64] : memref<2x12x16x32xf32, #tpu.memory_space<vmem>>, vector<1x1x16x32xf32>
    %81 = vector.shape_cast %80 : vector<1x1x16x32xf32> to vector<16x32xf32>
    %82 = vector.shape_cast %79 : vector<16x32xf32> to vector<1x1x16x32xf32>
    tpu.vector_store %arg11[%c1_61, %c3_62, %c0_63, %c0_64], %82 {strides = array<i32>} : memref<2x12x16x32xf32, #tpu.memory_space<vmem>>, vector<1x1x16x32xf32>,
    %83 = vector.extract_strided_slice %18 {offsets = [256, 0], sizes = [16, 32], strides = [1, 1]} : vector<384x32xf32> to vector<16x32xf32>
    %c1_65 = arith.constant 1 : index
    %c4_66 = arith.constant 4 : index
    %c0_67 = arith.constant 0 : index
    %c0_68 = arith.constant 0 : index
    %84 = vector.load %arg11[%c1_65, %c4_66, %c0_67, %c0_68] : memref<2x12x16x32xf32, #tpu.memory_space<vmem>>, vector<1x1x16x32xf32>
    %85 = vector.shape_cast %84 : vector<1x1x16x32xf32> to vector<16x32xf32>
    %86 = vector.shape_cast %83 : vector<16x32xf32> to vector<1x1x16x32xf32>
    tpu.vector_store %arg11[%c1_65, %c4_66, %c0_67, %c0_68], %86 {strides = array<i32>} : memref<2x12x16x32xf32, #tpu.memory_space<vmem>>, vector<1x1x16x32xf32>,
    %87 = vector.extract_strided_slice %18 {offsets = [272, 0], sizes = [16, 32], strides = [1, 1]} : vector<384x32xf32> to vector<16x32xf32>
    %c1_69 = arith.constant 1 : index
    %c5_70 = arith.constant 5 : index
    %c0_71 = arith.constant 0 : index
    %c0_72 = arith.constant 0 : index
    %88 = vector.load %arg11[%c1_69, %c5_70, %c0_71, %c0_72] : memref<2x12x16x32xf32, #tpu.memory_space<vmem>>, vector<1x1x16x32xf32>
    %89 = vector.shape_cast %88 : vector<1x1x16x32xf32> to vector<16x32xf32>
    %90 = vector.shape_cast %87 : vector<16x32xf32> to vector<1x1x16x32xf32>
    tpu.vector_store %arg11[%c1_69, %c5_70, %c0_71, %c0_72], %90 {strides = array<i32>} : memref<2x12x16x32xf32, #tpu.memory_space<vmem>>, vector<1x1x16x32xf32>,
    %91 = vector.extract_strided_slice %18 {offsets = [288, 0], sizes = [16, 32], strides = [1, 1]} : vector<384x32xf32> to vector<16x32xf32>
    %c1_73 = arith.constant 1 : index
    %c6_74 = arith.constant 6 : index
    %c0_75 = arith.constant 0 : index
    %c0_76 = arith.constant 0 : index
    %92 = vector.load %arg11[%c1_73, %c6_74, %c0_75, %c0_76] : memref<2x12x16x32xf32, #tpu.memory_space<vmem>>, vector<1x1x16x32xf32>
    %93 = vector.shape_cast %92 : vector<1x1x16x32xf32> to vector<16x32xf32>
    %94 = vector.shape_cast %91 : vector<16x32xf32> to vector<1x1x16x32xf32>
    tpu.vector_store %arg11[%c1_73, %c6_74, %c0_75, %c0_76], %94 {strides = array<i32>} : memref<2x12x16x32xf32, #tpu.memory_space<vmem>>, vector<1x1x16x32xf32>,
    %95 = vector.extract_strided_slice %18 {offsets = [304, 0], sizes = [16, 32], strides = [1, 1]} : vector<384x32xf32> to vector<16x32xf32>
    %c1_77 = arith.constant 1 : index
    %c7_78 = arith.constant 7 : index
    %c0_79 = arith.constant 0 : index
    %c0_80 = arith.constant 0 : index
    %96 = vector.load %arg11[%c1_77, %c7_78, %c0_79, %c0_80] : memref<2x12x16x32xf32, #tpu.memory_space<vmem>>, vector<1x1x16x32xf32>
    %97 = vector.shape_cast %96 : vector<1x1x16x32xf32> to vector<16x32xf32>
    %98 = vector.shape_cast %95 : vector<16x32xf32> to vector<1x1x16x32xf32>
    tpu.vector_store %arg11[%c1_77, %c7_78, %c0_79, %c0_80], %98 {strides = array<i32>} : memref<2x12x16x32xf32, #tpu.memory_space<vmem>>, vector<1x1x16x32xf32>,
    %99 = vector.extract_strided_slice %18 {offsets = [320, 0], sizes = [16, 32], strides = [1, 1]} : vector<384x32xf32> to vector<16x32xf32>
    %c1_81 = arith.constant 1 : index
    %c8_82 = arith.constant 8 : index
    %c0_83 = arith.constant 0 : index
    %c0_84 = arith.constant 0 : index
    %100 = vector.load %arg11[%c1_81, %c8_82, %c0_83, %c0_84] : memref<2x12x16x32xf32, #tpu.memory_space<vmem>>, vector<1x1x16x32xf32>
    %101 = vector.shape_cast %100 : vector<1x1x16x32xf32> to vector<16x32xf32>
    %102 = vector.shape_cast %99 : vector<16x32xf32> to vector<1x1x16x32xf32>
    tpu.vector_store %arg11[%c1_81, %c8_82, %c0_83, %c0_84], %102 {strides = array<i32>} : memref<2x12x16x32xf32, #tpu.memory_space<vmem>>, vector<1x1x16x32xf32>,
    %103 = vector.extract_strided_slice %18 {offsets = [336, 0], sizes = [16, 32], strides = [1, 1]} : vector<384x32xf32> to vector<16x32xf32>
    %c1_85 = arith.constant 1 : index
    %c9_86 = arith.constant 9 : index
    %c0_87 = arith.constant 0 : index
    %c0_88 = arith.constant 0 : index
    %104 = vector.load %arg11[%c1_85, %c9_86, %c0_87, %c0_88] : memref<2x12x16x32xf32, #tpu.memory_space<vmem>>, vector<1x1x16x32xf32>
    %105 = vector.shape_cast %104 : vector<1x1x16x32xf32> to vector<16x32xf32>
    %106 = vector.shape_cast %103 : vector<16x32xf32> to vector<1x1x16x32xf32>
    tpu.vector_store %arg11[%c1_85, %c9_86, %c0_87, %c0_88], %106 {strides = array<i32>} : memref<2x12x16x32xf32, #tpu.memory_space<vmem>>, vector<1x1x16x32xf32>,
    %107 = vector.extract_strided_slice %18 {offsets = [352, 0], sizes = [16, 32], strides = [1, 1]} : vector<384x32xf32> to vector<16x32xf32>
    %c1_89 = arith.constant 1 : index
    %c10_90 = arith.constant 10 : index
    %c0_91 = arith.constant 0 : index
    %c0_92 = arith.constant 0 : index
    %108 = vector.load %arg11[%c1_89, %c10_90, %c0_91, %c0_92] : memref<2x12x16x32xf32, #tpu.memory_space<vmem>>, vector<1x1x16x32xf32>
    %109 = vector.shape_cast %108 : vector<1x1x16x32xf32> to vector<16x32xf32>
    %110 = vector.shape_cast %107 : vector<16x32xf32> to vector<1x1x16x32xf32>
    tpu.vector_store %arg11[%c1_89, %c10_90, %c0_91, %c0_92], %110 {strides = array<i32>} : memref<2x12x16x32xf32, #tpu.memory_space<vmem>>, vector<1x1x16x32xf32>,
    %111 = vector.extract_strided_slice %18 {offsets = [368, 0], sizes = [16, 32], strides = [1, 1]} : vector<384x32xf32> to vector<16x32xf32>
    %c1_93 = arith.constant 1 : index
    %c11_94 = arith.constant 11 : index
    %c0_95 = arith.constant 0 : index
    %c0_96 = arith.constant 0 : index
    %112 = vector.load %arg11[%c1_93, %c11_94, %c0_95, %c0_96] : memref<2x12x16x32xf32, #tpu.memory_space<vmem>>, vector<1x1x16x32xf32>
    %113 = vector.shape_cast %112 : vector<1x1x16x32xf32> to vector<16x32xf32>
    %114 = vector.shape_cast %111 : vector<16x32xf32> to vector<1x1x16x32xf32>
    tpu.vector_store %arg11[%c1_93, %c11_94, %c0_95, %c0_96], %114 {strides = array<i32>} : memref<2x12x16x32xf32, #tpu.memory_space<vmem>>, vector<1x1x16x32xf32>,
    %cst_97 = arith.constant 0.000000e+00 : f32
    %115 = vector.broadcast %cst_97 : f32 to vector<128x64xf32>
    %c0_98 = arith.constant 0 : index
    %c0_99 = arith.constant 0 : index
    %c0_100 = arith.constant 0 : index
    %c0_101 = arith.constant 0 : index
    %116 = vector.load %arg11[%c0_98, %c0_99, %c0_100, %c0_101] : memref<2x12x16x32xf32, #tpu.memory_space<vmem>>, vector<2x8x8x32xf32>
    %117 = vector.shape_cast %116 : vector<2x8x8x32xf32> to vector<128x32xf32>
    %c0_102 = arith.constant 0 : index
    %c0_103 = arith.constant 0 : index
    %c0_104 = arith.constant 0 : index
    %118 = vector.load %arg3[%c0_102, %c0_103, %c0_104] : memref<25x32x64xf32, #tpu.memory_space<vmem>>, vector<1x32x64xf32>
    %119 = vector.shape_cast %118 : vector<1x32x64xf32> to vector<32x64xf32>
    %cst_105 = arith.constant dense<0.000000e+00> : vector<128x64xf32>
    %120 = tpu.matmul %117, %119, %cst_105 {dimension_numbers = #tpu.dot_dimension_numbers<[1], [0], [0], [1], [0, 0, 1, 1], [], []>} : vector<128x32xf32>, vector<32x64xf32>, vector<128x64xf32> -> vector<128x64xf32>
    %121 = arith.addf %115, %120 : vector<128x64xf32>
    %c0_106 = arith.constant 0 : index
    %c0_107 = arith.constant 0 : index
    %c1_108 = arith.constant 1 : index
    %c0_109 = arith.constant 0 : index
    %122 = vector.load %arg11[%c0_106, %c0_107, %c1_108, %c0_109] : memref<2x12x16x32xf32, #tpu.memory_space<vmem>>, vector<2x8x8x32xf32>
    %123 = vector.shape_cast %122 : vector<2x8x8x32xf32> to vector<128x32xf32>
    %c1_110 = arith.constant 1 : index
    %c0_111 = arith.constant 0 : index
    %c0_112 = arith.constant 0 : index
    %124 = vector.load %arg3[%c1_110, %c0_111, %c0_112] : memref<25x32x64xf32, #tpu.memory_space<vmem>>, vector<1x32x64xf32>
    %125 = vector.shape_cast %124 : vector<1x32x64xf32> to vector<32x64xf32>
    %cst_113 = arith.constant dense<0.000000e+00> : vector<128x64xf32>
    %126 = tpu.matmul %123, %125, %cst_113 {dimension_numbers = #tpu.dot_dimension_numbers<[1], [0], [0], [1], [0, 0, 1, 1], [], []>} : vector<128x32xf32>, vector<32x64xf32>, vector<128x64xf32> -> vector<128x64xf32>
    %127 = arith.addf %121, %126 : vector<128x64xf32>
    %c0_114 = arith.constant 0 : index
    %c0_115 = arith.constant 0 : index
    %c2_116 = arith.constant 2 : index
    %c0_117 = arith.constant 0 : index
    %128 = vector.load %arg11[%c0_114, %c0_115, %c2_116, %c0_117] : memref<2x12x16x32xf32, #tpu.memory_space<vmem>>, vector<2x8x8x32xf32>
    %129 = vector.shape_cast %128 : vector<2x8x8x32xf32> to vector<128x32xf32>
    %c2_118 = arith.constant 2 : index
    %c0_119 = arith.constant 0 : index
    %c0_120 = arith.constant 0 : index
    %130 = vector.load %arg3[%c2_118, %c0_119, %c0_120] : memref<25x32x64xf32, #tpu.memory_space<vmem>>, vector<1x32x64xf32>
    %131 = vector.shape_cast %130 : vector<1x32x64xf32> to vector<32x64xf32>
    %cst_121 = arith.constant dense<0.000000e+00> : vector<128x64xf32>
    %132 = tpu.matmul %129, %131, %cst_121 {dimension_numbers = #tpu.dot_dimension_numbers<[1], [0], [0], [1], [0, 0, 1, 1], [], []>} : vector<128x32xf32>, vector<32x64xf32>, vector<128x64xf32> -> vector<128x64xf32>
    %133 = arith.addf %127, %132 : vector<128x64xf32>
    %c0_122 = arith.constant 0 : index
    %c0_123 = arith.constant 0 : index
    %c3_124 = arith.constant 3 : index
    %c0_125 = arith.constant 0 : index
    %134 = vector.load %arg11[%c0_122, %c0_123, %c3_124, %c0_125] : memref<2x12x16x32xf32, #tpu.memory_space<vmem>>, vector<2x8x8x32xf32>
    %135 = vector.shape_cast %134 : vector<2x8x8x32xf32> to vector<128x32xf32>
    %c3_126 = arith.constant 3 : index
    %c0_127 = arith.constant 0 : index
    %c0_128 = arith.constant 0 : index
    %136 = vector.load %arg3[%c3_126, %c0_127, %c0_128] : memref<25x32x64xf32, #tpu.memory_space<vmem>>, vector<1x32x64xf32>
    %137 = vector.shape_cast %136 : vector<1x32x64xf32> to vector<32x64xf32>
    %cst_129 = arith.constant dense<0.000000e+00> : vector<128x64xf32>
    %138 = tpu.matmul %135, %137, %cst_129 {dimension_numbers = #tpu.dot_dimension_numbers<[1], [0], [0], [1], [0, 0, 1, 1], [], []>} : vector<128x32xf32>, vector<32x64xf32>, vector<128x64xf32> -> vector<128x64xf32>
    %139 = arith.addf %133, %138 : vector<128x64xf32>
    %c0_130 = arith.constant 0 : index
    %c0_131 = arith.constant 0 : index
    %c4_132 = arith.constant 4 : index
    %c0_133 = arith.constant 0 : index
    %140 = vector.load %arg11[%c0_130, %c0_131, %c4_132, %c0_133] : memref<2x12x16x32xf32, #tpu.memory_space<vmem>>, vector<2x8x8x32xf32>
    %141 = vector.shape_cast %140 : vector<2x8x8x32xf32> to vector<128x32xf32>
    %c4_134 = arith.constant 4 : index
    %c0_135 = arith.constant 0 : index
    %c0_136 = arith.constant 0 : index
    %142 = vector.load %arg3[%c4_134, %c0_135, %c0_136] : memref<25x32x64xf32, #tpu.memory_space<vmem>>, vector<1x32x64xf32>
    %143 = vector.shape_cast %142 : vector<1x32x64xf32> to vector<32x64xf32>
    %cst_137 = arith.constant dense<0.000000e+00> : vector<128x64xf32>
    %144 = tpu.matmul %141, %143, %cst_137 {dimension_numbers = #tpu.dot_dimension_numbers<[1], [0], [0], [1], [0, 0, 1, 1], [], []>} : vector<128x32xf32>, vector<32x64xf32>, vector<128x64xf32> -> vector<128x64xf32>
    %145 = arith.addf %139, %144 : vector<128x64xf32>
    %c0_138 = arith.constant 0 : index
    %c1_139 = arith.constant 1 : index
    %c0_140 = arith.constant 0 : index
    %c0_141 = arith.constant 0 : index
    %146 = vector.load %arg11[%c0_138, %c1_139, %c0_140, %c0_141] : memref<2x12x16x32xf32, #tpu.memory_space<vmem>>, vector<2x8x8x32xf32>
    %147 = vector.shape_cast %146 : vector<2x8x8x32xf32> to vector<128x32xf32>
    %c5_142 = arith.constant 5 : index
    %c0_143 = arith.constant 0 : index
    %c0_144 = arith.constant 0 : index
    %148 = vector.load %arg3[%c5_142, %c0_143, %c0_144] : memref<25x32x64xf32, #tpu.memory_space<vmem>>, vector<1x32x64xf32>
    %149 = vector.shape_cast %148 : vector<1x32x64xf32> to vector<32x64xf32>
    %cst_145 = arith.constant dense<0.000000e+00> : vector<128x64xf32>
    %150 = tpu.matmul %147, %149, %cst_145 {dimension_numbers = #tpu.dot_dimension_numbers<[1], [0], [0], [1], [0, 0, 1, 1], [], []>} : vector<128x32xf32>, vector<32x64xf32>, vector<128x64xf32> -> vector<128x64xf32>
    %151 = arith.addf %145, %150 : vector<128x64xf32>
    %c0_146 = arith.constant 0 : index
    %c1_147 = arith.constant 1 : index
    %c1_148 = arith.constant 1 : index
    %c0_149 = arith.constant 0 : index
    %152 = vector.load %arg11[%c0_146, %c1_147, %c1_148, %c0_149] : memref<2x12x16x32xf32, #tpu.memory_space<vmem>>, vector<2x8x8x32xf32>
    %153 = vector.shape_cast %152 : vector<2x8x8x32xf32> to vector<128x32xf32>
    %c6_150 = arith.constant 6 : index
    %c0_151 = arith.constant 0 : index
    %c0_152 = arith.constant 0 : index
    %154 = vector.load %arg3[%c6_150, %c0_151, %c0_152] : memref<25x32x64xf32, #tpu.memory_space<vmem>>, vector<1x32x64xf32>
    %155 = vector.shape_cast %154 : vector<1x32x64xf32> to vector<32x64xf32>
    %cst_153 = arith.constant dense<0.000000e+00> : vector<128x64xf32>
    %156 = tpu.matmul %153, %155, %cst_153 {dimension_numbers = #tpu.dot_dimension_numbers<[1], [0], [0], [1], [0, 0, 1, 1], [], []>} : vector<128x32xf32>, vector<32x64xf32>, vector<128x64xf32> -> vector<128x64xf32>
    %157 = arith.addf %151, %156 : vector<128x64xf32>
    %c0_154 = arith.constant 0 : index
    %c1_155 = arith.constant 1 : index
    %c2_156 = arith.constant 2 : index
    %c0_157 = arith.constant 0 : index
    %158 = vector.load %arg11[%c0_154, %c1_155, %c2_156, %c0_157] : memref<2x12x16x32xf32, #tpu.memory_space<vmem>>, vector<2x8x8x32xf32>
    %159 = vector.shape_cast %158 : vector<2x8x8x32xf32> to vector<128x32xf32>
    %c7_158 = arith.constant 7 : index
    %c0_159 = arith.constant 0 : index
    %c0_160 = arith.constant 0 : index
    %160 = vector.load %arg3[%c7_158, %c0_159, %c0_160] : memref<25x32x64xf32, #tpu.memory_space<vmem>>, vector<1x32x64xf32>
    %161 = vector.shape_cast %160 : vector<1x32x64xf32> to vector<32x64xf32>
    %cst_161 = arith.constant dense<0.000000e+00> : vector<128x64xf32>
    %162 = tpu.matmul %159, %161, %cst_161 {dimension_numbers = #tpu.dot_dimension_numbers<[1], [0], [0], [1], [0, 0, 1, 1], [], []>} : vector<128x32xf32>, vector<32x64xf32>, vector<128x64xf32> -> vector<128x64xf32>
    %163 = arith.addf %157, %162 : vector<128x64xf32>
    %c0_162 = arith.constant 0 : index
    %c1_163 = arith.constant 1 : index
    %c3_164 = arith.constant 3 : index
    %c0_165 = arith.constant 0 : index
    %164 = vector.load %arg11[%c0_162, %c1_163, %c3_164, %c0_165] : memref<2x12x16x32xf32, #tpu.memory_space<vmem>>, vector<2x8x8x32xf32>
    %165 = vector.shape_cast %164 : vector<2x8x8x32xf32> to vector<128x32xf32>
    %c8_166 = arith.constant 8 : index
    %c0_167 = arith.constant 0 : index
    %c0_168 = arith.constant 0 : index
    %166 = vector.load %arg3[%c8_166, %c0_167, %c0_168] : memref<25x32x64xf32, #tpu.memory_space<vmem>>, vector<1x32x64xf32>
    %167 = vector.shape_cast %166 : vector<1x32x64xf32> to vector<32x64xf32>
    %cst_169 = arith.constant dense<0.000000e+00> : vector<128x64xf32>
    %168 = tpu.matmul %165, %167, %cst_169 {dimension_numbers = #tpu.dot_dimension_numbers<[1], [0], [0], [1], [0, 0, 1, 1], [], []>} : vector<128x32xf32>, vector<32x64xf32>, vector<128x64xf32> -> vector<128x64xf32>
    %169 = arith.addf %163, %168 : vector<128x64xf32>
    %c0_170 = arith.constant 0 : index
    %c1_171 = arith.constant 1 : index
    %c4_172 = arith.constant 4 : index
    %c0_173 = arith.constant 0 : index
    %170 = vector.load %arg11[%c0_170, %c1_171, %c4_172, %c0_173] : memref<2x12x16x32xf32, #tpu.memory_space<vmem>>, vector<2x8x8x32xf32>
    %171 = vector.shape_cast %170 : vector<2x8x8x32xf32> to vector<128x32xf32>
    %c9_174 = arith.constant 9 : index
    %c0_175 = arith.constant 0 : index
    %c0_176 = arith.constant 0 : index
    %172 = vector.load %arg3[%c9_174, %c0_175, %c0_176] : memref<25x32x64xf32, #tpu.memory_space<vmem>>, vector<1x32x64xf32>
    %173 = vector.shape_cast %172 : vector<1x32x64xf32> to vector<32x64xf32>
    %cst_177 = arith.constant dense<0.000000e+00> : vector<128x64xf32>
    %174 = tpu.matmul %171, %173, %cst_177 {dimension_numbers = #tpu.dot_dimension_numbers<[1], [0], [0], [1], [0, 0, 1, 1], [], []>} : vector<128x32xf32>, vector<32x64xf32>, vector<128x64xf32> -> vector<128x64xf32>
    %175 = arith.addf %169, %174 : vector<128x64xf32>
    %c0_178 = arith.constant 0 : index
    %c2_179 = arith.constant 2 : index
    %c0_180 = arith.constant 0 : index
    %c0_181 = arith.constant 0 : index
    %176 = vector.load %arg11[%c0_178, %c2_179, %c0_180, %c0_181] : memref<2x12x16x32xf32, #tpu.memory_space<vmem>>, vector<2x8x8x32xf32>
    %177 = vector.shape_cast %176 : vector<2x8x8x32xf32> to vector<128x32xf32>
    %c10_182 = arith.constant 10 : index
    %c0_183 = arith.constant 0 : index
    %c0_184 = arith.constant 0 : index
    %178 = vector.load %arg3[%c10_182, %c0_183, %c0_184] : memref<25x32x64xf32, #tpu.memory_space<vmem>>, vector<1x32x64xf32>
    %179 = vector.shape_cast %178 : vector<1x32x64xf32> to vector<32x64xf32>
    %cst_185 = arith.constant dense<0.000000e+00> : vector<128x64xf32>
    %180 = tpu.matmul %177, %179, %cst_185 {dimension_numbers = #tpu.dot_dimension_numbers<[1], [0], [0], [1], [0, 0, 1, 1], [], []>} : vector<128x32xf32>, vector<32x64xf32>, vector<128x64xf32> -> vector<128x64xf32>
    %181 = arith.addf %175, %180 : vector<128x64xf32>
    %c0_186 = arith.constant 0 : index
    %c2_187 = arith.constant 2 : index
    %c1_188 = arith.constant 1 : index
    %c0_189 = arith.constant 0 : index
    %182 = vector.load %arg11[%c0_186, %c2_187, %c1_188, %c0_189] : memref<2x12x16x32xf32, #tpu.memory_space<vmem>>, vector<2x8x8x32xf32>
    %183 = vector.shape_cast %182 : vector<2x8x8x32xf32> to vector<128x32xf32>
    %c11_190 = arith.constant 11 : index
    %c0_191 = arith.constant 0 : index
    %c0_192 = arith.constant 0 : index
    %184 = vector.load %arg3[%c11_190, %c0_191, %c0_192] : memref<25x32x64xf32, #tpu.memory_space<vmem>>, vector<1x32x64xf32>
    %185 = vector.shape_cast %184 : vector<1x32x64xf32> to vector<32x64xf32>
    %cst_193 = arith.constant dense<0.000000e+00> : vector<128x64xf32>
    %186 = tpu.matmul %183, %185, %cst_193 {dimension_numbers = #tpu.dot_dimension_numbers<[1], [0], [0], [1], [0, 0, 1, 1], [], []>} : vector<128x32xf32>, vector<32x64xf32>, vector<128x64xf32> -> vector<128x64xf32>
    %187 = arith.addf %181, %186 : vector<128x64xf32>
    %c0_194 = arith.constant 0 : index
    %c2_195 = arith.constant 2 : index
    %c2_196 = arith.constant 2 : index
    %c0_197 = arith.constant 0 : index
    %188 = vector.load %arg11[%c0_194, %c2_195, %c2_196, %c0_197] : memref<2x12x16x32xf32, #tpu.memory_space<vmem>>, vector<2x8x8x32xf32>
    %189 = vector.shape_cast %188 : vector<2x8x8x32xf32> to vector<128x32xf32>
    %c12 = arith.constant 12 : index
    %c0_198 = arith.constant 0 : index
    %c0_199 = arith.constant 0 : index
    %190 = vector.load %arg3[%c12, %c0_198, %c0_199] : memref<25x32x64xf32, #tpu.memory_space<vmem>>, vector<1x32x64xf32>
    %191 = vector.shape_cast %190 : vector<1x32x64xf32> to vector<32x64xf32>
    %cst_200 = arith.constant dense<0.000000e+00> : vector<128x64xf32>
    %192 = tpu.matmul %189, %191, %cst_200 {dimension_numbers = #tpu.dot_dimension_numbers<[1], [0], [0], [1], [0, 0, 1, 1], [], []>} : vector<128x32xf32>, vector<32x64xf32>, vector<128x64xf32> -> vector<128x64xf32>
    %193 = arith.addf %187, %192 : vector<128x64xf32>
    %c0_201 = arith.constant 0 : index
    %c2_202 = arith.constant 2 : index
    %c3_203 = arith.constant 3 : index
    %c0_204 = arith.constant 0 : index
    %194 = vector.load %arg11[%c0_201, %c2_202, %c3_203, %c0_204] : memref<2x12x16x32xf32, #tpu.memory_space<vmem>>, vector<2x8x8x32xf32>
    %195 = vector.shape_cast %194 : vector<2x8x8x32xf32> to vector<128x32xf32>
    %c13 = arith.constant 13 : index
    %c0_205 = arith.constant 0 : index
    %c0_206 = arith.constant 0 : index
    %196 = vector.load %arg3[%c13, %c0_205, %c0_206] : memref<25x32x64xf32, #tpu.memory_space<vmem>>, vector<1x32x64xf32>
    %197 = vector.shape_cast %196 : vector<1x32x64xf32> to vector<32x64xf32>
    %cst_207 = arith.constant dense<0.000000e+00> : vector<128x64xf32>
    %198 = tpu.matmul %195, %197, %cst_207 {dimension_numbers = #tpu.dot_dimension_numbers<[1], [0], [0], [1], [0, 0, 1, 1], [], []>} : vector<128x32xf32>, vector<32x64xf32>, vector<128x64xf32> -> vector<128x64xf32>
    %199 = arith.addf %193, %198 : vector<128x64xf32>
    %c0_208 = arith.constant 0 : index
    %c2_209 = arith.constant 2 : index
    %c4_210 = arith.constant 4 : index
    %c0_211 = arith.constant 0 : index
    %200 = vector.load %arg11[%c0_208, %c2_209, %c4_210, %c0_211] : memref<2x12x16x32xf32, #tpu.memory_space<vmem>>, vector<2x8x8x32xf32>
    %201 = vector.shape_cast %200 : vector<2x8x8x32xf32> to vector<128x32xf32>
    %c14 = arith.constant 14 : index
    %c0_212 = arith.constant 0 : index
    %c0_213 = arith.constant 0 : index
    %202 = vector.load %arg3[%c14, %c0_212, %c0_213] : memref<25x32x64xf32, #tpu.memory_space<vmem>>, vector<1x32x64xf32>
    %203 = vector.shape_cast %202 : vector<1x32x64xf32> to vector<32x64xf32>
    %cst_214 = arith.constant dense<0.000000e+00> : vector<128x64xf32>
    %204 = tpu.matmul %201, %203, %cst_214 {dimension_numbers = #tpu.dot_dimension_numbers<[1], [0], [0], [1], [0, 0, 1, 1], [], []>} : vector<128x32xf32>, vector<32x64xf32>, vector<128x64xf32> -> vector<128x64xf32>
    %205 = arith.addf %199, %204 : vector<128x64xf32>
    %c0_215 = arith.constant 0 : index
    %c3_216 = arith.constant 3 : index
    %c0_217 = arith.constant 0 : index
    %c0_218 = arith.constant 0 : index
    %206 = vector.load %arg11[%c0_215, %c3_216, %c0_217, %c0_218] : memref<2x12x16x32xf32, #tpu.memory_space<vmem>>, vector<2x8x8x32xf32>
    %207 = vector.shape_cast %206 : vector<2x8x8x32xf32> to vector<128x32xf32>
    %c15 = arith.constant 15 : index
    %c0_219 = arith.constant 0 : index
    %c0_220 = arith.constant 0 : index
    %208 = vector.load %arg3[%c15, %c0_219, %c0_220] : memref<25x32x64xf32, #tpu.memory_space<vmem>>, vector<1x32x64xf32>
    %209 = vector.shape_cast %208 : vector<1x32x64xf32> to vector<32x64xf32>
    %cst_221 = arith.constant dense<0.000000e+00> : vector<128x64xf32>
    %210 = tpu.matmul %207, %209, %cst_221 {dimension_numbers = #tpu.dot_dimension_numbers<[1], [0], [0], [1], [0, 0, 1, 1], [], []>} : vector<128x32xf32>, vector<32x64xf32>, vector<128x64xf32> -> vector<128x64xf32>
    %211 = arith.addf %205, %210 : vector<128x64xf32>
    %c0_222 = arith.constant 0 : index
    %c3_223 = arith.constant 3 : index
    %c1_224 = arith.constant 1 : index
    %c0_225 = arith.constant 0 : index
    %212 = vector.load %arg11[%c0_222, %c3_223, %c1_224, %c0_225] : memref<2x12x16x32xf32, #tpu.memory_space<vmem>>, vector<2x8x8x32xf32>
    %213 = vector.shape_cast %212 : vector<2x8x8x32xf32> to vector<128x32xf32>
    %c16 = arith.constant 16 : index
    %c0_226 = arith.constant 0 : index
    %c0_227 = arith.constant 0 : index
    %214 = vector.load %arg3[%c16, %c0_226, %c0_227] : memref<25x32x64xf32, #tpu.memory_space<vmem>>, vector<1x32x64xf32>
    %215 = vector.shape_cast %214 : vector<1x32x64xf32> to vector<32x64xf32>
    %cst_228 = arith.constant dense<0.000000e+00> : vector<128x64xf32>
    %216 = tpu.matmul %213, %215, %cst_228 {dimension_numbers = #tpu.dot_dimension_numbers<[1], [0], [0], [1], [0, 0, 1, 1], [], []>} : vector<128x32xf32>, vector<32x64xf32>, vector<128x64xf32> -> vector<128x64xf32>
    %217 = arith.addf %211, %216 : vector<128x64xf32>
    %c0_229 = arith.constant 0 : index
    %c3_230 = arith.constant 3 : index
    %c2_231 = arith.constant 2 : index
    %c0_232 = arith.constant 0 : index
    %218 = vector.load %arg11[%c0_229, %c3_230, %c2_231, %c0_232] : memref<2x12x16x32xf32, #tpu.memory_space<vmem>>, vector<2x8x8x32xf32>
    %219 = vector.shape_cast %218 : vector<2x8x8x32xf32> to vector<128x32xf32>
    %c17 = arith.constant 17 : index
    %c0_233 = arith.constant 0 : index
    %c0_234 = arith.constant 0 : index
    %220 = vector.load %arg3[%c17, %c0_233, %c0_234] : memref<25x32x64xf32, #tpu.memory_space<vmem>>, vector<1x32x64xf32>
    %221 = vector.shape_cast %220 : vector<1x32x64xf32> to vector<32x64xf32>
    %cst_235 = arith.constant dense<0.000000e+00> : vector<128x64xf32>
    %222 = tpu.matmul %219, %221, %cst_235 {dimension_numbers = #tpu.dot_dimension_numbers<[1], [0], [0], [1], [0, 0, 1, 1], [], []>} : vector<128x32xf32>, vector<32x64xf32>, vector<128x64xf32> -> vector<128x64xf32>
    %223 = arith.addf %217, %222 : vector<128x64xf32>
    %c0_236 = arith.constant 0 : index
    %c3_237 = arith.constant 3 : index
    %c3_238 = arith.constant 3 : index
    %c0_239 = arith.constant 0 : index
    %224 = vector.load %arg11[%c0_236, %c3_237, %c3_238, %c0_239] : memref<2x12x16x32xf32, #tpu.memory_space<vmem>>, vector<2x8x8x32xf32>
    %225 = vector.shape_cast %224 : vector<2x8x8x32xf32> to vector<128x32xf32>
    %c18 = arith.constant 18 : index
    %c0_240 = arith.constant 0 : index
    %c0_241 = arith.constant 0 : index
    %226 = vector.load %arg3[%c18, %c0_240, %c0_241] : memref<25x32x64xf32, #tpu.memory_space<vmem>>, vector<1x32x64xf32>
    %227 = vector.shape_cast %226 : vector<1x32x64xf32> to vector<32x64xf32>
    %cst_242 = arith.constant dense<0.000000e+00> : vector<128x64xf32>
    %228 = tpu.matmul %225, %227, %cst_242 {dimension_numbers = #tpu.dot_dimension_numbers<[1], [0], [0], [1], [0, 0, 1, 1], [], []>} : vector<128x32xf32>, vector<32x64xf32>, vector<128x64xf32> -> vector<128x64xf32>
    %229 = arith.addf %223, %228 : vector<128x64xf32>
    %c0_243 = arith.constant 0 : index
    %c3_244 = arith.constant 3 : index
    %c4_245 = arith.constant 4 : index
    %c0_246 = arith.constant 0 : index
    %230 = vector.load %arg11[%c0_243, %c3_244, %c4_245, %c0_246] : memref<2x12x16x32xf32, #tpu.memory_space<vmem>>, vector<2x8x8x32xf32>
    %231 = vector.shape_cast %230 : vector<2x8x8x32xf32> to vector<128x32xf32>
    %c19 = arith.constant 19 : index
    %c0_247 = arith.constant 0 : index
    %c0_248 = arith.constant 0 : index
    %232 = vector.load %arg3[%c19, %c0_247, %c0_248] : memref<25x32x64xf32, #tpu.memory_space<vmem>>, vector<1x32x64xf32>
    %233 = vector.shape_cast %232 : vector<1x32x64xf32> to vector<32x64xf32>
    %cst_249 = arith.constant dense<0.000000e+00> : vector<128x64xf32>
    %234 = tpu.matmul %231, %233, %cst_249 {dimension_numbers = #tpu.dot_dimension_numbers<[1], [0], [0], [1], [0, 0, 1, 1], [], []>} : vector<128x32xf32>, vector<32x64xf32>, vector<128x64xf32> -> vector<128x64xf32>
    %235 = arith.addf %229, %234 : vector<128x64xf32>
    %c0_250 = arith.constant 0 : index
    %c4_251 = arith.constant 4 : index
    %c0_252 = arith.constant 0 : index
    %c0_253 = arith.constant 0 : index
    %236 = vector.load %arg11[%c0_250, %c4_251, %c0_252, %c0_253] : memref<2x12x16x32xf32, #tpu.memory_space<vmem>>, vector<2x8x8x32xf32>
    %237 = vector.shape_cast %236 : vector<2x8x8x32xf32> to vector<128x32xf32>
    %c20 = arith.constant 20 : index
    %c0_254 = arith.constant 0 : index
    %c0_255 = arith.constant 0 : index
    %238 = vector.load %arg3[%c20, %c0_254, %c0_255] : memref<25x32x64xf32, #tpu.memory_space<vmem>>, vector<1x32x64xf32>
    %239 = vector.shape_cast %238 : vector<1x32x64xf32> to vector<32x64xf32>
    %cst_256 = arith.constant dense<0.000000e+00> : vector<128x64xf32>
    %240 = tpu.matmul %237, %239, %cst_256 {dimension_numbers = #tpu.dot_dimension_numbers<[1], [0], [0], [1], [0, 0, 1, 1], [], []>} : vector<128x32xf32>, vector<32x64xf32>, vector<128x64xf32> -> vector<128x64xf32>
    %241 = arith.addf %235, %240 : vector<128x64xf32>
    %c0_257 = arith.constant 0 : index
    %c4_258 = arith.constant 4 : index
    %c1_259 = arith.constant 1 : index
    %c0_260 = arith.constant 0 : index
    %242 = vector.load %arg11[%c0_257, %c4_258, %c1_259, %c0_260] : memref<2x12x16x32xf32, #tpu.memory_space<vmem>>, vector<2x8x8x32xf32>
    %243 = vector.shape_cast %242 : vector<2x8x8x32xf32> to vector<128x32xf32>
    %c21 = arith.constant 21 : index
    %c0_261 = arith.constant 0 : index
    %c0_262 = arith.constant 0 : index
    %244 = vector.load %arg3[%c21, %c0_261, %c0_262] : memref<25x32x64xf32, #tpu.memory_space<vmem>>, vector<1x32x64xf32>
    %245 = vector.shape_cast %244 : vector<1x32x64xf32> to vector<32x64xf32>
    %cst_263 = arith.constant dense<0.000000e+00> : vector<128x64xf32>
    %246 = tpu.matmul %243, %245, %cst_263 {dimension_numbers = #tpu.dot_dimension_numbers<[1], [0], [0], [1], [0, 0, 1, 1], [], []>} : vector<128x32xf32>, vector<32x64xf32>, vector<128x64xf32> -> vector<128x64xf32>
    %247 = arith.addf %241, %246 : vector<128x64xf32>
    %c0_264 = arith.constant 0 : index
    %c4_265 = arith.constant 4 : index
    %c2_266 = arith.constant 2 : index
    %c0_267 = arith.constant 0 : index
    %248 = vector.load %arg11[%c0_264, %c4_265, %c2_266, %c0_267] : memref<2x12x16x32xf32, #tpu.memory_space<vmem>>, vector<2x8x8x32xf32>
    %249 = vector.shape_cast %248 : vector<2x8x8x32xf32> to vector<128x32xf32>
    %c22 = arith.constant 22 : index
    %c0_268 = arith.constant 0 : index
    %c0_269 = arith.constant 0 : index
    %250 = vector.load %arg3[%c22, %c0_268, %c0_269] : memref<25x32x64xf32, #tpu.memory_space<vmem>>, vector<1x32x64xf32>
    %251 = vector.shape_cast %250 : vector<1x32x64xf32> to vector<32x64xf32>
    %cst_270 = arith.constant dense<0.000000e+00> : vector<128x64xf32>
    %252 = tpu.matmul %249, %251, %cst_270 {dimension_numbers = #tpu.dot_dimension_numbers<[1], [0], [0], [1], [0, 0, 1, 1], [], []>} : vector<128x32xf32>, vector<32x64xf32>, vector<128x64xf32> -> vector<128x64xf32>
    %253 = arith.addf %247, %252 : vector<128x64xf32>
    %c0_271 = arith.constant 0 : index
    %c4_272 = arith.constant 4 : index
    %c3_273 = arith.constant 3 : index
    %c0_274 = arith.constant 0 : index
    %254 = vector.load %arg11[%c0_271, %c4_272, %c3_273, %c0_274] : memref<2x12x16x32xf32, #tpu.memory_space<vmem>>, vector<2x8x8x32xf32>
    %255 = vector.shape_cast %254 : vector<2x8x8x32xf32> to vector<128x32xf32>
    %c23 = arith.constant 23 : index
    %c0_275 = arith.constant 0 : index
    %c0_276 = arith.constant 0 : index
    %256 = vector.load %arg3[%c23, %c0_275, %c0_276] : memref<25x32x64xf32, #tpu.memory_space<vmem>>, vector<1x32x64xf32>
    %257 = vector.shape_cast %256 : vector<1x32x64xf32> to vector<32x64xf32>
    %cst_277 = arith.constant dense<0.000000e+00> : vector<128x64xf32>
    %258 = tpu.matmul %255, %257, %cst_277 {dimension_numbers = #tpu.dot_dimension_numbers<[1], [0], [0], [1], [0, 0, 1, 1], [], []>} : vector<128x32xf32>, vector<32x64xf32>, vector<128x64xf32> -> vector<128x64xf32>
    %259 = arith.addf %253, %258 : vector<128x64xf32>
    %c0_278 = arith.constant 0 : index
    %c4_279 = arith.constant 4 : index
    %c4_280 = arith.constant 4 : index
    %c0_281 = arith.constant 0 : index
    %260 = vector.load %arg11[%c0_278, %c4_279, %c4_280, %c0_281] : memref<2x12x16x32xf32, #tpu.memory_space<vmem>>, vector<2x8x8x32xf32>
    %261 = vector.shape_cast %260 : vector<2x8x8x32xf32> to vector<128x32xf32>
    %c24 = arith.constant 24 : index
    %c0_282 = arith.constant 0 : index
    %c0_283 = arith.constant 0 : index
    %262 = vector.load %arg3[%c24, %c0_282, %c0_283] : memref<25x32x64xf32, #tpu.memory_space<vmem>>, vector<1x32x64xf32>
    %263 = vector.shape_cast %262 : vector<1x32x64xf32> to vector<32x64xf32>
    %cst_284 = arith.constant dense<0.000000e+00> : vector<128x64xf32>
    %264 = tpu.matmul %261, %263, %cst_284 {dimension_numbers = #tpu.dot_dimension_numbers<[1], [0], [0], [1], [0, 0, 1, 1], [], []>} : vector<128x32xf32>, vector<32x64xf32>, vector<128x64xf32> -> vector<128x64xf32>
    %265 = arith.addf %259, %264 : vector<128x64xf32>
    %c0_285 = arith.constant 0 : index
    %c0_286 = arith.constant 0 : index
    %266 = vector.load %arg4[%c0_285, %c0_286] : memref<1x64xf32, #tpu.memory_space<vmem>>, vector<1x64xf32>
    %267 = vector.broadcast %266 : vector<1x64xf32> to vector<128x64xf32>
    %268 = arith.addf %265, %267 : vector<128x64xf32>
    %cst_287 = arith.constant 0.000000e+00 : f32
    %269 = vector.broadcast %cst_287 : f32 to vector<128x64xf32>
    %270 = arith.maximumf %268, %269 : vector<128x64xf32>
    %271 = vector.extract_strided_slice %270 {offsets = [0, 0], sizes = [8, 64], strides = [1, 1]} : vector<128x64xf32> to vector<8x64xf32>
    %c0_288 = arith.constant 0 : index
    %c0_289 = arith.constant 0 : index
    %c0_290 = arith.constant 0 : index
    %c0_291 = arith.constant 0 : index
    %272 = vector.load %arg12[%c0_288, %c0_289, %c0_290, %c0_291] : memref<2x8x8x64xf32, #tpu.memory_space<vmem>>, vector<1x1x8x64xf32>
    %273 = vector.shape_cast %272 : vector<1x1x8x64xf32> to vector<8x64xf32>
    %274 = vector.shape_cast %271 : vector<8x64xf32> to vector<1x1x8x64xf32>
    tpu.vector_store %arg12[%c0_288, %c0_289, %c0_290, %c0_291], %274 {strides = array<i32>} : memref<2x8x8x64xf32, #tpu.memory_space<vmem>>, vector<1x1x8x64xf32>,
    %275 = vector.extract_strided_slice %270 {offsets = [8, 0], sizes = [8, 64], strides = [1, 1]} : vector<128x64xf32> to vector<8x64xf32>
    %c0_292 = arith.constant 0 : index
    %c1_293 = arith.constant 1 : index
    %c0_294 = arith.constant 0 : index
    %c0_295 = arith.constant 0 : index
    %276 = vector.load %arg12[%c0_292, %c1_293, %c0_294, %c0_295] : memref<2x8x8x64xf32, #tpu.memory_space<vmem>>, vector<1x1x8x64xf32>
    %277 = vector.shape_cast %276 : vector<1x1x8x64xf32> to vector<8x64xf32>
    %278 = vector.shape_cast %275 : vector<8x64xf32> to vector<1x1x8x64xf32>
    tpu.vector_store %arg12[%c0_292, %c1_293, %c0_294, %c0_295], %278 {strides = array<i32>} : memref<2x8x8x64xf32, #tpu.memory_space<vmem>>, vector<1x1x8x64xf32>,
    %279 = vector.extract_strided_slice %270 {offsets = [16, 0], sizes = [8, 64], strides = [1, 1]} : vector<128x64xf32> to vector<8x64xf32>
    %c0_296 = arith.constant 0 : index
    %c2_297 = arith.constant 2 : index
    %c0_298 = arith.constant 0 : index
    %c0_299 = arith.constant 0 : index
    %280 = vector.load %arg12[%c0_296, %c2_297, %c0_298, %c0_299] : memref<2x8x8x64xf32, #tpu.memory_space<vmem>>, vector<1x1x8x64xf32>
    %281 = vector.shape_cast %280 : vector<1x1x8x64xf32> to vector<8x64xf32>
    %282 = vector.shape_cast %279 : vector<8x64xf32> to vector<1x1x8x64xf32>
    tpu.vector_store %arg12[%c0_296, %c2_297, %c0_298, %c0_299], %282 {strides = array<i32>} : memref<2x8x8x64xf32, #tpu.memory_space<vmem>>, vector<1x1x8x64xf32>,
    %283 = vector.extract_strided_slice %270 {offsets = [24, 0], sizes = [8, 64], strides = [1, 1]} : vector<128x64xf32> to vector<8x64xf32>
    %c0_300 = arith.constant 0 : index
    %c3_301 = arith.constant 3 : index
    %c0_302 = arith.constant 0 : index
    %c0_303 = arith.constant 0 : index
    %284 = vector.load %arg12[%c0_300, %c3_301, %c0_302, %c0_303] : memref<2x8x8x64xf32, #tpu.memory_space<vmem>>, vector<1x1x8x64xf32>
    %285 = vector.shape_cast %284 : vector<1x1x8x64xf32> to vector<8x64xf32>
    %286 = vector.shape_cast %283 : vector<8x64xf32> to vector<1x1x8x64xf32>
    tpu.vector_store %arg12[%c0_300, %c3_301, %c0_302, %c0_303], %286 {strides = array<i32>} : memref<2x8x8x64xf32, #tpu.memory_space<vmem>>, vector<1x1x8x64xf32>,
    %287 = vector.extract_strided_slice %270 {offsets = [32, 0], sizes = [8, 64], strides = [1, 1]} : vector<128x64xf32> to vector<8x64xf32>
    %c0_304 = arith.constant 0 : index
    %c4_305 = arith.constant 4 : index
    %c0_306 = arith.constant 0 : index
    %c0_307 = arith.constant 0 : index
    %288 = vector.load %arg12[%c0_304, %c4_305, %c0_306, %c0_307] : memref<2x8x8x64xf32, #tpu.memory_space<vmem>>, vector<1x1x8x64xf32>
    %289 = vector.shape_cast %288 : vector<1x1x8x64xf32> to vector<8x64xf32>
    %290 = vector.shape_cast %287 : vector<8x64xf32> to vector<1x1x8x64xf32>
    tpu.vector_store %arg12[%c0_304, %c4_305, %c0_306, %c0_307], %290 {strides = array<i32>} : memref<2x8x8x64xf32, #tpu.memory_space<vmem>>, vector<1x1x8x64xf32>,
    %291 = vector.extract_strided_slice %270 {offsets = [40, 0], sizes = [8, 64], strides = [1, 1]} : vector<128x64xf32> to vector<8x64xf32>
    %c0_308 = arith.constant 0 : index
    %c5_309 = arith.constant 5 : index
    %c0_310 = arith.constant 0 : index
    %c0_311 = arith.constant 0 : index
    %292 = vector.load %arg12[%c0_308, %c5_309, %c0_310, %c0_311] : memref<2x8x8x64xf32, #tpu.memory_space<vmem>>, vector<1x1x8x64xf32>
    %293 = vector.shape_cast %292 : vector<1x1x8x64xf32> to vector<8x64xf32>
    %294 = vector.shape_cast %291 : vector<8x64xf32> to vector<1x1x8x64xf32>
    tpu.vector_store %arg12[%c0_308, %c5_309, %c0_310, %c0_311], %294 {strides = array<i32>} : memref<2x8x8x64xf32, #tpu.memory_space<vmem>>, vector<1x1x8x64xf32>,
    %295 = vector.extract_strided_slice %270 {offsets = [48, 0], sizes = [8, 64], strides = [1, 1]} : vector<128x64xf32> to vector<8x64xf32>
    %c0_312 = arith.constant 0 : index
    %c6_313 = arith.constant 6 : index
    %c0_314 = arith.constant 0 : index
    %c0_315 = arith.constant 0 : index
    %296 = vector.load %arg12[%c0_312, %c6_313, %c0_314, %c0_315] : memref<2x8x8x64xf32, #tpu.memory_space<vmem>>, vector<1x1x8x64xf32>
    %297 = vector.shape_cast %296 : vector<1x1x8x64xf32> to vector<8x64xf32>
    %298 = vector.shape_cast %295 : vector<8x64xf32> to vector<1x1x8x64xf32>
    tpu.vector_store %arg12[%c0_312, %c6_313, %c0_314, %c0_315], %298 {strides = array<i32>} : memref<2x8x8x64xf32, #tpu.memory_space<vmem>>, vector<1x1x8x64xf32>,
    %299 = vector.extract_strided_slice %270 {offsets = [56, 0], sizes = [8, 64], strides = [1, 1]} : vector<128x64xf32> to vector<8x64xf32>
    %c0_316 = arith.constant 0 : index
    %c7_317 = arith.constant 7 : index
    %c0_318 = arith.constant 0 : index
    %c0_319 = arith.constant 0 : index
    %300 = vector.load %arg12[%c0_316, %c7_317, %c0_318, %c0_319] : memref<2x8x8x64xf32, #tpu.memory_space<vmem>>, vector<1x1x8x64xf32>
    %301 = vector.shape_cast %300 : vector<1x1x8x64xf32> to vector<8x64xf32>
    %302 = vector.shape_cast %299 : vector<8x64xf32> to vector<1x1x8x64xf32>
    tpu.vector_store %arg12[%c0_316, %c7_317, %c0_318, %c0_319], %302 {strides = array<i32>} : memref<2x8x8x64xf32, #tpu.memory_space<vmem>>, vector<1x1x8x64xf32>,
    %303 = vector.extract_strided_slice %270 {offsets = [64, 0], sizes = [8, 64], strides = [1, 1]} : vector<128x64xf32> to vector<8x64xf32>
    %c1_320 = arith.constant 1 : index
    %c0_321 = arith.constant 0 : index
    %c0_322 = arith.constant 0 : index
    %c0_323 = arith.constant 0 : index
    %304 = vector.load %arg12[%c1_320, %c0_321, %c0_322, %c0_323] : memref<2x8x8x64xf32, #tpu.memory_space<vmem>>, vector<1x1x8x64xf32>
    %305 = vector.shape_cast %304 : vector<1x1x8x64xf32> to vector<8x64xf32>
    %306 = vector.shape_cast %303 : vector<8x64xf32> to vector<1x1x8x64xf32>
    tpu.vector_store %arg12[%c1_320, %c0_321, %c0_322, %c0_323], %306 {strides = array<i32>} : memref<2x8x8x64xf32, #tpu.memory_space<vmem>>, vector<1x1x8x64xf32>,
    %307 = vector.extract_strided_slice %270 {offsets = [72, 0], sizes = [8, 64], strides = [1, 1]} : vector<128x64xf32> to vector<8x64xf32>
    %c1_324 = arith.constant 1 : index
    %c1_325 = arith.constant 1 : index
    %c0_326 = arith.constant 0 : index
    %c0_327 = arith.constant 0 : index
    %308 = vector.load %arg12[%c1_324, %c1_325, %c0_326, %c0_327] : memref<2x8x8x64xf32, #tpu.memory_space<vmem>>, vector<1x1x8x64xf32>
    %309 = vector.shape_cast %308 : vector<1x1x8x64xf32> to vector<8x64xf32>
    %310 = vector.shape_cast %307 : vector<8x64xf32> to vector<1x1x8x64xf32>
    tpu.vector_store %arg12[%c1_324, %c1_325, %c0_326, %c0_327], %310 {strides = array<i32>} : memref<2x8x8x64xf32, #tpu.memory_space<vmem>>, vector<1x1x8x64xf32>,
    %311 = vector.extract_strided_slice %270 {offsets = [80, 0], sizes = [8, 64], strides = [1, 1]} : vector<128x64xf32> to vector<8x64xf32>
    %c1_328 = arith.constant 1 : index
    %c2_329 = arith.constant 2 : index
    %c0_330 = arith.constant 0 : index
    %c0_331 = arith.constant 0 : index
    %312 = vector.load %arg12[%c1_328, %c2_329, %c0_330, %c0_331] : memref<2x8x8x64xf32, #tpu.memory_space<vmem>>, vector<1x1x8x64xf32>
    %313 = vector.shape_cast %312 : vector<1x1x8x64xf32> to vector<8x64xf32>
    %314 = vector.shape_cast %311 : vector<8x64xf32> to vector<1x1x8x64xf32>
    tpu.vector_store %arg12[%c1_328, %c2_329, %c0_330, %c0_331], %314 {strides = array<i32>} : memref<2x8x8x64xf32, #tpu.memory_space<vmem>>, vector<1x1x8x64xf32>,
    %315 = vector.extract_strided_slice %270 {offsets = [88, 0], sizes = [8, 64], strides = [1, 1]} : vector<128x64xf32> to vector<8x64xf32>
    %c1_332 = arith.constant 1 : index
    %c3_333 = arith.constant 3 : index
    %c0_334 = arith.constant 0 : index
    %c0_335 = arith.constant 0 : index
    %316 = vector.load %arg12[%c1_332, %c3_333, %c0_334, %c0_335] : memref<2x8x8x64xf32, #tpu.memory_space<vmem>>, vector<1x1x8x64xf32>
    %317 = vector.shape_cast %316 : vector<1x1x8x64xf32> to vector<8x64xf32>
    %318 = vector.shape_cast %315 : vector<8x64xf32> to vector<1x1x8x64xf32>
    tpu.vector_store %arg12[%c1_332, %c3_333, %c0_334, %c0_335], %318 {strides = array<i32>} : memref<2x8x8x64xf32, #tpu.memory_space<vmem>>, vector<1x1x8x64xf32>,
    %319 = vector.extract_strided_slice %270 {offsets = [96, 0], sizes = [8, 64], strides = [1, 1]} : vector<128x64xf32> to vector<8x64xf32>
    %c1_336 = arith.constant 1 : index
    %c4_337 = arith.constant 4 : index
    %c0_338 = arith.constant 0 : index
    %c0_339 = arith.constant 0 : index
    %320 = vector.load %arg12[%c1_336, %c4_337, %c0_338, %c0_339] : memref<2x8x8x64xf32, #tpu.memory_space<vmem>>, vector<1x1x8x64xf32>
    %321 = vector.shape_cast %320 : vector<1x1x8x64xf32> to vector<8x64xf32>
    %322 = vector.shape_cast %319 : vector<8x64xf32> to vector<1x1x8x64xf32>
    tpu.vector_store %arg12[%c1_336, %c4_337, %c0_338, %c0_339], %322 {strides = array<i32>} : memref<2x8x8x64xf32, #tpu.memory_space<vmem>>, vector<1x1x8x64xf32>,
    %323 = vector.extract_strided_slice %270 {offsets = [104, 0], sizes = [8, 64], strides = [1, 1]} : vector<128x64xf32> to vector<8x64xf32>
    %c1_340 = arith.constant 1 : index
    %c5_341 = arith.constant 5 : index
    %c0_342 = arith.constant 0 : index
    %c0_343 = arith.constant 0 : index
    %324 = vector.load %arg12[%c1_340, %c5_341, %c0_342, %c0_343] : memref<2x8x8x64xf32, #tpu.memory_space<vmem>>, vector<1x1x8x64xf32>
    %325 = vector.shape_cast %324 : vector<1x1x8x64xf32> to vector<8x64xf32>
    %326 = vector.shape_cast %323 : vector<8x64xf32> to vector<1x1x8x64xf32>
    tpu.vector_store %arg12[%c1_340, %c5_341, %c0_342, %c0_343], %326 {strides = array<i32>} : memref<2x8x8x64xf32, #tpu.memory_space<vmem>>, vector<1x1x8x64xf32>,
    %327 = vector.extract_strided_slice %270 {offsets = [112, 0], sizes = [8, 64], strides = [1, 1]} : vector<128x64xf32> to vector<8x64xf32>
    %c1_344 = arith.constant 1 : index
    %c6_345 = arith.constant 6 : index
    %c0_346 = arith.constant 0 : index
    %c0_347 = arith.constant 0 : index
    %328 = vector.load %arg12[%c1_344, %c6_345, %c0_346, %c0_347] : memref<2x8x8x64xf32, #tpu.memory_space<vmem>>, vector<1x1x8x64xf32>
    %329 = vector.shape_cast %328 : vector<1x1x8x64xf32> to vector<8x64xf32>
    %330 = vector.shape_cast %327 : vector<8x64xf32> to vector<1x1x8x64xf32>
    tpu.vector_store %arg12[%c1_344, %c6_345, %c0_346, %c0_347], %330 {strides = array<i32>} : memref<2x8x8x64xf32, #tpu.memory_space<vmem>>, vector<1x1x8x64xf32>,
    %331 = vector.extract_strided_slice %270 {offsets = [120, 0], sizes = [8, 64], strides = [1, 1]} : vector<128x64xf32> to vector<8x64xf32>
    %c1_348 = arith.constant 1 : index
    %c7_349 = arith.constant 7 : index
    %c0_350 = arith.constant 0 : index
    %c0_351 = arith.constant 0 : index
    %332 = vector.load %arg12[%c1_348, %c7_349, %c0_350, %c0_351] : memref<2x8x8x64xf32, #tpu.memory_space<vmem>>, vector<1x1x8x64xf32>
    %333 = vector.shape_cast %332 : vector<1x1x8x64xf32> to vector<8x64xf32>
    %334 = vector.shape_cast %331 : vector<8x64xf32> to vector<1x1x8x64xf32>
    tpu.vector_store %arg12[%c1_348, %c7_349, %c0_350, %c0_351], %334 {strides = array<i32>} : memref<2x8x8x64xf32, #tpu.memory_space<vmem>>, vector<1x1x8x64xf32>,
    %c0_i32_352 = arith.constant 0 : i32
    %335 = tpu.memref_slice %arg13[%c0_i32_352] : memref<1x!tpu.dma_semaphore, #tpu.memory_space<semaphore_mem>> -> memref<1x!tpu.dma_semaphore, #tpu.memory_space<semaphore_mem>>
    %336 = tpu.memref_squeeze %335 : memref<1x!tpu.dma_semaphore, #tpu.memory_space<semaphore_mem>> -> memref<!tpu.dma_semaphore, #tpu.memory_space<semaphore_mem>>
    tpu.wait_dma2 semaphore(%336 : memref<!tpu.dma_semaphore, #tpu.memory_space<semaphore_mem>>) src(%arg5 : memref<1024x512xf32, #tpu.memory_space<any>>) dst(%arg10 : memref<1024x512xf32, #tpu.memory_space<vmem>>)
    %cst_353 = arith.constant 0.000000e+00 : f32
    %337 = vector.broadcast %cst_353 : f32 to vector<2x512xf32>
    %c0_354 = arith.constant 0 : index
    %c0_355 = arith.constant 0 : index
    %c0_356 = arith.constant 0 : index
    %c0_357 = arith.constant 0 : index
    %338 = vector.load %arg12[%c0_354, %c0_355, %c0_356, %c0_357] : memref<2x8x8x64xf32, #tpu.memory_space<vmem>>, vector<2x1x1x64xf32>
    %339 = vector.shape_cast %338 : vector<2x1x1x64xf32> to vector<2x64xf32>
    %c0_358 = arith.constant 0 : index
    %c0_359 = arith.constant 0 : index
    %c1_360 = arith.constant 1 : index
    %c0_361 = arith.constant 0 : index
    %340 = vector.load %arg12[%c0_358, %c0_359, %c1_360, %c0_361] : memref<2x8x8x64xf32, #tpu.memory_space<vmem>>, vector<2x1x1x64xf32>
    %341 = vector.shape_cast %340 : vector<2x1x1x64xf32> to vector<2x64xf32>
    %342 = arith.maximumf %339, %341 : vector<2x64xf32>
    %c0_362 = arith.constant 0 : index
    %c1_363 = arith.constant 1 : index
    %c0_364 = arith.constant 0 : index
    %c0_365 = arith.constant 0 : index
    %343 = vector.load %arg12[%c0_362, %c1_363, %c0_364, %c0_365] : memref<2x8x8x64xf32, #tpu.memory_space<vmem>>, vector<2x1x1x64xf32>
    %344 = vector.shape_cast %343 : vector<2x1x1x64xf32> to vector<2x64xf32>
    %c0_366 = arith.constant 0 : index
    %c1_367 = arith.constant 1 : index
    %c1_368 = arith.constant 1 : index
    %c0_369 = arith.constant 0 : index
    %345 = vector.load %arg12[%c0_366, %c1_367, %c1_368, %c0_369] : memref<2x8x8x64xf32, #tpu.memory_space<vmem>>, vector<2x1x1x64xf32>
    %346 = vector.shape_cast %345 : vector<2x1x1x64xf32> to vector<2x64xf32>
    %347 = arith.maximumf %344, %346 : vector<2x64xf32>
    %348 = arith.maximumf %342, %347 : vector<2x64xf32>
    %c0_370 = arith.constant 0 : index
    %c0_371 = arith.constant 0 : index
    %349 = vector.load %arg10[%c0_370, %c0_371] : memref<1024x512xf32, #tpu.memory_space<vmem>>, vector<64x512xf32>
    %cst_372 = arith.constant dense<0.000000e+00> : vector<2x512xf32>
    %350 = tpu.matmul %348, %349, %cst_372 {dimension_numbers = #tpu.dot_dimension_numbers<[1], [0], [0], [1], [0, 0, 1, 1], [], []>} : vector<2x64xf32>, vector<64x512xf32>, vector<2x512xf32> -> vector<2x512xf32>
    %351 = arith.addf %337, %350 : vector<2x512xf32>
    %c0_373 = arith.constant 0 : index
    %c0_374 = arith.constant 0 : index
    %c2_375 = arith.constant 2 : index
    %c0_376 = arith.constant 0 : index
    %352 = vector.load %arg12[%c0_373, %c0_374, %c2_375, %c0_376] : memref<2x8x8x64xf32, #tpu.memory_space<vmem>>, vector<2x1x1x64xf32>
    %353 = vector.shape_cast %352 : vector<2x1x1x64xf32> to vector<2x64xf32>
    %c0_377 = arith.constant 0 : index
    %c0_378 = arith.constant 0 : index
    %c3_379 = arith.constant 3 : index
    %c0_380 = arith.constant 0 : index
    %354 = vector.load %arg12[%c0_377, %c0_378, %c3_379, %c0_380] : memref<2x8x8x64xf32, #tpu.memory_space<vmem>>, vector<2x1x1x64xf32>
    %355 = vector.shape_cast %354 : vector<2x1x1x64xf32> to vector<2x64xf32>
    %356 = arith.maximumf %353, %355 : vector<2x64xf32>
    %c0_381 = arith.constant 0 : index
    %c1_382 = arith.constant 1 : index
    %c2_383 = arith.constant 2 : index
    %c0_384 = arith.constant 0 : index
    %357 = vector.load %arg12[%c0_381, %c1_382, %c2_383, %c0_384] : memref<2x8x8x64xf32, #tpu.memory_space<vmem>>, vector<2x1x1x64xf32>
    %358 = vector.shape_cast %357 : vector<2x1x1x64xf32> to vector<2x64xf32>
    %c0_385 = arith.constant 0 : index
    %c1_386 = arith.constant 1 : index
    %c3_387 = arith.constant 3 : index
    %c0_388 = arith.constant 0 : index
    %359 = vector.load %arg12[%c0_385, %c1_386, %c3_387, %c0_388] : memref<2x8x8x64xf32, #tpu.memory_space<vmem>>, vector<2x1x1x64xf32>
    %360 = vector.shape_cast %359 : vector<2x1x1x64xf32> to vector<2x64xf32>
    %361 = arith.maximumf %358, %360 : vector<2x64xf32>
    %362 = arith.maximumf %356, %361 : vector<2x64xf32>
    %c64 = arith.constant 64 : index
    %c0_389 = arith.constant 0 : index
    %363 = vector.load %arg10[%c64, %c0_389] : memref<1024x512xf32, #tpu.memory_space<vmem>>, vector<64x512xf32>
    %cst_390 = arith.constant dense<0.000000e+00> : vector<2x512xf32>
    %364 = tpu.matmul %362, %363, %cst_390 {dimension_numbers = #tpu.dot_dimension_numbers<[1], [0], [0], [1], [0, 0, 1, 1], [], []>} : vector<2x64xf32>, vector<64x512xf32>, vector<2x512xf32> -> vector<2x512xf32>
    %365 = arith.addf %351, %364 : vector<2x512xf32>
    %c0_391 = arith.constant 0 : index
    %c0_392 = arith.constant 0 : index
    %c4_393 = arith.constant 4 : index
    %c0_394 = arith.constant 0 : index
    %366 = vector.load %arg12[%c0_391, %c0_392, %c4_393, %c0_394] : memref<2x8x8x64xf32, #tpu.memory_space<vmem>>, vector<2x1x1x64xf32>
    %367 = vector.shape_cast %366 : vector<2x1x1x64xf32> to vector<2x64xf32>
    %c0_395 = arith.constant 0 : index
    %c0_396 = arith.constant 0 : index
    %c5_397 = arith.constant 5 : index
    %c0_398 = arith.constant 0 : index
    %368 = vector.load %arg12[%c0_395, %c0_396, %c5_397, %c0_398] : memref<2x8x8x64xf32, #tpu.memory_space<vmem>>, vector<2x1x1x64xf32>
    %369 = vector.shape_cast %368 : vector<2x1x1x64xf32> to vector<2x64xf32>
    %370 = arith.maximumf %367, %369 : vector<2x64xf32>
    %c0_399 = arith.constant 0 : index
    %c1_400 = arith.constant 1 : index
    %c4_401 = arith.constant 4 : index
    %c0_402 = arith.constant 0 : index
    %371 = vector.load %arg12[%c0_399, %c1_400, %c4_401, %c0_402] : memref<2x8x8x64xf32, #tpu.memory_space<vmem>>, vector<2x1x1x64xf32>
    %372 = vector.shape_cast %371 : vector<2x1x1x64xf32> to vector<2x64xf32>
    %c0_403 = arith.constant 0 : index
    %c1_404 = arith.constant 1 : index
    %c5_405 = arith.constant 5 : index
    %c0_406 = arith.constant 0 : index
    %373 = vector.load %arg12[%c0_403, %c1_404, %c5_405, %c0_406] : memref<2x8x8x64xf32, #tpu.memory_space<vmem>>, vector<2x1x1x64xf32>
    %374 = vector.shape_cast %373 : vector<2x1x1x64xf32> to vector<2x64xf32>
    %375 = arith.maximumf %372, %374 : vector<2x64xf32>
    %376 = arith.maximumf %370, %375 : vector<2x64xf32>
    %c128 = arith.constant 128 : index
    %c0_407 = arith.constant 0 : index
    %377 = vector.load %arg10[%c128, %c0_407] : memref<1024x512xf32, #tpu.memory_space<vmem>>, vector<64x512xf32>
    %cst_408 = arith.constant dense<0.000000e+00> : vector<2x512xf32>
    %378 = tpu.matmul %376, %377, %cst_408 {dimension_numbers = #tpu.dot_dimension_numbers<[1], [0], [0], [1], [0, 0, 1, 1], [], []>} : vector<2x64xf32>, vector<64x512xf32>, vector<2x512xf32> -> vector<2x512xf32>
    %379 = arith.addf %365, %378 : vector<2x512xf32>
    %c0_409 = arith.constant 0 : index
    %c0_410 = arith.constant 0 : index
    %c6_411 = arith.constant 6 : index
    %c0_412 = arith.constant 0 : index
    %380 = vector.load %arg12[%c0_409, %c0_410, %c6_411, %c0_412] : memref<2x8x8x64xf32, #tpu.memory_space<vmem>>, vector<2x1x1x64xf32>
    %381 = vector.shape_cast %380 : vector<2x1x1x64xf32> to vector<2x64xf32>
    %c0_413 = arith.constant 0 : index
    %c0_414 = arith.constant 0 : index
    %c7_415 = arith.constant 7 : index
    %c0_416 = arith.constant 0 : index
    %382 = vector.load %arg12[%c0_413, %c0_414, %c7_415, %c0_416] : memref<2x8x8x64xf32, #tpu.memory_space<vmem>>, vector<2x1x1x64xf32>
    %383 = vector.shape_cast %382 : vector<2x1x1x64xf32> to vector<2x64xf32>
    %384 = arith.maximumf %381, %383 : vector<2x64xf32>
    %c0_417 = arith.constant 0 : index
    %c1_418 = arith.constant 1 : index
    %c6_419 = arith.constant 6 : index
    %c0_420 = arith.constant 0 : index
    %385 = vector.load %arg12[%c0_417, %c1_418, %c6_419, %c0_420] : memref<2x8x8x64xf32, #tpu.memory_space<vmem>>, vector<2x1x1x64xf32>
    %386 = vector.shape_cast %385 : vector<2x1x1x64xf32> to vector<2x64xf32>
    %c0_421 = arith.constant 0 : index
    %c1_422 = arith.constant 1 : index
    %c7_423 = arith.constant 7 : index
    %c0_424 = arith.constant 0 : index
    %387 = vector.load %arg12[%c0_421, %c1_422, %c7_423, %c0_424] : memref<2x8x8x64xf32, #tpu.memory_space<vmem>>, vector<2x1x1x64xf32>
    %388 = vector.shape_cast %387 : vector<2x1x1x64xf32> to vector<2x64xf32>
    %389 = arith.maximumf %386, %388 : vector<2x64xf32>
    %390 = arith.maximumf %384, %389 : vector<2x64xf32>
    %c192 = arith.constant 192 : index
    %c0_425 = arith.constant 0 : index
    %391 = vector.load %arg10[%c192, %c0_425] : memref<1024x512xf32, #tpu.memory_space<vmem>>, vector<64x512xf32>
    %cst_426 = arith.constant dense<0.000000e+00> : vector<2x512xf32>
    %392 = tpu.matmul %390, %391, %cst_426 {dimension_numbers = #tpu.dot_dimension_numbers<[1], [0], [0], [1], [0, 0, 1, 1], [], []>} : vector<2x64xf32>, vector<64x512xf32>, vector<2x512xf32> -> vector<2x512xf32>
    %393 = arith.addf %379, %392 : vector<2x512xf32>
    %c0_427 = arith.constant 0 : index
    %c2_428 = arith.constant 2 : index
    %c0_429 = arith.constant 0 : index
    %c0_430 = arith.constant 0 : index
    %394 = vector.load %arg12[%c0_427, %c2_428, %c0_429, %c0_430] : memref<2x8x8x64xf32, #tpu.memory_space<vmem>>, vector<2x1x1x64xf32>
    %395 = vector.shape_cast %394 : vector<2x1x1x64xf32> to vector<2x64xf32>
    %c0_431 = arith.constant 0 : index
    %c2_432 = arith.constant 2 : index
    %c1_433 = arith.constant 1 : index
    %c0_434 = arith.constant 0 : index
    %396 = vector.load %arg12[%c0_431, %c2_432, %c1_433, %c0_434] : memref<2x8x8x64xf32, #tpu.memory_space<vmem>>, vector<2x1x1x64xf32>
    %397 = vector.shape_cast %396 : vector<2x1x1x64xf32> to vector<2x64xf32>
    %398 = arith.maximumf %395, %397 : vector<2x64xf32>
    %c0_435 = arith.constant 0 : index
    %c3_436 = arith.constant 3 : index
    %c0_437 = arith.constant 0 : index
    %c0_438 = arith.constant 0 : index
    %399 = vector.load %arg12[%c0_435, %c3_436, %c0_437, %c0_438] : memref<2x8x8x64xf32, #tpu.memory_space<vmem>>, vector<2x1x1x64xf32>
    %400 = vector.shape_cast %399 : vector<2x1x1x64xf32> to vector<2x64xf32>
    %c0_439 = arith.constant 0 : index
    %c3_440 = arith.constant 3 : index
    %c1_441 = arith.constant 1 : index
    %c0_442 = arith.constant 0 : index
    %401 = vector.load %arg12[%c0_439, %c3_440, %c1_441, %c0_442] : memref<2x8x8x64xf32, #tpu.memory_space<vmem>>, vector<2x1x1x64xf32>
    %402 = vector.shape_cast %401 : vector<2x1x1x64xf32> to vector<2x64xf32>
    %403 = arith.maximumf %400, %402 : vector<2x64xf32>
    %404 = arith.maximumf %398, %403 : vector<2x64xf32>
    %c256 = arith.constant 256 : index
    %c0_443 = arith.constant 0 : index
    %405 = vector.load %arg10[%c256, %c0_443] : memref<1024x512xf32, #tpu.memory_space<vmem>>, vector<64x512xf32>
    %cst_444 = arith.constant dense<0.000000e+00> : vector<2x512xf32>
    %406 = tpu.matmul %404, %405, %cst_444 {dimension_numbers = #tpu.dot_dimension_numbers<[1], [0], [0], [1], [0, 0, 1, 1], [], []>} : vector<2x64xf32>, vector<64x512xf32>, vector<2x512xf32> -> vector<2x512xf32>
    %407 = arith.addf %393, %406 : vector<2x512xf32>
    %c0_445 = arith.constant 0 : index
    %c2_446 = arith.constant 2 : index
    %c2_447 = arith.constant 2 : index
    %c0_448 = arith.constant 0 : index
    %408 = vector.load %arg12[%c0_445, %c2_446, %c2_447, %c0_448] : memref<2x8x8x64xf32, #tpu.memory_space<vmem>>, vector<2x1x1x64xf32>
    %409 = vector.shape_cast %408 : vector<2x1x1x64xf32> to vector<2x64xf32>
    %c0_449 = arith.constant 0 : index
    %c2_450 = arith.constant 2 : index
    %c3_451 = arith.constant 3 : index
    %c0_452 = arith.constant 0 : index
    %410 = vector.load %arg12[%c0_449, %c2_450, %c3_451, %c0_452] : memref<2x8x8x64xf32, #tpu.memory_space<vmem>>, vector<2x1x1x64xf32>
    %411 = vector.shape_cast %410 : vector<2x1x1x64xf32> to vector<2x64xf32>
    %412 = arith.maximumf %409, %411 : vector<2x64xf32>
    %c0_453 = arith.constant 0 : index
    %c3_454 = arith.constant 3 : index
    %c2_455 = arith.constant 2 : index
    %c0_456 = arith.constant 0 : index
    %413 = vector.load %arg12[%c0_453, %c3_454, %c2_455, %c0_456] : memref<2x8x8x64xf32, #tpu.memory_space<vmem>>, vector<2x1x1x64xf32>
    %414 = vector.shape_cast %413 : vector<2x1x1x64xf32> to vector<2x64xf32>
    %c0_457 = arith.constant 0 : index
    %c3_458 = arith.constant 3 : index
    %c3_459 = arith.constant 3 : index
    %c0_460 = arith.constant 0 : index
    %415 = vector.load %arg12[%c0_457, %c3_458, %c3_459, %c0_460] : memref<2x8x8x64xf32, #tpu.memory_space<vmem>>, vector<2x1x1x64xf32>
    %416 = vector.shape_cast %415 : vector<2x1x1x64xf32> to vector<2x64xf32>
    %417 = arith.maximumf %414, %416 : vector<2x64xf32>
    %418 = arith.maximumf %412, %417 : vector<2x64xf32>
    %c320 = arith.constant 320 : index
    %c0_461 = arith.constant 0 : index
    %419 = vector.load %arg10[%c320, %c0_461] : memref<1024x512xf32, #tpu.memory_space<vmem>>, vector<64x512xf32>
    %cst_462 = arith.constant dense<0.000000e+00> : vector<2x512xf32>
    %420 = tpu.matmul %418, %419, %cst_462 {dimension_numbers = #tpu.dot_dimension_numbers<[1], [0], [0], [1], [0, 0, 1, 1], [], []>} : vector<2x64xf32>, vector<64x512xf32>, vector<2x512xf32> -> vector<2x512xf32>
    %421 = arith.addf %407, %420 : vector<2x512xf32>
    %c0_463 = arith.constant 0 : index
    %c2_464 = arith.constant 2 : index
    %c4_465 = arith.constant 4 : index
    %c0_466 = arith.constant 0 : index
    %422 = vector.load %arg12[%c0_463, %c2_464, %c4_465, %c0_466] : memref<2x8x8x64xf32, #tpu.memory_space<vmem>>, vector<2x1x1x64xf32>
    %423 = vector.shape_cast %422 : vector<2x1x1x64xf32> to vector<2x64xf32>
    %c0_467 = arith.constant 0 : index
    %c2_468 = arith.constant 2 : index
    %c5_469 = arith.constant 5 : index
    %c0_470 = arith.constant 0 : index
    %424 = vector.load %arg12[%c0_467, %c2_468, %c5_469, %c0_470] : memref<2x8x8x64xf32, #tpu.memory_space<vmem>>, vector<2x1x1x64xf32>
    %425 = vector.shape_cast %424 : vector<2x1x1x64xf32> to vector<2x64xf32>
    %426 = arith.maximumf %423, %425 : vector<2x64xf32>
    %c0_471 = arith.constant 0 : index
    %c3_472 = arith.constant 3 : index
    %c4_473 = arith.constant 4 : index
    %c0_474 = arith.constant 0 : index
    %427 = vector.load %arg12[%c0_471, %c3_472, %c4_473, %c0_474] : memref<2x8x8x64xf32, #tpu.memory_space<vmem>>, vector<2x1x1x64xf32>
    %428 = vector.shape_cast %427 : vector<2x1x1x64xf32> to vector<2x64xf32>
    %c0_475 = arith.constant 0 : index
    %c3_476 = arith.constant 3 : index
    %c5_477 = arith.constant 5 : index
    %c0_478 = arith.constant 0 : index
    %429 = vector.load %arg12[%c0_475, %c3_476, %c5_477, %c0_478] : memref<2x8x8x64xf32, #tpu.memory_space<vmem>>, vector<2x1x1x64xf32>
    %430 = vector.shape_cast %429 : vector<2x1x1x64xf32> to vector<2x64xf32>
    %431 = arith.maximumf %428, %430 : vector<2x64xf32>
    %432 = arith.maximumf %426, %431 : vector<2x64xf32>
    %c384_479 = arith.constant 384 : index
    %c0_480 = arith.constant 0 : index
    %433 = vector.load %arg10[%c384_479, %c0_480] : memref<1024x512xf32, #tpu.memory_space<vmem>>, vector<64x512xf32>
    %cst_481 = arith.constant dense<0.000000e+00> : vector<2x512xf32>
    %434 = tpu.matmul %432, %433, %cst_481 {dimension_numbers = #tpu.dot_dimension_numbers<[1], [0], [0], [1], [0, 0, 1, 1], [], []>} : vector<2x64xf32>, vector<64x512xf32>, vector<2x512xf32> -> vector<2x512xf32>
    %435 = arith.addf %421, %434 : vector<2x512xf32>
    %c0_482 = arith.constant 0 : index
    %c2_483 = arith.constant 2 : index
    %c6_484 = arith.constant 6 : index
    %c0_485 = arith.constant 0 : index
    %436 = vector.load %arg12[%c0_482, %c2_483, %c6_484, %c0_485] : memref<2x8x8x64xf32, #tpu.memory_space<vmem>>, vector<2x1x1x64xf32>
    %437 = vector.shape_cast %436 : vector<2x1x1x64xf32> to vector<2x64xf32>
    %c0_486 = arith.constant 0 : index
    %c2_487 = arith.constant 2 : index
    %c7_488 = arith.constant 7 : index
    %c0_489 = arith.constant 0 : index
    %438 = vector.load %arg12[%c0_486, %c2_487, %c7_488, %c0_489] : memref<2x8x8x64xf32, #tpu.memory_space<vmem>>, vector<2x1x1x64xf32>
    %439 = vector.shape_cast %438 : vector<2x1x1x64xf32> to vector<2x64xf32>
    %440 = arith.maximumf %437, %439 : vector<2x64xf32>
    %c0_490 = arith.constant 0 : index
    %c3_491 = arith.constant 3 : index
    %c6_492 = arith.constant 6 : index
    %c0_493 = arith.constant 0 : index
    %441 = vector.load %arg12[%c0_490, %c3_491, %c6_492, %c0_493] : memref<2x8x8x64xf32, #tpu.memory_space<vmem>>, vector<2x1x1x64xf32>
    %442 = vector.shape_cast %441 : vector<2x1x1x64xf32> to vector<2x64xf32>
    %c0_494 = arith.constant 0 : index
    %c3_495 = arith.constant 3 : index
    %c7_496 = arith.constant 7 : index
    %c0_497 = arith.constant 0 : index
    %443 = vector.load %arg12[%c0_494, %c3_495, %c7_496, %c0_497] : memref<2x8x8x64xf32, #tpu.memory_space<vmem>>, vector<2x1x1x64xf32>
    %444 = vector.shape_cast %443 : vector<2x1x1x64xf32> to vector<2x64xf32>
    %445 = arith.maximumf %442, %444 : vector<2x64xf32>
    %446 = arith.maximumf %440, %445 : vector<2x64xf32>
    %c448 = arith.constant 448 : index
    %c0_498 = arith.constant 0 : index
    %447 = vector.load %arg10[%c448, %c0_498] : memref<1024x512xf32, #tpu.memory_space<vmem>>, vector<64x512xf32>
    %cst_499 = arith.constant dense<0.000000e+00> : vector<2x512xf32>
    %448 = tpu.matmul %446, %447, %cst_499 {dimension_numbers = #tpu.dot_dimension_numbers<[1], [0], [0], [1], [0, 0, 1, 1], [], []>} : vector<2x64xf32>, vector<64x512xf32>, vector<2x512xf32> -> vector<2x512xf32>
    %449 = arith.addf %435, %448 : vector<2x512xf32>
    %c0_500 = arith.constant 0 : index
    %c4_501 = arith.constant 4 : index
    %c0_502 = arith.constant 0 : index
    %c0_503 = arith.constant 0 : index
    %450 = vector.load %arg12[%c0_500, %c4_501, %c0_502, %c0_503] : memref<2x8x8x64xf32, #tpu.memory_space<vmem>>, vector<2x1x1x64xf32>
    %451 = vector.shape_cast %450 : vector<2x1x1x64xf32> to vector<2x64xf32>
    %c0_504 = arith.constant 0 : index
    %c4_505 = arith.constant 4 : index
    %c1_506 = arith.constant 1 : index
    %c0_507 = arith.constant 0 : index
    %452 = vector.load %arg12[%c0_504, %c4_505, %c1_506, %c0_507] : memref<2x8x8x64xf32, #tpu.memory_space<vmem>>, vector<2x1x1x64xf32>
    %453 = vector.shape_cast %452 : vector<2x1x1x64xf32> to vector<2x64xf32>
    %454 = arith.maximumf %451, %453 : vector<2x64xf32>
    %c0_508 = arith.constant 0 : index
    %c5_509 = arith.constant 5 : index
    %c0_510 = arith.constant 0 : index
    %c0_511 = arith.constant 0 : index
    %455 = vector.load %arg12[%c0_508, %c5_509, %c0_510, %c0_511] : memref<2x8x8x64xf32, #tpu.memory_space<vmem>>, vector<2x1x1x64xf32>
    %456 = vector.shape_cast %455 : vector<2x1x1x64xf32> to vector<2x64xf32>
    %c0_512 = arith.constant 0 : index
    %c5_513 = arith.constant 5 : index
    %c1_514 = arith.constant 1 : index
    %c0_515 = arith.constant 0 : index
    %457 = vector.load %arg12[%c0_512, %c5_513, %c1_514, %c0_515] : memref<2x8x8x64xf32, #tpu.memory_space<vmem>>, vector<2x1x1x64xf32>
    %458 = vector.shape_cast %457 : vector<2x1x1x64xf32> to vector<2x64xf32>
    %459 = arith.maximumf %456, %458 : vector<2x64xf32>
    %460 = arith.maximumf %454, %459 : vector<2x64xf32>
    %c512 = arith.constant 512 : index
    %c0_516 = arith.constant 0 : index
    %461 = vector.load %arg10[%c512, %c0_516] : memref<1024x512xf32, #tpu.memory_space<vmem>>, vector<64x512xf32>
    %cst_517 = arith.constant dense<0.000000e+00> : vector<2x512xf32>
    %462 = tpu.matmul %460, %461, %cst_517 {dimension_numbers = #tpu.dot_dimension_numbers<[1], [0], [0], [1], [0, 0, 1, 1], [], []>} : vector<2x64xf32>, vector<64x512xf32>, vector<2x512xf32> -> vector<2x512xf32>
    %463 = arith.addf %449, %462 : vector<2x512xf32>
    %c0_518 = arith.constant 0 : index
    %c4_519 = arith.constant 4 : index
    %c2_520 = arith.constant 2 : index
    %c0_521 = arith.constant 0 : index
    %464 = vector.load %arg12[%c0_518, %c4_519, %c2_520, %c0_521] : memref<2x8x8x64xf32, #tpu.memory_space<vmem>>, vector<2x1x1x64xf32>
    %465 = vector.shape_cast %464 : vector<2x1x1x64xf32> to vector<2x64xf32>
    %c0_522 = arith.constant 0 : index
    %c4_523 = arith.constant 4 : index
    %c3_524 = arith.constant 3 : index
    %c0_525 = arith.constant 0 : index
    %466 = vector.load %arg12[%c0_522, %c4_523, %c3_524, %c0_525] : memref<2x8x8x64xf32, #tpu.memory_space<vmem>>, vector<2x1x1x64xf32>
    %467 = vector.shape_cast %466 : vector<2x1x1x64xf32> to vector<2x64xf32>
    %468 = arith.maximumf %465, %467 : vector<2x64xf32>
    %c0_526 = arith.constant 0 : index
    %c5_527 = arith.constant 5 : index
    %c2_528 = arith.constant 2 : index
    %c0_529 = arith.constant 0 : index
    %469 = vector.load %arg12[%c0_526, %c5_527, %c2_528, %c0_529] : memref<2x8x8x64xf32, #tpu.memory_space<vmem>>, vector<2x1x1x64xf32>
    %470 = vector.shape_cast %469 : vector<2x1x1x64xf32> to vector<2x64xf32>
    %c0_530 = arith.constant 0 : index
    %c5_531 = arith.constant 5 : index
    %c3_532 = arith.constant 3 : index
    %c0_533 = arith.constant 0 : index
    %471 = vector.load %arg12[%c0_530, %c5_531, %c3_532, %c0_533] : memref<2x8x8x64xf32, #tpu.memory_space<vmem>>, vector<2x1x1x64xf32>
    %472 = vector.shape_cast %471 : vector<2x1x1x64xf32> to vector<2x64xf32>
    %473 = arith.maximumf %470, %472 : vector<2x64xf32>
    %474 = arith.maximumf %468, %473 : vector<2x64xf32>
    %c576 = arith.constant 576 : index
    %c0_534 = arith.constant 0 : index
    %475 = vector.load %arg10[%c576, %c0_534] : memref<1024x512xf32, #tpu.memory_space<vmem>>, vector<64x512xf32>
    %cst_535 = arith.constant dense<0.000000e+00> : vector<2x512xf32>
    %476 = tpu.matmul %474, %475, %cst_535 {dimension_numbers = #tpu.dot_dimension_numbers<[1], [0], [0], [1], [0, 0, 1, 1], [], []>} : vector<2x64xf32>, vector<64x512xf32>, vector<2x512xf32> -> vector<2x512xf32>
    %477 = arith.addf %463, %476 : vector<2x512xf32>
    %c0_536 = arith.constant 0 : index
    %c4_537 = arith.constant 4 : index
    %c4_538 = arith.constant 4 : index
    %c0_539 = arith.constant 0 : index
    %478 = vector.load %arg12[%c0_536, %c4_537, %c4_538, %c0_539] : memref<2x8x8x64xf32, #tpu.memory_space<vmem>>, vector<2x1x1x64xf32>
    %479 = vector.shape_cast %478 : vector<2x1x1x64xf32> to vector<2x64xf32>
    %c0_540 = arith.constant 0 : index
    %c4_541 = arith.constant 4 : index
    %c5_542 = arith.constant 5 : index
    %c0_543 = arith.constant 0 : index
    %480 = vector.load %arg12[%c0_540, %c4_541, %c5_542, %c0_543] : memref<2x8x8x64xf32, #tpu.memory_space<vmem>>, vector<2x1x1x64xf32>
    %481 = vector.shape_cast %480 : vector<2x1x1x64xf32> to vector<2x64xf32>
    %482 = arith.maximumf %479, %481 : vector<2x64xf32>
    %c0_544 = arith.constant 0 : index
    %c5_545 = arith.constant 5 : index
    %c4_546 = arith.constant 4 : index
    %c0_547 = arith.constant 0 : index
    %483 = vector.load %arg12[%c0_544, %c5_545, %c4_546, %c0_547] : memref<2x8x8x64xf32, #tpu.memory_space<vmem>>, vector<2x1x1x64xf32>
    %484 = vector.shape_cast %483 : vector<2x1x1x64xf32> to vector<2x64xf32>
    %c0_548 = arith.constant 0 : index
    %c5_549 = arith.constant 5 : index
    %c5_550 = arith.constant 5 : index
    %c0_551 = arith.constant 0 : index
    %485 = vector.load %arg12[%c0_548, %c5_549, %c5_550, %c0_551] : memref<2x8x8x64xf32, #tpu.memory_space<vmem>>, vector<2x1x1x64xf32>
    %486 = vector.shape_cast %485 : vector<2x1x1x64xf32> to vector<2x64xf32>
    %487 = arith.maximumf %484, %486 : vector<2x64xf32>
    %488 = arith.maximumf %482, %487 : vector<2x64xf32>
    %c640 = arith.constant 640 : index
    %c0_552 = arith.constant 0 : index
    %489 = vector.load %arg10[%c640, %c0_552] : memref<1024x512xf32, #tpu.memory_space<vmem>>, vector<64x512xf32>
    %cst_553 = arith.constant dense<0.000000e+00> : vector<2x512xf32>
    %490 = tpu.matmul %488, %489, %cst_553 {dimension_numbers = #tpu.dot_dimension_numbers<[1], [0], [0], [1], [0, 0, 1, 1], [], []>} : vector<2x64xf32>, vector<64x512xf32>, vector<2x512xf32> -> vector<2x512xf32>
    %491 = arith.addf %477, %490 : vector<2x512xf32>
    %c0_554 = arith.constant 0 : index
    %c4_555 = arith.constant 4 : index
    %c6_556 = arith.constant 6 : index
    %c0_557 = arith.constant 0 : index
    %492 = vector.load %arg12[%c0_554, %c4_555, %c6_556, %c0_557] : memref<2x8x8x64xf32, #tpu.memory_space<vmem>>, vector<2x1x1x64xf32>
    %493 = vector.shape_cast %492 : vector<2x1x1x64xf32> to vector<2x64xf32>
    %c0_558 = arith.constant 0 : index
    %c4_559 = arith.constant 4 : index
    %c7_560 = arith.constant 7 : index
    %c0_561 = arith.constant 0 : index
    %494 = vector.load %arg12[%c0_558, %c4_559, %c7_560, %c0_561] : memref<2x8x8x64xf32, #tpu.memory_space<vmem>>, vector<2x1x1x64xf32>
    %495 = vector.shape_cast %494 : vector<2x1x1x64xf32> to vector<2x64xf32>
    %496 = arith.maximumf %493, %495 : vector<2x64xf32>
    %c0_562 = arith.constant 0 : index
    %c5_563 = arith.constant 5 : index
    %c6_564 = arith.constant 6 : index
    %c0_565 = arith.constant 0 : index
    %497 = vector.load %arg12[%c0_562, %c5_563, %c6_564, %c0_565] : memref<2x8x8x64xf32, #tpu.memory_space<vmem>>, vector<2x1x1x64xf32>
    %498 = vector.shape_cast %497 : vector<2x1x1x64xf32> to vector<2x64xf32>
    %c0_566 = arith.constant 0 : index
    %c5_567 = arith.constant 5 : index
    %c7_568 = arith.constant 7 : index
    %c0_569 = arith.constant 0 : index
    %499 = vector.load %arg12[%c0_566, %c5_567, %c7_568, %c0_569] : memref<2x8x8x64xf32, #tpu.memory_space<vmem>>, vector<2x1x1x64xf32>
    %500 = vector.shape_cast %499 : vector<2x1x1x64xf32> to vector<2x64xf32>
    %501 = arith.maximumf %498, %500 : vector<2x64xf32>
    %502 = arith.maximumf %496, %501 : vector<2x64xf32>
    %c704 = arith.constant 704 : index
    %c0_570 = arith.constant 0 : index
    %503 = vector.load %arg10[%c704, %c0_570] : memref<1024x512xf32, #tpu.memory_space<vmem>>, vector<64x512xf32>
    %cst_571 = arith.constant dense<0.000000e+00> : vector<2x512xf32>
    %504 = tpu.matmul %502, %503, %cst_571 {dimension_numbers = #tpu.dot_dimension_numbers<[1], [0], [0], [1], [0, 0, 1, 1], [], []>} : vector<2x64xf32>, vector<64x512xf32>, vector<2x512xf32> -> vector<2x512xf32>
    %505 = arith.addf %491, %504 : vector<2x512xf32>
    %c0_572 = arith.constant 0 : index
    %c6_573 = arith.constant 6 : index
    %c0_574 = arith.constant 0 : index
    %c0_575 = arith.constant 0 : index
    %506 = vector.load %arg12[%c0_572, %c6_573, %c0_574, %c0_575] : memref<2x8x8x64xf32, #tpu.memory_space<vmem>>, vector<2x1x1x64xf32>
    %507 = vector.shape_cast %506 : vector<2x1x1x64xf32> to vector<2x64xf32>
    %c0_576 = arith.constant 0 : index
    %c6_577 = arith.constant 6 : index
    %c1_578 = arith.constant 1 : index
    %c0_579 = arith.constant 0 : index
    %508 = vector.load %arg12[%c0_576, %c6_577, %c1_578, %c0_579] : memref<2x8x8x64xf32, #tpu.memory_space<vmem>>, vector<2x1x1x64xf32>
    %509 = vector.shape_cast %508 : vector<2x1x1x64xf32> to vector<2x64xf32>
    %510 = arith.maximumf %507, %509 : vector<2x64xf32>
    %c0_580 = arith.constant 0 : index
    %c7_581 = arith.constant 7 : index
    %c0_582 = arith.constant 0 : index
    %c0_583 = arith.constant 0 : index
    %511 = vector.load %arg12[%c0_580, %c7_581, %c0_582, %c0_583] : memref<2x8x8x64xf32, #tpu.memory_space<vmem>>, vector<2x1x1x64xf32>
    %512 = vector.shape_cast %511 : vector<2x1x1x64xf32> to vector<2x64xf32>
    %c0_584 = arith.constant 0 : index
    %c7_585 = arith.constant 7 : index
    %c1_586 = arith.constant 1 : index
    %c0_587 = arith.constant 0 : index
    %513 = vector.load %arg12[%c0_584, %c7_585, %c1_586, %c0_587] : memref<2x8x8x64xf32, #tpu.memory_space<vmem>>, vector<2x1x1x64xf32>
    %514 = vector.shape_cast %513 : vector<2x1x1x64xf32> to vector<2x64xf32>
    %515 = arith.maximumf %512, %514 : vector<2x64xf32>
    %516 = arith.maximumf %510, %515 : vector<2x64xf32>
    %c768_588 = arith.constant 768 : index
    %c0_589 = arith.constant 0 : index
    %517 = vector.load %arg10[%c768_588, %c0_589] : memref<1024x512xf32, #tpu.memory_space<vmem>>, vector<64x512xf32>
    %cst_590 = arith.constant dense<0.000000e+00> : vector<2x512xf32>
    %518 = tpu.matmul %516, %517, %cst_590 {dimension_numbers = #tpu.dot_dimension_numbers<[1], [0], [0], [1], [0, 0, 1, 1], [], []>} : vector<2x64xf32>, vector<64x512xf32>, vector<2x512xf32> -> vector<2x512xf32>
    %519 = arith.addf %505, %518 : vector<2x512xf32>
    %c0_591 = arith.constant 0 : index
    %c6_592 = arith.constant 6 : index
    %c2_593 = arith.constant 2 : index
    %c0_594 = arith.constant 0 : index
    %520 = vector.load %arg12[%c0_591, %c6_592, %c2_593, %c0_594] : memref<2x8x8x64xf32, #tpu.memory_space<vmem>>, vector<2x1x1x64xf32>
    %521 = vector.shape_cast %520 : vector<2x1x1x64xf32> to vector<2x64xf32>
    %c0_595 = arith.constant 0 : index
    %c6_596 = arith.constant 6 : index
    %c3_597 = arith.constant 3 : index
    %c0_598 = arith.constant 0 : index
    %522 = vector.load %arg12[%c0_595, %c6_596, %c3_597, %c0_598] : memref<2x8x8x64xf32, #tpu.memory_space<vmem>>, vector<2x1x1x64xf32>
    %523 = vector.shape_cast %522 : vector<2x1x1x64xf32> to vector<2x64xf32>
    %524 = arith.maximumf %521, %523 : vector<2x64xf32>
    %c0_599 = arith.constant 0 : index
    %c7_600 = arith.constant 7 : index
    %c2_601 = arith.constant 2 : index
    %c0_602 = arith.constant 0 : index
    %525 = vector.load %arg12[%c0_599, %c7_600, %c2_601, %c0_602] : memref<2x8x8x64xf32, #tpu.memory_space<vmem>>, vector<2x1x1x64xf32>
    %526 = vector.shape_cast %525 : vector<2x1x1x64xf32> to vector<2x64xf32>
    %c0_603 = arith.constant 0 : index
    %c7_604 = arith.constant 7 : index
    %c3_605 = arith.constant 3 : index
    %c0_606 = arith.constant 0 : index
    %527 = vector.load %arg12[%c0_603, %c7_604, %c3_605, %c0_606] : memref<2x8x8x64xf32, #tpu.memory_space<vmem>>, vector<2x1x1x64xf32>
    %528 = vector.shape_cast %527 : vector<2x1x1x64xf32> to vector<2x64xf32>
    %529 = arith.maximumf %526, %528 : vector<2x64xf32>
    %530 = arith.maximumf %524, %529 : vector<2x64xf32>
    %c832 = arith.constant 832 : index
    %c0_607 = arith.constant 0 : index
    %531 = vector.load %arg10[%c832, %c0_607] : memref<1024x512xf32, #tpu.memory_space<vmem>>, vector<64x512xf32>
    %cst_608 = arith.constant dense<0.000000e+00> : vector<2x512xf32>
    %532 = tpu.matmul %530, %531, %cst_608 {dimension_numbers = #tpu.dot_dimension_numbers<[1], [0], [0], [1], [0, 0, 1, 1], [], []>} : vector<2x64xf32>, vector<64x512xf32>, vector<2x512xf32> -> vector<2x512xf32>
    %533 = arith.addf %519, %532 : vector<2x512xf32>
    %c0_609 = arith.constant 0 : index
    %c6_610 = arith.constant 6 : index
    %c4_611 = arith.constant 4 : index
    %c0_612 = arith.constant 0 : index
    %534 = vector.load %arg12[%c0_609, %c6_610, %c4_611, %c0_612] : memref<2x8x8x64xf32, #tpu.memory_space<vmem>>, vector<2x1x1x64xf32>
    %535 = vector.shape_cast %534 : vector<2x1x1x64xf32> to vector<2x64xf32>
    %c0_613 = arith.constant 0 : index
    %c6_614 = arith.constant 6 : index
    %c5_615 = arith.constant 5 : index
    %c0_616 = arith.constant 0 : index
    %536 = vector.load %arg12[%c0_613, %c6_614, %c5_615, %c0_616] : memref<2x8x8x64xf32, #tpu.memory_space<vmem>>, vector<2x1x1x64xf32>
    %537 = vector.shape_cast %536 : vector<2x1x1x64xf32> to vector<2x64xf32>
    %538 = arith.maximumf %535, %537 : vector<2x64xf32>
    %c0_617 = arith.constant 0 : index
    %c7_618 = arith.constant 7 : index
    %c4_619 = arith.constant 4 : index
    %c0_620 = arith.constant 0 : index
    %539 = vector.load %arg12[%c0_617, %c7_618, %c4_619, %c0_620] : memref<2x8x8x64xf32, #tpu.memory_space<vmem>>, vector<2x1x1x64xf32>
    %540 = vector.shape_cast %539 : vector<2x1x1x64xf32> to vector<2x64xf32>
    %c0_621 = arith.constant 0 : index
    %c7_622 = arith.constant 7 : index
    %c5_623 = arith.constant 5 : index
    %c0_624 = arith.constant 0 : index
    %541 = vector.load %arg12[%c0_621, %c7_622, %c5_623, %c0_624] : memref<2x8x8x64xf32, #tpu.memory_space<vmem>>, vector<2x1x1x64xf32>
    %542 = vector.shape_cast %541 : vector<2x1x1x64xf32> to vector<2x64xf32>
    %543 = arith.maximumf %540, %542 : vector<2x64xf32>
    %544 = arith.maximumf %538, %543 : vector<2x64xf32>
    %c896 = arith.constant 896 : index
    %c0_625 = arith.constant 0 : index
    %545 = vector.load %arg10[%c896, %c0_625] : memref<1024x512xf32, #tpu.memory_space<vmem>>, vector<64x512xf32>
    %cst_626 = arith.constant dense<0.000000e+00> : vector<2x512xf32>
    %546 = tpu.matmul %544, %545, %cst_626 {dimension_numbers = #tpu.dot_dimension_numbers<[1], [0], [0], [1], [0, 0, 1, 1], [], []>} : vector<2x64xf32>, vector<64x512xf32>, vector<2x512xf32> -> vector<2x512xf32>
    %547 = arith.addf %533, %546 : vector<2x512xf32>
    %c0_627 = arith.constant 0 : index
    %c6_628 = arith.constant 6 : index
    %c6_629 = arith.constant 6 : index
    %c0_630 = arith.constant 0 : index
    %548 = vector.load %arg12[%c0_627, %c6_628, %c6_629, %c0_630] : memref<2x8x8x64xf32, #tpu.memory_space<vmem>>, vector<2x1x1x64xf32>
    %549 = vector.shape_cast %548 : vector<2x1x1x64xf32> to vector<2x64xf32>
    %c0_631 = arith.constant 0 : index
    %c6_632 = arith.constant 6 : index
    %c7_633 = arith.constant 7 : index
    %c0_634 = arith.constant 0 : index
    %550 = vector.load %arg12[%c0_631, %c6_632, %c7_633, %c0_634] : memref<2x8x8x64xf32, #tpu.memory_space<vmem>>, vector<2x1x1x64xf32>
    %551 = vector.shape_cast %550 : vector<2x1x1x64xf32> to vector<2x64xf32>
    %552 = arith.maximumf %549, %551 : vector<2x64xf32>
    %c0_635 = arith.constant 0 : index
    %c7_636 = arith.constant 7 : index
    %c6_637 = arith.constant 6 : index
    %c0_638 = arith.constant 0 : index
    %553 = vector.load %arg12[%c0_635, %c7_636, %c6_637, %c0_638] : memref<2x8x8x64xf32, #tpu.memory_space<vmem>>, vector<2x1x1x64xf32>
    %554 = vector.shape_cast %553 : vector<2x1x1x64xf32> to vector<2x64xf32>
    %c0_639 = arith.constant 0 : index
    %c7_640 = arith.constant 7 : index
    %c7_641 = arith.constant 7 : index
    %c0_642 = arith.constant 0 : index
    %555 = vector.load %arg12[%c0_639, %c7_640, %c7_641, %c0_642] : memref<2x8x8x64xf32, #tpu.memory_space<vmem>>, vector<2x1x1x64xf32>
    %556 = vector.shape_cast %555 : vector<2x1x1x64xf32> to vector<2x64xf32>
    %557 = arith.maximumf %554, %556 : vector<2x64xf32>
    %558 = arith.maximumf %552, %557 : vector<2x64xf32>
    %c960 = arith.constant 960 : index
    %c0_643 = arith.constant 0 : index
    %559 = vector.load %arg10[%c960, %c0_643] : memref<1024x512xf32, #tpu.memory_space<vmem>>, vector<64x512xf32>
    %cst_644 = arith.constant dense<0.000000e+00> : vector<2x512xf32>
    %560 = tpu.matmul %558, %559, %cst_644 {dimension_numbers = #tpu.dot_dimension_numbers<[1], [0], [0], [1], [0, 0, 1, 1], [], []>} : vector<2x64xf32>, vector<64x512xf32>, vector<2x512xf32> -> vector<2x512xf32>
    %561 = arith.addf %547, %560 : vector<2x512xf32>
    %c0_645 = arith.constant 0 : index
    %c0_646 = arith.constant 0 : index
    %562 = vector.load %arg6[%c0_645, %c0_646] : memref<1x512xf32, #tpu.memory_space<vmem>>, vector<1x512xf32>
    %563 = vector.broadcast %562 : vector<1x512xf32> to vector<2x512xf32>
    %564 = arith.addf %561, %563 : vector<2x512xf32>
    %cst_647 = arith.constant 0.000000e+00 : f32
    %565 = vector.broadcast %cst_647 : f32 to vector<2x512xf32>
    %566 = arith.maximumf %564, %565 : vector<2x512xf32>
    %c0_648 = arith.constant 0 : index
    %c0_649 = arith.constant 0 : index
    %567 = vector.load %arg7[%c0_648, %c0_649] : memref<512x10xf32, #tpu.memory_space<vmem>>, vector<512x10xf32>
    %cst_650 = arith.constant dense<0.000000e+00> : vector<2x10xf32>
    %568 = tpu.matmul %566, %567, %cst_650 {dimension_numbers = #tpu.dot_dimension_numbers<[1], [0], [0], [1], [0, 0, 1, 1], [], []>} : vector<2x512xf32>, vector<512x10xf32>, vector<2x10xf32> -> vector<2x10xf32>
    %c0_651 = arith.constant 0 : index
    %c0_652 = arith.constant 0 : index
    %569 = vector.load %arg8[%c0_651, %c0_652] : memref<1x10xf32, #tpu.memory_space<vmem>>, vector<1x10xf32>
    %570 = vector.broadcast %569 : vector<1x10xf32> to vector<2x10xf32>
    %571 = arith.addf %568, %570 : vector<2x10xf32>
    %c0_653 = arith.constant 0 : index
    %c0_654 = arith.constant 0 : index
    %572 = vector.load %arg9[%c0_653, %c0_654] : memref<2x10xf32, #tpu.memory_space<vmem>>, vector<2x10xf32>
    tpu.vector_store %arg9[%c0_653, %c0_654], %571 {strides = array<i32>} : memref<2x10xf32, #tpu.memory_space<vmem>>, vector<2x10xf32>,
    return
  }
}

</mosaic_0001>

<bundles_post_ra>
// kernel: mnist_net_forward.1
= control target key start
LH: loop header
LB: loop body
LE: loop exit
PB: predicated region body
PF: predicated region fallthrough
CT: control target
= control target key end

     0   :  { %14 = vsyncpa [#allocation7], 0  ;;  %s22637_s0 = inlined_call_operand.vmem [shape: f32[1536,32], index: 0, kind: input, shape index: {}]   ;;  %s22638_s1 = inlined_call_operand.vmem [shape: f32[32,32], index: 1, kind: input, shape index: {}]   ;;  %s22639_s2 = inlined_call_operand.vmem [shape: f32[1,32], index: 2, kind: input, shape index: {}]   ;;  %s22640_s3 = inlined_call_operand.vmem [shape: f32[25,32,64], index: 3, kind: input, shape index: {}]   ;;  %s22641_s4 = inlined_call_operand.vmem [shape: f32[1,64], index: 4, kind: input, shape index: {}]   ;;  %s22642_s5 = inlined_call_operand.vmem [shape: f32[1024,512], index: 5, kind: input, shape index: {}]   ;;  %s22643_s6 = inlined_call_operand.vmem [shape: f32[1,512], index: 6, kind: input, shape index: {}]   ;;  %s22644_s7 = inlined_call_operand.vmem [shape: f32[512,10], index: 7, kind: input, shape index: {}]   ;;  %s22645_s8 = inlined_call_operand.vmem [shape: f32[1,10], index: 8, kind: input, shape index: {}]   ;;  %s22646_s9 = inlined_call_operand.hbm [shape: f32[2,10], index: 9, kind: output, shape index: {}]  }
   0x1   :  { %v16591_v0 = vld [vmem:[%s22642_s5] sm:$0xff]  ;;  %v16596_v1 = vld [vmem:[%s22642_s5 + $0x8] sm:$0xff]  ;;  %v16601_v2 = vld [vmem:[%s22642_s5 + $0x10] sm:$0xff] }
   0x2   :  { %22678 = vst [vmem:[#allocation11_spill] sm:$0xff] %v16591_v0  ;;  %22679 = vst [vmem:[#allocation12_spill] sm:$0xff] %v16596_v1  ;;  %v16606_v3 = vld [vmem:[%s22642_s5 + $0x18] sm:$0xff]  ;;  %v16611_v4 = vld [vmem:[%s22642_s5 + $0x20] sm:$0xff] }
   0x3   :  { %22680 = vst [vmem:[#allocation13_spill] sm:$0xff] %v16601_v2  ;;  %22681 = vst [vmem:[#allocation14_spill] sm:$0xff] %v16606_v3  ;;  %v16616_v5 = vld [vmem:[%s22642_s5 + $0x28] sm:$0xff]  ;;  %v16621_v6 = vld [vmem:[%s22642_s5 + $0x30] sm:$0xff] }
   0x4   :  { %22682 = vst [vmem:[#allocation15_spill] sm:$0xff] %v16611_v4  ;;  %22683 = vst [vmem:[#allocation16_spill] sm:$0xff] %v16616_v5  ;;  %v16626_v7 = vld [vmem:[%s22642_s5 + $0x38] sm:$0xff]  ;;  %v16631_v8 = vld [vmem:[%s22642_s5 + $0x40] sm:$0xff] }
   0x5   :  { %22684 = vst [vmem:[#allocation17_spill] sm:$0xff] %v16621_v6  ;;  %22685 = vst [vmem:[#allocation18_spill] sm:$0xff] %v16626_v7  ;;  %v16636_v9 = vld [vmem:[%s22642_s5 + $0x48] sm:$0xff]  ;;  %v16641_v10 = vld [vmem:[%s22642_s5 + $0x50] sm:$0xff] }
   0x6   :  { %22686 = vst [vmem:[#allocation19_spill] sm:$0xff] %v16631_v8  ;;  %22687 = vst [vmem:[#allocation20_spill] sm:$0xff] %v16636_v9  ;;  %v16646_v11 = vld [vmem:[%s22642_s5 + $0x58] sm:$0xff]  ;;  %v16651_v12 = vld [vmem:[%s22642_s5 + $0x60] sm:$0xff] }
   0x7   :  { %22688 = vst [vmem:[#allocation21_spill] sm:$0xff] %v16641_v10  ;;  %22689 = vst [vmem:[#allocation22_spill] sm:$0xff] %v16646_v11  ;;  %v16656_v13 = vld [vmem:[%s22642_s5 + $0x68] sm:$0xff]  ;;  %v16661_v14 = vld [vmem:[%s22642_s5 + $0x70] sm:$0xff] }
   0x8   :  { %22690 = vst [vmem:[#allocation23_spill] sm:$0xff] %v16651_v12  ;;  %22691 = vst [vmem:[#allocation24_spill] sm:$0xff] %v16656_v13  ;;  %v16666_v15 = vld [vmem:[%s22642_s5 + $0x78] sm:$0xff]  ;;  %v16671_v16 = vld [vmem:[%s22642_s5 + $0x80] sm:$0xff] }
   0x9   :  { %22692 = vst [vmem:[#allocation25_spill] sm:$0xff] %v16661_v14  ;;  %22693 = vst [vmem:[#allocation26_spill] sm:$0xff] %v16666_v15  ;;  %v16676_v17 = vld [vmem:[%s22642_s5 + $0x88] sm:$0xff]  ;;  %v16681_v18 = vld [vmem:[%s22642_s5 + $0x90] sm:$0xff] }
   0xa   :  { %22694 = vst [vmem:[#allocation27_spill] sm:$0xff] %v16671_v16  ;;  %22695 = vst [vmem:[#allocation28_spill] sm:$0xff] %v16676_v17  ;;  %v16686_v19 = vld [vmem:[%s22642_s5 + $0x98] sm:$0xff]  ;;  %v16691_v20 = vld [vmem:[%s22642_s5 + $0xa0] sm:$0xff] }
   0xb   :  { %22696 = vst [vmem:[#allocation29_spill] sm:$0xff] %v16681_v18  ;;  %22697 = vst [vmem:[#allocation30_spill] sm:$0xff] %v16686_v19  ;;  %v16696_v21 = vld [vmem:[%s22642_s5 + $0xa8] sm:$0xff]  ;;  %v16701_v22 = vld [vmem:[%s22642_s5 + $0xb0] sm:$0xff] }
   0xc   :  { %22698 = vst [vmem:[#allocation31_spill] sm:$0xff] %v16691_v20  ;;  %22699 = vst [vmem:[#allocation32_spill] sm:$0xff] %v16696_v21  ;;  %v16706_v23 = vld [vmem:[%s22642_s5 + $0xb8] sm:$0xff]  ;;  %v16711_v24 = vld [vmem:[%s22642_s5 + $0xc0] sm:$0xff] }
   0xd   :  { %22700 = vst [vmem:[#allocation33_spill] sm:$0xff] %v16701_v22  ;;  %22701 = vst [vmem:[#allocation34_spill] sm:$0xff] %v16706_v23  ;;  %v16716_v25 = vld [vmem:[%s22642_s5 + $0xc8] sm:$0xff]  ;;  %v16721_v26 = vld [vmem:[%s22642_s5 + $0xd0] sm:$0xff] }
   0xe   :  { %22702 = vst [vmem:[#allocation35_spill] sm:$0xff] %v16711_v24  ;;  %22703 = vst [vmem:[#allocation36_spill] sm:$0xff] %v16716_v25  ;;  %v16726_v27 = vld [vmem:[%s22642_s5 + $0xd8] sm:$0xff]  ;;  %v16731_v28 = vld [vmem:[%s22642_s5 + $0xe0] sm:$0xff] }
   0xf   :  { %22704 = vst [vmem:[#allocation37_spill] sm:$0xff] %v16721_v26  ;;  %22705 = vst [vmem:[#allocation38_spill] sm:$0xff] %v16726_v27  ;;  %v16736_v29 = vld [vmem:[%s22642_s5 + $0xe8] sm:$0xff]  ;;  %v16741_v30 = vld [vmem:[%s22642_s5 + $0xf0] sm:$0xff] }
  0x10   :  { %22706 = vst [vmem:[#allocation39_spill] sm:$0xff] %v16731_v28  ;;  %22707 = vst [vmem:[#allocation40_spill] sm:$0xff] %v16736_v29  ;;  %v16746_v31 = vld [vmem:[%s22642_s5 + $0xf8] sm:$0xff]  ;;  %v16751_v32 = vld [vmem:[%s22642_s5 + $0x100] sm:$0xff] }
  0x11   :  { %22708 = vst [vmem:[#allocation41_spill] sm:$0xff] %v16741_v30  ;;  %22709 = vst [vmem:[#allocation42_spill] sm:$0xff] %v16746_v31  ;;  %v16756_v33 = vld [vmem:[%s22642_s5 + $0x108] sm:$0xff]  ;;  %v16761_v34 = vld [vmem:[%s22642_s5 + $0x110] sm:$0xff] }
  0x12   :  { %22710 = vst [vmem:[#allocation43_spill] sm:$0xff] %v16751_v32  ;;  %22711 = vst [vmem:[#allocation44_spill] sm:$0xff] %v16756_v33  ;;  %v16766_v35 = vld [vmem:[%s22642_s5 + $0x118] sm:$0xff]  ;;  %v16771_v36 = vld [vmem:[%s22642_s5 + $0x120] sm:$0xff] }
  0x13   :  { %22712 = vst [vmem:[#allocation45_spill] sm:$0xff] %v16761_v34  ;;  %22713 = vst [vmem:[#allocation46_spill] sm:$0xff] %v16766_v35  ;;  %v16776_v37 = vld [vmem:[%s22642_s5 + $0x128] sm:$0xff]  ;;  %v16781_v38 = vld [vmem:[%s22642_s5 + $0x130] sm:$0xff] }
  0x14   :  { %22714 = vst [vmem:[#allocation47_spill] sm:$0xff] %v16771_v36  ;;  %22715 = vst [vmem:[#allocation48_spill] sm:$0xff] %v16776_v37  ;;  %v16786_v39 = vld [vmem:[%s22642_s5 + $0x138] sm:$0xff]  ;;  %v16791_v40 = vld [vmem:[%s22642_s5 + $0x140] sm:$0xff] }
  0x15   :  { %22716 = vst [vmem:[#allocation49_spill] sm:$0xff] %v16781_v38  ;;  %22717 = vst [vmem:[#allocation50_spill] sm:$0xff] %v16786_v39  ;;  %v16796_v41 = vld [vmem:[%s22642_s5 + $0x148] sm:$0xff]  ;;  %v16801_v42 = vld [vmem:[%s22642_s5 + $0x150] sm:$0xff] }
  0x16   :  { %22718 = vst [vmem:[#allocation51_spill] sm:$0xff] %v16791_v40  ;;  %22719 = vst [vmem:[#allocation52_spill] sm:$0xff] %v16796_v41  ;;  %v16806_v43 = vld [vmem:[%s22642_s5 + $0x158] sm:$0xff]  ;;  %v16811_v44 = vld [vmem:[%s22642_s5 + $0x160] sm:$0xff] }
  0x17   :  { %22720 = vst [vmem:[#allocation53_spill] sm:$0xff] %v16801_v42  ;;  %22721 = vst [vmem:[#allocation54_spill] sm:$0xff] %v16806_v43  ;;  %v16816_v45 = vld [vmem:[%s22642_s5 + $0x168] sm:$0xff]  ;;  %v16821_v46 = vld [vmem:[%s22642_s5 + $0x170] sm:$0xff] }
  0x18   :  { %22722 = vst [vmem:[#allocation55_spill] sm:$0xff] %v16811_v44  ;;  %22723 = vst [vmem:[#allocation56_spill] sm:$0xff] %v16816_v45  ;;  %v16826_v47 = vld [vmem:[%s22642_s5 + $0x178] sm:$0xff]  ;;  %v16831_v48 = vld [vmem:[%s22642_s5 + $0x180] sm:$0xff] }
  0x19   :  { %22724 = vst [vmem:[#allocation57_spill] sm:$0xff] %v16821_v46  ;;  %22725 = vst [vmem:[#allocation58_spill] sm:$0xff] %v16826_v47  ;;  %v16836_v49 = vld [vmem:[%s22642_s5 + $0x188] sm:$0xff]  ;;  %v16841_v50 = vld [vmem:[%s22642_s5 + $0x190] sm:$0xff] }
  0x1a   :  { %22726 = vst [vmem:[#allocation59_spill] sm:$0xff] %v16831_v48  ;;  %22727 = vst [vmem:[#allocation60_spill] sm:$0xff] %v16836_v49  ;;  %v16846_v51 = vld [vmem:[%s22642_s5 + $0x198] sm:$0xff]  ;;  %v16851_v52 = vld [vmem:[%s22642_s5 + $0x1a0] sm:$0xff] }
  0x1b   :  { %22728 = vst [vmem:[#allocation61_spill] sm:$0xff] %v16841_v50  ;;  %22729 = vst [vmem:[#allocation62_spill] sm:$0xff] %v16846_v51  ;;  %v16856_v53 = vld [vmem:[%s22642_s5 + $0x1a8] sm:$0xff]  ;;  %v16861_v54 = vld [vmem:[%s22642_s5 + $0x1b0] sm:$0xff] }
  0x1c   :  { %22730 = vst [vmem:[#allocation63_spill] sm:$0xff] %v16851_v52  ;;  %22731 = vst [vmem:[#allocation64_spill] sm:$0xff] %v16856_v53  ;;  %v16866_v55 = vld [vmem:[%s22642_s5 + $0x1b8] sm:$0xff]  ;;  %v16871_v56 = vld [vmem:[%s22642_s5 + $0x1c0] sm:$0xff] }
  0x1d   :  { %22732 = vst [vmem:[#allocation65_spill] sm:$0xff] %v16861_v54  ;;  %22733 = vst [vmem:[#allocation66_spill] sm:$0xff] %v16866_v55  ;;  %v16876_v57 = vld [vmem:[%s22642_s5 + $0x1c8] sm:$0xff]  ;;  %v16881_v58 = vld [vmem:[%s22642_s5 + $0x1d0] sm:$0xff] }
  0x1e   :  { %22734 = vst [vmem:[#allocation67_spill] sm:$0xff] %v16871_v56  ;;  %22735 = vst [vmem:[#allocation68_spill] sm:$0xff] %v16876_v57  ;;  %v16886_v59 = vld [vmem:[%s22642_s5 + $0x1d8] sm:$0xff]  ;;  %v16891_v60 = vld [vmem:[%s22642_s5 + $0x1e0] sm:$0xff] }
  0x1f   :  { %22736 = vst [vmem:[#allocation69_spill] sm:$0xff] %v16881_v58  ;;  %22737 = vst [vmem:[#allocation70_spill] sm:$0xff] %v16886_v59  ;;  %v16896_v61 = vld [vmem:[%s22642_s5 + $0x1e8] sm:$0xff]  ;;  %v16901_v62 = vld [vmem:[%s22642_s5 + $0x1f0] sm:$0xff] }
  0x20   :  { %22738 = vst [vmem:[#allocation71_spill] sm:$0xff] %v16891_v60  ;;  %22739 = vst [vmem:[#allocation72_spill] sm:$0xff] %v16896_v61  ;;  %v16906_v63 = vld [vmem:[%s22642_s5 + $0x1f8] sm:$0xff]  ;;  %v16911_v30 = vld [vmem:[%s22642_s5 + $0x200] sm:$0xff] }
  0x21   :  { %22740 = vst [vmem:[#allocation73_spill] sm:$0xff] %v16901_v62  ;;  %22741 = vst [vmem:[#allocation74_spill] sm:$0xff] %v16906_v63  ;;  %v16916_v26 = vld [vmem:[%s22642_s5 + $0x208] sm:$0xff]  ;;  %v16921_v31 = vld [vmem:[%s22642_s5 + $0x210] sm:$0xff] }
  0x22   :  { %22742 = vst [vmem:[#allocation75_spill] sm:$0xff] %v16911_v30  ;;  %22743 = vst [vmem:[#allocation76_spill] sm:$0xff] %v16916_v26  ;;  %v16926_v27 = vld [vmem:[%s22642_s5 + $0x218] sm:$0xff]  ;;  %v16931_v22 = vld [vmem:[%s22642_s5 + $0x220] sm:$0xff] }
  0x23   :  { %22744 = vst [vmem:[#allocation77_spill] sm:$0xff] %v16921_v31  ;;  %22745 = vst [vmem:[#allocation78_spill] sm:$0xff] %v16926_v27  ;;  %v16936_v30 = vld [vmem:[%s22642_s5 + $0x228] sm:$0xff]  ;;  %v16941_v26 = vld [vmem:[%s22642_s5 + $0x230] sm:$0xff] }
  0x24   :  { %22746 = vst [vmem:[#allocation79_spill] sm:$0xff] %v16931_v22  ;;  %22747 = vst [vmem:[#allocation80_spill] sm:$0xff] %v16936_v30  ;;  %v16946_v31 = vld [vmem:[%s22642_s5 + $0x238] sm:$0xff]  ;;  %v16951_v27 = vld [vmem:[%s22642_s5 + $0x240] sm:$0xff] }
  0x25   :  { %22748 = vst [vmem:[#allocation81_spill] sm:$0xff] %v16941_v26  ;;  %22749 = vst [vmem:[#allocation82_spill] sm:$0xff] %v16946_v31  ;;  %v16956_v22 = vld [vmem:[%s22642_s5 + $0x248] sm:$0xff]  ;;  %v16961_v30 = vld [vmem:[%s22642_s5 + $0x250] sm:$0xff] }
  0x26   :  { %22750 = vst [vmem:[#allocation83_spill] sm:$0xff] %v16951_v27  ;;  %22751 = vst [vmem:[#allocation84_spill] sm:$0xff] %v16956_v22  ;;  %v16966_v26 = vld [vmem:[%s22642_s5 + $0x258] sm:$0xff]  ;;  %v16971_v31 = vld [vmem:[%s22642_s5 + $0x260] sm:$0xff] }
  0x27   :  { %22752 = vst [vmem:[#allocation85_spill] sm:$0xff] %v16961_v30  ;;  %22753 = vst [vmem:[#allocation86_spill] sm:$0xff] %v16966_v26  ;;  %v16976_v27 = vld [vmem:[%s22642_s5 + $0x268] sm:$0xff]  ;;  %v16981_v22 = vld [vmem:[%s22642_s5 + $0x270] sm:$0xff] }
  0x28   :  { %22754 = vst [vmem:[#allocation87_spill] sm:$0xff] %v16971_v31  ;;  %22755 = vst [vmem:[#allocation88_spill] sm:$0xff] %v16976_v27  ;;  %v16986_v30 = vld [vmem:[%s22642_s5 + $0x278] sm:$0xff]  ;;  %v16991_v26 = vld [vmem:[%s22642_s5 + $0x280] sm:$0xff] }
  0x29   :  { %22756 = vst [vmem:[#allocation89_spill] sm:$0xff] %v16981_v22  ;;  %22757 = vst [vmem:[#allocation90_spill] sm:$0xff] %v16986_v30  ;;  %v16996_v31 = vld [vmem:[%s22642_s5 + $0x288] sm:$0xff]  ;;  %v17001_v27 = vld [vmem:[%s22642_s5 + $0x290] sm:$0xff] }
  0x2a   :  { %22758 = vst [vmem:[#allocation91_spill] sm:$0xff] %v16991_v26  ;;  %22759 = vst [vmem:[#allocation92_spill] sm:$0xff] %v16996_v31  ;;  %v17006_v22 = vld [vmem:[%s22642_s5 + $0x298] sm:$0xff]  ;;  %v17011_v30 = vld [vmem:[%s22642_s5 + $0x2a0] sm:$0xff] }
  0x2b   :  { %22760 = vst [vmem:[#allocation93_spill] sm:$0xff] %v17001_v27  ;;  %22761 = vst [vmem:[#allocation94_spill] sm:$0xff] %v17006_v22  ;;  %v17016_v26 = vld [vmem:[%s22642_s5 + $0x2a8] sm:$0xff]  ;;  %v17021_v31 = vld [vmem:[%s22642_s5 + $0x2b0] sm:$0xff] }
  0x2c   :  { %22762 = vst [vmem:[#allocation95_spill] sm:$0xff] %v17011_v30  ;;  %22763 = vst [vmem:[#allocation96_spill] sm:$0xff] %v17016_v26  ;;  %v17026_v27 = vld [vmem:[%s22642_s5 + $0x2b8] sm:$0xff]  ;;  %v17031_v22 = vld [vmem:[%s22642_s5 + $0x2c0] sm:$0xff] }
  0x2d   :  { %22764 = vst [vmem:[#allocation97_spill] sm:$0xff] %v17021_v31  ;;  %22765 = vst [vmem:[#allocation98_spill] sm:$0xff] %v17026_v27  ;;  %v17036_v30 = vld [vmem:[%s22642_s5 + $0x2c8] sm:$0xff]  ;;  %v17041_v26 = vld [vmem:[%s22642_s5 + $0x2d0] sm:$0xff] }
  0x2e   :  { %22766 = vst [vmem:[#allocation99_spill] sm:$0xff] %v17031_v22  ;;  %22767 = vst [vmem:[#allocation100_spill] sm:$0xff] %v17036_v30  ;;  %v17046_v31 = vld [vmem:[%s22642_s5 + $0x2d8] sm:$0xff]  ;;  %v17051_v27 = vld [vmem:[%s22642_s5 + $0x2e0] sm:$0xff] }
  0x2f   :  { %22768 = vst [vmem:[#allocation101_spill] sm:$0xff] %v17041_v26  ;;  %22769 = vst [vmem:[#allocation102_spill] sm:$0xff] %v17046_v31  ;;  %v17056_v22 = vld [vmem:[%s22642_s5 + $0x2e8] sm:$0xff]  ;;  %v17061_v30 = vld [vmem:[%s22642_s5 + $0x2f0] sm:$0xff] }
  0x30   :  { %22770 = vst [vmem:[#allocation103_spill] sm:$0xff] %v17051_v27  ;;  %22771 = vst [vmem:[#allocation104_spill] sm:$0xff] %v17056_v22  ;;  %v17066_v26 = vld [vmem:[%s22642_s5 + $0x2f8] sm:$0xff]  ;;  %v17071_v31 = vld [vmem:[%s22642_s5 + $0x300] sm:$0xff] }
  0x31   :  { %22772 = vst [vmem:[#allocation105_spill] sm:$0xff] %v17061_v30  ;;  %22773 = vst [vmem:[#allocation106_spill] sm:$0xff] %v17066_v26  ;;  %v17076_v27 = vld [vmem:[%s22642_s5 + $0x308] sm:$0xff]  ;;  %v17081_v22 = vld [vmem:[%s22642_s5 + $0x310] sm:$0xff] }
  0x32   :  { %22774 = vst [vmem:[#allocation107_spill] sm:$0xff] %v17071_v31  ;;  %22775 = vst [vmem:[#allocation108_spill] sm:$0xff] %v17076_v27  ;;  %v17086_v30 = vld [vmem:[%s22642_s5 + $0x318] sm:$0xff]  ;;  %v17091_v26 = vld [vmem:[%s22642_s5 + $0x320] sm:$0xff] }
  0x33   :  { %22776 = vst [vmem:[#allocation109_spill] sm:$0xff] %v17081_v22  ;;  %22777 = vst [vmem:[#allocation110_spill] sm:$0xff] %v17086_v30  ;;  %v17096_v31 = vld [vmem:[%s22642_s5 + $0x328] sm:$0xff]  ;;  %v17101_v27 = vld [vmem:[%s22642_s5 + $0x330] sm:$0xff] }
  0x34   :  { %22778 = vst [vmem:[#allocation111_spill] sm:$0xff] %v17091_v26  ;;  %22779 = vst [vmem:[#allocation112_spill] sm:$0xff] %v17096_v31  ;;  %v17106_v22 = vld [vmem:[%s22642_s5 + $0x338] sm:$0xff]  ;;  %v17111_v30 = vld [vmem:[%s22642_s5 + $0x340] sm:$0xff] }
  0x35   :  { %22780 = vst [vmem:[#allocation113_spill] sm:$0xff] %v17101_v27  ;;  %22781 = vst [vmem:[#allocation114_spill] sm:$0xff] %v17106_v22  ;;  %v17116_v26 = vld [vmem:[%s22642_s5 + $0x348] sm:$0xff]  ;;  %v17121_v31 = vld [vmem:[%s22642_s5 + $0x350] sm:$0xff] }
  0x36   :  { %22782 = vst [vmem:[#allocation115_spill] sm:$0xff] %v17111_v30  ;;  %22783 = vst [vmem:[#allocation116_spill] sm:$0xff] %v17116_v26  ;;  %v17126_v27 = vld [vmem:[%s22642_s5 + $0x358] sm:$0xff]  ;;  %v17131_v22 = vld [vmem:[%s22642_s5 + $0x360] sm:$0xff] }
  0x37   :  { %22784 = vst [vmem:[#allocation117_spill] sm:$0xff] %v17121_v31  ;;  %22785 = vst [vmem:[#allocation118_spill] sm:$0xff] %v17126_v27  ;;  %v17136_v30 = vld [vmem:[%s22642_s5 + $0x368] sm:$0xff]  ;;  %v17141_v26 = vld [vmem:[%s22642_s5 + $0x370] sm:$0xff] }
  0x38   :  { %22786 = vst [vmem:[#allocation119_spill] sm:$0xff] %v17131_v22  ;;  %22787 = vst [vmem:[#allocation120_spill] sm:$0xff] %v17136_v30  ;;  %v17146_v31 = vld [vmem:[%s22642_s5 + $0x378] sm:$0xff]  ;;  %v17151_v27 = vld [vmem:[%s22642_s5 + $0x380] sm:$0xff] }
  0x39   :  { %22788 = vst [vmem:[#allocation121_spill] sm:$0xff] %v17141_v26  ;;  %22789 = vst [vmem:[#allocation122_spill] sm:$0xff] %v17146_v31  ;;  %v17156_v22 = vld [vmem:[%s22642_s5 + $0x388] sm:$0xff]  ;;  %v17161_v30 = vld [vmem:[%s22642_s5 + $0x390] sm:$0xff] }
  0x3a   :  { %22790 = vst [vmem:[#allocation123_spill] sm:$0xff] %v17151_v27  ;;  %22791 = vst [vmem:[#allocation124_spill] sm:$0xff] %v17156_v22  ;;  %v17166_v26 = vld [vmem:[%s22642_s5 + $0x398] sm:$0xff]  ;;  %v17171_v31 = vld [vmem:[%s22642_s5 + $0x3a0] sm:$0xff] }
  0x3b   :  { %22792 = vst [vmem:[#allocation125_spill] sm:$0xff] %v17161_v30  ;;  %22793 = vst [vmem:[#allocation126_spill] sm:$0xff] %v17166_v26  ;;  %v17176_v27 = vld [vmem:[%s22642_s5 + $0x3a8] sm:$0xff]  ;;  %v17181_v22 = vld [vmem:[%s22642_s5 + $0x3b0] sm:$0xff] }
  0x3c   :  { %22794 = vst [vmem:[#allocation127_spill] sm:$0xff] %v17171_v31  ;;  %22795 = vst [vmem:[#allocation128_spill] sm:$0xff] %v17176_v27  ;;  %v17186_v30 = vld [vmem:[%s22642_s5 + $0x3b8] sm:$0xff]  ;;  %v17191_v26 = vld [vmem:[%s22642_s5 + $0x3c0] sm:$0xff] }
  0x3d   :  { %22796 = vst [vmem:[#allocation129_spill] sm:$0xff] %v17181_v22  ;;  %22797 = vst [vmem:[#allocation130_spill] sm:$0xff] %v17186_v30  ;;  %v17196_v31 = vld [vmem:[%s22642_s5 + $0x3c8] sm:$0xff]  ;;  %v17201_v27 = vld [vmem:[%s22642_s5 + $0x3d0] sm:$0xff] }
  0x3e   :  { %22798 = vst [vmem:[#allocation131_spill] sm:$0xff] %v17191_v26  ;;  %22799 = vst [vmem:[#allocation132_spill] sm:$0xff] %v17196_v31  ;;  %v17206_v22 = vld [vmem:[%s22642_s5 + $0x3d8] sm:$0xff]  ;;  %v17211_v30 = vld [vmem:[%s22642_s5 + $0x3e0] sm:$0xff] }
  0x3f   :  { %22800 = vst [vmem:[#allocation133_spill] sm:$0xff] %v17201_v27  ;;  %22801 = vst [vmem:[#allocation134_spill] sm:$0xff] %v17206_v22  ;;  %v17216_v26 = vld [vmem:[%s22642_s5 + $0x3e8] sm:$0xff]  ;;  %v17221_v31 = vld [vmem:[%s22642_s5 + $0x3f0] sm:$0xff] }
  0x40   :  { %22802 = vst [vmem:[#allocation135_spill] sm:$0xff] %v17211_v30  ;;  %22803 = vst [vmem:[#allocation136_spill] sm:$0xff] %v17216_v26  ;;  %v17226_v27 = vld [vmem:[%s22642_s5 + $0x3f8] sm:$0xff]  ;;  %v17231_v22 = vld [vmem:[%s22642_s5 + $0x400] sm:$0xff] }
  0x41   :  { %22804 = vst [vmem:[#allocation137_spill] sm:$0xff] %v17221_v31  ;;  %22805 = vst [vmem:[#allocation138_spill] sm:$0xff] %v17226_v27  ;;  %v17236_v30 = vld [vmem:[%s22642_s5 + $0x408] sm:$0xff]  ;;  %v17241_v26 = vld [vmem:[%s22642_s5 + $0x410] sm:$0xff] }
  0x42   :  { %22806 = vst [vmem:[#allocation139_spill] sm:$0xff] %v17231_v22  ;;  %22807 = vst [vmem:[#allocation140_spill] sm:$0xff] %v17236_v30  ;;  %v17246_v31 = vld [vmem:[%s22642_s5 + $0x418] sm:$0xff]  ;;  %v17251_v27 = vld [vmem:[%s22642_s5 + $0x420] sm:$0xff] }
  0x43   :  { %22808 = vst [vmem:[#allocation141_spill] sm:$0xff] %v17241_v26  ;;  %22809 = vst [vmem:[#allocation142_spill] sm:$0xff] %v17246_v31  ;;  %v17256_v22 = vld [vmem:[%s22642_s5 + $0x428] sm:$0xff]  ;;  %v17261_v30 = vld [vmem:[%s22642_s5 + $0x430] sm:$0xff] }
  0x44   :  { %22810 = vst [vmem:[#allocation143_spill] sm:$0xff] %v17251_v27  ;;  %22811 = vst [vmem:[#allocation144_spill] sm:$0xff] %v17256_v22  ;;  %v17266_v26 = vld [vmem:[%s22642_s5 + $0x438] sm:$0xff]  ;;  %v17271_v31 = vld [vmem:[%s22642_s5 + $0x440] sm:$0xff] }
  0x45   :  { %22812 = vst [vmem:[#allocation145_spill] sm:$0xff] %v17261_v30  ;;  %22813 = vst [vmem:[#allocation146_spill] sm:$0xff] %v17266_v26  ;;  %v17276_v27 = vld [vmem:[%s22642_s5 + $0x448] sm:$0xff]  ;;  %v17281_v22 = vld [vmem:[%s22642_s5 + $0x450] sm:$0xff] }
  0x46   :  { %22814 = vst [vmem:[#allocation147_spill] sm:$0xff] %v17271_v31  ;;  %22815 = vst [vmem:[#allocation148_spill] sm:$0xff] %v17276_v27  ;;  %v17286_v30 = vld [vmem:[%s22642_s5 + $0x458] sm:$0xff]  ;;  %v17291_v26 = vld [vmem:[%s22642_s5 + $0x460] sm:$0xff] }
  0x47   :  { %22816 = vst [vmem:[#allocation149_spill] sm:$0xff] %v17281_v22  ;;  %22817 = vst [vmem:[#allocation150_spill] sm:$0xff] %v17286_v30  ;;  %v17296_v31 = vld [vmem:[%s22642_s5 + $0x468] sm:$0xff]  ;;  %v17301_v27 = vld [vmem:[%s22642_s5 + $0x470] sm:$0xff] }
  0x48   :  { %22818 = vst [vmem:[#allocation151_spill] sm:$0xff] %v17291_v26  ;;  %22819 = vst [vmem:[#allocation152_spill] sm:$0xff] %v17296_v31  ;;  %v17306_v22 = vld [vmem:[%s22642_s5 + $0x478] sm:$0xff]  ;;  %v17311_v30 = vld [vmem:[%s22642_s5 + $0x480] sm:$0xff] }
  0x49   :  { %22820 = vst [vmem:[#allocation153_spill] sm:$0xff] %v17301_v27  ;;  %22821 = vst [vmem:[#allocation154_spill] sm:$0xff] %v17306_v22  ;;  %v17316_v26 = vld [vmem:[%s22642_s5 + $0x488] sm:$0xff]  ;;  %v17321_v31 = vld [vmem:[%s22642_s5 + $0x490] sm:$0xff] }
  0x4a   :  { %22822 = vst [vmem:[#allocation155_spill] sm:$0xff] %v17311_v30  ;;  %22823 = vst [vmem:[#allocation156_spill] sm:$0xff] %v17316_v26  ;;  %v17326_v27 = vld [vmem:[%s22642_s5 + $0x498] sm:$0xff]  ;;  %v17331_v22 = vld [vmem:[%s22642_s5 + $0x4a0] sm:$0xff] }
  0x4b   :  { %22824 = vst [vmem:[#allocation157_spill] sm:$0xff] %v17321_v31  ;;  %22825 = vst [vmem:[#allocation158_spill] sm:$0xff] %v17326_v27  ;;  %v17336_v30 = vld [vmem:[%s22642_s5 + $0x4a8] sm:$0xff]  ;;  %v17341_v26 = vld [vmem:[%s22642_s5 + $0x4b0] sm:$0xff] }
  0x4c   :  { %22826 = vst [vmem:[#allocation159_spill] sm:$0xff] %v17331_v22  ;;  %22827 = vst [vmem:[#allocation160_spill] sm:$0xff] %v17336_v30  ;;  %v17346_v31 = vld [vmem:[%s22642_s5 + $0x4b8] sm:$0xff]  ;;  %v17351_v27 = vld [vmem:[%s22642_s5 + $0x4c0] sm:$0xff] }
  0x4d   :  { %22828 = vst [vmem:[#allocation161_spill] sm:$0xff] %v17341_v26  ;;  %22829 = vst [vmem:[#allocation162_spill] sm:$0xff] %v17346_v31  ;;  %v17356_v22 = vld [vmem:[%s22642_s5 + $0x4c8] sm:$0xff]  ;;  %v17361_v30 = vld [vmem:[%s22642_s5 + $0x4d0] sm:$0xff] }
  0x4e   :  { %22830 = vst [vmem:[#allocation163_spill] sm:$0xff] %v17351_v27  ;;  %22831 = vst [vmem:[#allocation164_spill] sm:$0xff] %v17356_v22  ;;  %v17366_v26 = vld [vmem:[%s22642_s5 + $0x4d8] sm:$0xff]  ;;  %v17371_v31 = vld [vmem:[%s22642_s5 + $0x4e0] sm:$0xff] }
  0x4f   :  { %22832 = vst [vmem:[#allocation165_spill] sm:$0xff] %v17361_v30  ;;  %22833 = vst [vmem:[#allocation166_spill] sm:$0xff] %v17366_v26  ;;  %v17376_v27 = vld [vmem:[%s22642_s5 + $0x4e8] sm:$0xff]  ;;  %v17381_v22 = vld [vmem:[%s22642_s5 + $0x4f0] sm:$0xff] }
  0x50   :  { %22834 = vst [vmem:[#allocation167_spill] sm:$0xff] %v17371_v31  ;;  %22835 = vst [vmem:[#allocation168_spill] sm:$0xff] %v17376_v27  ;;  %v17386_v30 = vld [vmem:[%s22642_s5 + $0x4f8] sm:$0xff]  ;;  %v17391_v26 = vld [vmem:[%s22642_s5 + $0x500] sm:$0xff] }
  0x51   :  { %22836 = vst [vmem:[#allocation169_spill] sm:$0xff] %v17381_v22  ;;  %22837 = vst [vmem:[#allocation170_spill] sm:$0xff] %v17386_v30  ;;  %v17396_v31 = vld [vmem:[%s22642_s5 + $0x508] sm:$0xff]  ;;  %v17401_v27 = vld [vmem:[%s22642_s5 + $0x510] sm:$0xff] }
  0x52   :  { %22838 = vst [vmem:[#allocation171_spill] sm:$0xff] %v17391_v26  ;;  %22839 = vst [vmem:[#allocation172_spill] sm:$0xff] %v17396_v31  ;;  %v17406_v22 = vld [vmem:[%s22642_s5 + $0x518] sm:$0xff]  ;;  %v17411_v30 = vld [vmem:[%s22642_s5 + $0x520] sm:$0xff] }
  0x53   :  { %22840 = vst [vmem:[#allocation173_spill] sm:$0xff] %v17401_v27  ;;  %22841 = vst [vmem:[#allocation174_spill] sm:$0xff] %v17406_v22  ;;  %v17416_v26 = vld [vmem:[%s22642_s5 + $0x528] sm:$0xff]  ;;  %v17421_v31 = vld [vmem:[%s22642_s5 + $0x530] sm:$0xff] }
  0x54   :  { %22842 = vst [vmem:[#allocation175_spill] sm:$0xff] %v17411_v30  ;;  %22843 = vst [vmem:[#allocation176_spill] sm:$0xff] %v17416_v26  ;;  %v17426_v27 = vld [vmem:[%s22642_s5 + $0x538] sm:$0xff]  ;;  %v17431_v22 = vld [vmem:[%s22642_s5 + $0x540] sm:$0xff] }
  0x55   :  { %22844 = vst [vmem:[#allocation177_spill] sm:$0xff] %v17421_v31  ;;  %22845 = vst [vmem:[#allocation178_spill] sm:$0xff] %v17426_v27  ;;  %v17436_v30 = vld [vmem:[%s22642_s5 + $0x548] sm:$0xff]  ;;  %v17441_v26 = vld [vmem:[%s22642_s5 + $0x550] sm:$0xff] }
  0x56   :  { %22846 = vst [vmem:[#allocation179_spill] sm:$0xff] %v17431_v22  ;;  %22847 = vst [vmem:[#allocation180_spill] sm:$0xff] %v17436_v30  ;;  %v17446_v31 = vld [vmem:[%s22642_s5 + $0x558] sm:$0xff]  ;;  %v17451_v27 = vld [vmem:[%s22642_s5 + $0x560] sm:$0xff] }
  0x57   :  { %22848 = vst [vmem:[#allocation181_spill] sm:$0xff] %v17441_v26  ;;  %22849 = vst [vmem:[#allocation182_spill] sm:$0xff] %v17446_v31  ;;  %v17456_v22 = vld [vmem:[%s22642_s5 + $0x568] sm:$0xff]  ;;  %v17461_v30 = vld [vmem:[%s22642_s5 + $0x570] sm:$0xff] }
  0x58   :  { %22850 = vst [vmem:[#allocation183_spill] sm:$0xff] %v17451_v27  ;;  %22851 = vst [vmem:[#allocation184_spill] sm:$0xff] %v17456_v22  ;;  %v17466_v26 = vld [vmem:[%s22642_s5 + $0x578] sm:$0xff]  ;;  %v17471_v31 = vld [vmem:[%s22642_s5 + $0x580] sm:$0xff] }
  0x59   :  { %22852 = vst [vmem:[#allocation185_spill] sm:$0xff] %v17461_v30  ;;  %22853 = vst [vmem:[#allocation186_spill] sm:$0xff] %v17466_v26  ;;  %v17476_v27 = vld [vmem:[%s22642_s5 + $0x588] sm:$0xff]  ;;  %v17481_v22 = vld [vmem:[%s22642_s5 + $0x590] sm:$0xff] }
  0x5a   :  { %22854 = vst [vmem:[#allocation187_spill] sm:$0xff] %v17471_v31  ;;  %22855 = vst [vmem:[#allocation188_spill] sm:$0xff] %v17476_v27  ;;  %v17486_v30 = vld [vmem:[%s22642_s5 + $0x598] sm:$0xff]  ;;  %v17491_v26 = vld [vmem:[%s22642_s5 + $0x5a0] sm:$0xff] }
  0x5b   :  { %22856 = vst [vmem:[#allocation189_spill] sm:$0xff] %v17481_v22  ;;  %22857 = vst [vmem:[#allocation190_spill] sm:$0xff] %v17486_v30  ;;  %v17496_v31 = vld [vmem:[%s22642_s5 + $0x5a8] sm:$0xff]  ;;  %v17501_v27 = vld [vmem:[%s22642_s5 + $0x5b0] sm:$0xff] }
  0x5c   :  { %22858 = vst [vmem:[#allocation191_spill] sm:$0xff] %v17491_v26  ;;  %22859 = vst [vmem:[#allocation192_spill] sm:$0xff] %v17496_v31  ;;  %v17506_v22 = vld [vmem:[%s22642_s5 + $0x5b8] sm:$0xff]  ;;  %v17511_v30 = vld [vmem:[%s22642_s5 + $0x5c0] sm:$0xff] }
  0x5d   :  { %22860 = vst [vmem:[#allocation193_spill] sm:$0xff] %v17501_v27  ;;  %22861 = vst [vmem:[#allocation194_spill] sm:$0xff] %v17506_v22  ;;  %v17516_v26 = vld [vmem:[%s22642_s5 + $0x5c8] sm:$0xff]  ;;  %v17521_v31 = vld [vmem:[%s22642_s5 + $0x5d0] sm:$0xff] }
  0x5e   :  { %22862 = vst [vmem:[#allocation195_spill] sm:$0xff] %v17511_v30  ;;  %22863 = vst [vmem:[#allocation196_spill] sm:$0xff] %v17516_v26  ;;  %v17526_v27 = vld [vmem:[%s22642_s5 + $0x5d8] sm:$0xff]  ;;  %v17531_v22 = vld [vmem:[%s22642_s5 + $0x5e0] sm:$0xff] }
  0x5f   :  { %22864 = vst [vmem:[#allocation197_spill] sm:$0xff] %v17521_v31  ;;  %22865 = vst [vmem:[#allocation198_spill] sm:$0xff] %v17526_v27  ;;  %v17536_v30 = vld [vmem:[%s22642_s5 + $0x5e8] sm:$0xff]  ;;  %v17541_v26 = vld [vmem:[%s22642_s5 + $0x5f0] sm:$0xff] }
  0x60   :  { %22866 = vst [vmem:[#allocation199_spill] sm:$0xff] %v17531_v22  ;;  %22867 = vst [vmem:[#allocation200_spill] sm:$0xff] %v17536_v30  ;;  %v17546_v31 = vld [vmem:[%s22642_s5 + $0x5f8] sm:$0xff]  ;;  %v17551_v27 = vld [vmem:[%s22642_s5 + $0x600] sm:$0xff] }
  0x61   :  { %22868 = vst [vmem:[#allocation201_spill] sm:$0xff] %v17541_v26  ;;  %22869 = vst [vmem:[#allocation202_spill] sm:$0xff] %v17546_v31  ;;  %v17556_v22 = vld [vmem:[%s22642_s5 + $0x608] sm:$0xff]  ;;  %v17561_v30 = vld [vmem:[%s22642_s5 + $0x610] sm:$0xff] }
  0x62   :  { %22870 = vst [vmem:[#allocation203_spill] sm:$0xff] %v17551_v27  ;;  %22871 = vst [vmem:[#allocation204_spill] sm:$0xff] %v17556_v22  ;;  %v17566_v26 = vld [vmem:[%s22642_s5 + $0x618] sm:$0xff]  ;;  %v17571_v31 = vld [vmem:[%s22642_s5 + $0x620] sm:$0xff] }
  0x63   :  { %22872 = vst [vmem:[#allocation205_spill] sm:$0xff] %v17561_v30  ;;  %22873 = vst [vmem:[#allocation206_spill] sm:$0xff] %v17566_v26  ;;  %v17576_v27 = vld [vmem:[%s22642_s5 + $0x628] sm:$0xff]  ;;  %v17581_v22 = vld [vmem:[%s22642_s5 + $0x630] sm:$0xff] }
  0x64   :  { %22874 = vst [vmem:[#allocation207_spill] sm:$0xff] %v17571_v31  ;;  %22875 = vst [vmem:[#allocation208_spill] sm:$0xff] %v17576_v27  ;;  %v17586_v30 = vld [vmem:[%s22642_s5 + $0x638] sm:$0xff]  ;;  %v17591_v26 = vld [vmem:[%s22642_s5 + $0x640] sm:$0xff] }
  0x65   :  { %22876 = vst [vmem:[#allocation209_spill] sm:$0xff] %v17581_v22  ;;  %22877 = vst [vmem:[#allocation210_spill] sm:$0xff] %v17586_v30  ;;  %v17596_v31 = vld [vmem:[%s22642_s5 + $0x648] sm:$0xff]  ;;  %v17601_v27 = vld [vmem:[%s22642_s5 + $0x650] sm:$0xff] }
  0x66   :  { %22878 = vst [vmem:[#allocation211_spill] sm:$0xff] %v17591_v26  ;;  %22879 = vst [vmem:[#allocation212_spill] sm:$0xff] %v17596_v31  ;;  %v17606_v22 = vld [vmem:[%s22642_s5 + $0x658] sm:$0xff]  ;;  %v17611_v30 = vld [vmem:[%s22642_s5 + $0x660] sm:$0xff] }
  0x67   :  { %22880 = vst [vmem:[#allocation213_spill] sm:$0xff] %v17601_v27  ;;  %22881 = vst [vmem:[#allocation214_spill] sm:$0xff] %v17606_v22  ;;  %v17616_v26 = vld [vmem:[%s22642_s5 + $0x668] sm:$0xff]  ;;  %v17621_v31 = vld [vmem:[%s22642_s5 + $0x670] sm:$0xff] }
  0x68   :  { %22882 = vst [vmem:[#allocation215_spill] sm:$0xff] %v17611_v30  ;;  %22883 = vst [vmem:[#allocation216_spill] sm:$0xff] %v17616_v26  ;;  %v17626_v27 = vld [vmem:[%s22642_s5 + $0x678] sm:$0xff]  ;;  %v17631_v22 = vld [vmem:[%s22642_s5 + $0x680] sm:$0xff] }
  0x69   :  { %22884 = vst [vmem:[#allocation217_spill] sm:$0xff] %v17621_v31  ;;  %22885 = vst [vmem:[#allocation218_spill] sm:$0xff] %v17626_v27  ;;  %v17636_v30 = vld [vmem:[%s22642_s5 + $0x688] sm:$0xff]  ;;  %v17641_v26 = vld [vmem:[%s22642_s5 + $0x690] sm:$0xff] }
  0x6a   :  { %22886 = vst [vmem:[#allocation219_spill] sm:$0xff] %v17631_v22  ;;  %22887 = vst [vmem:[#allocation220_spill] sm:$0xff] %v17636_v30  ;;  %v17646_v31 = vld [vmem:[%s22642_s5 + $0x698] sm:$0xff]  ;;  %v17651_v27 = vld [vmem:[%s22642_s5 + $0x6a0] sm:$0xff] }
  0x6b   :  { %22888 = vst [vmem:[#allocation221_spill] sm:$0xff] %v17641_v26  ;;  %22889 = vst [vmem:[#allocation222_spill] sm:$0xff] %v17646_v31  ;;  %v17656_v22 = vld [vmem:[%s22642_s5 + $0x6a8] sm:$0xff]  ;;  %v17661_v30 = vld [vmem:[%s22642_s5 + $0x6b0] sm:$0xff] }
  0x6c   :  { %22890 = vst [vmem:[#allocation223_spill] sm:$0xff] %v17651_v27  ;;  %22891 = vst [vmem:[#allocation224_spill] sm:$0xff] %v17656_v22  ;;  %v17666_v26 = vld [vmem:[%s22642_s5 + $0x6b8] sm:$0xff]  ;;  %v17671_v31 = vld [vmem:[%s22642_s5 + $0x6c0] sm:$0xff] }
  0x6d   :  { %22892 = vst [vmem:[#allocation225_spill] sm:$0xff] %v17661_v30  ;;  %22893 = vst [vmem:[#allocation226_spill] sm:$0xff] %v17666_v26  ;;  %v17676_v27 = vld [vmem:[%s22642_s5 + $0x6c8] sm:$0xff]  ;;  %v17681_v22 = vld [vmem:[%s22642_s5 + $0x6d0] sm:$0xff] }
  0x6e   :  { %22894 = vst [vmem:[#allocation227_spill] sm:$0xff] %v17671_v31  ;;  %22895 = vst [vmem:[#allocation228_spill] sm:$0xff] %v17676_v27  ;;  %v17686_v30 = vld [vmem:[%s22642_s5 + $0x6d8] sm:$0xff]  ;;  %v17691_v26 = vld [vmem:[%s22642_s5 + $0x6e0] sm:$0xff] }
  0x6f   :  { %22896 = vst [vmem:[#allocation229_spill] sm:$0xff] %v17681_v22  ;;  %22897 = vst [vmem:[#allocation230_spill] sm:$0xff] %v17686_v30  ;;  %v17696_v31 = vld [vmem:[%s22642_s5 + $0x6e8] sm:$0xff]  ;;  %v17701_v27 = vld [vmem:[%s22642_s5 + $0x6f0] sm:$0xff] }
  0x70   :  { %22898 = vst [vmem:[#allocation231_spill] sm:$0xff] %v17691_v26  ;;  %22899 = vst [vmem:[#allocation232_spill] sm:$0xff] %v17696_v31  ;;  %v17706_v22 = vld [vmem:[%s22642_s5 + $0x6f8] sm:$0xff]  ;;  %v17711_v30 = vld [vmem:[%s22642_s5 + $0x700] sm:$0xff] }
  0x71   :  { %22900 = vst [vmem:[#allocation233_spill] sm:$0xff] %v17701_v27  ;;  %22901 = vst [vmem:[#allocation234_spill] sm:$0xff] %v17706_v22  ;;  %v17716_v26 = vld [vmem:[%s22642_s5 + $0x708] sm:$0xff]  ;;  %v17721_v31 = vld [vmem:[%s22642_s5 + $0x710] sm:$0xff] }
  0x72   :  { %22902 = vst [vmem:[#allocation235_spill] sm:$0xff] %v17711_v30  ;;  %22903 = vst [vmem:[#allocation236_spill] sm:$0xff] %v17716_v26  ;;  %v17726_v27 = vld [vmem:[%s22642_s5 + $0x718] sm:$0xff]  ;;  %v17731_v22 = vld [vmem:[%s22642_s5 + $0x720] sm:$0xff] }
  0x73   :  { %22904 = vst [vmem:[#allocation237_spill] sm:$0xff] %v17721_v31  ;;  %22905 = vst [vmem:[#allocation238_spill] sm:$0xff] %v17726_v27  ;;  %v17736_v30 = vld [vmem:[%s22642_s5 + $0x728] sm:$0xff]  ;;  %v17741_v26 = vld [vmem:[%s22642_s5 + $0x730] sm:$0xff] }
  0x74   :  { %22906 = vst [vmem:[#allocation239_spill] sm:$0xff] %v17731_v22  ;;  %22907 = vst [vmem:[#allocation240_spill] sm:$0xff] %v17736_v30  ;;  %v17746_v31 = vld [vmem:[%s22642_s5 + $0x738] sm:$0xff]  ;;  %v17751_v27 = vld [vmem:[%s22642_s5 + $0x740] sm:$0xff] }
  0x75   :  { %22908 = vst [vmem:[#allocation241_spill] sm:$0xff] %v17741_v26  ;;  %22909 = vst [vmem:[#allocation242_spill] sm:$0xff] %v17746_v31  ;;  %v17756_v22 = vld [vmem:[%s22642_s5 + $0x748] sm:$0xff]  ;;  %v17761_v30 = vld [vmem:[%s22642_s5 + $0x750] sm:$0xff] }
  0x76   :  { %22910 = vst [vmem:[#allocation243_spill] sm:$0xff] %v17751_v27  ;;  %22911 = vst [vmem:[#allocation244_spill] sm:$0xff] %v17756_v22  ;;  %v17766_v26 = vld [vmem:[%s22642_s5 + $0x758] sm:$0xff]  ;;  %v17771_v31 = vld [vmem:[%s22642_s5 + $0x760] sm:$0xff] }
  0x77   :  { %22912 = vst [vmem:[#allocation245_spill] sm:$0xff] %v17761_v30  ;;  %22913 = vst [vmem:[#allocation246_spill] sm:$0xff] %v17766_v26  ;;  %v17776_v27 = vld [vmem:[%s22642_s5 + $0x768] sm:$0xff]  ;;  %v17781_v22 = vld [vmem:[%s22642_s5 + $0x770] sm:$0xff] }
  0x78   :  { %22914 = vst [vmem:[#allocation247_spill] sm:$0xff] %v17771_v31  ;;  %22915 = vst [vmem:[#allocation248_spill] sm:$0xff] %v17776_v27  ;;  %v17786_v30 = vld [vmem:[%s22642_s5 + $0x778] sm:$0xff]  ;;  %v17791_v26 = vld [vmem:[%s22642_s5 + $0x780] sm:$0xff] }
  0x79   :  { %22916 = vst [vmem:[#allocation249_spill] sm:$0xff] %v17781_v22  ;;  %22917 = vst [vmem:[#allocation250_spill] sm:$0xff] %v17786_v30  ;;  %v17796_v31 = vld [vmem:[%s22642_s5 + $0x788] sm:$0xff]  ;;  %v17801_v27 = vld [vmem:[%s22642_s5 + $0x790] sm:$0xff] }
  0x7a   :  { %22918 = vst [vmem:[#allocation251_spill] sm:$0xff] %v17791_v26  ;;  %22919 = vst [vmem:[#allocation252_spill] sm:$0xff] %v17796_v31  ;;  %v17806_v22 = vld [vmem:[%s22642_s5 + $0x798] sm:$0xff]  ;;  %v17811_v30 = vld [vmem:[%s22642_s5 + $0x7a0] sm:$0xff] }
  0x7b   :  { %22920 = vst [vmem:[#allocation253_spill] sm:$0xff] %v17801_v27  ;;  %22921 = vst [vmem:[#allocation254_spill] sm:$0xff] %v17806_v22  ;;  %v17816_v26 = vld [vmem:[%s22642_s5 + $0x7a8] sm:$0xff]  ;;  %v17821_v31 = vld [vmem:[%s22642_s5 + $0x7b0] sm:$0xff] }
  0x7c   :  { %22922 = vst [vmem:[#allocation255_spill] sm:$0xff] %v17811_v30  ;;  %22923 = vst [vmem:[#allocation256_spill] sm:$0xff] %v17816_v26  ;;  %v17826_v27 = vld [vmem:[%s22642_s5 + $0x7b8] sm:$0xff]  ;;  %v17831_v22 = vld [vmem:[%s22642_s5 + $0x7c0] sm:$0xff] }
  0x7d   :  { %22924 = vst [vmem:[#allocation257_spill] sm:$0xff] %v17821_v31  ;;  %22925 = vst [vmem:[#allocation258_spill] sm:$0xff] %v17826_v27  ;;  %v17836_v30 = vld [vmem:[%s22642_s5 + $0x7c8] sm:$0xff]  ;;  %v17841_v26 = vld [vmem:[%s22642_s5 + $0x7d0] sm:$0xff] }
  0x7e   :  { %22926 = vst [vmem:[#allocation259_spill] sm:$0xff] %v17831_v22  ;;  %22927 = vst [vmem:[#allocation260_spill] sm:$0xff] %v17836_v30  ;;  %v17846_v31 = vld [vmem:[%s22642_s5 + $0x7d8] sm:$0xff]  ;;  %v17851_v27 = vld [vmem:[%s22642_s5 + $0x7e0] sm:$0xff] }
  0x7f   :  { %22928 = vst [vmem:[#allocation261_spill] sm:$0xff] %v17841_v26  ;;  %22929 = vst [vmem:[#allocation262_spill] sm:$0xff] %v17846_v31  ;;  %v17856_v22 = vld [vmem:[%s22642_s5 + $0x7e8] sm:$0xff]  ;;  %v17861_v30 = vld [vmem:[%s22642_s5 + $0x7f0] sm:$0xff] }
  0x80   :  { %22930 = vst [vmem:[#allocation263_spill] sm:$0xff] %v17851_v27  ;;  %22931 = vst [vmem:[#allocation264_spill] sm:$0xff] %v17856_v22  ;;  %v17866_v26 = vld [vmem:[%s22642_s5 + $0x7f8] sm:$0xff]  ;;  %v17871_v31 = vld [vmem:[%s22642_s5 + $0x800] sm:$0xff] }
  0x81   :  { %22932 = vst [vmem:[#allocation265_spill] sm:$0xff] %v17861_v30  ;;  %22933 = vst [vmem:[#allocation266_spill] sm:$0xff] %v17866_v26  ;;  %v17876_v27 = vld [vmem:[%s22642_s5 + $0x808] sm:$0xff]  ;;  %v17881_v22 = vld [vmem:[%s22642_s5 + $0x810] sm:$0xff] }
  0x82   :  { %22934 = vst [vmem:[#allocation267_spill] sm:$0xff] %v17871_v31  ;;  %22935 = vst [vmem:[#allocation268_spill] sm:$0xff] %v17876_v27  ;;  %v17886_v30 = vld [vmem:[%s22642_s5 + $0x818] sm:$0xff]  ;;  %v17891_v26 = vld [vmem:[%s22642_s5 + $0x820] sm:$0xff] }
  0x83   :  { %22936 = vst [vmem:[#allocation269_spill] sm:$0xff] %v17881_v22  ;;  %22937 = vst [vmem:[#allocation270_spill] sm:$0xff] %v17886_v30  ;;  %v17896_v31 = vld [vmem:[%s22642_s5 + $0x828] sm:$0xff]  ;;  %v17901_v27 = vld [vmem:[%s22642_s5 + $0x830] sm:$0xff] }
  0x84   :  { %22938 = vst [vmem:[#allocation271_spill] sm:$0xff] %v17891_v26  ;;  %22939 = vst [vmem:[#allocation272_spill] sm:$0xff] %v17896_v31  ;;  %v17906_v22 = vld [vmem:[%s22642_s5 + $0x838] sm:$0xff]  ;;  %v17911_v30 = vld [vmem:[%s22642_s5 + $0x840] sm:$0xff] }
  0x85   :  { %22940 = vst [vmem:[#allocation273_spill] sm:$0xff] %v17901_v27  ;;  %22941 = vst [vmem:[#allocation274_spill] sm:$0xff] %v17906_v22  ;;  %v17916_v26 = vld [vmem:[%s22642_s5 + $0x848] sm:$0xff]  ;;  %v17921_v31 = vld [vmem:[%s22642_s5 + $0x850] sm:$0xff] }
  0x86   :  { %22942 = vst [vmem:[#allocation275_spill] sm:$0xff] %v17911_v30  ;;  %22943 = vst [vmem:[#allocation276_spill] sm:$0xff] %v17916_v26  ;;  %v17926_v27 = vld [vmem:[%s22642_s5 + $0x858] sm:$0xff]  ;;  %v17931_v22 = vld [vmem:[%s22642_s5 + $0x860] sm:$0xff] }
  0x87   :  { %22944 = vst [vmem:[#allocation277_spill] sm:$0xff] %v17921_v31  ;;  %22945 = vst [vmem:[#allocation278_spill] sm:$0xff] %v17926_v27  ;;  %v17936_v30 = vld [vmem:[%s22642_s5 + $0x868] sm:$0xff]  ;;  %v17941_v26 = vld [vmem:[%s22642_s5 + $0x870] sm:$0xff] }
  0x88   :  { %22946 = vst [vmem:[#allocation279_spill] sm:$0xff] %v17931_v22  ;;  %22947 = vst [vmem:[#allocation280_spill] sm:$0xff] %v17936_v30  ;;  %v17946_v31 = vld [vmem:[%s22642_s5 + $0x878] sm:$0xff]  ;;  %v17951_v27 = vld [vmem:[%s22642_s5 + $0x880] sm:$0xff] }
  0x89   :  { %22948 = vst [vmem:[#allocation281_spill] sm:$0xff] %v17941_v26  ;;  %22949 = vst [vmem:[#allocation282_spill] sm:$0xff] %v17946_v31  ;;  %v17956_v22 = vld [vmem:[%s22642_s5 + $0x888] sm:$0xff]  ;;  %v17961_v30 = vld [vmem:[%s22642_s5 + $0x890] sm:$0xff] }
  0x8a   :  { %22950 = vst [vmem:[#allocation283_spill] sm:$0xff] %v17951_v27  ;;  %22951 = vst [vmem:[#allocation284_spill] sm:$0xff] %v17956_v22  ;;  %v17966_v26 = vld [vmem:[%s22642_s5 + $0x898] sm:$0xff]  ;;  %v17971_v31 = vld [vmem:[%s22642_s5 + $0x8a0] sm:$0xff] }
  0x8b   :  { %22952 = vst [vmem:[#allocation285_spill] sm:$0xff] %v17961_v30  ;;  %22953 = vst [vmem:[#allocation286_spill] sm:$0xff] %v17966_v26  ;;  %v17976_v27 = vld [vmem:[%s22642_s5 + $0x8a8] sm:$0xff]  ;;  %v17981_v22 = vld [vmem:[%s22642_s5 + $0x8b0] sm:$0xff] }
  0x8c   :  { %22954 = vst [vmem:[#allocation287_spill] sm:$0xff] %v17971_v31  ;;  %22955 = vst [vmem:[#allocation288_spill] sm:$0xff] %v17976_v27  ;;  %v17986_v30 = vld [vmem:[%s22642_s5 + $0x8b8] sm:$0xff]  ;;  %v17991_v26 = vld [vmem:[%s22642_s5 + $0x8c0] sm:$0xff] }
  0x8d   :  { %22956 = vst [vmem:[#allocation289_spill] sm:$0xff] %v17981_v22  ;;  %22957 = vst [vmem:[#allocation290_spill] sm:$0xff] %v17986_v30  ;;  %v17996_v31 = vld [vmem:[%s22642_s5 + $0x8c8] sm:$0xff]  ;;  %v18001_v27 = vld [vmem:[%s22642_s5 + $0x8d0] sm:$0xff] }
  0x8e   :  { %22958 = vst [vmem:[#allocation291_spill] sm:$0xff] %v17991_v26  ;;  %22959 = vst [vmem:[#allocation292_spill] sm:$0xff] %v17996_v31  ;;  %v18006_v22 = vld [vmem:[%s22642_s5 + $0x8d8] sm:$0xff]  ;;  %v18011_v30 = vld [vmem:[%s22642_s5 + $0x8e0] sm:$0xff] }
  0x8f   :  { %22960 = vst [vmem:[#allocation293_spill] sm:$0xff] %v18001_v27  ;;  %22961 = vst [vmem:[#allocation294_spill] sm:$0xff] %v18006_v22  ;;  %v18016_v26 = vld [vmem:[%s22642_s5 + $0x8e8] sm:$0xff]  ;;  %v18021_v31 = vld [vmem:[%s22642_s5 + $0x8f0] sm:$0xff] }
  0x90   :  { %22962 = vst [vmem:[#allocation295_spill] sm:$0xff] %v18011_v30  ;;  %22963 = vst [vmem:[#allocation296_spill] sm:$0xff] %v18016_v26  ;;  %v18026_v27 = vld [vmem:[%s22642_s5 + $0x8f8] sm:$0xff]  ;;  %v18031_v22 = vld [vmem:[%s22642_s5 + $0x900] sm:$0xff] }
  0x91   :  { %22964 = vst [vmem:[#allocation297_spill] sm:$0xff] %v18021_v31  ;;  %22965 = vst [vmem:[#allocation298_spill] sm:$0xff] %v18026_v27  ;;  %v18036_v30 = vld [vmem:[%s22642_s5 + $0x908] sm:$0xff]  ;;  %v18041_v26 = vld [vmem:[%s22642_s5 + $0x910] sm:$0xff] }
  0x92   :  { %22966 = vst [vmem:[#allocation299_spill] sm:$0xff] %v18031_v22  ;;  %22967 = vst [vmem:[#allocation300_spill] sm:$0xff] %v18036_v30  ;;  %v18046_v31 = vld [vmem:[%s22642_s5 + $0x918] sm:$0xff]  ;;  %v18051_v27 = vld [vmem:[%s22642_s5 + $0x920] sm:$0xff] }
  0x93   :  { %22968 = vst [vmem:[#allocation301_spill] sm:$0xff] %v18041_v26  ;;  %22969 = vst [vmem:[#allocation302_spill] sm:$0xff] %v18046_v31  ;;  %v18056_v22 = vld [vmem:[%s22642_s5 + $0x928] sm:$0xff]  ;;  %v18061_v30 = vld [vmem:[%s22642_s5 + $0x930] sm:$0xff] }
  0x94   :  { %22970 = vst [vmem:[#allocation303_spill] sm:$0xff] %v18051_v27  ;;  %22971 = vst [vmem:[#allocation304_spill] sm:$0xff] %v18056_v22  ;;  %v18066_v26 = vld [vmem:[%s22642_s5 + $0x938] sm:$0xff]  ;;  %v18071_v31 = vld [vmem:[%s22642_s5 + $0x940] sm:$0xff] }
  0x95   :  { %22972 = vst [vmem:[#allocation305_spill] sm:$0xff] %v18061_v30  ;;  %22973 = vst [vmem:[#allocation306_spill] sm:$0xff] %v18066_v26  ;;  %v18076_v27 = vld [vmem:[%s22642_s5 + $0x948] sm:$0xff]  ;;  %v18081_v22 = vld [vmem:[%s22642_s5 + $0x950] sm:$0xff] }
  0x96   :  { %22974 = vst [vmem:[#allocation307_spill] sm:$0xff] %v18071_v31  ;;  %22975 = vst [vmem:[#allocation308_spill] sm:$0xff] %v18076_v27  ;;  %v18086_v30 = vld [vmem:[%s22642_s5 + $0x958] sm:$0xff]  ;;  %v18091_v26 = vld [vmem:[%s22642_s5 + $0x960] sm:$0xff] }
  0x97   :  { %22976 = vst [vmem:[#allocation309_spill] sm:$0xff] %v18081_v22  ;;  %22977 = vst [vmem:[#allocation310_spill] sm:$0xff] %v18086_v30  ;;  %v18096_v31 = vld [vmem:[%s22642_s5 + $0x968] sm:$0xff]  ;;  %v18101_v27 = vld [vmem:[%s22642_s5 + $0x970] sm:$0xff] }
  0x98   :  { %22978 = vst [vmem:[#allocation311_spill] sm:$0xff] %v18091_v26  ;;  %22979 = vst [vmem:[#allocation312_spill] sm:$0xff] %v18096_v31  ;;  %v18106_v22 = vld [vmem:[%s22642_s5 + $0x978] sm:$0xff]  ;;  %v18111_v30 = vld [vmem:[%s22642_s5 + $0x980] sm:$0xff] }
  0x99   :  { %22980 = vst [vmem:[#allocation313_spill] sm:$0xff] %v18101_v27  ;;  %22981 = vst [vmem:[#allocation314_spill] sm:$0xff] %v18106_v22  ;;  %v18116_v26 = vld [vmem:[%s22642_s5 + $0x988] sm:$0xff]  ;;  %v18121_v31 = vld [vmem:[%s22642_s5 + $0x990] sm:$0xff] }
  0x9a   :  { %22982 = vst [vmem:[#allocation315_spill] sm:$0xff] %v18111_v30  ;;  %22983 = vst [vmem:[#allocation316_spill] sm:$0xff] %v18116_v26  ;;  %v18126_v27 = vld [vmem:[%s22642_s5 + $0x998] sm:$0xff]  ;;  %v18131_v22 = vld [vmem:[%s22642_s5 + $0x9a0] sm:$0xff] }
  0x9b   :  { %22984 = vst [vmem:[#allocation317_spill] sm:$0xff] %v18121_v31  ;;  %22985 = vst [vmem:[#allocation318_spill] sm:$0xff] %v18126_v27  ;;  %v18136_v30 = vld [vmem:[%s22642_s5 + $0x9a8] sm:$0xff]  ;;  %v18141_v26 = vld [vmem:[%s22642_s5 + $0x9b0] sm:$0xff] }
  0x9c   :  { %22986 = vst [vmem:[#allocation319_spill] sm:$0xff] %v18131_v22  ;;  %22987 = vst [vmem:[#allocation320_spill] sm:$0xff] %v18136_v30  ;;  %v18146_v31 = vld [vmem:[%s22642_s5 + $0x9b8] sm:$0xff]  ;;  %v18151_v27 = vld [vmem:[%s22642_s5 + $0x9c0] sm:$0xff] }
  0x9d   :  { %22988 = vst [vmem:[#allocation321_spill] sm:$0xff] %v18141_v26  ;;  %22989 = vst [vmem:[#allocation322_spill] sm:$0xff] %v18146_v31  ;;  %v18156_v22 = vld [vmem:[%s22642_s5 + $0x9c8] sm:$0xff]  ;;  %v18161_v30 = vld [vmem:[%s22642_s5 + $0x9d0] sm:$0xff] }
  0x9e   :  { %22990 = vst [vmem:[#allocation323_spill] sm:$0xff] %v18151_v27  ;;  %22991 = vst [vmem:[#allocation324_spill] sm:$0xff] %v18156_v22  ;;  %v18166_v26 = vld [vmem:[%s22642_s5 + $0x9d8] sm:$0xff]  ;;  %v18171_v31 = vld [vmem:[%s22642_s5 + $0x9e0] sm:$0xff] }
  0x9f   :  { %22992 = vst [vmem:[#allocation325_spill] sm:$0xff] %v18161_v30  ;;  %22993 = vst [vmem:[#allocation326_spill] sm:$0xff] %v18166_v26  ;;  %v18176_v27 = vld [vmem:[%s22642_s5 + $0x9e8] sm:$0xff]  ;;  %v18181_v22 = vld [vmem:[%s22642_s5 + $0x9f0] sm:$0xff] }
  0xa0   :  { %22994 = vst [vmem:[#allocation327_spill] sm:$0xff] %v18171_v31  ;;  %22995 = vst [vmem:[#allocation328_spill] sm:$0xff] %v18176_v27  ;;  %v18186_v30 = vld [vmem:[%s22642_s5 + $0x9f8] sm:$0xff]  ;;  %v18191_v26 = vld [vmem:[%s22642_s5 + $0xa00] sm:$0xff] }
  0xa1   :  { %22996 = vst [vmem:[#allocation329_spill] sm:$0xff] %v18181_v22  ;;  %22997 = vst [vmem:[#allocation330_spill] sm:$0xff] %v18186_v30  ;;  %v18196_v31 = vld [vmem:[%s22642_s5 + $0xa08] sm:$0xff]  ;;  %v18201_v27 = vld [vmem:[%s22642_s5 + $0xa10] sm:$0xff] }
  0xa2   :  { %22998 = vst [vmem:[#allocation331_spill] sm:$0xff] %v18191_v26  ;;  %22999 = vst [vmem:[#allocation332_spill] sm:$0xff] %v18196_v31  ;;  %v18206_v22 = vld [vmem:[%s22642_s5 + $0xa18] sm:$0xff]  ;;  %v18211_v30 = vld [vmem:[%s22642_s5 + $0xa20] sm:$0xff] }
  0xa3   :  { %23000 = vst [vmem:[#allocation333_spill] sm:$0xff] %v18201_v27  ;;  %23001 = vst [vmem:[#allocation334_spill] sm:$0xff] %v18206_v22  ;;  %v18216_v26 = vld [vmem:[%s22642_s5 + $0xa28] sm:$0xff]  ;;  %v18221_v31 = vld [vmem:[%s22642_s5 + $0xa30] sm:$0xff] }
  0xa4   :  { %23002 = vst [vmem:[#allocation335_spill] sm:$0xff] %v18211_v30  ;;  %23003 = vst [vmem:[#allocation336_spill] sm:$0xff] %v18216_v26  ;;  %v18226_v27 = vld [vmem:[%s22642_s5 + $0xa38] sm:$0xff]  ;;  %v18231_v22 = vld [vmem:[%s22642_s5 + $0xa40] sm:$0xff] }
  0xa5   :  { %23004 = vst [vmem:[#allocation337_spill] sm:$0xff] %v18221_v31  ;;  %23005 = vst [vmem:[#allocation338_spill] sm:$0xff] %v18226_v27  ;;  %v18236_v30 = vld [vmem:[%s22642_s5 + $0xa48] sm:$0xff]  ;;  %v18241_v26 = vld [vmem:[%s22642_s5 + $0xa50] sm:$0xff] }
  0xa6   :  { %23006 = vst [vmem:[#allocation339_spill] sm:$0xff] %v18231_v22  ;;  %23007 = vst [vmem:[#allocation340_spill] sm:$0xff] %v18236_v30  ;;  %v18246_v31 = vld [vmem:[%s22642_s5 + $0xa58] sm:$0xff]  ;;  %v18251_v27 = vld [vmem:[%s22642_s5 + $0xa60] sm:$0xff] }
  0xa7   :  { %23008 = vst [vmem:[#allocation341_spill] sm:$0xff] %v18241_v26  ;;  %23009 = vst [vmem:[#allocation342_spill] sm:$0xff] %v18246_v31  ;;  %v18256_v22 = vld [vmem:[%s22642_s5 + $0xa68] sm:$0xff]  ;;  %v18261_v30 = vld [vmem:[%s22642_s5 + $0xa70] sm:$0xff] }
  0xa8   :  { %23010 = vst [vmem:[#allocation343_spill] sm:$0xff] %v18251_v27  ;;  %23011 = vst [vmem:[#allocation344_spill] sm:$0xff] %v18256_v22  ;;  %v18266_v26 = vld [vmem:[%s22642_s5 + $0xa78] sm:$0xff]  ;;  %v18271_v31 = vld [vmem:[%s22642_s5 + $0xa80] sm:$0xff] }
  0xa9   :  { %23012 = vst [vmem:[#allocation345_spill] sm:$0xff] %v18261_v30  ;;  %23013 = vst [vmem:[#allocation346_spill] sm:$0xff] %v18266_v26  ;;  %v18276_v27 = vld [vmem:[%s22642_s5 + $0xa88] sm:$0xff]  ;;  %v18281_v22 = vld [vmem:[%s22642_s5 + $0xa90] sm:$0xff] }
  0xaa   :  { %23014 = vst [vmem:[#allocation347_spill] sm:$0xff] %v18271_v31  ;;  %23015 = vst [vmem:[#allocation348_spill] sm:$0xff] %v18276_v27  ;;  %v18286_v30 = vld [vmem:[%s22642_s5 + $0xa98] sm:$0xff]  ;;  %v18291_v26 = vld [vmem:[%s22642_s5 + $0xaa0] sm:$0xff] }
  0xab   :  { %23016 = vst [vmem:[#allocation349_spill] sm:$0xff] %v18281_v22  ;;  %23017 = vst [vmem:[#allocation350_spill] sm:$0xff] %v18286_v30  ;;  %v18296_v31 = vld [vmem:[%s22642_s5 + $0xaa8] sm:$0xff]  ;;  %v18301_v27 = vld [vmem:[%s22642_s5 + $0xab0] sm:$0xff] }
  0xac   :  { %23018 = vst [vmem:[#allocation351_spill] sm:$0xff] %v18291_v26  ;;  %23019 = vst [vmem:[#allocation352_spill] sm:$0xff] %v18296_v31  ;;  %v18306_v22 = vld [vmem:[%s22642_s5 + $0xab8] sm:$0xff]  ;;  %v18311_v30 = vld [vmem:[%s22642_s5 + $0xac0] sm:$0xff] }
  0xad   :  { %23020 = vst [vmem:[#allocation353_spill] sm:$0xff] %v18301_v27  ;;  %23021 = vst [vmem:[#allocation354_spill] sm:$0xff] %v18306_v22  ;;  %v18316_v26 = vld [vmem:[%s22642_s5 + $0xac8] sm:$0xff]  ;;  %v18321_v31 = vld [vmem:[%s22642_s5 + $0xad0] sm:$0xff] }
  0xae   :  { %23022 = vst [vmem:[#allocation355_spill] sm:$0xff] %v18311_v30  ;;  %23023 = vst [vmem:[#allocation356_spill] sm:$0xff] %v18316_v26  ;;  %v18326_v27 = vld [vmem:[%s22642_s5 + $0xad8] sm:$0xff]  ;;  %v18331_v22 = vld [vmem:[%s22642_s5 + $0xae0] sm:$0xff] }
  0xaf   :  { %23024 = vst [vmem:[#allocation357_spill] sm:$0xff] %v18321_v31  ;;  %23025 = vst [vmem:[#allocation358_spill] sm:$0xff] %v18326_v27  ;;  %v18336_v30 = vld [vmem:[%s22642_s5 + $0xae8] sm:$0xff]  ;;  %v18341_v26 = vld [vmem:[%s22642_s5 + $0xaf0] sm:$0xff] }
  0xb0   :  { %23026 = vst [vmem:[#allocation359_spill] sm:$0xff] %v18331_v22  ;;  %23027 = vst [vmem:[#allocation360_spill] sm:$0xff] %v18336_v30  ;;  %v18346_v31 = vld [vmem:[%s22642_s5 + $0xaf8] sm:$0xff]  ;;  %v18351_v27 = vld [vmem:[%s22642_s5 + $0xb00] sm:$0xff] }
  0xb1   :  { %23028 = vst [vmem:[#allocation361_spill] sm:$0xff] %v18341_v26  ;;  %23029 = vst [vmem:[#allocation362_spill] sm:$0xff] %v18346_v31  ;;  %v18356_v22 = vld [vmem:[%s22642_s5 + $0xb08] sm:$0xff]  ;;  %v18361_v30 = vld [vmem:[%s22642_s5 + $0xb10] sm:$0xff] }
  0xb2   :  { %23030 = vst [vmem:[#allocation363_spill] sm:$0xff] %v18351_v27  ;;  %23031 = vst [vmem:[#allocation364_spill] sm:$0xff] %v18356_v22  ;;  %v18366_v26 = vld [vmem:[%s22642_s5 + $0xb18] sm:$0xff]  ;;  %v18371_v31 = vld [vmem:[%s22642_s5 + $0xb20] sm:$0xff] }
  0xb3   :  { %23032 = vst [vmem:[#allocation365_spill] sm:$0xff] %v18361_v30  ;;  %23033 = vst [vmem:[#allocation366_spill] sm:$0xff] %v18366_v26  ;;  %v18376_v27 = vld [vmem:[%s22642_s5 + $0xb28] sm:$0xff]  ;;  %v18381_v22 = vld [vmem:[%s22642_s5 + $0xb30] sm:$0xff] }
  0xb4   :  { %23034 = vst [vmem:[#allocation367_spill] sm:$0xff] %v18371_v31  ;;  %23035 = vst [vmem:[#allocation368_spill] sm:$0xff] %v18376_v27  ;;  %v18386_v30 = vld [vmem:[%s22642_s5 + $0xb38] sm:$0xff]  ;;  %v18391_v26 = vld [vmem:[%s22642_s5 + $0xb40] sm:$0xff] }
  0xb5   :  { %23036 = vst [vmem:[#allocation369_spill] sm:$0xff] %v18381_v22  ;;  %23037 = vst [vmem:[#allocation370_spill] sm:$0xff] %v18386_v30  ;;  %v18396_v31 = vld [vmem:[%s22642_s5 + $0xb48] sm:$0xff]  ;;  %v18401_v27 = vld [vmem:[%s22642_s5 + $0xb50] sm:$0xff] }
  0xb6   :  { %23038 = vst [vmem:[#allocation371_spill] sm:$0xff] %v18391_v26  ;;  %23039 = vst [vmem:[#allocation372_spill] sm:$0xff] %v18396_v31  ;;  %v18406_v22 = vld [vmem:[%s22642_s5 + $0xb58] sm:$0xff]  ;;  %v18411_v30 = vld [vmem:[%s22642_s5 + $0xb60] sm:$0xff] }
  0xb7   :  { %23040 = vst [vmem:[#allocation373_spill] sm:$0xff] %v18401_v27  ;;  %23041 = vst [vmem:[#allocation374_spill] sm:$0xff] %v18406_v22  ;;  %v18416_v26 = vld [vmem:[%s22642_s5 + $0xb68] sm:$0xff]  ;;  %v18421_v31 = vld [vmem:[%s22642_s5 + $0xb70] sm:$0xff] }
  0xb8   :  { %23042 = vst [vmem:[#allocation375_spill] sm:$0xff] %v18411_v30  ;;  %23043 = vst [vmem:[#allocation376_spill] sm:$0xff] %v18416_v26  ;;  %v18426_v27 = vld [vmem:[%s22642_s5 + $0xb78] sm:$0xff]  ;;  %v18431_v22 = vld [vmem:[%s22642_s5 + $0xb80] sm:$0xff] }
  0xb9   :  { %23044 = vst [vmem:[#allocation377_spill] sm:$0xff] %v18421_v31  ;;  %23045 = vst [vmem:[#allocation378_spill] sm:$0xff] %v18426_v27  ;;  %v18436_v30 = vld [vmem:[%s22642_s5 + $0xb88] sm:$0xff]  ;;  %v18441_v26 = vld [vmem:[%s22642_s5 + $0xb90] sm:$0xff] }
  0xba   :  { %23046 = vst [vmem:[#allocation379_spill] sm:$0xff] %v18431_v22  ;;  %23047 = vst [vmem:[#allocation380_spill] sm:$0xff] %v18436_v30  ;;  %v18446_v31 = vld [vmem:[%s22642_s5 + $0xb98] sm:$0xff]  ;;  %v18451_v27 = vld [vmem:[%s22642_s5 + $0xba0] sm:$0xff] }
  0xbb   :  { %23048 = vst [vmem:[#allocation381_spill] sm:$0xff] %v18441_v26  ;;  %23049 = vst [vmem:[#allocation382_spill] sm:$0xff] %v18446_v31  ;;  %v18456_v22 = vld [vmem:[%s22642_s5 + $0xba8] sm:$0xff]  ;;  %v18461_v30 = vld [vmem:[%s22642_s5 + $0xbb0] sm:$0xff] }
  0xbc   :  { %23050 = vst [vmem:[#allocation383_spill] sm:$0xff] %v18451_v27  ;;  %23051 = vst [vmem:[#allocation384_spill] sm:$0xff] %v18456_v22  ;;  %v18466_v26 = vld [vmem:[%s22642_s5 + $0xbb8] sm:$0xff]  ;;  %v18471_v31 = vld [vmem:[%s22642_s5 + $0xbc0] sm:$0xff] }
  0xbd   :  { %23052 = vst [vmem:[#allocation385_spill] sm:$0xff] %v18461_v30  ;;  %23053 = vst [vmem:[#allocation386_spill] sm:$0xff] %v18466_v26  ;;  %v18476_v27 = vld [vmem:[%s22642_s5 + $0xbc8] sm:$0xff]  ;;  %v18481_v22 = vld [vmem:[%s22642_s5 + $0xbd0] sm:$0xff] }
  0xbe   :  { %23054 = vst [vmem:[#allocation387_spill] sm:$0xff] %v18471_v31  ;;  %23055 = vst [vmem:[#allocation388_spill] sm:$0xff] %v18476_v27  ;;  %v18486_v30 = vld [vmem:[%s22642_s5 + $0xbd8] sm:$0xff]  ;;  %v18491_v26 = vld [vmem:[%s22642_s5 + $0xbe0] sm:$0xff] }
  0xbf   :  { %23056 = vst [vmem:[#allocation389_spill] sm:$0xff] %v18481_v22  ;;  %23057 = vst [vmem:[#allocation390_spill] sm:$0xff] %v18486_v30  ;;  %v18496_v31 = vld [vmem:[%s22642_s5 + $0xbe8] sm:$0xff]  ;;  %v18501_v27 = vld [vmem:[%s22642_s5 + $0xbf0] sm:$0xff] }
  0xc0   :  { %23058 = vst [vmem:[#allocation391_spill] sm:$0xff] %v18491_v26  ;;  %23059 = vst [vmem:[#allocation392_spill] sm:$0xff] %v18496_v31  ;;  %v18506_v22 = vld [vmem:[%s22642_s5 + $0xbf8] sm:$0xff]  ;;  %v18511_v30 = vld [vmem:[%s22642_s5 + $0xc00] sm:$0xff] }
  0xc1   :  { %23060 = vst [vmem:[#allocation393_spill] sm:$0xff] %v18501_v27  ;;  %23061 = vst [vmem:[#allocation394_spill] sm:$0xff] %v18506_v22  ;;  %v18516_v26 = vld [vmem:[%s22642_s5 + $0xc08] sm:$0xff]  ;;  %v18521_v31 = vld [vmem:[%s22642_s5 + $0xc10] sm:$0xff] }
  0xc2   :  { %23062 = vst [vmem:[#allocation395_spill] sm:$0xff] %v18511_v30  ;;  %23063 = vst [vmem:[#allocation396_spill] sm:$0xff] %v18516_v26  ;;  %v18526_v27 = vld [vmem:[%s22642_s5 + $0xc18] sm:$0xff]  ;;  %v18531_v22 = vld [vmem:[%s22642_s5 + $0xc20] sm:$0xff] }
  0xc3   :  { %23064 = vst [vmem:[#allocation397_spill] sm:$0xff] %v18521_v31  ;;  %23065 = vst [vmem:[#allocation398_spill] sm:$0xff] %v18526_v27  ;;  %v18536_v30 = vld [vmem:[%s22642_s5 + $0xc28] sm:$0xff]  ;;  %v18541_v26 = vld [vmem:[%s22642_s5 + $0xc30] sm:$0xff] }
  0xc4   :  { %23066 = vst [vmem:[#allocation399_spill] sm:$0xff] %v18531_v22  ;;  %23067 = vst [vmem:[#allocation400_spill] sm:$0xff] %v18536_v30  ;;  %v18546_v31 = vld [vmem:[%s22642_s5 + $0xc38] sm:$0xff]  ;;  %v18551_v27 = vld [vmem:[%s22642_s5 + $0xc40] sm:$0xff] }
  0xc5   :  { %23068 = vst [vmem:[#allocation401_spill] sm:$0xff] %v18541_v26  ;;  %23069 = vst [vmem:[#allocation402_spill] sm:$0xff] %v18546_v31  ;;  %v18556_v22 = vld [vmem:[%s22642_s5 + $0xc48] sm:$0xff]  ;;  %v18561_v30 = vld [vmem:[%s22642_s5 + $0xc50] sm:$0xff] }
  0xc6   :  { %23070 = vst [vmem:[#allocation403_spill] sm:$0xff] %v18551_v27  ;;  %23071 = vst [vmem:[#allocation404_spill] sm:$0xff] %v18556_v22  ;;  %v18566_v26 = vld [vmem:[%s22642_s5 + $0xc58] sm:$0xff]  ;;  %v18571_v31 = vld [vmem:[%s22642_s5 + $0xc60] sm:$0xff] }
  0xc7   :  { %23072 = vst [vmem:[#allocation405_spill] sm:$0xff] %v18561_v30  ;;  %23073 = vst [vmem:[#allocation406_spill] sm:$0xff] %v18566_v26  ;;  %v18576_v27 = vld [vmem:[%s22642_s5 + $0xc68] sm:$0xff]  ;;  %v18581_v22 = vld [vmem:[%s22642_s5 + $0xc70] sm:$0xff] }
  0xc8   :  { %23074 = vst [vmem:[#allocation407_spill] sm:$0xff] %v18571_v31  ;;  %23075 = vst [vmem:[#allocation408_spill] sm:$0xff] %v18576_v27  ;;  %v18586_v30 = vld [vmem:[%s22642_s5 + $0xc78] sm:$0xff]  ;;  %v18591_v26 = vld [vmem:[%s22642_s5 + $0xc80] sm:$0xff] }
  0xc9   :  { %23076 = vst [vmem:[#allocation409_spill] sm:$0xff] %v18581_v22  ;;  %23077 = vst [vmem:[#allocation410_spill] sm:$0xff] %v18586_v30  ;;  %v18596_v31 = vld [vmem:[%s22642_s5 + $0xc88] sm:$0xff]  ;;  %v18601_v27 = vld [vmem:[%s22642_s5 + $0xc90] sm:$0xff] }
  0xca   :  { %23078 = vst [vmem:[#allocation411_spill] sm:$0xff] %v18591_v26  ;;  %23079 = vst [vmem:[#allocation412_spill] sm:$0xff] %v18596_v31  ;;  %v18606_v22 = vld [vmem:[%s22642_s5 + $0xc98] sm:$0xff]  ;;  %v18611_v30 = vld [vmem:[%s22642_s5 + $0xca0] sm:$0xff] }
  0xcb   :  { %23080 = vst [vmem:[#allocation413_spill] sm:$0xff] %v18601_v27  ;;  %23081 = vst [vmem:[#allocation414_spill] sm:$0xff] %v18606_v22  ;;  %v18616_v26 = vld [vmem:[%s22642_s5 + $0xca8] sm:$0xff]  ;;  %v18621_v31 = vld [vmem:[%s22642_s5 + $0xcb0] sm:$0xff] }
  0xcc   :  { %23082 = vst [vmem:[#allocation415_spill] sm:$0xff] %v18611_v30  ;;  %23083 = vst [vmem:[#allocation416_spill] sm:$0xff] %v18616_v26  ;;  %v18626_v27 = vld [vmem:[%s22642_s5 + $0xcb8] sm:$0xff]  ;;  %v18631_v22 = vld [vmem:[%s22642_s5 + $0xcc0] sm:$0xff] }
  0xcd   :  { %23084 = vst [vmem:[#allocation417_spill] sm:$0xff] %v18621_v31  ;;  %23085 = vst [vmem:[#allocation418_spill] sm:$0xff] %v18626_v27  ;;  %v18636_v30 = vld [vmem:[%s22642_s5 + $0xcc8] sm:$0xff]  ;;  %v18641_v26 = vld [vmem:[%s22642_s5 + $0xcd0] sm:$0xff] }
  0xce   :  { %23086 = vst [vmem:[#allocation419_spill] sm:$0xff] %v18631_v22  ;;  %23087 = vst [vmem:[#allocation420_spill] sm:$0xff] %v18636_v30  ;;  %v18646_v31 = vld [vmem:[%s22642_s5 + $0xcd8] sm:$0xff]  ;;  %v18651_v27 = vld [vmem:[%s22642_s5 + $0xce0] sm:$0xff] }
  0xcf   :  { %23088 = vst [vmem:[#allocation421_spill] sm:$0xff] %v18641_v26  ;;  %23089 = vst [vmem:[#allocation422_spill] sm:$0xff] %v18646_v31  ;;  %v18656_v22 = vld [vmem:[%s22642_s5 + $0xce8] sm:$0xff]  ;;  %v18661_v30 = vld [vmem:[%s22642_s5 + $0xcf0] sm:$0xff] }
  0xd0   :  { %23090 = vst [vmem:[#allocation423_spill] sm:$0xff] %v18651_v27  ;;  %23091 = vst [vmem:[#allocation424_spill] sm:$0xff] %v18656_v22  ;;  %v18666_v26 = vld [vmem:[%s22642_s5 + $0xcf8] sm:$0xff]  ;;  %v18671_v31 = vld [vmem:[%s22642_s5 + $0xd00] sm:$0xff] }
  0xd1   :  { %23092 = vst [vmem:[#allocation425_spill] sm:$0xff] %v18661_v30  ;;  %23093 = vst [vmem:[#allocation426_spill] sm:$0xff] %v18666_v26  ;;  %v18676_v27 = vld [vmem:[%s22642_s5 + $0xd08] sm:$0xff]  ;;  %v18681_v22 = vld [vmem:[%s22642_s5 + $0xd10] sm:$0xff] }
  0xd2   :  { %23094 = vst [vmem:[#allocation427_spill] sm:$0xff] %v18671_v31  ;;  %23095 = vst [vmem:[#allocation428_spill] sm:$0xff] %v18676_v27  ;;  %v18686_v30 = vld [vmem:[%s22642_s5 + $0xd18] sm:$0xff]  ;;  %v18691_v26 = vld [vmem:[%s22642_s5 + $0xd20] sm:$0xff] }
  0xd3   :  { %23096 = vst [vmem:[#allocation429_spill] sm:$0xff] %v18681_v22  ;;  %23097 = vst [vmem:[#allocation430_spill] sm:$0xff] %v18686_v30  ;;  %v18696_v31 = vld [vmem:[%s22642_s5 + $0xd28] sm:$0xff]  ;;  %v18701_v27 = vld [vmem:[%s22642_s5 + $0xd30] sm:$0xff] }
  0xd4   :  { %23098 = vst [vmem:[#allocation431_spill] sm:$0xff] %v18691_v26  ;;  %23099 = vst [vmem:[#allocation432_spill] sm:$0xff] %v18696_v31  ;;  %v18706_v22 = vld [vmem:[%s22642_s5 + $0xd38] sm:$0xff]  ;;  %v18711_v30 = vld [vmem:[%s22642_s5 + $0xd40] sm:$0xff] }
  0xd5   :  { %23100 = vst [vmem:[#allocation433_spill] sm:$0xff] %v18701_v27  ;;  %23101 = vst [vmem:[#allocation434_spill] sm:$0xff] %v18706_v22  ;;  %v18716_v26 = vld [vmem:[%s22642_s5 + $0xd48] sm:$0xff]  ;;  %v18721_v31 = vld [vmem:[%s22642_s5 + $0xd50] sm:$0xff] }
  0xd6   :  { %23102 = vst [vmem:[#allocation435_spill] sm:$0xff] %v18711_v30  ;;  %23103 = vst [vmem:[#allocation436_spill] sm:$0xff] %v18716_v26  ;;  %v18726_v27 = vld [vmem:[%s22642_s5 + $0xd58] sm:$0xff]  ;;  %v18731_v22 = vld [vmem:[%s22642_s5 + $0xd60] sm:$0xff] }
  0xd7   :  { %23104 = vst [vmem:[#allocation437_spill] sm:$0xff] %v18721_v31  ;;  %23105 = vst [vmem:[#allocation438_spill] sm:$0xff] %v18726_v27  ;;  %v18736_v30 = vld [vmem:[%s22642_s5 + $0xd68] sm:$0xff]  ;;  %v18741_v26 = vld [vmem:[%s22642_s5 + $0xd70] sm:$0xff] }
  0xd8   :  { %23106 = vst [vmem:[#allocation439_spill] sm:$0xff] %v18731_v22  ;;  %23107 = vst [vmem:[#allocation440_spill] sm:$0xff] %v18736_v30  ;;  %v18746_v31 = vld [vmem:[%s22642_s5 + $0xd78] sm:$0xff]  ;;  %v18751_v27 = vld [vmem:[%s22642_s5 + $0xd80] sm:$0xff] }
  0xd9   :  { %23108 = vst [vmem:[#allocation441_spill] sm:$0xff] %v18741_v26  ;;  %23109 = vst [vmem:[#allocation442_spill] sm:$0xff] %v18746_v31  ;;  %v18756_v22 = vld [vmem:[%s22642_s5 + $0xd88] sm:$0xff]  ;;  %v18761_v30 = vld [vmem:[%s22642_s5 + $0xd90] sm:$0xff] }
  0xda   :  { %23110 = vst [vmem:[#allocation443_spill] sm:$0xff] %v18751_v27  ;;  %23111 = vst [vmem:[#allocation444_spill] sm:$0xff] %v18756_v22  ;;  %v18766_v26 = vld [vmem:[%s22642_s5 + $0xd98] sm:$0xff]  ;;  %v18771_v31 = vld [vmem:[%s22642_s5 + $0xda0] sm:$0xff] }
  0xdb   :  { %23112 = vst [vmem:[#allocation445_spill] sm:$0xff] %v18761_v30  ;;  %23113 = vst [vmem:[#allocation446_spill] sm:$0xff] %v18766_v26  ;;  %v18776_v27 = vld [vmem:[%s22642_s5 + $0xda8] sm:$0xff]  ;;  %v18781_v22 = vld [vmem:[%s22642_s5 + $0xdb0] sm:$0xff] }
  0xdc   :  { %23114 = vst [vmem:[#allocation447_spill] sm:$0xff] %v18771_v31  ;;  %23115 = vst [vmem:[#allocation448_spill] sm:$0xff] %v18776_v27  ;;  %v18786_v30 = vld [vmem:[%s22642_s5 + $0xdb8] sm:$0xff]  ;;  %v18791_v26 = vld [vmem:[%s22642_s5 + $0xdc0] sm:$0xff] }
  0xdd   :  { %23116 = vst [vmem:[#allocation449_spill] sm:$0xff] %v18781_v22  ;;  %23117 = vst [vmem:[#allocation450_spill] sm:$0xff] %v18786_v30  ;;  %v18796_v31 = vld [vmem:[%s22642_s5 + $0xdc8] sm:$0xff]  ;;  %v18801_v27 = vld [vmem:[%s22642_s5 + $0xdd0] sm:$0xff] }
  0xde   :  { %23118 = vst [vmem:[#allocation451_spill] sm:$0xff] %v18791_v26  ;;  %23119 = vst [vmem:[#allocation452_spill] sm:$0xff] %v18796_v31  ;;  %v18806_v22 = vld [vmem:[%s22642_s5 + $0xdd8] sm:$0xff]  ;;  %v18811_v30 = vld [vmem:[%s22642_s5 + $0xde0] sm:$0xff] }
  0xdf   :  { %23120 = vst [vmem:[#allocation453_spill] sm:$0xff] %v18801_v27  ;;  %23121 = vst [vmem:[#allocation454_spill] sm:$0xff] %v18806_v22  ;;  %v18816_v26 = vld [vmem:[%s22642_s5 + $0xde8] sm:$0xff]  ;;  %v18821_v31 = vld [vmem:[%s22642_s5 + $0xdf0] sm:$0xff] }
  0xe0   :  { %23122 = vst [vmem:[#allocation455_spill] sm:$0xff] %v18811_v30  ;;  %23123 = vst [vmem:[#allocation456_spill] sm:$0xff] %v18816_v26  ;;  %v18826_v27 = vld [vmem:[%s22642_s5 + $0xdf8] sm:$0xff]  ;;  %v18831_v22 = vld [vmem:[%s22642_s5 + $0xe00] sm:$0xff] }
  0xe1   :  { %23124 = vst [vmem:[#allocation457_spill] sm:$0xff] %v18821_v31  ;;  %23125 = vst [vmem:[#allocation458_spill] sm:$0xff] %v18826_v27  ;;  %v18836_v30 = vld [vmem:[%s22642_s5 + $0xe08] sm:$0xff]  ;;  %v18841_v26 = vld [vmem:[%s22642_s5 + $0xe10] sm:$0xff] }
  0xe2   :  { %23126 = vst [vmem:[#allocation459_spill] sm:$0xff] %v18831_v22  ;;  %23127 = vst [vmem:[#allocation460_spill] sm:$0xff] %v18836_v30  ;;  %v18846_v31 = vld [vmem:[%s22642_s5 + $0xe18] sm:$0xff]  ;;  %v18851_v27 = vld [vmem:[%s22642_s5 + $0xe20] sm:$0xff] }
  0xe3   :  { %23128 = vst [vmem:[#allocation461_spill] sm:$0xff] %v18841_v26  ;;  %23129 = vst [vmem:[#allocation462_spill] sm:$0xff] %v18846_v31  ;;  %v18856_v22 = vld [vmem:[%s22642_s5 + $0xe28] sm:$0xff]  ;;  %v18861_v30 = vld [vmem:[%s22642_s5 + $0xe30] sm:$0xff] }
  0xe4   :  { %23130 = vst [vmem:[#allocation463_spill] sm:$0xff] %v18851_v27  ;;  %23131 = vst [vmem:[#allocation464_spill] sm:$0xff] %v18856_v22  ;;  %v18866_v26 = vld [vmem:[%s22642_s5 + $0xe38] sm:$0xff]  ;;  %v18871_v31 = vld [vmem:[%s22642_s5 + $0xe40] sm:$0xff] }
  0xe5   :  { %23132 = vst [vmem:[#allocation465_spill] sm:$0xff] %v18861_v30  ;;  %23133 = vst [vmem:[#allocation466_spill] sm:$0xff] %v18866_v26  ;;  %v18876_v27 = vld [vmem:[%s22642_s5 + $0xe48] sm:$0xff]  ;;  %v18881_v22 = vld [vmem:[%s22642_s5 + $0xe50] sm:$0xff] }
  0xe6   :  { %23134 = vst [vmem:[#allocation467_spill] sm:$0xff] %v18871_v31  ;;  %23135 = vst [vmem:[#allocation468_spill] sm:$0xff] %v18876_v27  ;;  %v18886_v30 = vld [vmem:[%s22642_s5 + $0xe58] sm:$0xff]  ;;  %v18891_v26 = vld [vmem:[%s22642_s5 + $0xe60] sm:$0xff] }
  0xe7   :  { %23136 = vst [vmem:[#allocation469_spill] sm:$0xff] %v18881_v22  ;;  %23137 = vst [vmem:[#allocation470_spill] sm:$0xff] %v18886_v30  ;;  %v18896_v31 = vld [vmem:[%s22642_s5 + $0xe68] sm:$0xff]  ;;  %v18901_v27 = vld [vmem:[%s22642_s5 + $0xe70] sm:$0xff] }
  0xe8   :  { %23138 = vst [vmem:[#allocation471_spill] sm:$0xff] %v18891_v26  ;;  %23139 = vst [vmem:[#allocation472_spill] sm:$0xff] %v18896_v31  ;;  %v18906_v22 = vld [vmem:[%s22642_s5 + $0xe78] sm:$0xff]  ;;  %v18911_v30 = vld [vmem:[%s22642_s5 + $0xe80] sm:$0xff] }
  0xe9   :  { %23140 = vst [vmem:[#allocation473_spill] sm:$0xff] %v18901_v27  ;;  %23141 = vst [vmem:[#allocation474_spill] sm:$0xff] %v18906_v22  ;;  %v18916_v26 = vld [vmem:[%s22642_s5 + $0xe88] sm:$0xff]  ;;  %v18921_v31 = vld [vmem:[%s22642_s5 + $0xe90] sm:$0xff] }
  0xea   :  { %23142 = vst [vmem:[#allocation475_spill] sm:$0xff] %v18911_v30  ;;  %23143 = vst [vmem:[#allocation476_spill] sm:$0xff] %v18916_v26  ;;  %v18926_v27 = vld [vmem:[%s22642_s5 + $0xe98] sm:$0xff]  ;;  %v18931_v22 = vld [vmem:[%s22642_s5 + $0xea0] sm:$0xff] }
  0xeb   :  { %23144 = vst [vmem:[#allocation477_spill] sm:$0xff] %v18921_v31  ;;  %23145 = vst [vmem:[#allocation478_spill] sm:$0xff] %v18926_v27  ;;  %v18936_v30 = vld [vmem:[%s22642_s5 + $0xea8] sm:$0xff]  ;;  %v18941_v26 = vld [vmem:[%s22642_s5 + $0xeb0] sm:$0xff] }
  0xec   :  { %23146 = vst [vmem:[#allocation479_spill] sm:$0xff] %v18931_v22  ;;  %23147 = vst [vmem:[#allocation480_spill] sm:$0xff] %v18936_v30  ;;  %v18946_v31 = vld [vmem:[%s22642_s5 + $0xeb8] sm:$0xff]  ;;  %v18951_v27 = vld [vmem:[%s22642_s5 + $0xec0] sm:$0xff] }
  0xed   :  { %23148 = vst [vmem:[#allocation481_spill] sm:$0xff] %v18941_v26  ;;  %23149 = vst [vmem:[#allocation482_spill] sm:$0xff] %v18946_v31  ;;  %v18956_v22 = vld [vmem:[%s22642_s5 + $0xec8] sm:$0xff]  ;;  %v18961_v30 = vld [vmem:[%s22642_s5 + $0xed0] sm:$0xff] }
  0xee   :  { %23150 = vst [vmem:[#allocation483_spill] sm:$0xff] %v18951_v27  ;;  %23151 = vst [vmem:[#allocation484_spill] sm:$0xff] %v18956_v22  ;;  %v18966_v26 = vld [vmem:[%s22642_s5 + $0xed8] sm:$0xff]  ;;  %v18971_v31 = vld [vmem:[%s22642_s5 + $0xee0] sm:$0xff] }
  0xef   :  { %23152 = vst [vmem:[#allocation485_spill] sm:$0xff] %v18961_v30  ;;  %23153 = vst [vmem:[#allocation486_spill] sm:$0xff] %v18966_v26  ;;  %v18976_v27 = vld [vmem:[%s22642_s5 + $0xee8] sm:$0xff]  ;;  %v18981_v22 = vld [vmem:[%s22642_s5 + $0xef0] sm:$0xff] }
  0xf0   :  { %23154 = vst [vmem:[#allocation487_spill] sm:$0xff] %v18971_v31  ;;  %23155 = vst [vmem:[#allocation488_spill] sm:$0xff] %v18976_v27  ;;  %v18986_v30 = vld [vmem:[%s22642_s5 + $0xef8] sm:$0xff]  ;;  %v18991_v26 = vld [vmem:[%s22642_s5 + $0xf00] sm:$0xff] }
  0xf1   :  { %23156 = vst [vmem:[#allocation489_spill] sm:$0xff] %v18981_v22  ;;  %23157 = vst [vmem:[#allocation490_spill] sm:$0xff] %v18986_v30  ;;  %v18996_v31 = vld [vmem:[%s22642_s5 + $0xf08] sm:$0xff]  ;;  %v19001_v27 = vld [vmem:[%s22642_s5 + $0xf10] sm:$0xff] }
  0xf2   :  { %23158 = vst [vmem:[#allocation491_spill] sm:$0xff] %v18991_v26  ;;  %23159 = vst [vmem:[#allocation492_spill] sm:$0xff] %v18996_v31  ;;  %v19006_v22 = vld [vmem:[%s22642_s5 + $0xf18] sm:$0xff]  ;;  %v19011_v30 = vld [vmem:[%s22642_s5 + $0xf20] sm:$0xff] }
  0xf3   :  { %23160 = vst [vmem:[#allocation493_spill] sm:$0xff] %v19001_v27  ;;  %23161 = vst [vmem:[#allocation494_spill] sm:$0xff] %v19006_v22  ;;  %v19016_v26 = vld [vmem:[%s22642_s5 + $0xf28] sm:$0xff]  ;;  %v19021_v31 = vld [vmem:[%s22642_s5 + $0xf30] sm:$0xff] }
  0xf4   :  { %23162 = vst [vmem:[#allocation495_spill] sm:$0xff] %v19011_v30  ;;  %23163 = vst [vmem:[#allocation496_spill] sm:$0xff] %v19016_v26  ;;  %v19026_v27 = vld [vmem:[%s22642_s5 + $0xf38] sm:$0xff]  ;;  %v19031_v22 = vld [vmem:[%s22642_s5 + $0xf40] sm:$0xff] }
  0xf5   :  { %23164 = vst [vmem:[#allocation497_spill] sm:$0xff] %v19021_v31  ;;  %23165 = vst [vmem:[#allocation498_spill] sm:$0xff] %v19026_v27  ;;  %v19036_v30 = vld [vmem:[%s22642_s5 + $0xf48] sm:$0xff]  ;;  %v19041_v26 = vld [vmem:[%s22642_s5 + $0xf50] sm:$0xff] }
  0xf6   :  { %23166 = vst [vmem:[#allocation499_spill] sm:$0xff] %v19031_v22  ;;  %23167 = vst [vmem:[#allocation500_spill] sm:$0xff] %v19036_v30  ;;  %v19046_v31 = vld [vmem:[%s22642_s5 + $0xf58] sm:$0xff]  ;;  %v19051_v27 = vld [vmem:[%s22642_s5 + $0xf60] sm:$0xff] }
  0xf7   :  { %23168 = vst [vmem:[#allocation501_spill] sm:$0xff] %v19041_v26  ;;  %23169 = vst [vmem:[#allocation502_spill] sm:$0xff] %v19046_v31  ;;  %v19056_v22 = vld [vmem:[%s22642_s5 + $0xf68] sm:$0xff]  ;;  %v19061_v30 = vld [vmem:[%s22642_s5 + $0xf70] sm:$0xff] }
  0xf8   :  { %23170 = vst [vmem:[#allocation503_spill] sm:$0xff] %v19051_v27  ;;  %23171 = vst [vmem:[#allocation504_spill] sm:$0xff] %v19056_v22  ;;  %v19066_v26 = vld [vmem:[%s22642_s5 + $0xf78] sm:$0xff]  ;;  %v19071_v31 = vld [vmem:[%s22642_s5 + $0xf80] sm:$0xff] }
  0xf9   :  { %23172 = vst [vmem:[#allocation505_spill] sm:$0xff] %v19061_v30  ;;  %23173 = vst [vmem:[#allocation506_spill] sm:$0xff] %v19066_v26  ;;  %v19076_v27 = vld [vmem:[%s22642_s5 + $0xf88] sm:$0xff]  ;;  %v19081_v22 = vld [vmem:[%s22642_s5 + $0xf90] sm:$0xff] }
  0xfa   :  { %23174 = vst [vmem:[#allocation507_spill] sm:$0xff] %v19071_v31  ;;  %23175 = vst [vmem:[#allocation508_spill] sm:$0xff] %v19076_v27  ;;  %v19086_v30 = vld [vmem:[%s22642_s5 + $0xf98] sm:$0xff]  ;;  %v19091_v26 = vld [vmem:[%s22642_s5 + $0xfa0] sm:$0xff] }
  0xfb   :  { %23176 = vst [vmem:[#allocation509_spill] sm:$0xff] %v19081_v22  ;;  %23177 = vst [vmem:[#allocation510_spill] sm:$0xff] %v19086_v30  ;;  %v19096_v31 = vld [vmem:[%s22642_s5 + $0xfa8] sm:$0xff]  ;;  %v19101_v27 = vld [vmem:[%s22642_s5 + $0xfb0] sm:$0xff] }
  0xfc   :  { %23178 = vst [vmem:[#allocation511_spill] sm:$0xff] %v19091_v26  ;;  %23179 = vst [vmem:[#allocation512_spill] sm:$0xff] %v19096_v31  ;;  %v19106_v22 = vld [vmem:[%s22642_s5 + $0xfb8] sm:$0xff]  ;;  %v19111_v30 = vld [vmem:[%s22642_s5 + $0xfc0] sm:$0xff] }
  0xfd   :  { %23180 = vst [vmem:[#allocation513_spill] sm:$0xff] %v19101_v27  ;;  %23181 = vst [vmem:[#allocation514_spill] sm:$0xff] %v19106_v22  ;;  %v19116_v26 = vld [vmem:[%s22642_s5 + $0xfc8] sm:$0xff]  ;;  %v19121_v31 = vld [vmem:[%s22642_s5 + $0xfd0] sm:$0xff] }
  0xfe   :  { %23182 = vst [vmem:[#allocation515_spill] sm:$0xff] %v19111_v30  ;;  %23183 = vst [vmem:[#allocation516_spill] sm:$0xff] %v19116_v26  ;;  %v19126_v27 = vld [vmem:[%s22642_s5 + $0xfd8] sm:$0xff]  ;;  %v19131_v22 = vld [vmem:[%s22642_s5 + $0xfe0] sm:$0xff] }
  0xff   :  { %23184 = vst [vmem:[#allocation517_spill] sm:$0xff] %v19121_v31  ;;  %23185 = vst [vmem:[#allocation518_spill] sm:$0xff] %v19126_v27  ;;  %v19136_v30 = vld [vmem:[%s22642_s5 + $0xfe8] sm:$0xff]  ;;  %v19141_v26 = vld [vmem:[%s22642_s5 + $0xff0] sm:$0xff] }
 0x100   :  { %23186 = vst [vmem:[#allocation519_spill] sm:$0xff] %v19131_v22  ;;  %23187 = vst [vmem:[#allocation520_spill] sm:$0xff] %v19136_v30  ;;  %v19146_v31 = vld [vmem:[%s22642_s5 + $0xff8] sm:$0xff] }
 0x101   :  { %23188 = vst [vmem:[#allocation521_spill] sm:$0xff] %v19141_v26  ;;  %23189 = vst [vmem:[#allocation522_spill] sm:$0xff] %v19146_v31 }
 0x102   :  { %1094 = vsyncadd [#allocation5], 65536  ;;  %v1095_v27 = vld [vmem:[%s22638_s1] sm:$0xff]  ;;  %v1096_v22 = vld [vmem:[%s22638_s1 + $0x8] sm:$0xff]  ;;  %vm1147_vm0 = vcmask 261120   ;;  %vm9162_vm1 = vcmask 523264  }
 0x103   :  { %v19154_v30 = vpack.c.bf16 %v1096_v22, %v1095_v27  ;;  %v1097_v26 = vld [vmem:[%s22638_s1 + $0x10] sm:$0xff]  ;;  %v1098_v31 = vld [vmem:[%s22638_s1 + $0x18] sm:$0xff]  ;;  %v1099_v18 = vld [vmem:[%s22637_s0] sm:$0xff] }
 0x104   :  { %v19165_v23 = vpack.c.bf16 %v1098_v31, %v1097_v26  ;;  %14140 = vmatprep.mubr.msk.f32.mxu1 %vm1147_vm0, %v1099_v18  ;;  %v1100_v22 = vld [vmem:[%s22637_s0 + $0x8] sm:$0xff]  ;;  %v1101_v18 = vld [vmem:[%s22637_s0 + $0x10] sm:$0xff]  ;;  %v1102_v26 = vld [vmem:[%s22637_s0 + $0x18] sm:$0xff] }
 0x105   :  { %15253 = vmatprep.subr.bf16.mxu1 %v19154_v30  ;;  %15269 = vmatprep.subr.bf16.mxu0 %v19154_v30  ;;  %v1103_v27 = vld [vmem:[%s22637_s0 + $0x20] sm:$0xff]  ;;  %v1104_v31 = vld [vmem:[%s22637_s0 + $0x28] sm:$0xff]  ;;  %v1106_v19 = vld [vmem:[%s22637_s0 + $0x38] sm:$0xff] }
 0x106   :  { %15255 = vmatpush3.bf16.msra.mxu1 %v19154_v30  ;;  %15271 = vmatpush3.bf16.msra.mxu0 %v19154_v30  ;;  %v1107_v14 = vld [vmem:[%s22637_s0 + $0x40] sm:$0xff]  ;;  %v2697_v3 = vld [vmem:[%s22637_s0 + $0x4d0] sm:$0xff] }
 0x107   :  { %15257 = vmatprep.subr.bf16.mxu1 %v19165_v23  ;;  %15273 = vmatprep.subr.bf16.mxu0 %v19165_v23  ;;  %v2695_v11 = vld [vmem:[%s22637_s0 + $0x4c0] sm:$0xff]  ;;  %v2701_v17 = vld [vmem:[%s22637_s0 + $0x4f0] sm:$0xff] }
 0x108   :  { %v2699_v25 = vld [vmem:[%s22637_s0 + $0x4e0] sm:$0xff]  ;;  %v2705_v1 = vld [vmem:[%s22637_s0 + $0x510] sm:$0xff] }
 0x109   :  { %v2703_v9 = vld [vmem:[%s22637_s0 + $0x500] sm:$0xff]  ;;  %v2709_v51 = vld [vmem:[%s22637_s0 + $0x530] sm:$0xff] }
 0x10a   :  { %15259 = vmatpush3.bf16.msra.mxu1 %v19165_v23  ;;  %15275 = vmatpush3.bf16.msra.mxu0 %v19165_v23  ;;  %v2707_v59 = vld [vmem:[%s22637_s0 + $0x520] sm:$0xff]  ;;  %v2713_v35 = vld [vmem:[%s22637_s0 + $0x550] sm:$0xff] }
 0x10b   :  { %15261 = vmatprep.subr.bf16.mxu1 %v19154_v30  ;;  %v2711_v43 = vld [vmem:[%s22637_s0 + $0x540] sm:$0xff]  ;;  %v2717_v49 = vld [vmem:[%s22637_s0 + $0x570] sm:$0xff] }
 0x10c   :  { %v2715_v57 = vld [vmem:[%s22637_s0 + $0x560] sm:$0xff]  ;;  %v2721_v33 = vld [vmem:[%s22637_s0 + $0x590] sm:$0xff] }
 0x10d   :  { %14141 = vmatmul.mubr.msk.f32.vlgmr.msra.gmra.mrb[0].mxu1 %vm1147_vm0, %v1100_v22  ;;  %v1105_v22 = vld [vmem:[%s22637_s0 + $0x30] sm:$0xff]  ;;  %v2719_v41 = vld [vmem:[%s22637_s0 + $0x580] sm:$0xff] }
 0x10e   :  { %15263 = vmatpush3.bf16.msra.mxu1 %v19154_v30  ;;  %14143 = vmatprep.mubr.msk.f32.mxu1 %vm1147_vm0, %v1101_v18  ;;  %v2142_v18 = vld [vmem:[%s22637_s0 + $0x300] sm:$0xff] }
 0x10f   :  { %15265 = vmatprep.subr.bf16.mxu1 %v19165_v23  ;;  %14300 = vmatprep.mubr.msk.f32.mxu0 %vm1147_vm0, %v2142_v18  ;;  %v1108_v18 = vld [vmem:[%s22637_s0 + $0x48] sm:$0xff] }
 0x111   :  { %14144 = vmatmul.mubr.msk.f32.gmra.mrb[2].mxu1 %vm1147_vm0, %v1102_v26  ;;  %v2143_v26 = vld [vmem:[%s22637_s0 + $0x308] sm:$0xff] }
 0x112   :  { %14146 = vmatprep.mubr.msk.f32.mxu1 %vm1147_vm0, %v1103_v27  ;;  %15267 = vmatpush3.bf16.msra.mxu1 %v19165_v23  ;;  %v2144_v27 = vld [vmem:[%s22637_s0 + $0x310] sm:$0xff] }
 0x113   :  { %16060 = vmatprep.subr.bf16.mxu1 %v19154_v30  ;;  %14301 = vmatmul.mubr.msk.f32.vlgmr.msra.gmra.mrb[0].mxu0 %vm1147_vm0, %v2143_v26  ;;  %v1109_v26 = vld [vmem:[%s22637_s0 + $0x50] sm:$0xff] }
 0x114   :  { %14303 = vmatprep.mubr.msk.f32.mxu0 %vm1147_vm0, %v2144_v27  ;;  %v2147_v27 = vld [vmem:[%s22637_s0 + $0x328] sm:$0xff] }
 0x115   :  { %14147 = vmatmul.mubr.msk.f32.gmra.mrb[4].mxu1 %vm1147_vm0, %v1104_v31  ;;  %v2145_v31 = vld [vmem:[%s22637_s0 + $0x318] sm:$0xff] }
 0x116   :  { %14149 = vmatprep.mubr.msk.f32.mxu1 %vm1147_vm0, %v1105_v22  ;;  %v2146_v22 = vld [vmem:[%s22637_s0 + $0x320] sm:$0xff] }
 0x117   :  { %14304 = vmatmul.mubr.msk.f32.gmra.mrb[2].mxu0 %vm1147_vm0, %v2145_v31  ;;  %v1111_v31 = vld [vmem:[%s22637_s0 + $0x60] sm:$0xff] }
 0x118   :  { %14306 = vmatprep.mubr.msk.f32.mxu0 %vm1147_vm0, %v2146_v22  ;;  %v2149_v22 = vld [vmem:[%s22637_s0 + $0x338] sm:$0xff] }
 0x119   :  { %14150 = vmatmul.mubr.msk.f32.gmra.mrb[6].mxu1 %vm1147_vm0, %v1106_v19  ;;  %v1110_v19 = vld [vmem:[%s22637_s0 + $0x58] sm:$0xff] }
 0x11a   :  { %14152 = vmatprep.mubr.msk.f32.mxu1 %vm1147_vm0, %v1107_v14  ;;  %v2148_v14 = vld [vmem:[%s22637_s0 + $0x330] sm:$0xff] }
 0x11b   :  { %14307 = vmatmul.mubr.msk.f32.gmra.mrb[4].mxu0 %vm1147_vm0, %v2147_v27  ;;  %v1113_v27 = vld [vmem:[%s22637_s0 + $0x70] sm:$0xff] }
 0x11c   :  { %14309 = vmatprep.mubr.msk.f32.mxu0 %vm1147_vm0, %v2148_v14  ;;  %v2151_v14 = vld [vmem:[%s22637_s0 + $0x348] sm:$0xff] }
 0x11d   :  { %14153 = vmatmul.mubr.msk.f32.gmra.mrb[8].mxu1 %vm1147_vm0, %v1108_v18  ;;  %v2150_v18 = vld [vmem:[%s22637_s0 + $0x340] sm:$0xff] }
 0x11e   :  { %14155 = vmatprep.mubr.msk.f32.mxu1 %vm1147_vm0, %v1109_v26  ;;  %v1112_v26 = vld [vmem:[%s22637_s0 + $0x68] sm:$0xff] }
 0x11f   :  { %14310 = vmatmul.mubr.msk.f32.gmra.mrb[6].mxu0 %vm1147_vm0, %v2149_v22  ;;  %v1115_v22 = vld [vmem:[%s22637_s0 + $0x80] sm:$0xff] }
 0x120   :  { %14312 = vmatprep.mubr.msk.f32.mxu0 %vm1147_vm0, %v2150_v18  ;;  %v2153_v18 = vld [vmem:[%s22637_s0 + $0x358] sm:$0xff] }
 0x121   :  { %14156 = vmatmul.mubr.msk.f32.gmra.mrb[10].mxu1 %vm1147_vm0, %v1110_v19  ;;  %v2152_v19 = vld [vmem:[%s22637_s0 + $0x350] sm:$0xff] }
 0x122   :  { %14158 = vmatprep.mubr.msk.f32.mxu1 %vm1147_vm0, %v1111_v31  ;;  %v1114_v31 = vld [vmem:[%s22637_s0 + $0x78] sm:$0xff] }
 0x123   :  { %14313 = vmatmul.mubr.msk.f32.gmra.mrb[8].mxu0 %vm1147_vm0, %v2151_v14  ;;  %v1117_v14 = vld [vmem:[%s22637_s0 + $0x90] sm:$0xff] }
 0x124   :  { %14315 = vmatprep.mubr.msk.f32.mxu0 %vm1147_vm0, %v2152_v19  ;;  %v2155_v19 = vld [vmem:[%s22637_s0 + $0x368] sm:$0xff] }
 0x125   :  { %14159 = vmatmul.mubr.msk.f32.gmra.mrb[12].mxu1 %vm1147_vm0, %v1112_v26  ;;  %v2154_v26 = vld [vmem:[%s22637_s0 + $0x360] sm:$0xff] }
 0x126   :  { %14161 = vmatprep.mubr.msk.f32.mxu1 %vm1147_vm0, %v1113_v27  ;;  %v1116_v27 = vld [vmem:[%s22637_s0 + $0x88] sm:$0xff] }
 0x127   :  { %14316 = vmatmul.mubr.msk.f32.gmra.mrb[10].mxu0 %vm1147_vm0, %v2153_v18  ;;  %v1119_v18 = vld [vmem:[%s22637_s0 + $0xa0] sm:$0xff] }
 0x128   :  { %14318 = vmatprep.mubr.msk.f32.mxu0 %vm1147_vm0, %v2154_v26  ;;  %v2157_v26 = vld [vmem:[%s22637_s0 + $0x378] sm:$0xff] }
 0x129   :  { %14162 = vmatmul.mubr.msk.f32.gmra.mrb[14].mxu1 %vm1147_vm0, %v1114_v31  ;;  %v2156_v31 = vld [vmem:[%s22637_s0 + $0x370] sm:$0xff] }
 0x12a   :  { %14164 = vmatprep.mubr.msk.f32.mxu1 %vm1147_vm0, %v1115_v22  ;;  %v1118_v22 = vld [vmem:[%s22637_s0 + $0x98] sm:$0xff] }
 0x12b   :  { %14319 = vmatmul.mubr.msk.f32.gmra.mrb[12].mxu0 %vm1147_vm0, %v2155_v19  ;;  %v1121_v19 = vld [vmem:[%s22637_s0 + $0xb0] sm:$0xff] }
 0x12c   :  { %14321 = vmatprep.mubr.msk.f32.mxu0 %vm1147_vm0, %v2156_v31  ;;  %v2159_v31 = vld [vmem:[%s22637_s0 + $0x388] sm:$0xff] }
 0x12d   :  { %14165 = vmatmul.mubr.msk.f32.gmra.mrb[16].mxu1 %vm1147_vm0, %v1116_v27  ;;  %v2158_v27 = vld [vmem:[%s22637_s0 + $0x380] sm:$0xff] }
 0x12e   :  { %14167 = vmatprep.mubr.msk.f32.mxu1 %vm1147_vm0, %v1117_v14  ;;  %v1120_v14 = vld [vmem:[%s22637_s0 + $0xa8] sm:$0xff] }
 0x12f   :  { %14322 = vmatmul.mubr.msk.f32.gmra.mrb[14].mxu0 %vm1147_vm0, %v2157_v26  ;;  %v1123_v26 = vld [vmem:[%s22637_s0 + $0xc0] sm:$0xff] }
 0x130   :  { %14324 = vmatprep.mubr.msk.f32.mxu0 %vm1147_vm0, %v2158_v27  ;;  %v2161_v27 = vld [vmem:[%s22637_s0 + $0x398] sm:$0xff] }
 0x131   :  { %14168 = vmatmul.mubr.msk.f32.gmra.mrb[18].mxu1 %vm1147_vm0, %v1118_v22  ;;  %v2160_v22 = vld [vmem:[%s22637_s0 + $0x390] sm:$0xff] }
 0x132   :  { %14170 = vmatprep.mubr.msk.f32.mxu1 %vm1147_vm0, %v1119_v18  ;;  %v1122_v18 = vld [vmem:[%s22637_s0 + $0xb8] sm:$0xff] }
 0x133   :  { %14325 = vmatmul.mubr.msk.f32.gmra.mrb[16].mxu0 %vm1147_vm0, %v2159_v31  ;;  %v1125_v31 = vld [vmem:[%s22637_s0 + $0xd0] sm:$0xff] }
 0x134   :  { %14327 = vmatprep.mubr.msk.f32.mxu0 %vm1147_vm0, %v2160_v22  ;;  %v2163_v22 = vld [vmem:[%s22637_s0 + $0x3a8] sm:$0xff] }
 0x135   :  { %14171 = vmatmul.mubr.msk.f32.gmra.mrb[20].mxu1 %vm1147_vm0, %v1120_v14  ;;  %v2162_v14 = vld [vmem:[%s22637_s0 + $0x3a0] sm:$0xff] }
 0x136   :  { %14173 = vmatprep.mubr.msk.f32.mxu1 %vm1147_vm0, %v1121_v19  ;;  %v1124_v19 = vld [vmem:[%s22637_s0 + $0xc8] sm:$0xff] }
 0x137   :  { %14328 = vmatmul.mubr.msk.f32.gmra.mrb[18].mxu0 %vm1147_vm0, %v2161_v27  ;;  %v1127_v27 = vld [vmem:[%s22637_s0 + $0xe0] sm:$0xff] }
 0x138   :  { %14330 = vmatprep.mubr.msk.f32.mxu0 %vm1147_vm0, %v2162_v14  ;;  %v2165_v14 = vld [vmem:[%s22637_s0 + $0x3b8] sm:$0xff] }
 0x139   :  { %14174 = vmatmul.mubr.msk.f32.gmra.mrb[22].mxu1 %vm1147_vm0, %v1122_v18  ;;  %v2164_v18 = vld [vmem:[%s22637_s0 + $0x3b0] sm:$0xff] }
 0x13a   :  { %14176 = vmatprep.mubr.msk.f32.mxu1 %vm1147_vm0, %v1123_v26  ;;  %v1126_v26 = vld [vmem:[%s22637_s0 + $0xd8] sm:$0xff] }
 0x13b   :  { %14331 = vmatmul.mubr.msk.f32.gmra.mrb[20].mxu0 %vm1147_vm0, %v2163_v22  ;;  %v1129_v22 = vld [vmem:[%s22637_s0 + $0xf0] sm:$0xff] }
 0x13c   :  { %14333 = vmatprep.mubr.msk.f32.mxu0 %vm1147_vm0, %v2164_v18  ;;  %v2167_v18 = vld [vmem:[%s22637_s0 + $0x3c8] sm:$0xff] }
 0x13d   :  { %14177 = vmatmul.mubr.msk.f32.gmra.mrb[24].mxu1 %vm1147_vm0, %v1124_v19  ;;  %v2166_v19 = vld [vmem:[%s22637_s0 + $0x3c0] sm:$0xff] }
 0x13e   :  { %14179 = vmatprep.mubr.msk.f32.mxu1 %vm1147_vm0, %v1125_v31  ;;  %v1128_v31 = vld [vmem:[%s22637_s0 + $0xe8] sm:$0xff] }
 0x13f   :  { %14334 = vmatmul.mubr.msk.f32.gmra.mrb[22].mxu0 %vm1147_vm0, %v2165_v14  ;;  %v1131_v14 = vld [vmem:[%s22637_s0 + $0x100] sm:$0xff] }
 0x140   :  { %14336 = vmatprep.mubr.msk.f32.mxu0 %vm1147_vm0, %v2166_v19  ;;  %v2169_v19 = vld [vmem:[%s22637_s0 + $0x3d8] sm:$0xff] }
 0x141   :  { %14180 = vmatmul.mubr.msk.f32.gmra.mrb[26].mxu1 %vm1147_vm0, %v1126_v26  ;;  %v2168_v26 = vld [vmem:[%s22637_s0 + $0x3d0] sm:$0xff] }
 0x142   :  { %14182 = vmatprep.mubr.msk.f32.mxu1 %vm1147_vm0, %v1127_v27  ;;  %v1130_v27 = vld [vmem:[%s22637_s0 + $0xf8] sm:$0xff] }
 0x143   :  { %14337 = vmatmul.mubr.msk.f32.gmra.mrb[24].mxu0 %vm1147_vm0, %v2167_v18  ;;  %v1133_v18 = vld [vmem:[%s22637_s0 + $0x110] sm:$0xff] }
 0x144   :  { %14339 = vmatprep.mubr.msk.f32.mxu0 %vm1147_vm0, %v2168_v26  ;;  %v2171_v26 = vld [vmem:[%s22637_s0 + $0x3e8] sm:$0xff] }
 0x145   :  { %14183 = vmatmul.mubr.msk.f32.gmra.mrb[28].mxu1 %vm1147_vm0, %v1128_v31  ;;  %v2170_v31 = vld [vmem:[%s22637_s0 + $0x3e0] sm:$0xff] }
 0x146   :  { %14185 = vmatprep.mubr.msk.f32.mxu1 %vm1147_vm0, %v1129_v22  ;;  %v1132_v22 = vld [vmem:[%s22637_s0 + $0x108] sm:$0xff] }
 0x147   :  { %14340 = vmatmul.mubr.msk.f32.gmra.mrb[26].mxu0 %vm1147_vm0, %v2169_v19  ;;  %v1135_v19 = vld [vmem:[%s22637_s0 + $0x120] sm:$0xff] }
 0x148   :  { %14342 = vmatprep.mubr.msk.f32.mxu0 %vm1147_vm0, %v2170_v31  ;;  %v2173_v31 = vld [vmem:[%s22637_s0 + $0x3f8] sm:$0xff] }
 0x149   :  { %14186 = vmatmul.mubr.msk.f32.gmra.mrb[30].mxu1 %vm1147_vm0, %v1130_v27  ;;  %v2172_v27 = vld [vmem:[%s22637_s0 + $0x3f0] sm:$0xff] }
 0x14a   :  { %14188 = vmatprep.mubr.msk.f32.mxu1 %vm1147_vm0, %v1131_v14  ;;  %v1134_v14 = vld [vmem:[%s22637_s0 + $0x118] sm:$0xff] }
 0x14b   :  { %14343 = vmatmul.mubr.msk.f32.gmra.mrb[28].mxu0 %vm1147_vm0, %v2171_v26  ;;  %v1137_v26 = vld [vmem:[%s22637_s0 + $0x130] sm:$0xff] }
 0x14c   :  { %14345 = vmatprep.mubr.msk.f32.mxu0 %vm1147_vm0, %v2172_v27  ;;  %v2175_v27 = vld [vmem:[%s22637_s0 + $0x408] sm:$0xff] }
 0x14d   :  { %14189 = vmatmul.mubr.msk.f32.gmra.mrb[32].mxu1 %vm1147_vm0, %v1132_v22  ;;  %v2174_v22 = vld [vmem:[%s22637_s0 + $0x400] sm:$0xff] }
 0x14e   :  { %14191 = vmatprep.mubr.msk.f32.mxu1 %vm1147_vm0, %v1133_v18  ;;  %v1136_v18 = vld [vmem:[%s22637_s0 + $0x128] sm:$0xff] }
 0x14f   :  { %14346 = vmatmul.mubr.msk.f32.gmra.mrb[30].mxu0 %vm1147_vm0, %v2173_v31  ;;  %v1139_v31 = vld [vmem:[%s22637_s0 + $0x140] sm:$0xff] }
 0x150   :  { %14348 = vmatprep.mubr.msk.f32.mxu0 %vm1147_vm0, %v2174_v22  ;;  %v2177_v22 = vld [vmem:[%s22637_s0 + $0x418] sm:$0xff] }
 0x151   :  { %14192 = vmatmul.mubr.msk.f32.gmra.mrb[34].mxu1 %vm1147_vm0, %v1134_v14  ;;  %v2176_v14 = vld [vmem:[%s22637_s0 + $0x410] sm:$0xff] }
 0x152   :  { %14194 = vmatprep.mubr.msk.f32.mxu1 %vm1147_vm0, %v1135_v19  ;;  %v1138_v19 = vld [vmem:[%s22637_s0 + $0x138] sm:$0xff] }
 0x153   :  { %14349 = vmatmul.mubr.msk.f32.gmra.mrb[32].mxu0 %vm1147_vm0, %v2175_v27  ;;  %v1141_v27 = vld [vmem:[%s22637_s0 + $0x150] sm:$0xff] }
 0x154   :  { %14351 = vmatprep.mubr.msk.f32.mxu0 %vm1147_vm0, %v2176_v14  ;;  %v2179_v14 = vld [vmem:[%s22637_s0 + $0x428] sm:$0xff] }
 0x155   :  { %14195 = vmatmul.mubr.msk.f32.gmra.mrb[36].mxu1 %vm1147_vm0, %v1136_v18  ;;  %v2178_v18 = vld [vmem:[%s22637_s0 + $0x420] sm:$0xff] }
 0x156   :  { %14197 = vmatprep.mubr.msk.f32.mxu1 %vm1147_vm0, %v1137_v26  ;;  %v1140_v26 = vld [vmem:[%s22637_s0 + $0x148] sm:$0xff] }
 0x157   :  { %14352 = vmatmul.mubr.msk.f32.gmra.mrb[34].mxu0 %vm1147_vm0, %v2177_v22  ;;  %v1144_v22 = vld [vmem:[%s22637_s0 + $0x168] sm:$0xff] }
 0x158   :  { %14354 = vmatprep.mubr.msk.f32.mxu0 %vm1147_vm0, %v2178_v18  ;;  %v1145_v18 = vld [vmem:[%s22637_s0 + $0x170] sm:$0xff] }
 0x159   :  { %14198 = vmatmul.mubr.msk.f32.gmra.mrb[38].mxu1 %vm1147_vm0, %v1138_v19  ;;  %v1142_v19 = vld [vmem:[%s22637_s0 + $0x158] sm:$0xff] }
 0x15a   :  { %14200 = vmatprep.mubr.msk.f32.mxu1 %vm1147_vm0, %v1139_v31  ;;  %v1143_v31 = vld [vmem:[%s22637_s0 + $0x160] sm:$0xff] }
 0x15b   :  { %14355 = vmatmul.mubr.msk.f32.gmra.mrb[36].mxu0 %vm1147_vm0, %v2179_v14  ;;  %v1598_v14 = vld [vmem:[%s22637_s0 + $0x188] sm:$0xff] }
 0x15d   :  { %14201 = vmatmul.mubr.msk.f32.gmra.mrb[40].mxu1 %vm1147_vm0, %v1140_v26  ;;  %v1146_v26 = vld [vmem:[%s22637_s0 + $0x178] sm:$0xff] }
 0x15e   :  { %14203 = vmatprep.mubr.msk.f32.mxu1 %vm1147_vm0, %v1141_v27  ;;  %v1597_v27 = vld [vmem:[%s22637_s0 + $0x180] sm:$0xff] }
 0x161   :  { %14204 = vmatmul.mubr.msk.f32.gmra.mrb[42].mxu1 %vm1147_vm0, %v1142_v19  ;;  %v1599_v19 = vld [vmem:[%s22637_s0 + $0x190] sm:$0xff] }
 0x162   :  { %14206 = vmatprep.mubr.msk.f32.mxu1 %vm1147_vm0, %v1143_v31  ;;  %v1600_v31 = vld [vmem:[%s22637_s0 + $0x198] sm:$0xff] }
 0x165   :  { %14207 = vmatmul.mubr.msk.f32.gmra.mrb[44].mxu1 %vm1147_vm0, %v1144_v22  ;;  %v1601_v22 = vld [vmem:[%s22637_s0 + $0x1a0] sm:$0xff] }
 0x166   :  { %14209 = vmatprep.mubr.msk.f32.mxu1 %vm1147_vm0, %v1145_v18  ;;  %v1602_v18 = vld [vmem:[%s22637_s0 + $0x1a8] sm:$0xff] }
 0x169   :  { %14210 = vmatmul.mubr.msk.f32.gmra.mrb[46].mxu1 %vm1147_vm0, %v1146_v26  ;;  %v1603_v26 = vld [vmem:[%s22637_s0 + $0x1b0] sm:$0xff] }
 0x16a   :  { %14220 = vmatprep.mubr.msk.f32.mxu1 %vm1147_vm0, %v1597_v27  ;;  %v1604_v27 = vld [vmem:[%s22637_s0 + $0x1b8] sm:$0xff] }
 0x16d   :  { %14221 = vmatmul.mubr.msk.f32.vlgmr.msra.gmra.mrb[48].mxu1 %vm1147_vm0, %v1598_v14  ;;  %v1605_v14 = vld [vmem:[%s22637_s0 + $0x1c0] sm:$0xff] }
 0x16e   :  { %16062 = vmatpush3.bf16.msra.mxu1 %v19154_v30  ;;  %14223 = vmatprep.mubr.msk.f32.mxu1 %vm1147_vm0, %v1599_v19  ;;  %v1606_v19 = vld [vmem:[%s22637_s0 + $0x1c8] sm:$0xff] }
 0x16f   :  { %16061 = vmatprep.subr.bf16.mxu1 %v19165_v23 }
 0x171   :  { %14224 = vmatmul.mubr.msk.f32.gmra.mrb[50].mxu1 %vm1147_vm0, %v1600_v31  ;;  %v1607_v31 = vld [vmem:[%s22637_s0 + $0x1d0] sm:$0xff] }
 0x172   :  { %14226 = vmatprep.mubr.msk.f32.mxu1 %vm1147_vm0, %v1601_v22  ;;  %16063 = vmatpush3.bf16.msra.mxu1 %v19165_v23  ;;  %v1608_v22 = vld [vmem:[%s22637_s0 + $0x1d8] sm:$0xff] }
 0x173   :  { %15277 = vmatprep.subr.bf16.mxu1 %v19154_v30 }
 0x175   :  { %14227 = vmatmul.mubr.msk.f32.gmra.mrb[52].mxu1 %vm1147_vm0, %v1602_v18  ;;  %v1609_v18 = vld [vmem:[%s22637_s0 + $0x1e0] sm:$0xff] }
 0x176   :  { %14229 = vmatprep.mubr.msk.f32.mxu1 %vm1147_vm0, %v1603_v26  ;;  %v1610_v26 = vld [vmem:[%s22637_s0 + $0x1e8] sm:$0xff] }
 0x179   :  { %14230 = vmatmul.mubr.msk.f32.gmra.mrb[54].mxu1 %vm1147_vm0, %v1604_v27  ;;  %v1611_v27 = vld [vmem:[%s22637_s0 + $0x1f0] sm:$0xff] }
 0x17a   :  { %14232 = vmatprep.mubr.msk.f32.mxu1 %vm1147_vm0, %v1605_v14  ;;  %v1612_v14 = vld [vmem:[%s22637_s0 + $0x1f8] sm:$0xff] }
 0x17d   :  { %14233 = vmatmul.mubr.msk.f32.gmra.mrb[56].mxu1 %vm1147_vm0, %v1606_v19  ;;  %v1613_v19 = vld [vmem:[%s22637_s0 + $0x200] sm:$0xff] }
 0x17e   :  { %14235 = vmatprep.mubr.msk.f32.mxu1 %vm1147_vm0, %v1607_v31  ;;  %v1614_v31 = vld [vmem:[%s22637_s0 + $0x208] sm:$0xff] }
 0x181   :  { %14236 = vmatmul.mubr.msk.f32.gmra.mrb[58].mxu1 %vm1147_vm0, %v1608_v22  ;;  %v1615_v22 = vld [vmem:[%s22637_s0 + $0x210] sm:$0xff] }
 0x182   :  { %14238 = vmatprep.mubr.msk.f32.mxu1 %vm1147_vm0, %v1609_v18  ;;  %v1616_v18 = vld [vmem:[%s22637_s0 + $0x218] sm:$0xff] }
 0x185   :  { %14239 = vmatmul.mubr.msk.f32.gmra.mrb[60].mxu1 %vm1147_vm0, %v1610_v26  ;;  %v1617_v26 = vld [vmem:[%s22637_s0 + $0x220] sm:$0xff] }
 0x186   :  { %14241 = vmatprep.mubr.msk.f32.mxu1 %vm1147_vm0, %v1611_v27  ;;  %v1618_v27 = vld [vmem:[%s22637_s0 + $0x228] sm:$0xff] }
 0x189   :  { %14242 = vmatmul.mubr.msk.f32.gmra.mrb[62].mxu1 %vm1147_vm0, %v1612_v14  ;;  %v1619_v14 = vld [vmem:[%s22637_s0 + $0x230] sm:$0xff] }
 0x18a   :  { %14244 = vmatprep.mubr.msk.f32.mxu1 %vm1147_vm0, %v1613_v19  ;;  %v1620_v19 = vld [vmem:[%s22637_s0 + $0x238] sm:$0xff] }
 0x18d   :  { %14245 = vmatmul.mubr.msk.f32.gmra.mrb[64].mxu1 %vm1147_vm0, %v1614_v31  ;;  %v1621_v31 = vld [vmem:[%s22637_s0 + $0x240] sm:$0xff] }
 0x18e   :  { %14247 = vmatprep.mubr.msk.f32.mxu1 %vm1147_vm0, %v1615_v22  ;;  %v1622_v22 = vld [vmem:[%s22637_s0 + $0x248] sm:$0xff] }
 0x191   :  { %14248 = vmatmul.mubr.msk.f32.gmra.mrb[66].mxu1 %vm1147_vm0, %v1616_v18  ;;  %v1623_v18 = vld [vmem:[%s22637_s0 + $0x250] sm:$0xff] }
 0x192   :  { %14250 = vmatprep.mubr.msk.f32.mxu1 %vm1147_vm0, %v1617_v26  ;;  %v1624_v26 = vld [vmem:[%s22637_s0 + $0x258] sm:$0xff] }
 0x195   :  { %14251 = vmatmul.mubr.msk.f32.gmra.mrb[68].mxu1 %vm1147_vm0, %v1618_v27  ;;  %v1625_v27 = vld [vmem:[%s22637_s0 + $0x260] sm:$0xff] }
 0x196   :  { %14253 = vmatprep.mubr.msk.f32.mxu1 %vm1147_vm0, %v1619_v14  ;;  %v1626_v14 = vld [vmem:[%s22637_s0 + $0x268] sm:$0xff] }
 0x199   :  { %14254 = vmatmul.mubr.msk.f32.gmra.mrb[70].mxu1 %vm1147_vm0, %v1620_v19  ;;  %v1627_v19 = vld [vmem:[%s22637_s0 + $0x270] sm:$0xff] }
 0x19a   :  { %14256 = vmatprep.mubr.msk.f32.mxu1 %vm1147_vm0, %v1621_v31  ;;  %v1628_v31 = vld [vmem:[%s22637_s0 + $0x278] sm:$0xff] }
 0x19d   :  { %14257 = vmatmul.mubr.msk.f32.gmra.mrb[72].mxu1 %vm1147_vm0, %v1622_v22  ;;  %v1629_v22 = vld [vmem:[%s22637_s0 + $0x280] sm:$0xff] }
 0x19e   :  { %14259 = vmatprep.mubr.msk.f32.mxu1 %vm1147_vm0, %v1623_v18  ;;  %v1630_v18 = vld [vmem:[%s22637_s0 + $0x288] sm:$0xff] }
 0x1a1   :  { %14260 = vmatmul.mubr.msk.f32.gmra.mrb[74].mxu1 %vm1147_vm0, %v1624_v26  ;;  %v1631_v26 = vld [vmem:[%s22637_s0 + $0x290] sm:$0xff] }
 0x1a2   :  { %14262 = vmatprep.mubr.msk.f32.mxu1 %vm1147_vm0, %v1625_v27  ;;  %v1632_v27 = vld [vmem:[%s22637_s0 + $0x298] sm:$0xff] }
 0x1a5   :  { %14263 = vmatmul.mubr.msk.f32.gmra.mrb[76].mxu1 %vm1147_vm0, %v1626_v14  ;;  %v1633_v14 = vld [vmem:[%s22637_s0 + $0x2a0] sm:$0xff] }
 0x1a6   :  { %14265 = vmatprep.mubr.msk.f32.mxu1 %vm1147_vm0, %v1627_v19  ;;  %v1634_v19 = vld [vmem:[%s22637_s0 + $0x2a8] sm:$0xff] }
 0x1a9   :  { %14266 = vmatmul.mubr.msk.f32.gmra.mrb[78].mxu1 %vm1147_vm0, %v1628_v31  ;;  %v1635_v31 = vld [vmem:[%s22637_s0 + $0x2b0] sm:$0xff] }
 0x1aa   :  { %14268 = vmatprep.mubr.msk.f32.mxu1 %vm1147_vm0, %v1629_v22  ;;  %v1636_v22 = vld [vmem:[%s22637_s0 + $0x2b8] sm:$0xff] }
 0x1ad   :  { %14269 = vmatmul.mubr.msk.f32.gmra.mrb[80].mxu1 %vm1147_vm0, %v1630_v18  ;;  %v1637_v18 = vld [vmem:[%s22637_s0 + $0x2c0] sm:$0xff] }
 0x1ae   :  { %14271 = vmatprep.mubr.msk.f32.mxu1 %vm1147_vm0, %v1631_v26  ;;  %v1638_v26 = vld [vmem:[%s22637_s0 + $0x2c8] sm:$0xff] }
 0x1b1   :  { %14272 = vmatmul.mubr.msk.f32.gmra.mrb[82].mxu1 %vm1147_vm0, %v1632_v27  ;;  %v1639_v27 = vld [vmem:[%s22637_s0 + $0x2d0] sm:$0xff] }
 0x1b2   :  { %14274 = vmatprep.mubr.msk.f32.mxu1 %vm1147_vm0, %v1633_v14  ;;  %v1640_v14 = vld [vmem:[%s22637_s0 + $0x2d8] sm:$0xff] }
 0x1b5   :  { %14275 = vmatmul.mubr.msk.f32.gmra.mrb[84].mxu1 %vm1147_vm0, %v1634_v19  ;;  %v1641_v19 = vld [vmem:[%s22637_s0 + $0x2e0] sm:$0xff] }
 0x1b6   :  { %14277 = vmatprep.mubr.msk.f32.mxu1 %vm1147_vm0, %v1635_v31  ;;  %v1642_v31 = vld [vmem:[%s22637_s0 + $0x2e8] sm:$0xff] }
 0x1b9   :  { %14278 = vmatmul.mubr.msk.f32.gmra.mrb[86].mxu1 %vm1147_vm0, %v1636_v22  ;;  %v1643_v22 = vld [vmem:[%s22637_s0 + $0x2f0] sm:$0xff] }
 0x1ba   :  { %14280 = vmatprep.mubr.msk.f32.mxu1 %vm1147_vm0, %v1637_v18  ;;  %v1644_v18 = vld [vmem:[%s22637_s0 + $0x2f8] sm:$0xff] }
 0x1bd   :  { %14281 = vmatmul.mubr.msk.f32.gmra.mrb[88].mxu1 %vm1147_vm0, %v1638_v26  ;;  %v2180_v26 = vld [vmem:[%s22637_s0 + $0x430] sm:$0xff] }
 0x1be   :  { %14283 = vmatprep.mubr.msk.f32.mxu1 %vm1147_vm0, %v1639_v27  ;;  %v2181_v27 = vld [vmem:[%s22637_s0 + $0x438] sm:$0xff] }
 0x1c1   :  { %14284 = vmatmul.mubr.msk.f32.gmra.mrb[90].mxu1 %vm1147_vm0, %v1640_v14  ;;  %v2182_v14 = vld [vmem:[%s22637_s0 + $0x440] sm:$0xff] }
 0x1c2   :  { %14286 = vmatprep.mubr.msk.f32.mxu1 %vm1147_vm0, %v1641_v19  ;;  %v2183_v19 = vld [vmem:[%s22637_s0 + $0x448] sm:$0xff] }
 0x1c5   :  { %14287 = vmatmul.mubr.msk.f32.gmra.mrb[92].mxu1 %vm1147_vm0, %v1642_v31  ;;  %v2184_v31 = vld [vmem:[%s22637_s0 + $0x450] sm:$0xff] }
 0x1c6   :  { %14289 = vmatprep.mubr.msk.f32.mxu1 %vm1147_vm0, %v1643_v22  ;;  %v2186_v22 = vld [vmem:[%s22637_s0 + $0x460] sm:$0xff] }
 0x1c9   :  { %14290 = vmatmul.mubr.msk.f32.gmra.mrb[94].mxu1 %vm1147_vm0, %v1644_v18  ;;  %v2187_v18 = vld [vmem:[%s22637_s0 + $0x468] sm:$0xff] }
 0x1ca   :  { %14357 = vmatprep.mubr.msk.f32.mxu1 %vm1147_vm0, %v2180_v26  ;;  %v2188_v26 = vld [vmem:[%s22637_s0 + $0x470] sm:$0xff] }
 0x1cd   :  { %14358 = vmatmul.mubr.msk.f32.vlgmr.msra.gmra.mrb[96].mxu1 %vm1147_vm0, %v2181_v27  ;;  %v2687_v27 = vld [vmem:[%s22637_s0 + $0x480] sm:$0xff] }
 0x1ce   :  { %15279 = vmatpush3.bf16.msra.mxu1 %v19154_v30  ;;  %14360 = vmatprep.mubr.msk.f32.mxu1 %vm1147_vm0, %v2182_v14  ;;  %v2185_v30 = vld [vmem:[%s22637_s0 + $0x458] sm:$0xff]  ;;  %v2688_v14 = vld [vmem:[%s22637_s0 + $0x488] sm:$0xff] }
 0x1cf   :  { %15281 = vmatprep.subr.bf16.mxu1 %v19165_v23 }
 0x1d1   :  { %14361 = vmatmul.mubr.msk.f32.gmra.mrb[98].mxu1 %vm1147_vm0, %v2183_v19  ;;  %v2689_v19 = vld [vmem:[%s22637_s0 + $0x490] sm:$0xff] }
 0x1d2   :  { %14363 = vmatprep.mubr.msk.f32.mxu1 %vm1147_vm0, %v2184_v31  ;;  %15283 = vmatpush3.bf16.msra.mxu1 %v19165_v23  ;;  %v2189_v23 = vld [vmem:[%s22637_s0 + $0x478] sm:$0xff] }
 0x1d5   :  { %14364 = vmatmul.mubr.msk.f32.gmra.mrb[100].mxu1 %vm1147_vm0, %v2185_v30 }
 0x1d6   :  { %14366 = vmatprep.mubr.msk.f32.mxu1 %vm1147_vm0, %v2186_v22  ;;  %v2690_v22 = vld [vmem:[%s22637_s0 + $0x498] sm:$0xff] }
 0x1d9   :  { %14367 = vmatmul.mubr.msk.f32.gmra.mrb[102].mxu1 %vm1147_vm0, %v2187_v18  ;;  %v2691_v18 = vld [vmem:[%s22637_s0 + $0x4a0] sm:$0xff] }
 0x1da   :  { %14369 = vmatprep.mubr.msk.f32.mxu1 %vm1147_vm0, %v2188_v26 }
 0x1dd   :  { %14370 = vmatmul.mubr.msk.f32.gmra.mrb[104].mxu1 %vm1147_vm0, %v2189_v23 }
 0x1de   :  { %14380 = vmatprep.mubr.msk.f32.mxu1 %vm1147_vm0, %v2687_v27  ;;  %v2692_v27 = vld [vmem:[%s22637_s0 + $0x4a8] sm:$0xff] }
 0x1e0   :  { %v19770_v31 = vpop.f32.mrb[0].mxu1 }
 0x1e1   :  { %v19772_v30 = vpop.f32.mrb[1].mxu1  ;;  %14381 = vmatmul.mubr.msk.f32.vlgmr.msra.gmra.mrb[106].mxu1 %vm1147_vm0, %v2688_v14  ;;  %v2693_v14 = vld [vmem:[%s22637_s0 + $0x4b0] sm:$0xff] }
 0x1e2   :  { %14383 = vmatprep.mubr.msk.f32.mxu1 %vm1147_vm0, %v2689_v19 }
 0x1e4   :  { %v19782_v26 = vpop.f32.mrb[2].mxu1 }
 0x1e5   :  { %v19784_v23 = vpop.f32.mrb[3].mxu1  ;;  %14384 = vmatmul.mubr.msk.f32.gmra.mrb[108].mxu1 %vm1147_vm0, %v2690_v22  ;;  %v2694_v22 = vld [vmem:[%s22637_s0 + $0x4b8] sm:$0xff] }
 0x1e6   :  { %14386 = vmatprep.mubr.msk.f32.mxu1 %vm1147_vm0, %v2691_v18  ;;  %v19799_v15 = vpop.f32.mrb[0].mxu0 }
 0x1e7   :  { %v19805_v18 = vpop.f32.mrb[1].mxu0 }
 0x1e8   :  { %v19794_v19 = vpop.f32.mrb[4].mxu1 }
 0x1e9   :  { %v19796_v10 = vpop.f32.mrb[5].mxu1  ;;  %14387 = vmatmul.mubr.msk.f32.gmra.mrb[110].mxu1 %vm1147_vm0, %v2692_v27 }
 0x1ea   :  { %14389 = vmatprep.mubr.msk.f32.mxu1 %vm1147_vm0, %v2693_v14  ;;  %v19815_v27 = vpop.f32.mrb[2].mxu0  ;;  %v2696_v14 = vld [vmem:[%s22637_s0 + $0x4c8] sm:$0xff] }
 0x1eb   :  { %v19821_v7 = vpop.f32.mrb[3].mxu0 }
 0x1ec   :  { %v19810_v6 = vpop.f32.mrb[6].mxu1 }
 0x1ed   :  { %v19812_v2 = vpop.f32.mrb[7].mxu1  ;;  %14390 = vmatmul.mubr.msk.f32.gmra.mrb[112].mxu1 %vm1147_vm0, %v2694_v22 }
 0x1ee   :  { %14392 = vmatprep.mubr.msk.f32.mxu1 %vm1147_vm0, %v2695_v11  ;;  %v19831_v22 = vpop.f32.mrb[4].mxu0  ;;  %v2698_v11 = vld [vmem:[%s22637_s0 + $0x4d8] sm:$0xff] }
 0x1ef   :  { %v19837_v29 = vpop.f32.mrb[5].mxu0 }
 0x1f0   :  { %v19826_v28 = vpop.f32.mrb[8].mxu1 }
 0x1f1   :  { %v19828_v24 = vpop.f32.mrb[9].mxu1  ;;  %14393 = vmatmul.mubr.msk.f32.gmra.mrb[114].mxu1 %vm1147_vm0, %v2696_v14 }
 0x1f2   :  { %14395 = vmatprep.mubr.msk.f32.mxu1 %vm1147_vm0, %v2697_v3  ;;  %v19847_v14 = vpop.f32.mrb[6].mxu0  ;;  %v2700_v3 = vld [vmem:[%s22637_s0 + $0x4e8] sm:$0xff] }
 0x1f3   :  { %v19853_v21 = vpop.f32.mrb[7].mxu0 }
 0x1f4   :  { %v19842_v20 = vpop.f32.mrb[10].mxu1 }
 0x1f5   :  { %v19844_v16 = vpop.f32.mrb[11].mxu1  ;;  %14396 = vmatmul.mubr.msk.f32.gmra.mrb[116].mxu1 %vm1147_vm0, %v2698_v11 }
 0x1f6   :  { %14398 = vmatprep.mubr.msk.f32.mxu1 %vm1147_vm0, %v2699_v25  ;;  %v19863_v11 = vpop.f32.mrb[8].mxu0  ;;  %v2702_v25 = vld [vmem:[%s22637_s0 + $0x4f8] sm:$0xff] }
 0x1f7   :  { %v19869_v13 = vpop.f32.mrb[9].mxu0 }
 0x1f8   :  { %v19858_v12 = vpop.f32.mrb[12].mxu1 }
 0x1f9   :  { %v19860_v8 = vpop.f32.mrb[13].mxu1  ;;  %14399 = vmatmul.mubr.msk.f32.gmra.mrb[118].mxu1 %vm1147_vm0, %v2700_v3 }
 0x1fa   :  { %14401 = vmatprep.mubr.msk.f32.mxu1 %vm1147_vm0, %v2701_v17  ;;  %v19879_v3 = vpop.f32.mrb[10].mxu0  ;;  %v2704_v17 = vld [vmem:[%s22637_s0 + $0x508] sm:$0xff] }
 0x1fb   :  { %v19885_v5 = vpop.f32.mrb[11].mxu0 }
 0x1fc   :  { %v19874_v4 = vpop.f32.mrb[14].mxu1 }
 0x1fd   :  { %v19876_v0 = vpop.f32.mrb[15].mxu1  ;;  %14402 = vmatmul.mubr.msk.f32.gmra.mrb[120].mxu1 %vm1147_vm0, %v2702_v25 }
 0x1fe   :  { %14404 = vmatprep.mubr.msk.f32.mxu1 %vm1147_vm0, %v2703_v9  ;;  %v19895_v25 = vpop.f32.mrb[12].mxu0  ;;  %v2706_v9 = vld [vmem:[%s22637_s0 + $0x518] sm:$0xff] }
 0x1ff   :  { %v19901_v63 = vpop.f32.mrb[13].mxu0 }
 0x200   :  { %v19890_v62 = vpop.f32.mrb[16].mxu1 }
 0x201   :  { %v19892_v58 = vpop.f32.mrb[17].mxu1  ;;  %14405 = vmatmul.mubr.msk.f32.gmra.mrb[122].mxu1 %vm1147_vm0, %v2704_v17 }
 0x202   :  { %14407 = vmatprep.mubr.msk.f32.mxu1 %vm1147_vm0, %v2705_v1  ;;  %v19911_v17 = vpop.f32.mrb[14].mxu0  ;;  %v2708_v1 = vld [vmem:[%s22637_s0 + $0x528] sm:$0xff] }
 0x203   :  { %v19917_v55 = vpop.f32.mrb[15].mxu0 }
 0x204   :  { %v19906_v54 = vpop.f32.mrb[18].mxu1 }
 0x205   :  { %v19908_v50 = vpop.f32.mrb[19].mxu1  ;;  %14408 = vmatmul.mubr.msk.f32.gmra.mrb[124].mxu1 %vm1147_vm0, %v2706_v9 }
 0x206   :  { %14410 = vmatprep.mubr.msk.f32.mxu1 %vm1147_vm0, %v2707_v59  ;;  %v19927_v9 = vpop.f32.mrb[16].mxu0  ;;  %v2710_v59 = vld [vmem:[%s22637_s0 + $0x538] sm:$0xff] }
 0x207   :  { %v19933_v47 = vpop.f32.mrb[17].mxu0 }
 0x208   :  { %v19922_v46 = vpop.f32.mrb[20].mxu1 }
 0x209   :  { %v19924_v42 = vpop.f32.mrb[21].mxu1  ;;  %14411 = vmatmul.mubr.msk.f32.gmra.mrb[126].mxu1 %vm1147_vm0, %v2708_v1 }
 0x20a   :  { %14413 = vmatprep.mubr.msk.f32.mxu1 %vm1147_vm0, %v2709_v51  ;;  %v19943_v1 = vpop.f32.mrb[18].mxu0  ;;  %v2712_v51 = vld [vmem:[%s22637_s0 + $0x548] sm:$0xff] }
 0x20b   :  { %v19949_v39 = vpop.f32.mrb[19].mxu0 }
 0x20c   :  { %v19938_v38 = vpop.f32.mrb[22].mxu1 }
 0x20d   :  { %v19940_v34 = vpop.f32.mrb[23].mxu1  ;;  %14414 = vmatmul.mubr.msk.f32.gmra.mrb[128].mxu1 %vm1147_vm0, %v2710_v59 }
 0x20e   :  { %14416 = vmatprep.mubr.msk.f32.mxu1 %vm1147_vm0, %v2711_v43  ;;  %v19959_v59 = vpop.f32.mrb[20].mxu0  ;;  %v2714_v43 = vld [vmem:[%s22637_s0 + $0x558] sm:$0xff] }
 0x20f   :  { %v19965_v61 = vpop.f32.mrb[21].mxu0 }
 0x210   :  { %v19954_v60 = vpop.f32.mrb[24].mxu1 }
 0x211   :  { %v19956_v56 = vpop.f32.mrb[25].mxu1  ;;  %14417 = vmatmul.mubr.msk.f32.gmra.mrb[130].mxu1 %vm1147_vm0, %v2712_v51 }
 0x212   :  { %14419 = vmatprep.mubr.msk.f32.mxu1 %vm1147_vm0, %v2713_v35  ;;  %v19975_v51 = vpop.f32.mrb[22].mxu0  ;;  %v2716_v35 = vld [vmem:[%s22637_s0 + $0x568] sm:$0xff] }
 0x213   :  { %v19981_v53 = vpop.f32.mrb[23].mxu0 }
 0x214   :  { %v19970_v52 = vpop.f32.mrb[26].mxu1 }
 0x215   :  { %23190 = vst [vmem:[#allocation523_spill] sm:$0xff] %v19970_v52  ;;  %v19972_v48 = vpop.f32.mrb[27].mxu1  ;;  %14420 = vmatmul.mubr.msk.f32.gmra.mrb[132].mxu1 %vm1147_vm0, %v2714_v43 }
 0x216   :  { %23191 = vst [vmem:[#allocation524_spill] sm:$0xff] %v19972_v48  ;;  %14422 = vmatprep.mubr.msk.f32.mxu1 %vm1147_vm0, %v2715_v57  ;;  %v19991_v43 = vpop.f32.mrb[24].mxu0  ;;  %v2718_v57 = vld [vmem:[%s22637_s0 + $0x578] sm:$0xff] }
 0x217   :  { %v19997_v45 = vpop.f32.mrb[25].mxu0 }
 0x218   :  { %v19986_v44 = vpop.f32.mrb[28].mxu1 }
 0x219   :  { %23192 = vst [vmem:[#allocation525_spill] sm:$0xff] %v19986_v44  ;;  %v19988_v40 = vpop.f32.mrb[29].mxu1  ;;  %14423 = vmatmul.mubr.msk.f32.gmra.mrb[134].mxu1 %vm1147_vm0, %v2716_v35  ;;  %v2723_v44 = vld [vmem:[%s22637_s0 + $0x5a0] sm:$0xff] }
 0x21a   :  { %23193 = vst [vmem:[#allocation526_spill] sm:$0xff] %v19988_v40  ;;  %14425 = vmatprep.mubr.msk.f32.mxu1 %vm1147_vm0, %v2717_v49  ;;  %v20007_v35 = vpop.f32.mrb[26].mxu0  ;;  %v2720_v49 = vld [vmem:[%s22637_s0 + $0x588] sm:$0xff] }
 0x21b   :  { %23196 = vst [vmem:[#allocation529_spill] sm:$0xff] %v20007_v35  ;;  %v20013_v37 = vpop.f32.mrb[27].mxu0 }
 0x21c   :  { %v20002_v36 = vpop.f32.mrb[30].mxu1  ;;  %23197 = vst [vmem:[#allocation530_spill] sm:$0xff] %v20013_v37 }
 0x21d   :  { %23194 = vst [vmem:[#allocation527_spill] sm:$0xff] %v20002_v36  ;;  %v20004_v32 = vpop.f32.mrb[31].mxu1  ;;  %14426 = vmatmul.mubr.msk.f32.gmra.mrb[136].mxu1 %vm1147_vm0, %v2718_v57 }
 0x21e   :  { %23195 = vst [vmem:[#allocation528_spill] sm:$0xff] %v20004_v32  ;;  %14428 = vmatprep.mubr.msk.f32.mxu1 %vm1147_vm0, %v2719_v41  ;;  %v20023_v57 = vpop.f32.mrb[28].mxu0  ;;  %v2722_v41 = vld [vmem:[%s22637_s0 + $0x598] sm:$0xff] }
 0x21f   :  { %23200 = vst [vmem:[#allocation533_spill] sm:$0xff] %v20023_v57  ;;  %v20029_v32 = vpop.f32.mrb[29].mxu0 }
 0x220   :  { %v20018_v40 = vpop.f32.mrb[32].mxu1  ;;  %23201 = vst [vmem:[#allocation534_spill] sm:$0xff] %v20029_v32  ;;  %v2725_v32 = vld [vmem:[%s22637_s0 + $0x5b0] sm:$0xff] }
 0x221   :  { %23198 = vst [vmem:[#allocation531_spill] sm:$0xff] %v20018_v40  ;;  %v20020_v36 = vpop.f32.mrb[33].mxu1  ;;  %14429 = vmatmul.mubr.msk.f32.gmra.mrb[138].mxu1 %vm1147_vm0, %v2720_v49 }
 0x222   :  { %23199 = vst [vmem:[#allocation532_spill] sm:$0xff] %v20020_v36  ;;  %14431 = vmatprep.mubr.msk.f32.mxu1 %vm1147_vm0, %v2721_v33  ;;  %v20039_v49 = vpop.f32.mrb[30].mxu0  ;;  %v2724_v33 = vld [vmem:[%s22637_s0 + $0x5a8] sm:$0xff] }
 0x223   :  { %23204 = vst [vmem:[#allocation537_spill] sm:$0xff] %v20039_v49  ;;  %v20045_v36 = vpop.f32.mrb[31].mxu0 }
 0x224   :  { %v20034_v37 = vpop.f32.mrb[34].mxu1  ;;  %23205 = vst [vmem:[#allocation538_spill] sm:$0xff] %v20045_v36 }
 0x225   :  { %23202 = vst [vmem:[#allocation535_spill] sm:$0xff] %v20034_v37  ;;  %v20036_v40 = vpop.f32.mrb[35].mxu1  ;;  %14432 = vmatmul.mubr.msk.f32.gmra.mrb[140].mxu1 %vm1147_vm0, %v2722_v41 }
 0x226   :  { %23203 = vst [vmem:[#allocation536_spill] sm:$0xff] %v20036_v40  ;;  %14434 = vmatprep.mubr.msk.f32.mxu1 %vm1147_vm0, %v2723_v44  ;;  %v20055_v41 = vpop.f32.mrb[32].mxu0  ;;  %v12823_v44 = vld [vmem:[%s22640_s3 + $0x20] sm:$0xff]  ;;  %v12824_v40 = vld [vmem:[%s22640_s3 + $0x28] sm:$0xff] }
 0x227   :  { %23208 = vst [vmem:[#allocation541_spill] sm:$0xff] %v20055_v41  ;;  %v20067_v36 = vpop.f32.mrb[33].mxu0 }
 0x228   :  { %v20050_v57 = vpop.f32.mrb[36].mxu1  ;;  %23209 = vst [vmem:[#allocation542_spill] sm:$0xff] %v20067_v36 }
 0x229   :  { %23206 = vst [vmem:[#allocation539_spill] sm:$0xff] %v20050_v57  ;;  %v20052_v37 = vpop.f32.mrb[37].mxu1  ;;  %14435 = vmatmul.mubr.msk.f32.gmra.mrb[142].mxu1 %vm1147_vm0, %v2724_v33  ;;  %v2726_v57 = vld [vmem:[%s22637_s0 + $0x5b8] sm:$0xff]  ;;  %v2727_v33 = vld [vmem:[%s22637_s0 + $0x5c0] sm:$0xff] }
 0x22a   :  { %23207 = vst [vmem:[#allocation540_spill] sm:$0xff] %v20052_v37  ;;  %14437 = vmatprep.mubr.msk.f32.mxu1 %vm1147_vm0, %v2725_v32  ;;  %v15284_v37 = vpack.c.bf16 %v12824_v40, %v12823_v44  ;;  %v20077_v35 = vpop.f32.mrb[34].mxu0  ;;  %v2728_v32 = vld [vmem:[%s22637_s0 + $0x5c8] sm:$0xff]  ;;  %v2729_v44 = vld [vmem:[%s22637_s0 + $0x5d0] sm:$0xff] }
 0x22b   :  { %23212 = vst [vmem:[#allocation545_spill] sm:$0xff] %v20077_v35  ;;  %v20083_v40 = vpop.f32.mrb[35].mxu0 }
 0x22c   :  { %v20072_v41 = vpop.f32.mrb[38].mxu1  ;;  %15285 = vmatprep.subr.bf16.mxu0 %v15284_v37  ;;  %23213 = vst [vmem:[#allocation546_spill] sm:$0xff] %v20083_v40  ;;  %v2731_v40 = vld [vmem:[%s22637_s0 + $0x5e0] sm:$0xff] }
 0x22d   :  { %23210 = vst [vmem:[#allocation543_spill] sm:$0xff] %v20072_v41  ;;  %v20074_v49 = vpop.f32.mrb[39].mxu1  ;;  %14438 = vmatmul.mubr.msk.f32.gmra.mrb[144].mxu1 %vm1147_vm0, %v2726_v57  ;;  %15287 = vmatpush3.bf16.msra.mxu0 %v15284_v37  ;;  %v2730_v37 = vld [vmem:[%s22637_s0 + $0x5d8] sm:$0xff] }
 0x22e   :  { %23211 = vst [vmem:[#allocation544_spill] sm:$0xff] %v20074_v49  ;;  %14440 = vmatprep.mubr.msk.f32.mxu1 %vm1147_vm0, %v2727_v33  ;;  %v20093_v57 = vpop.f32.mrb[36].mxu0 }
 0x22f   :  { %23216 = vst [vmem:[#allocation549_spill] sm:$0xff] %v20093_v57  ;;  %v20099_v33 = vpop.f32.mrb[37].mxu0 }
 0x230   :  { %v20088_v41 = vpop.f32.mrb[40].mxu1  ;;  %23217 = vst [vmem:[#allocation550_spill] sm:$0xff] %v20099_v33 }
 0x231   :  { %23214 = vst [vmem:[#allocation547_spill] sm:$0xff] %v20088_v41  ;;  %v20090_v49 = vpop.f32.mrb[41].mxu1  ;;  %14441 = vmatmul.mubr.msk.f32.gmra.mrb[146].mxu1 %vm1147_vm0, %v2728_v32  ;;  %v2732_v32 = vld [vmem:[%s22637_s0 + $0x5e8] sm:$0xff] }
 0x232   :  { %23215 = vst [vmem:[#allocation548_spill] sm:$0xff] %v20090_v49  ;;  %14443 = vmatprep.mubr.msk.f32.mxu1 %vm1147_vm0, %v2729_v44  ;;  %v2733_v44 = vld [vmem:[%s22637_s0 + $0x5f0] sm:$0xff] }
 0x234   :  { %v20104_v35 = vpop.f32.mrb[42].mxu1 }
 0x235   :  { %23218 = vst [vmem:[#allocation551_spill] sm:$0xff] %v20104_v35  ;;  %v20106_v41 = vpop.f32.mrb[43].mxu1  ;;  %14444 = vmatmul.mubr.msk.f32.gmra.mrb[148].mxu1 %vm1147_vm0, %v2730_v37 }
 0x236   :  { %23219 = vst [vmem:[#allocation552_spill] sm:$0xff] %v20106_v41  ;;  %14446 = vmatprep.mubr.msk.f32.mxu1 %vm1147_vm0, %v2731_v40  ;;  %v2734_v40 = vld [vmem:[%s22637_s0 + $0x5f8] sm:$0xff] }
 0x238   :  { %v20116_v49 = vpop.f32.mrb[44].mxu1 }
 0x239   :  { %23220 = vst [vmem:[#allocation553_spill] sm:$0xff] %v20116_v49  ;;  %v20118_v33 = vpop.f32.mrb[45].mxu1  ;;  %14447 = vmatmul.mubr.msk.f32.gmra.mrb[150].mxu1 %vm1147_vm0, %v2732_v32  ;;  %v12825_v32 = vld [vmem:[%s22640_s3 + $0x30] sm:$0xff] }
 0x23a   :  { %23221 = vst [vmem:[#allocation554_spill] sm:$0xff] %v20118_v33  ;;  %14449 = vmatprep.mubr.msk.f32.mxu1 %vm1147_vm0, %v2733_v44  ;;  %v12826_v44 = vld [vmem:[%s22640_s3 + $0x38] sm:$0xff] }
 0x23b   :  { %v15288_v36 = vpack.c.bf16 %v12826_v44, %v12825_v32 }
 0x23c   :  { %v20125_v37 = vpop.f32.mrb[46].mxu1 }
 0x23d   :  { %23222 = vst [vmem:[#allocation555_spill] sm:$0xff] %v20125_v37  ;;  %v20127_v41 = vpop.f32.mrb[47].mxu1  ;;  %14450 = vmatmul.mubr.msk.f32.gmra.mrb[152].mxu1 %vm1147_vm0, %v2734_v40  ;;  %15289 = vmatprep.subr.bf16.mxu0 %v15288_v36 }
 0x23e   :  { %23223 = vst [vmem:[#allocation556_spill] sm:$0xff] %v20127_v41  ;;  %15291 = vmatpush3.bf16.msra.mxu0 %v15288_v36 }
 0x240   :  { %v14222_v35 = vpop.f32.mrb[48].mxu1 }
 0x241   :  { %v2095_v57 = vmax.f32 %v19770_v31, %v14222_v35  ;;  %v1855_v49 = vpop.f32.mrb[49].mxu1 }
 0x242   :  { %v2094_v33 = vmax.f32 %v19772_v30, %v1855_v49 }
 0x243   :  { %v20139_v37 = vmax.f32 %v2095_v57, %v19799_v15 }
 0x244   :  { %v20142_v40 = vmax.f32 %v2094_v33, %v19805_v18  ;;  %v14225_v41 = vpop.f32.mrb[50].mxu1 }
 0x245   :  { %v2097_v31 = vmax.f32 %v19782_v26, %v14225_v41  ;;  %v1865_v35 = vpop.f32.mrb[51].mxu1 }
 0x246   :  { %v2096_v48 = vmax.f32 %v19784_v23, %v1865_v35 }
 0x247   :  { %v20147_v52 = vmax.f32 %v2097_v31, %v19815_v27 }
 0x248   :  { %v20150_v30 = vmax.f32 %v2096_v48, %v19821_v7  ;;  %v14228_v49 = vpop.f32.mrb[52].mxu1 }
 0x249   :  { %v2099_v15 = vmax.f32 %v19794_v19, %v14228_v49  ;;  %v1875_v57 = vpop.f32.mrb[53].mxu1 }
 0x24a   :  { %v2098_v18 = vmax.f32 %v19796_v10, %v1875_v57 }
 0x24b   :  { %v20155_v33 = vmax.f32 %v2099_v15, %v19831_v22 }
 0x24c   :  { %v20158_v26 = vmax.f32 %v2098_v18, %v19837_v29  ;;  %v14231_v36 = vpop.f32.mrb[54].mxu1 }
 0x24d   :  { %v2101_v23 = vmax.f32 %v19810_v6, %v14231_v36  ;;  %v1885_v27 = vpop.f32.mrb[55].mxu1 }
 0x24e   :  { %v2100_v41 = vmax.f32 %v19812_v2, %v1885_v27 }
 0x24f   :  { %v20163_v7 = vmax.f32 %v2101_v23, %v19847_v14 }
 0x250   :  { %v20166_v48 = vmax.f32 %v2100_v41, %v19853_v21  ;;  %v14234_v19 = vpop.f32.mrb[56].mxu1 }
 0x251   :  { %v2103_v10 = vmax.f32 %v19826_v28, %v14234_v19  ;;  %v1895_v22 = vpop.f32.mrb[57].mxu1 }
 0x252   :  { %v2102_v32 = vmax.f32 %v19828_v24, %v1895_v22 }
 0x253   :  { %v20171_v29 = vmax.f32 %v2103_v10, %v19863_v11 }
 0x254   :  { %v20174_v6 = vmax.f32 %v2102_v32, %v19869_v13  ;;  %v14237_v44 = vpop.f32.mrb[58].mxu1 }
 0x255   :  { %v2105_v2 = vmax.f32 %v19842_v20, %v14237_v44  ;;  %v1905_v14 = vpop.f32.mrb[59].mxu1 }
 0x256   :  { %v2104_v31 = vmax.f32 %v19844_v16, %v1905_v14 }
 0x257   :  { %v20179_v21 = vmax.f32 %v2105_v2, %v19879_v3 }
 0x258   :  { %v20182_v28 = vmax.f32 %v2104_v31, %v19885_v5  ;;  %v14240_v35 = vpop.f32.mrb[60].mxu1  ;;  %v23225_v31 = vld [vmem:[#allocation524_spill] sm:$0xff] }
 0x259   :  { %v2107_v24 = vmax.f32 %v19858_v12, %v14240_v35  ;;  %v1915_v11 = vpop.f32.mrb[61].mxu1 }
 0x25a   :  { %v2106_v49 = vmax.f32 %v19860_v8, %v1915_v11  ;;  %v23227_v11 = vld [vmem:[#allocation530_spill] sm:$0xff] }
 0x25b   :  { %v20187_v13 = vmax.f32 %v2107_v24, %v19895_v25 }
 0x25c   :  { %v20190_v20 = vmax.f32 %v2106_v49, %v19901_v63  ;;  %v14243_v15 = vpop.f32.mrb[62].mxu1 }
 0x25d   :  { %v2109_v16 = vmax.f32 %v19874_v4, %v14243_v15  ;;  %v1925_v3 = vpop.f32.mrb[63].mxu1 }
 0x25e   :  { %v2108_v57 = vmax.f32 %v19876_v0, %v1925_v3 }
 0x25f   :  { %v20195_v5 = vmax.f32 %v2109_v16, %v19911_v17  ;;  %v23229_v16 = vld [vmem:[#allocation526_spill] sm:$0xff] }
 0x260   :  { %v20198_v12 = vmax.f32 %v2108_v57, %v19917_v55  ;;  %v14246_v18 = vpop.f32.mrb[64].mxu1 }
 0x261   :  { %v2111_v8 = vmax.f32 %v19890_v62, %v14246_v18  ;;  %v1935_v25 = vpop.f32.mrb[65].mxu1  ;;  %v3422_v18 = vld [vmem:[%s22640_s3] sm:$0xff] }
 0x262   :  { %v2110_v36 = vmax.f32 %v19892_v58, %v1935_v25  ;;  %v23231_v25 = vld [vmem:[#allocation534_spill] sm:$0xff] }
 0x263   :  { %v20203_v63 = vmax.f32 %v2111_v8, %v19927_v9  ;;  %v3423_v8 = vld [vmem:[%s22640_s3 + $0x8] sm:$0xff] }
 0x264   :  { %v20206_v4 = vmax.f32 %v2110_v36, %v19933_v47  ;;  %v14249_v23 = vpop.f32.mrb[66].mxu1 }
 0x265   :  { %v2113_v0 = vmax.f32 %v19906_v54, %v14249_v23  ;;  %v1945_v17 = vpop.f32.mrb[67].mxu1 }
 0x266   :  { %v2112_v27 = vmax.f32 %v19908_v50, %v1945_v17  ;;  %v23232_v17 = vld [vmem:[#allocation527_spill] sm:$0xff] }
 0x267   :  { %v20211_v55 = vmax.f32 %v2113_v0, %v19943_v1  ;;  %v20262_v0 = vpack.c.bf16 %v3423_v8, %v3422_v18  ;;  %v23244_v8 = vld [vmem:[#allocation539_spill] sm:$0xff] }
 0x268   :  { %v20214_v62 = vmax.f32 %v2112_v27, %v19949_v39  ;;  %v14252_v41 = vpop.f32.mrb[68].mxu1 }
 0x269   :  { %v2115_v58 = vmax.f32 %v19922_v46, %v14252_v41  ;;  %v1955_v9 = vpop.f32.mrb[69].mxu1  ;;  %15293 = vmatprep.subr.bf16.mxu0 %v20262_v0 }
 0x26a   :  { %v2114_v19 = vmax.f32 %v19924_v42, %v1955_v9 }
 0x26b   :  { %v20219_v47 = vmax.f32 %v2115_v58, %v19959_v59  ;;  %v23233_v58 = vld [vmem:[#allocation528_spill] sm:$0xff] }
 0x26c   :  { %v20222_v54 = vmax.f32 %v2114_v19, %v19965_v61  ;;  %v14255_v10 = vpop.f32.mrb[70].mxu1  ;;  %v23234_v19 = vld [vmem:[#allocation537_spill] sm:$0xff] }
 0x26d   :  { %v2117_v50 = vmax.f32 %v19938_v38, %v14255_v10  ;;  %v1965_v1 = vpop.f32.mrb[71].mxu1 }
 0x26e   :  { %v2116_v22 = vmax.f32 %v19940_v34, %v1965_v1  ;;  %v23224_v34 = vld [vmem:[#allocation523_spill] sm:$0xff] }
 0x26f   :  { %v20227_v39 = vmax.f32 %v2117_v50, %v19975_v51  ;;  %v23235_v50 = vld [vmem:[#allocation538_spill] sm:$0xff] }
 0x270   :  { %v20230_v46 = vmax.f32 %v2116_v22, %v19981_v53  ;;  %v14258_v32 = vpop.f32.mrb[72].mxu1  ;;  %v23226_v53 = vld [vmem:[#allocation529_spill] sm:$0xff] }
 0x271   :  { %v2119_v42 = vmax.f32 %v19954_v60, %v14258_v32  ;;  %v1975_v59 = vpop.f32.mrb[73].mxu1  ;;  %v23236_v32 = vld [vmem:[#allocation531_spill] sm:$0xff] }
 0x272   :  { %v2118_v44 = vmax.f32 %v19956_v56, %v1975_v59  ;;  %v23228_v56 = vld [vmem:[#allocation525_spill] sm:$0xff] }
 0x273   :  { %v20235_v61 = vmax.f32 %v2119_v42, %v19991_v43 }
 0x274   :  { %v20238_v38 = vmax.f32 %v2118_v44, %v19997_v45  ;;  %v14261_v2 = vpop.f32.mrb[74].mxu1  ;;  %v23230_v45 = vld [vmem:[#allocation533_spill] sm:$0xff]  ;;  %v23237_v44 = vld [vmem:[#allocation532_spill] sm:$0xff] }
 0x275   :  { %v2121_v14 = vmax.f32 %v23224_v34, %v14261_v2  ;;  %v1985_v51 = vpop.f32.mrb[75].mxu1  ;;  %v23238_v34 = vld [vmem:[#allocation541_spill] sm:$0xff] }
 0x276   :  { %v2120_v35 = vmax.f32 %v23225_v31, %v1985_v51  ;;  %v23239_v51 = vld [vmem:[#allocation542_spill] sm:$0xff] }
 0x277   :  { %v20243_v24 = vmax.f32 %v2121_v14, %v23226_v53  ;;  %v23240_v53 = vld [vmem:[#allocation535_spill] sm:$0xff] }
 0x278   :  { %v20246_v60 = vmax.f32 %v2120_v35, %v23227_v11  ;;  %v14264_v49 = vpop.f32.mrb[76].mxu1 }
 0x279   :  { %v2123_v15 = vmax.f32 %v23228_v56, %v14264_v49  ;;  %v1995_v43 = vpop.f32.mrb[77].mxu1  ;;  %v23241_v56 = vld [vmem:[#allocation536_spill] sm:$0xff] }
 0x27a   :  { %v2122_v3 = vmax.f32 %v23229_v16, %v1995_v43  ;;  %v23242_v43 = vld [vmem:[#allocation545_spill] sm:$0xff] }
 0x27b   :  { %v20251_v57 = vmax.f32 %v2123_v15, %v23230_v45 }
 0x27c   :  { %v20260_v36 = vmax.f32 %v2122_v3, %v23231_v25  ;;  %v14267_v23 = vpop.f32.mrb[78].mxu1  ;;  %v23243_v3 = vld [vmem:[#allocation546_spill] sm:$0xff] }
 0x27d   :  { %v2125_v27 = vmax.f32 %v23232_v17, %v14267_v23  ;;  %v2005_v41 = vpop.f32.mrb[79].mxu1  ;;  %v23245_v17 = vld [vmem:[#allocation540_spill] sm:$0xff] }
 0x27e   :  { %v2124_v9 = vmax.f32 %v23233_v58, %v2005_v41  ;;  %v23246_v41 = vld [vmem:[#allocation549_spill] sm:$0xff] }
 0x27f   :  { %v20268_v10 = vmax.f32 %v2125_v27, %v23234_v19 }
 0x280   :  { %v20271_v1 = vmax.f32 %v2124_v9, %v23235_v50  ;;  %v14270_v22 = vpop.f32.mrb[80].mxu1  ;;  %v23247_v9 = vld [vmem:[#allocation550_spill] sm:$0xff] }
 0x281   :  { %v2127_v42 = vmax.f32 %v23236_v32, %v14270_v22  ;;  %v2015_v59 = vpop.f32.mrb[81].mxu1  ;;  %v23248_v22 = vld [vmem:[#allocation543_spill] sm:$0xff] }
 0x282   :  { %v2126_v2 = vmax.f32 %v23237_v44, %v2015_v59  ;;  %v23249_v59 = vld [vmem:[#allocation544_spill] sm:$0xff] }
 0x283   :  { %v20276_v14 = vmax.f32 %v2127_v42, %v23238_v34  ;;  %v23250_v34 = vld [vmem:[#allocation547_spill] sm:$0xff] }
 0x284   :  { %v20279_v31 = vmax.f32 %v2126_v2, %v23239_v51  ;;  %v14273_v35 = vpop.f32.mrb[82].mxu1 }
 0x285   :  { %v2129_v11 = vmax.f32 %v23240_v53, %v14273_v35  ;;  %v2025_v49 = vpop.f32.mrb[83].mxu1  ;;  %v23251_v53 = vld [vmem:[#allocation548_spill] sm:$0xff] }
 0x286   :  { %v2128_v15 = vmax.f32 %v23241_v56, %v2025_v49  ;;  %v23252_v56 = vld [vmem:[#allocation551_spill] sm:$0xff] }
 0x287   :  { %v20284_v16 = vmax.f32 %v2129_v11, %v23242_v43 }
 0x288   :  { %v20287_v45 = vmax.f32 %v2128_v15, %v23243_v3  ;;  %v14276_v18 = vpop.f32.mrb[84].mxu1  ;;  %v23253_v3 = vld [vmem:[#allocation552_spill] sm:$0xff] }
 0x289   :  { %v2131_v25 = vmax.f32 %v23244_v8, %v14276_v18  ;;  %v2035_v23 = vpop.f32.mrb[85].mxu1 }
 0x28a   :  { %v2130_v27 = vmax.f32 %v23245_v17, %v2035_v23 }
 0x28b   :  { %v20292_v58 = vmax.f32 %v2131_v25, %v23246_v41  ;;  %v23254_v25 = vld [vmem:[#allocation553_spill] sm:$0xff] }
 0x28c   :  { %v20295_v19 = vmax.f32 %v2130_v27, %v23247_v9  ;;  %v14279_v50 = vpop.f32.mrb[86].mxu1  ;;  %v23255_v27 = vld [vmem:[#allocation554_spill] sm:$0xff] }
 0x28d   :  { %v2133_v32 = vmax.f32 %v23248_v22, %v14279_v50  ;;  %v2045_v42 = vpop.f32.mrb[87].mxu1  ;;  %v23256_v50 = vld [vmem:[#allocation555_spill] sm:$0xff] }
 0x28e   :  { %v2132_v44 = vmax.f32 %v23249_v59, %v2045_v42  ;;  %v23257_v59 = vld [vmem:[#allocation556_spill] sm:$0xff] }
 0x290   :  { %v14282_v2 = vpop.f32.mrb[88].mxu1 }
 0x291   :  { %v2135_v51 = vmax.f32 %v23250_v34, %v14282_v2  ;;  %v2055_v35 = vpop.f32.mrb[89].mxu1 }
 0x292   :  { %v2134_v11 = vmax.f32 %v23251_v53, %v2055_v35 }
 0x294   :  { %v14285_v49 = vpop.f32.mrb[90].mxu1 }
 0x295   :  { %v2137_v15 = vmax.f32 %v23252_v56, %v14285_v49  ;;  %v2065_v43 = vpop.f32.mrb[91].mxu1 }
 0x296   :  { %v2136_v18 = vmax.f32 %v23253_v3, %v2065_v43 }
 0x298   :  { %v14288_v8 = vpop.f32.mrb[92].mxu1 }
 0x299   :  { %v2139_v23 = vmax.f32 %v23254_v25, %v14288_v8  ;;  %v2075_v17 = vpop.f32.mrb[93].mxu1 }
 0x29a   :  { %v2138_v41 = vmax.f32 %v23255_v27, %v2075_v17 }
 0x29c   :  { %v14291_v9 = vpop.f32.mrb[94].mxu1 }
 0x29d   :  { %v2141_v22 = vmax.f32 %v23256_v50, %v14291_v9  ;;  %v2085_v42 = vpop.f32.mrb[95].mxu1 }
 0x29e   :  { %v2140_v2 = vmax.f32 %v23257_v59, %v2085_v42 }
 0x2a0   :  { %v14359_v34 = vpop.f32.mrb[96].mxu1 }
 0x2a1   :  { %v20307_v35 = vmax.f32 %v2133_v32, %v14359_v34  ;;  %v2590_v53 = vpop.f32.mrb[97].mxu1 }
 0x2a2   :  { %v20309_v49 = vmax.f32 %v2132_v44, %v2590_v53 }
 0x2a4   :  { %v14362_v56 = vpop.f32.mrb[98].mxu1 }
 0x2a5   :  { %v20311_v43 = vmax.f32 %v2135_v51, %v14362_v56  ;;  %v2600_v3 = vpop.f32.mrb[99].mxu1 }
 0x2a6   :  { %v20313_v8 = vmax.f32 %v2134_v11, %v2600_v3 }
 0x2a8   :  { %v14365_v25 = vpop.f32.mrb[100].mxu1 }
 0x2a9   :  { %v20315_v17 = vmax.f32 %v2137_v15, %v14365_v25  ;;  %v2610_v27 = vpop.f32.mrb[101].mxu1  ;;  %v20330_v15 = vld [vmem:[%s22639_s2] ss:$0 sm:$0xff] }
 0x2aa   :  { %v20317_v9 = vmax.f32 %v2136_v18, %v2610_v27 }
 0x2ac   :  { %v14368_v50 = vpop.f32.mrb[102].mxu1 }
 0x2ad   :  { %v20319_v42 = vmax.f32 %v2139_v23, %v14368_v50  ;;  %v2620_v32 = vpop.f32.mrb[103].mxu1 }
 0x2ae   :  { %v20321_v59 = vmax.f32 %v2138_v41, %v2620_v32 }
 0x2b0   :  { %v14371_v44 = vpop.f32.mrb[104].mxu1 }
 0x2b1   :  { %v20323_v34 = vmax.f32 %v2141_v22, %v14371_v44  ;;  %v2630_v51 = vpop.f32.mrb[105].mxu1 }
 0x2b2   :  { %v20325_v53 = vmax.f32 %v2140_v2, %v2630_v51 }
 0x2b4   :  { %v14382_v11 = vpop.f32.mrb[106].mxu1 }
 0x2b5   :  { %v3185_v18 = vmax.f32 %v20139_v37, %v14382_v11  ;;  %v2945_v56 = vpop.f32.mrb[107].mxu1 }
 0x2b6   :  { %v3184_v23 = vmax.f32 %v20142_v40, %v2945_v56 }
 0x2b7   :  { %v3240_v41 = vadd.f32 %v20330_v15, %v3185_v18 }
 0x2b8   :  { %v3239_v3 = vadd.f32 %v20330_v15, %v3184_v23  ;;  %v14385_v22 = vpop.f32.mrb[108].mxu1 }
 0x2b9   :  { %v3288_v25 = vmax.f32 %v3240_v41, 0.0  ;;  %v3187_v2 = vmax.f32 %v20147_v52, %v14385_v22  ;;  %v2955_v27 = vpop.f32.mrb[109].mxu1 }
 0x2ba   :  { %v3287_v50 = vmax.f32 %v3239_v3, 0.0  ;;  %v3186_v32 = vmax.f32 %v20150_v30, %v2955_v27 }
 0x2bb   :  { %3336 = vst.msk [vmem:[#allocation3 + $0x8] sm:$0xff] %vm1147_vm0, %v3288_v25  ;;  %v3242_v44 = vadd.f32 %v20330_v15, %v3187_v2 }
 0x2bc   :  { %3335 = vst.msk [vmem:[#allocation3] sm:$0xff] %vm1147_vm0, %v3287_v50  ;;  %v3241_v37 = vadd.f32 %v20330_v15, %v3186_v32  ;;  %v14388_v40 = vpop.f32.mrb[110].mxu1  ;;  %v3424_v50 = vld [vmem:[%s22640_s3 + $0x10] sm:$0xff]  ;;  %v3425_v32 = vld [vmem:[%s22640_s3 + $0x18] sm:$0xff] }
 0x2bd   :  { %v3290_v51 = vmax.f32 %v3242_v44, 0.0  ;;  %v3189_v11 = vmax.f32 %v20155_v33, %v14388_v40  ;;  %v2965_v18 = vpop.f32.mrb[111].mxu1 }
 0x2be   :  { %v3289_v56 = vmax.f32 %v3241_v37, 0.0  ;;  %v3188_v52 = vmax.f32 %v20158_v26, %v2965_v18  ;;  %v15296_v18 = vpack.c.bf16 %v3425_v32, %v3424_v50 }
 0x2bf   :  { %3339 = vst.msk [vmem:[#allocation3 + $0x18] sm:$0xff] %vm1147_vm0, %v3290_v51  ;;  %v3244_v30 = vadd.f32 %v20330_v15, %v3189_v11 }
 0x2c0   :  { %3338 = vst.msk [vmem:[#allocation3 + $0x10] sm:$0xff] %vm1147_vm0, %v3289_v56  ;;  %v3243_v23 = vadd.f32 %v20330_v15, %v3188_v52  ;;  %v14391_v41 = vpop.f32.mrb[112].mxu1 }
 0x2c1   :  { %v3292_v3 = vmax.f32 %v3244_v30, 0.0  ;;  %v3191_v22 = vmax.f32 %v20163_v7, %v14391_v41  ;;  %v2975_v25 = vpop.f32.mrb[113].mxu1  ;;  %v12859_v30 = vld [vmem:[%s22640_s3 + $0x40] sm:$0xff] }
 0x2c2   :  { %v3291_v2 = vmax.f32 %v3243_v23, 0.0  ;;  %v3190_v33 = vmax.f32 %v20166_v48, %v2975_v25  ;;  %v12860_v23 = vld [vmem:[%s22640_s3 + $0x48] sm:$0xff] }
 0x2c3   :  { %3342 = vst.msk [vmem:[#allocation3 + $0x28] sm:$0xff] %vm1147_vm0, %v3292_v3  ;;  %v3246_v26 = vadd.f32 %v20330_v15, %v3191_v22  ;;  %v3426_v27 = vld [vmem:[#allocation3 + $0x1] sm:$0xff] }
 0x2c4   :  { %3341 = vst.msk [vmem:[#allocation3 + $0x20] sm:$0xff] %vm1147_vm0, %v3291_v2  ;;  %v3245_v7 = vadd.f32 %v20330_v15, %v3190_v33  ;;  %v14394_v44 = vpop.f32.mrb[114].mxu1  ;;  %14460 = vmatprep.mubr.msk.f32.mxu0 %vm1147_vm0, %v3426_v27  ;;  %v20380_v33 = vpack.c.bf16 %v12860_v23, %v12859_v30 }
 0x2c5   :  { %v3294_v48 = vmax.f32 %v3246_v26, 0.0  ;;  %v3193_v37 = vmax.f32 %v20171_v29, %v14394_v44  ;;  %v2985_v40 = vpop.f32.mrb[115].mxu1 }
 0x2c6   :  { %v3293_v51 = vmax.f32 %v3245_v7, 0.0  ;;  %v3192_v11 = vmax.f32 %v20174_v6, %v2985_v40 }
 0x2c7   :  { %3345 = vst.msk [vmem:[#allocation3 + $0x38] sm:$0xff] %vm1147_vm0, %v3294_v48  ;;  %v3248_v56 = vadd.f32 %v20330_v15, %v3193_v37  ;;  %v20365_v52 = vld [vmem:[#allocation3 + $0x11] sm:$0xff] }
 0x2c8   :  { %3344 = vst.msk [vmem:[#allocation3 + $0x30] sm:$0xff] %vm1147_vm0, %v3293_v51  ;;  %v3247_v29 = vadd.f32 %v20330_v15, %v3192_v11  ;;  %v14397_v6 = vpop.f32.mrb[116].mxu1  ;;  %14461 = vmatmul.mubr.msk.f32.vlgmr.msra.gmra.mrb[38].mxu0 %vm1147_vm0, %v20365_v52 }
 0x2c9   :  { %v3296_v41 = vmax.f32 %v3248_v56, 0.0  ;;  %v3195_v3 = vmax.f32 %v20179_v21, %v14397_v6  ;;  %v2995_v22 = vpop.f32.mrb[117].mxu1  ;;  %15295 = vmatpush3.bf16.msra.mxu0 %v20262_v0 }
 0x2ca   :  { %v3295_v25 = vmax.f32 %v3247_v29, 0.0  ;;  %v3194_v2 = vmax.f32 %v20182_v28, %v2995_v22  ;;  %15297 = vmatprep.subr.bf16.mxu0 %v15296_v18 }
 0x2cb   :  { %3348 = vst.msk [vmem:[#allocation3 + $0x48] sm:$0xff] %vm1147_vm0, %v3296_v41  ;;  %v3250_v26 = vadd.f32 %v20330_v15, %v3195_v3  ;;  %v20384_v27 = vld [vmem:[#allocation3 + $0x21] sm:$0xff] }
 0x2cc   :  { %3347 = vst.msk [vmem:[#allocation3 + $0x40] sm:$0xff] %vm1147_vm0, %v3295_v25  ;;  %v3249_v50 = vadd.f32 %v20330_v15, %v3194_v2  ;;  %v14400_v21 = vpop.f32.mrb[118].mxu1  ;;  %14463 = vmatprep.mubr.msk.f32.mxu0 %vm1147_vm0, %v20384_v27 }
 0x2cd   :  { %v3298_v0 = vmax.f32 %v3250_v26, 0.0  ;;  %v3197_v28 = vmax.f32 %v20187_v13, %v14400_v21  ;;  %v3005_v32 = vpop.f32.mrb[119].mxu1  ;;  %15299 = vmatpush3.bf16.msra.mxu0 %v15296_v18 }
 0x2ce   :  { %v3297_v7 = vmax.f32 %v3249_v50, 0.0  ;;  %v3196_v44 = vmax.f32 %v20190_v20, %v3005_v32  ;;  %15301 = vmatprep.subr.bf16.mxu0 %v20380_v33 }
 0x2cf   :  { %3351 = vst.msk [vmem:[#allocation3 + $0x58] sm:$0xff] %vm1147_vm0, %v3298_v0  ;;  %v3252_v48 = vadd.f32 %v20330_v15, %v3197_v28  ;;  %v20395_v37 = vld [vmem:[#allocation3 + $0x31] sm:$0xff] }
 0x2d0   :  { %3350 = vst.msk [vmem:[#allocation3 + $0x50] sm:$0xff] %vm1147_vm0, %v3297_v7  ;;  %v3251_v40 = vadd.f32 %v20330_v15, %v3196_v44  ;;  %v14403_v51 = vpop.f32.mrb[120].mxu1  ;;  %14464 = vmatmul.mubr.msk.f32.gmra.mrb[40].mxu0 %vm1147_vm0, %v20395_v37 }
 0x2d1   :  { %v3300_v13 = vmax.f32 %v3252_v48, 0.0  ;;  %v3199_v11 = vmax.f32 %v20195_v5, %v14403_v51  ;;  %v3015_v20 = vpop.f32.mrb[121].mxu1 }
 0x2d2   :  { %v3299_v18 = vmax.f32 %v3251_v40, 0.0  ;;  %v3198_v56 = vmax.f32 %v20198_v12, %v3015_v20 }
 0x2d3   :  { %3354 = vst.msk [vmem:[#allocation3 + $0x68] sm:$0xff] %vm1147_vm0, %v3300_v13  ;;  %v3254_v30 = vadd.f32 %v20330_v15, %v3199_v11  ;;  %v20405_v23 = vld [vmem:[#allocation3 + $0x41] sm:$0xff] }
 0x2d4   :  { %3353 = vst.msk [vmem:[#allocation3 + $0x60] sm:$0xff] %vm1147_vm0, %v3299_v18  ;;  %v3253_v29 = vadd.f32 %v20330_v15, %v3198_v56  ;;  %v14406_v6 = vpop.f32.mrb[122].mxu1  ;;  %14466 = vmatprep.mubr.msk.f32.mxu0 %vm1147_vm0, %v20405_v23 }
 0x2d5   :  { %v3302_v41 = vmax.f32 %v3254_v30, 0.0  ;;  %v3201_v5 = vmax.f32 %v20203_v63, %v14406_v6  ;;  %v3025_v3 = vpop.f32.mrb[123].mxu1 }
 0x2d6   :  { %v3301_v22 = vmax.f32 %v3253_v29, 0.0  ;;  %v3200_v12 = vmax.f32 %v20206_v4, %v3025_v3 }
 0x2d7   :  { %3357 = vst.msk [vmem:[#allocation3 + $0x78] sm:$0xff] %vm1147_vm0, %v3302_v41  ;;  %v3256_v25 = vadd.f32 %v20330_v15, %v3201_v5  ;;  %v20415_v2 = vld [vmem:[#allocation3 + $0x51] sm:$0xff] }
 0x2d8   :  { %3356 = vst.msk [vmem:[#allocation3 + $0x70] sm:$0xff] %vm1147_vm0, %v3301_v22  ;;  %v3255_v26 = vadd.f32 %v20330_v15, %v3200_v12  ;;  %v14409_v50 = vpop.f32.mrb[124].mxu1  ;;  %14467 = vmatmul.mubr.msk.f32.gmra.mrb[42].mxu0 %vm1147_vm0, %v20415_v2 }
 0x2d9   :  { %v3304_v21 = vmax.f32 %v3256_v25, 0.0  ;;  %v3203_v63 = vmax.f32 %v20211_v55, %v14409_v50  ;;  %v3035_v0 = vpop.f32.mrb[125].mxu1 }
 0x2da   :  { %v3303_v28 = vmax.f32 %v3255_v26, 0.0  ;;  %v3202_v4 = vmax.f32 %v20214_v62, %v3035_v0 }
 0x2db   :  { %3360 = vst.msk [vmem:[#allocation3 + $0x88] sm:$0xff] %vm1147_vm0, %v3304_v21  ;;  %v3258_v32 = vadd.f32 %v20330_v15, %v3203_v63  ;;  %v20425_v7 = vld [vmem:[#allocation3 + $0x61] sm:$0xff] }
 0x2dc   :  { %3359 = vst.msk [vmem:[#allocation3 + $0x80] sm:$0xff] %vm1147_vm0, %v3303_v28  ;;  %v3257_v44 = vadd.f32 %v20330_v15, %v3202_v4  ;;  %v14412_v48 = vpop.f32.mrb[126].mxu1  ;;  %14469 = vmatprep.mubr.msk.f32.mxu0 %vm1147_vm0, %v20425_v7 }
 0x2dd   :  { %v3306_v40 = vmax.f32 %v3258_v32, 0.0  ;;  %v3205_v55 = vmax.f32 %v20219_v47, %v14412_v48  ;;  %v3045_v51 = vpop.f32.mrb[127].mxu1 }
 0x2de   :  { %v3305_v13 = vmax.f32 %v3257_v44, 0.0  ;;  %v3204_v62 = vmax.f32 %v20222_v54, %v3045_v51 }
 0x2df   :  { %3363 = vst.msk [vmem:[#allocation3 + $0x98] sm:$0xff] %vm1147_vm0, %v3306_v40  ;;  %v3260_v11 = vadd.f32 %v20330_v15, %v3205_v55  ;;  %v20435_v20 = vld [vmem:[#allocation3 + $0x71] sm:$0xff] }
 0x2e0   :  { %3362 = vst.msk [vmem:[#allocation3 + $0x90] sm:$0xff] %vm1147_vm0, %v3305_v13  ;;  %v3259_v18 = vadd.f32 %v20330_v15, %v3204_v62  ;;  %v14415_v56 = vpop.f32.mrb[128].mxu1  ;;  %14470 = vmatmul.mubr.msk.f32.gmra.mrb[44].mxu0 %vm1147_vm0, %v20435_v20 }
 0x2e1   :  { %v3308_v30 = vmax.f32 %v3260_v11, 0.0  ;;  %v3207_v47 = vmax.f32 %v20227_v39, %v14415_v56  ;;  %v3055_v29 = vpop.f32.mrb[129].mxu1 }
 0x2e2   :  { %v3307_v6 = vmax.f32 %v3259_v18, 0.0  ;;  %v3206_v54 = vmax.f32 %v20230_v46, %v3055_v29 }
 0x2e3   :  { %3366 = vst.msk [vmem:[#allocation3 + $0xa8] sm:$0xff] %vm1147_vm0, %v3308_v30  ;;  %v3262_v41 = vadd.f32 %v20330_v15, %v3207_v47 }
 0x2e4   :  { %3365 = vst.msk [vmem:[#allocation3 + $0xa0] sm:$0xff] %vm1147_vm0, %v3307_v6  ;;  %v3261_v5 = vadd.f32 %v20330_v15, %v3206_v54  ;;  %v14418_v3 = vpop.f32.mrb[130].mxu1 }
 0x2e5   :  { %v3310_v22 = vmax.f32 %v3262_v41, 0.0  ;;  %v3209_v12 = vmax.f32 %v20235_v61, %v14418_v3  ;;  %v3065_v25 = vpop.f32.mrb[131].mxu1 }
 0x2e6   :  { %v3309_v26 = vmax.f32 %v3261_v5, 0.0  ;;  %v3208_v39 = vmax.f32 %v20238_v38, %v3065_v25 }
 0x2e7   :  { %3369 = vst.msk [vmem:[#allocation3 + $0xb8] sm:$0xff] %vm1147_vm0, %v3310_v22  ;;  %v3264_v46 = vadd.f32 %v20330_v15, %v3209_v12 }
 0x2e8   :  { %3368 = vst.msk [vmem:[#allocation3 + $0xb0] sm:$0xff] %vm1147_vm0, %v3309_v26  ;;  %v3263_v50 = vadd.f32 %v20330_v15, %v3208_v39  ;;  %v14421_v21 = vpop.f32.mrb[132].mxu1 }
 0x2e9   :  { %v3312_v63 = vmax.f32 %v3264_v46, 0.0  ;;  %v3211_v0 = vmax.f32 %v20243_v24, %v14421_v21  ;;  %v3075_v28 = vpop.f32.mrb[133].mxu1 }
 0x2ea   :  { %v3311_v4 = vmax.f32 %v3263_v50, 0.0  ;;  %v3210_v61 = vmax.f32 %v20246_v60, %v3075_v28 }
 0x2eb   :  { %3372 = vst.msk [vmem:[#allocation3 + $0xc8] sm:$0xff] %vm1147_vm0, %v3312_v63  ;;  %v3266_v38 = vadd.f32 %v20330_v15, %v3211_v0 }
 0x2ec   :  { %3371 = vst.msk [vmem:[#allocation3 + $0xc0] sm:$0xff] %vm1147_vm0, %v3311_v4  ;;  %v3265_v32 = vadd.f32 %v20330_v15, %v3210_v61  ;;  %v14424_v44 = vpop.f32.mrb[134].mxu1 }
 0x2ed   :  { %v3314_v48 = vmax.f32 %v3266_v38, 0.0  ;;  %v3213_v40 = vmax.f32 %v20251_v57, %v14424_v44  ;;  %v3085_v55 = vpop.f32.mrb[135].mxu1 }
 0x2ee   :  { %v3313_v51 = vmax.f32 %v3265_v32, 0.0  ;;  %v3212_v24 = vmax.f32 %v20260_v36, %v3085_v55 }
 0x2ef   :  { %3375 = vst.msk [vmem:[#allocation3 + $0xd8] sm:$0xff] %vm1147_vm0, %v3314_v48  ;;  %v3268_v60 = vadd.f32 %v20330_v15, %v3213_v40 }
 0x2f0   :  { %3374 = vst.msk [vmem:[#allocation3 + $0xd0] sm:$0xff] %vm1147_vm0, %v3313_v51  ;;  %v3267_v13 = vadd.f32 %v20330_v15, %v3212_v24  ;;  %v14427_v62 = vpop.f32.mrb[136].mxu1 }
 0x2f1   :  { %v3316_v11 = vmax.f32 %v3268_v60, 0.0  ;;  %v3215_v18 = vmax.f32 %v20268_v10, %v14427_v62  ;;  %v3095_v56 = vpop.f32.mrb[137].mxu1 }
 0x2f2   :  { %v3315_v30 = vmax.f32 %v3267_v13, 0.0  ;;  %v3214_v57 = vmax.f32 %v20271_v1, %v3095_v56 }
 0x2f3   :  { %3378 = vst.msk [vmem:[#allocation3 + $0xe8] sm:$0xff] %vm1147_vm0, %v3316_v11  ;;  %v3270_v36 = vadd.f32 %v20330_v15, %v3215_v18  ;;  %v3434_v47 = vld [vmem:[#allocation3 + $0xc1] sm:$0xff] }
 0x2f4   :  { %3377 = vst.msk [vmem:[#allocation3 + $0xe0] sm:$0xff] %vm1147_vm0, %v3315_v30  ;;  %v3269_v29 = vadd.f32 %v20330_v15, %v3214_v57  ;;  %v14430_v6 = vpop.f32.mrb[138].mxu1  ;;  %14472 = vmatprep.mubr.msk.f32.mxu0 %vm1147_vm0, %v3434_v47 }
 0x2f5   :  { %v3318_v54 = vmax.f32 %v3270_v36, 0.0  ;;  %v3217_v41 = vmax.f32 %v20276_v14, %v14430_v6  ;;  %v3105_v10 = vpop.f32.mrb[139].mxu1 }
 0x2f6   :  { %v3317_v5 = vmax.f32 %v3269_v29, 0.0  ;;  %v3216_v3 = vmax.f32 %v20279_v31, %v3105_v10 }
 0x2f7   :  { %3381 = vst.msk [vmem:[#allocation3 + $0xf8] sm:$0xff] %vm1147_vm0, %v3318_v54  ;;  %v3272_v1 = vadd.f32 %v20330_v15, %v3217_v41  ;;  %v20476_v22 = vld [vmem:[#allocation3 + $0xd1] sm:$0xff] }
 0x2f8   :  { %3380 = vst.msk [vmem:[#allocation3 + $0xf0] sm:$0xff] %vm1147_vm0, %v3317_v5  ;;  %v3271_v12 = vadd.f32 %v20330_v15, %v3216_v3  ;;  %v14433_v25 = vpop.f32.mrb[140].mxu1  ;;  %14473 = vmatmul.mubr.msk.f32.gmra.mrb[46].mxu0 %vm1147_vm0, %v20476_v22 }
 0x2f9   :  { %v3320_v26 = vmax.f32 %v3272_v1, 0.0  ;;  %v3219_v14 = vmax.f32 %v20284_v16, %v14433_v25  ;;  %v3115_v39 = vpop.f32.mrb[141].mxu1 }
 0x2fa   :  { %v3319_v46 = vmax.f32 %v3271_v12, 0.0  ;;  %v3218_v31 = vmax.f32 %v20287_v45, %v3115_v39  ;;  %v12861_v39 = vld [vmem:[%s22640_s3 + $0x50] sm:$0xff] }
 0x2fb   :  { %3384 = vst.msk [vmem:[#allocation3 + $0x108] sm:$0xff] %vm1147_vm0, %v3320_v26  ;;  %v3274_v50 = vadd.f32 %v20330_v15, %v3219_v14  ;;  %v20486_v21 = vld [vmem:[#allocation3 + $0xe1] sm:$0xff] }
 0x2fc   :  { %3383 = vst.msk [vmem:[#allocation3 + $0x100] sm:$0xff] %vm1147_vm0, %v3319_v46  ;;  %v3273_v63 = vadd.f32 %v20330_v15, %v3218_v31  ;;  %v14436_v0 = vpop.f32.mrb[142].mxu1  ;;  %14475 = vmatprep.mubr.msk.f32.mxu0 %vm1147_vm0, %v20486_v21  ;;  %v12862_v46 = vld [vmem:[%s22640_s3 + $0x58] sm:$0xff] }
 0x2fd   :  { %v3322_v28 = vmax.f32 %v3274_v50, 0.0  ;;  %v3221_v16 = vmax.f32 %v20292_v58, %v14436_v0  ;;  %v3125_v4 = vpop.f32.mrb[143].mxu1 }
 0x2fe   :  { %v3321_v61 = vmax.f32 %v3273_v63, 0.0  ;;  %v3220_v45 = vmax.f32 %v20295_v19, %v3125_v4  ;;  %v15304_v4 = vpack.c.bf16 %v12862_v46, %v12861_v39 }
 0x2ff   :  { %3387 = vst.msk [vmem:[#allocation3 + $0x118] sm:$0xff] %vm1147_vm0, %v3322_v28  ;;  %v3276_v38 = vadd.f32 %v20330_v15, %v3221_v16  ;;  %v20496_v32 = vld [vmem:[#allocation3 + $0xf1] sm:$0xff] }
 0x300   :  { %3386 = vst.msk [vmem:[#allocation3 + $0x110] sm:$0xff] %vm1147_vm0, %v3321_v61  ;;  %v3275_v44 = vadd.f32 %v20330_v15, %v3220_v45  ;;  %v14439_v48 = vpop.f32.mrb[144].mxu1  ;;  %14476 = vmatmul.mubr.msk.f32.gmra.mrb[48].mxu0 %vm1147_vm0, %v20496_v32  ;;  %v20553_v45 = vld [vmem:[#allocation3 + $0x10] sm:$0xff] }
 0x301   :  { %v3324_v40 = vmax.f32 %v3276_v38, 0.0  ;;  %v3223_v58 = vmax.f32 %v20307_v35, %v14439_v48  ;;  %v3135_v55 = vpop.f32.mrb[145].mxu1  ;;  %v12879_v38 = vld [vmem:[%s22640_s3 + $0x60] sm:$0xff]  ;;  %v20671_v39 = vld [vmem:[#allocation3 + $0xf2] sm:$0xff] }
 0x302   :  { %v3323_v51 = vmax.f32 %v3275_v44, 0.0  ;;  %v3222_v19 = vmax.f32 %v20309_v49, %v3135_v55  ;;  %v20571_v55 = vld [vmem:[#allocation3 + $0x30] sm:$0xff] }
 0x303   :  { %3390 = vst.msk [vmem:[#allocation3 + $0x128] sm:$0xff] %vm1147_vm0, %v3324_v40  ;;  %v3278_v24 = vadd.f32 %v20330_v15, %v3223_v58  ;;  %v20506_v60 = vld [vmem:[#allocation3 + $0x101] sm:$0xff] }
 0x304   :  { %3389 = vst.msk [vmem:[#allocation3 + $0x120] sm:$0xff] %vm1147_vm0, %v3323_v51  ;;  %v3277_v13 = vadd.f32 %v20330_v15, %v3222_v19  ;;  %v14442_v62 = vpop.f32.mrb[146].mxu1  ;;  %14478 = vmatprep.mubr.msk.f32.mxu0 %vm1147_vm0, %v20506_v60  ;;  %v20584_v51 = vld [vmem:[#allocation3 + $0x60] sm:$0xff]  ;;  %v20588_v19 = vld [vmem:[#allocation3 + $0x70] sm:$0xff] }
 0x305   :  { %v3326_v11 = vmax.f32 %v3278_v24, 0.0  ;;  %v3225_v35 = vmax.f32 %v20311_v43, %v14442_v62  ;;  %v3145_v18 = vpop.f32.mrb[147].mxu1  ;;  %v3414_v24 = vld [vmem:[#allocation3 + $0xc0] sm:$0xff] }
 0x306   :  { %v3325_v56 = vmax.f32 %v3277_v13, 0.0  ;;  %v3224_v49 = vmax.f32 %v20313_v8, %v3145_v18  ;;  %v20593_v13 = vld [vmem:[#allocation3 + $0xd0] sm:$0xff]  ;;  %v20597_v62 = vld [vmem:[#allocation3 + $0xe0] sm:$0xff] }
 0x307   :  { %3393 = vst.msk [vmem:[#allocation3 + $0x138] sm:$0xff] %vm1147_vm0, %v3326_v11  ;;  %v3280_v30 = vadd.f32 %v20330_v15, %v3225_v35  ;;  %v20516_v57 = vld [vmem:[#allocation3 + $0x111] sm:$0xff]  ;;  %v20605_v35 = vld [vmem:[#allocation3 + $0x100] sm:$0xff] }
 0x308   :  { %3392 = vst.msk [vmem:[#allocation3 + $0x130] sm:$0xff] %vm1147_vm0, %v3325_v56  ;;  %v3279_v36 = vadd.f32 %v20330_v15, %v3224_v49  ;;  %v14445_v47 = vpop.f32.mrb[148].mxu1  ;;  %14479 = vmatmul.mubr.msk.f32.gmra.mrb[50].mxu0 %vm1147_vm0, %v20516_v57  ;;  %v20601_v11 = vld [vmem:[#allocation3 + $0xf0] sm:$0xff]  ;;  %v20675_v46 = vld [vmem:[#allocation3 + $0x102] sm:$0xff] }
 0x309   :  { %v3328_v29 = vmax.f32 %v3280_v30, 0.0  ;;  %v3227_v43 = vmax.f32 %v20315_v17, %v14445_v47  ;;  %v3155_v6 = vpop.f32.mrb[149].mxu1  ;;  %v20609_v18 = vld [vmem:[#allocation3 + $0x110] sm:$0xff]  ;;  %v3833_v47 = vld [vmem:[#allocation3 + $0x2] sm:$0xff] }
 0x30a   :  { %v3327_v54 = vmax.f32 %v3279_v36, 0.0  ;;  %v3226_v8 = vmax.f32 %v20317_v9, %v3155_v6  ;;  %v12881_v30 = vld [vmem:[%s22640_s3 + $0x70] sm:$0xff]  ;;  %v12882_v36 = vld [vmem:[%s22640_s3 + $0x78] sm:$0xff]  ;;  %v12899_v6 = vld [vmem:[%s22640_s3 + $0x80] sm:$0xff] }
 0x30b   :  { %3396 = vst.msk [vmem:[#allocation3 + $0x148] sm:$0xff] %vm1147_vm0, %v3328_v29  ;;  %v3282_v41 = vadd.f32 %v20330_v15, %v3227_v43  ;;  %v20526_v10 = vld [vmem:[#allocation3 + $0x121] sm:$0xff]  ;;  %v15312_v29 = vpack.c.bf16 %v12882_v36, %v12881_v30  ;;  %v20628_v43 = vld [vmem:[#allocation3 + $0x12] sm:$0xff] }
 0x30c   :  { %3395 = vst.msk [vmem:[#allocation3 + $0x140] sm:$0xff] %vm1147_vm0, %v3327_v54  ;;  %v3281_v5 = vadd.f32 %v20330_v15, %v3226_v8  ;;  %v14448_v3 = vpop.f32.mrb[150].mxu1  ;;  %14481 = vmatprep.mubr.msk.f32.mxu0 %vm1147_vm0, %v20526_v10  ;;  %v20613_v56 = vld [vmem:[#allocation3 + $0x120] sm:$0xff]  ;;  %v12900_v54 = vld [vmem:[%s22640_s3 + $0x88] sm:$0xff]  ;;  %v20733_v36 = vld [vmem:[#allocation3 + $0xd3] sm:$0xff] }
 0x30d   :  { %v3330_v1 = vmax.f32 %v3282_v41, 0.0  ;;  %v3229_v17 = vmax.f32 %v20319_v42, %v14448_v3  ;;  %v3165_v12 = vpop.f32.mrb[151].mxu1  ;;  %v20638_v8 = vld [vmem:[#allocation3 + $0x22] sm:$0xff]  ;;  %v15316_v41 = vpack.c.bf16 %v12900_v54, %v12899_v6  ;;  %v20749_v54 = vld [vmem:[#allocation3 + $0x113] sm:$0xff] }
 0x30e   :  { %v3329_v25 = vmax.f32 %v3281_v5, 0.0  ;;  %v3228_v9 = vmax.f32 %v20321_v59, %v3165_v12  ;;  %v3406_v59 = vld [vmem:[#allocation3] sm:$0xff]  ;;  %v20642_v5 = vld [vmem:[#allocation3 + $0x32] sm:$0xff] }
 0x30f   :  { %3399 = vst.msk [vmem:[#allocation3 + $0x158] sm:$0xff] %vm1147_vm0, %v3330_v1  ;;  %v3284_v26 = vadd.f32 %v20330_v15, %v3229_v17  ;;  %v20536_v14 = vld [vmem:[#allocation3 + $0x131] sm:$0xff]  ;;  %v20646_v3 = vld [vmem:[#allocation3 + $0x42] sm:$0xff] }
 0x310   :  { %3398 = vst.msk [vmem:[#allocation3 + $0x150] sm:$0xff] %vm1147_vm0, %v3329_v25  ;;  %v3283_v42 = vadd.f32 %v20330_v15, %v3228_v9  ;;  %v14451_v31 = vpop.f32.mrb[152].mxu1  ;;  %14482 = vmatmul.mubr.msk.f32.gmra.mrb[52].mxu0 %vm1147_vm0, %v20536_v14  ;;  %v20617_v49 = vld [vmem:[#allocation3 + $0x130] sm:$0xff]  ;;  %v20654_v17 = vld [vmem:[#allocation3 + $0x62] sm:$0xff] }
 0x311   :  { %v3332_v50 = vmax.f32 %v3284_v26, 0.0  ;;  %v3231_v63 = vmax.f32 %v20323_v34, %v14451_v31  ;;  %v3175_v0 = vpop.f32.mrb[153].mxu1  ;;  %14492 = vmatprep.mubr.msk.f32.mxu0 %vm1147_vm0, %v3406_v59  ;;  %v12880_v34 = vld [vmem:[%s22640_s3 + $0x68] sm:$0xff]  ;;  %v20650_v1 = vld [vmem:[#allocation3 + $0x52] sm:$0xff] }
 0x312   :  { %v3331_v28 = vmax.f32 %v3283_v42, 0.0  ;;  %v3230_v16 = vmax.f32 %v20325_v53, %v3175_v0  ;;  %v20565_v53 = vld [vmem:[#allocation3 + $0x20] sm:$0xff]  ;;  %v15308_v58 = vpack.c.bf16 %v12880_v34, %v12879_v38  ;;  %v20658_v12 = vld [vmem:[#allocation3 + $0x72] sm:$0xff] }
 0x313   :  { %3402 = vst.msk [vmem:[#allocation3 + $0x168] sm:$0xff] %vm1147_vm0, %v3332_v50  ;;  %v3286_v61 = vadd.f32 %v20330_v15, %v3231_v63  ;;  %v3841_v25 = vld [vmem:[#allocation3 + $0xc2] sm:$0xff]  ;;  %v20663_v9 = vld [vmem:[#allocation3 + $0xd2] sm:$0xff] }
 0x314   :  { %3401 = vst.msk [vmem:[#allocation3 + $0x160] sm:$0xff] %vm1147_vm0, %v3331_v28  ;;  %v3285_v44 = vadd.f32 %v20330_v15, %v3230_v16  ;;  %14493 = vmatmul.mubr.msk.f32.vlgmr.msra.gmra.mrb[38].mxu0 %vm1147_vm0, %v20553_v45  ;;  %v20576_v15 = vld [vmem:[#allocation3 + $0x40] sm:$0xff]  ;;  %v20679_v42 = vld [vmem:[#allocation3 + $0x112] sm:$0xff] }
 0x315   :  { %v3334_v48 = vmax.f32 %v3286_v61, 0.0  ;;  %14495 = vmatprep.mubr.msk.f32.mxu0 %vm1147_vm0, %v20565_v53  ;;  %15303 = vmatpush3.bf16.msra.mxu0 %v20380_v33  ;;  %v20580_v33 = vld [vmem:[#allocation3 + $0x50] sm:$0xff]  ;;  %v20667_v26 = vld [vmem:[#allocation3 + $0xe2] sm:$0xff]  ;;  %v12902_v63 = vld [vmem:[%s22640_s3 + $0x98] sm:$0xff] }
 0x316   :  { %v3333_v40 = vmax.f32 %v3285_v44, 0.0  ;;  %15305 = vmatprep.subr.bf16.mxu0 %v15304_v4  ;;  %v20683_v31 = vld [vmem:[#allocation3 + $0x122] sm:$0xff]  ;;  %v20687_v59 = vld [vmem:[#allocation3 + $0x132] sm:$0xff] }
 0x317   :  { %3405 = vst.msk [vmem:[#allocation3 + $0x178] sm:$0xff] %vm1147_vm0, %v3334_v48  ;;  %v12901_v50 = vld [vmem:[%s22640_s3 + $0x90] sm:$0xff]  ;;  %v4063_v0 = vld [vmem:[#allocation3 + $0x3] sm:$0xff] }
 0x318   :  { %3404 = vst.msk [vmem:[#allocation3 + $0x170] sm:$0xff] %vm1147_vm0, %v3333_v40  ;;  %14496 = vmatmul.mubr.msk.f32.gmra.mrb[40].mxu0 %vm1147_vm0, %v20571_v55  ;;  %v15320_v28 = vpack.c.bf16 %v12902_v63, %v12901_v50  ;;  %v20698_v16 = vld [vmem:[#allocation3 + $0x13] sm:$0xff]  ;;  %v12920_v61 = vld [vmem:[%s22640_s3 + $0xa8] sm:$0xff] }
 0x319   :  { %14498 = vmatprep.mubr.msk.f32.mxu0 %vm1147_vm0, %v20576_v15  ;;  %15307 = vmatpush3.bf16.msra.mxu0 %v15304_v4  ;;  %v12919_v4 = vld [vmem:[%s22640_s3 + $0xa0] sm:$0xff]  ;;  %v20712_v44 = vld [vmem:[#allocation3 + $0x33] sm:$0xff] }
 0x31a   :  { %15309 = vmatprep.subr.bf16.mxu0 %v15308_v58  ;;  %v20708_v38 = vld [vmem:[#allocation3 + $0x23] sm:$0xff]  ;;  %v15324_v34 = vpack.c.bf16 %v12920_v61, %v12919_v4  ;;  %v20720_v40 = vld [vmem:[#allocation3 + $0x53] sm:$0xff] }
 0x31b   :  { %v20716_v48 = vld [vmem:[#allocation3 + $0x43] sm:$0xff]  ;;  %v12921_v50 = vld [vmem:[%s22640_s3 + $0xb0] sm:$0xff]  ;;  %v12922_v63 = vld [vmem:[%s22640_s3 + $0xb8] sm:$0xff] }
 0x31c   :  { %14499 = vmatmul.mubr.msk.f32.gmra.mrb[42].mxu0 %vm1147_vm0, %v20580_v33  ;;  %v4071_v30 = vld [vmem:[#allocation3 + $0xc3] sm:$0xff]  ;;  %v20768_v4 = vld [vmem:[#allocation3 + $0x14] sm:$0xff] }
 0x31d   :  { %14501 = vmatprep.mubr.msk.f32.mxu0 %vm1147_vm0, %v20584_v51  ;;  %v20745_v6 = vld [vmem:[#allocation3 + $0x103] sm:$0xff]  ;;  %23259 = vst [vmem:[#allocation524_spill] sm:$0xff] %v20768_v4 }
 0x31e   :  { %v12939_v61 = vld [vmem:[%s22640_s3 + $0xc0] sm:$0xff] }
 0x320   :  { %14502 = vmatmul.mubr.msk.f32.gmra.mrb[44].mxu0 %vm1147_vm0, %v20588_v19 }
 0x321   :  { %14504 = vmatprep.mubr.msk.f32.mxu0 %vm1147_vm0, %v3414_v24  ;;  %v20728_v24 = vld [vmem:[#allocation3 + $0x73] sm:$0xff] }
 0x324   :  { %14505 = vmatmul.mubr.msk.f32.gmra.mrb[46].mxu0 %vm1147_vm0, %v20593_v13 }
 0x325   :  { %14507 = vmatprep.mubr.msk.f32.mxu0 %vm1147_vm0, %v20597_v62 }
 0x328   :  { %14508 = vmatmul.mubr.msk.f32.gmra.mrb[48].mxu0 %vm1147_vm0, %v20601_v11 }
 0x329   :  { %14510 = vmatprep.mubr.msk.f32.mxu0 %vm1147_vm0, %v20605_v35 }
 0x32c   :  { %14511 = vmatmul.mubr.msk.f32.gmra.mrb[50].mxu0 %vm1147_vm0, %v20609_v18 }
 0x32d   :  { %14513 = vmatprep.mubr.msk.f32.mxu0 %vm1147_vm0, %v20613_v56 }
 0x330   :  { %14514 = vmatmul.mubr.msk.f32.gmra.mrb[52].mxu0 %vm1147_vm0, %v20617_v49 }
 0x331   :  { %14524 = vmatprep.mubr.msk.f32.mxu0 %vm1147_vm0, %v3833_v47  ;;  %v20737_v47 = vld [vmem:[#allocation3 + $0xe3] sm:$0xff] }
 0x334   :  { %14525 = vmatmul.mubr.msk.f32.vlgmr.msra.gmra.mrb[38].mxu0 %vm1147_vm0, %v20628_v43 }
 0x335   :  { %14527 = vmatprep.mubr.msk.f32.mxu0 %vm1147_vm0, %v20638_v8  ;;  %15311 = vmatpush3.bf16.msra.mxu0 %v15308_v58  ;;  %v20724_v58 = vld [vmem:[#allocation3 + $0x63] sm:$0xff] }
 0x336   :  { %15313 = vmatprep.subr.bf16.mxu0 %v15312_v29 }
 0x338   :  { %14528 = vmatmul.mubr.msk.f32.gmra.mrb[40].mxu0 %vm1147_vm0, %v20642_v5 }
 0x339   :  { %14530 = vmatprep.mubr.msk.f32.mxu0 %vm1147_vm0, %v20646_v3  ;;  %15315 = vmatpush3.bf16.msra.mxu0 %v15312_v29  ;;  %v20741_v29 = vld [vmem:[#allocation3 + $0xf3] sm:$0xff] }
 0x33a   :  { %15317 = vmatprep.subr.bf16.mxu0 %v15316_v41 }
 0x33c   :  { %14531 = vmatmul.mubr.msk.f32.gmra.mrb[42].mxu0 %vm1147_vm0, %v20650_v1 }
 0x33d   :  { %14533 = vmatprep.mubr.msk.f32.mxu0 %vm1147_vm0, %v20654_v17 }
 0x340   :  { %14534 = vmatmul.mubr.msk.f32.gmra.mrb[44].mxu0 %vm1147_vm0, %v20658_v12 }
 0x341   :  { %14536 = vmatprep.mubr.msk.f32.mxu0 %vm1147_vm0, %v3841_v25  ;;  %v20757_v25 = vld [vmem:[#allocation3 + $0x133] sm:$0xff] }
 0x344   :  { %14537 = vmatmul.mubr.msk.f32.gmra.mrb[46].mxu0 %vm1147_vm0, %v20663_v9 }
 0x345   :  { %14539 = vmatprep.mubr.msk.f32.mxu0 %vm1147_vm0, %v20667_v26 }
 0x348   :  { %14540 = vmatmul.mubr.msk.f32.gmra.mrb[48].mxu0 %vm1147_vm0, %v20671_v39 }
 0x349   :  { %14542 = vmatprep.mubr.msk.f32.mxu0 %vm1147_vm0, %v20675_v46 }
 0x34c   :  { %14543 = vmatmul.mubr.msk.f32.gmra.mrb[50].mxu0 %vm1147_vm0, %v20679_v42 }
 0x34d   :  { %14545 = vmatprep.mubr.msk.f32.mxu0 %vm1147_vm0, %v20683_v31 }
 0x350   :  { %14546 = vmatmul.mubr.msk.f32.gmra.mrb[52].mxu0 %vm1147_vm0, %v20687_v59 }
 0x351   :  { %14556 = vmatprep.mubr.msk.f32.mxu0 %vm1147_vm0, %v4063_v0  ;;  %v4293_v0 = vld [vmem:[#allocation3 + $0x4] sm:$0xff] }
 0x354   :  { %14557 = vmatmul.mubr.msk.f32.vlgmr.msra.gmra.mrb[38].mxu0 %vm1147_vm0, %v20698_v16 }
 0x355   :  { %14559 = vmatprep.mubr.msk.f32.mxu0 %vm1147_vm0, %v20708_v38  ;;  %15319 = vmatpush3.bf16.msra.mxu0 %v15316_v41  ;;  %v20753_v41 = vld [vmem:[#allocation3 + $0x123] sm:$0xff] }
 0x356   :  { %15321 = vmatprep.subr.bf16.mxu0 %v15320_v28  ;;  %23258 = vst [vmem:[#allocation523_spill] sm:$0xff] %v20753_v41 }
 0x358   :  { %14560 = vmatmul.mubr.msk.f32.gmra.mrb[40].mxu0 %vm1147_vm0, %v20712_v44 }
 0x359   :  { %14562 = vmatprep.mubr.msk.f32.mxu0 %vm1147_vm0, %v20716_v48  ;;  %15323 = vmatpush3.bf16.msra.mxu0 %v15320_v28  ;;  %v15328_v28 = vpack.c.bf16 %v12922_v63, %v12921_v50  ;;  %v20782_v63 = vld [vmem:[#allocation3 + $0x34] sm:$0xff] }
 0x35a   :  { %15325 = vmatprep.subr.bf16.mxu0 %v15324_v34 }
 0x35c   :  { %14563 = vmatmul.mubr.msk.f32.gmra.mrb[42].mxu0 %vm1147_vm0, %v20720_v40 }
 0x35d   :  { %14565 = vmatprep.mubr.msk.f32.mxu0 %vm1147_vm0, %v20724_v58 }
 0x360   :  { %14566 = vmatmul.mubr.msk.f32.gmra.mrb[44].mxu0 %vm1147_vm0, %v20728_v24 }
 0x361   :  { %14568 = vmatprep.mubr.msk.f32.mxu0 %vm1147_vm0, %v4071_v30  ;;  %v12940_v30 = vld [vmem:[%s22640_s3 + $0xc8] sm:$0xff] }
 0x362   :  { %v15332_v50 = vpack.c.bf16 %v12940_v30, %v12939_v61  ;;  %v20798_v61 = vld [vmem:[#allocation3 + $0x74] sm:$0xff]  ;;  %v4301_v30 = vld [vmem:[#allocation3 + $0xc4] sm:$0xff] }
 0x363   :  { %23263 = vst [vmem:[#allocation526_spill] sm:$0xff] %v20798_v61 }
 0x364   :  { %14569 = vmatmul.mubr.msk.f32.gmra.mrb[46].mxu0 %vm1147_vm0, %v20733_v36 }
 0x365   :  { %14571 = vmatprep.mubr.msk.f32.mxu0 %vm1147_vm0, %v20737_v47 }
 0x368   :  { %14572 = vmatmul.mubr.msk.f32.gmra.mrb[48].mxu0 %vm1147_vm0, %v20741_v29 }
 0x369   :  { %14574 = vmatprep.mubr.msk.f32.mxu0 %vm1147_vm0, %v20745_v6 }
 0x36c   :  { %14575 = vmatmul.mubr.msk.f32.gmra.mrb[50].mxu0 %vm1147_vm0, %v20749_v54 }
 0x36d   :  { %14577 = vmatprep.mubr.msk.f32.mxu0 %vm1147_vm0, %v20753_v41  ;;  %v20778_v41 = vld [vmem:[#allocation3 + $0x24] sm:$0xff] }
 0x370   :  { %14578 = vmatmul.mubr.msk.f32.gmra.mrb[52].mxu0 %vm1147_vm0, %v20757_v25 }
 0x371   :  { %14588 = vmatprep.mubr.msk.f32.mxu0 %vm1147_vm0, %v4293_v0  ;;  %v20786_v0 = vld [vmem:[#allocation3 + $0x44] sm:$0xff] }
 0x372   :  { %23260 = vst [vmem:[#allocation529_spill] sm:$0xff] %v20786_v0 }
 0x374   :  { %14589 = vmatmul.mubr.msk.f32.vlgmr.msra.gmra.mrb[38].mxu0 %vm1147_vm0, %v20768_v4  ;;  %v20790_v4 = vld [vmem:[#allocation3 + $0x54] sm:$0xff] }
 0x375   :  { %14591 = vmatprep.mubr.msk.f32.mxu0 %vm1147_vm0, %v20778_v41  ;;  %15327 = vmatpush3.bf16.msra.mxu0 %v15324_v34  ;;  %23261 = vst [vmem:[#allocation530_spill] sm:$0xff] %v20790_v4  ;;  %v20794_v34 = vld [vmem:[#allocation3 + $0x64] sm:$0xff] }
 0x376   :  { %15329 = vmatprep.subr.bf16.mxu0 %v15328_v28  ;;  %23262 = vst [vmem:[#allocation525_spill] sm:$0xff] %v20794_v34 }
 0x378   :  { %14592 = vmatmul.mubr.msk.f32.gmra.mrb[40].mxu0 %vm1147_vm0, %v20782_v63 }
 0x379   :  { %14594 = vmatprep.mubr.msk.f32.mxu0 %vm1147_vm0, %v20786_v0  ;;  %15331 = vmatpush3.bf16.msra.mxu0 %v15328_v28  ;;  %v20803_v28 = vld [vmem:[#allocation3 + $0xd4] sm:$0xff]  ;;  %v20807_v0 = vld [vmem:[#allocation3 + $0xe4] sm:$0xff] }
 0x37a   :  { %15333 = vmatprep.subr.bf16.mxu0 %v15332_v50  ;;  %23264 = vst [vmem:[#allocation533_spill] sm:$0xff] %v20803_v28  ;;  %23265 = vst [vmem:[#allocation534_spill] sm:$0xff] %v20807_v0 }
 0x37c   :  { %14595 = vmatmul.mubr.msk.f32.gmra.mrb[42].mxu0 %vm1147_vm0, %v20790_v4  ;;  %v20811_v4 = vld [vmem:[#allocation3 + $0xf4] sm:$0xff] }
 0x37d   :  { %14597 = vmatprep.mubr.msk.f32.mxu0 %vm1147_vm0, %v20794_v34  ;;  %23266 = vst [vmem:[#allocation527_spill] sm:$0xff] %v20811_v4  ;;  %v20815_v34 = vld [vmem:[#allocation3 + $0x104] sm:$0xff] }
 0x37e   :  { %23267 = vst [vmem:[#allocation528_spill] sm:$0xff] %v20815_v34 }
 0x380   :  { %14598 = vmatmul.mubr.msk.f32.gmra.mrb[44].mxu0 %vm1147_vm0, %v20798_v61  ;;  %v12960_v61 = vld [vmem:[%s22640_s3 + $0xe8] sm:$0xff] }
 0x381   :  { %14600 = vmatprep.mubr.msk.f32.mxu0 %vm1147_vm0, %v4301_v30  ;;  %v20819_v30 = vld [vmem:[#allocation3 + $0x114] sm:$0xff] }
 0x382   :  { %23268 = vst [vmem:[#allocation537_spill] sm:$0xff] %v20819_v30 }
 0x384   :  { %14601 = vmatmul.mubr.msk.f32.gmra.mrb[46].mxu0 %vm1147_vm0, %v20803_v28  ;;  %v20823_v28 = vld [vmem:[#allocation3 + $0x124] sm:$0xff] }
 0x385   :  { %14603 = vmatprep.mubr.msk.f32.mxu0 %vm1147_vm0, %v20807_v0  ;;  %23269 = vst [vmem:[#allocation538_spill] sm:$0xff] %v20823_v28  ;;  %v20827_v0 = vld [vmem:[#allocation3 + $0x134] sm:$0xff] }
 0x386   :  { %23270 = vst [vmem:[#allocation531_spill] sm:$0xff] %v20827_v0 }
 0x388   :  { %14604 = vmatmul.mubr.msk.f32.gmra.mrb[48].mxu0 %vm1147_vm0, %v20811_v4  ;;  %v12941_v4 = vld [vmem:[%s22640_s3 + $0xd0] sm:$0xff] }
 0x389   :  { %14606 = vmatprep.mubr.msk.f32.mxu0 %vm1147_vm0, %v20815_v34  ;;  %v12942_v34 = vld [vmem:[%s22640_s3 + $0xd8] sm:$0xff] }
 0x38c   :  { %14607 = vmatmul.mubr.msk.f32.gmra.mrb[50].mxu0 %vm1147_vm0, %v20819_v30  ;;  %v15336_v30 = vpack.c.bf16 %v12942_v34, %v12941_v4  ;;  %v20875_v4 = vld [vmem:[#allocation3 + $0x140] sm:$0xff] }
 0x38d   :  { %14609 = vmatprep.mubr.msk.f32.mxu0 %vm1147_vm0, %v20823_v28  ;;  %v12959_v28 = vld [vmem:[%s22640_s3 + $0xe0] sm:$0xff] }
 0x390   :  { %14610 = vmatmul.mubr.msk.f32.gmra.mrb[52].mxu0 %vm1147_vm0, %v20827_v0  ;;  %v15340_v0 = vpack.c.bf16 %v12960_v61, %v12959_v28  ;;  %v12979_v61 = vld [vmem:[%s22640_s3 + $0x100] sm:$0xff]  ;;  %v12980_v28 = vld [vmem:[%s22640_s3 + $0x108] sm:$0xff] }
 0x391   :  { %14620 = vmatprep.mubr.msk.f32.mxu0 %vm1147_vm0, %v20553_v45  ;;  %v20857_v45 = vld [vmem:[#allocation3 + $0x80] sm:$0xff] }
 0x394   :  { %14621 = vmatmul.mubr.msk.f32.vlgmr.msra.gmra.mrb[38].mxu0 %vm1147_vm0, %v20565_v53 }
 0x395   :  { %14623 = vmatprep.mubr.msk.f32.mxu0 %vm1147_vm0, %v20571_v55  ;;  %15335 = vmatpush3.bf16.msra.mxu0 %v15332_v50  ;;  %v12962_v50 = vld [vmem:[%s22640_s3 + $0xf8] sm:$0xff] }
 0x396   :  { %15337 = vmatprep.subr.bf16.mxu0 %v15336_v30 }
 0x398   :  { %14624 = vmatmul.mubr.msk.f32.gmra.mrb[40].mxu0 %vm1147_vm0, %v20576_v15 }
 0x399   :  { %14626 = vmatprep.mubr.msk.f32.mxu0 %vm1147_vm0, %v20580_v33  ;;  %15339 = vmatpush3.bf16.msra.mxu0 %v15336_v30  ;;  %v15348_v30 = vpack.c.bf16 %v12980_v28, %v12979_v61  ;;  %v23271_v28 = vld [vmem:[#allocation523_spill] sm:$0xff] }
 0x39a   :  { %15341 = vmatprep.subr.bf16.mxu0 %v15340_v0 }
 0x39c   :  { %14627 = vmatmul.mubr.msk.f32.gmra.mrb[42].mxu0 %vm1147_vm0, %v20584_v51 }
 0x39d   :  { %14629 = vmatprep.mubr.msk.f32.mxu0 %vm1147_vm0, %v20588_v19 }
 0x3a0   :  { %14630 = vmatmul.mubr.msk.f32.gmra.mrb[44].mxu0 %vm1147_vm0, %v20857_v45 }
 0x3a1   :  { %14632 = vmatprep.mubr.msk.f32.mxu0 %vm1147_vm0, %v20593_v13  ;;  %v12961_v13 = vld [vmem:[%s22640_s3 + $0xf0] sm:$0xff] }
 0x3a2   :  { %v15344_v34 = vpack.c.bf16 %v12962_v50, %v12961_v13  ;;  %v13019_v50 = vld [vmem:[%s22640_s3 + $0x140] sm:$0xff] }
 0x3a4   :  { %14633 = vmatmul.mubr.msk.f32.gmra.mrb[46].mxu0 %vm1147_vm0, %v20597_v62 }
 0x3a5   :  { %14635 = vmatprep.mubr.msk.f32.mxu0 %vm1147_vm0, %v20601_v11 }
 0x3a8   :  { %14636 = vmatmul.mubr.msk.f32.gmra.mrb[48].mxu0 %vm1147_vm0, %v20605_v35 }
 0x3a9   :  { %14638 = vmatprep.mubr.msk.f32.mxu0 %vm1147_vm0, %v20609_v18 }
 0x3ac   :  { %14639 = vmatmul.mubr.msk.f32.gmra.mrb[50].mxu0 %vm1147_vm0, %v20613_v56 }
 0x3ad   :  { %14641 = vmatprep.mubr.msk.f32.mxu0 %vm1147_vm0, %v20617_v49 }
 0x3b0   :  { %14642 = vmatmul.mubr.msk.f32.gmra.mrb[52].mxu0 %vm1147_vm0, %v20875_v4 }
 0x3b1   :  { %14652 = vmatprep.mubr.msk.f32.mxu0 %vm1147_vm0, %v20365_v52  ;;  %v20905_v52 = vld [vmem:[#allocation3 + $0x81] sm:$0xff] }
 0x3b4   :  { %14653 = vmatmul.mubr.msk.f32.vlgmr.msra.gmra.mrb[38].mxu0 %vm1147_vm0, %v20384_v27  ;;  %v20923_v27 = vld [vmem:[#allocation3 + $0x141] sm:$0xff] }
 0x3b5   :  { %14655 = vmatprep.mubr.msk.f32.mxu0 %vm1147_vm0, %v20395_v37  ;;  %15343 = vmatpush3.bf16.msra.mxu0 %v15340_v0  ;;  %v12981_v37 = vld [vmem:[%s22640_s3 + $0x110] sm:$0xff]  ;;  %v13002_v0 = vld [vmem:[%s22640_s3 + $0x138] sm:$0xff] }
 0x3b6   :  { %15345 = vmatprep.subr.bf16.mxu0 %v15344_v34 }
 0x3b8   :  { %14656 = vmatmul.mubr.msk.f32.gmra.mrb[40].mxu0 %vm1147_vm0, %v20405_v23  ;;  %v12982_v23 = vld [vmem:[%s22640_s3 + $0x118] sm:$0xff] }
 0x3b9   :  { %14658 = vmatprep.mubr.msk.f32.mxu0 %vm1147_vm0, %v20415_v2  ;;  %15347 = vmatpush3.bf16.msra.mxu0 %v15344_v34  ;;  %v15352_v2 = vpack.c.bf16 %v12982_v23, %v12981_v37  ;;  %v13020_v34 = vld [vmem:[%s22640_s3 + $0x148] sm:$0xff]  ;;  %v13022_v37 = vld [vmem:[%s22640_s3 + $0x158] sm:$0xff] }
 0x3ba   :  { %15349 = vmatprep.subr.bf16.mxu0 %v15348_v30  ;;  %v15364_v61 = vpack.c.bf16 %v13020_v34, %v13019_v50  ;;  %v23272_v23 = vld [vmem:[#allocation524_spill] sm:$0xff]  ;;  %v23276_v50 = vld [vmem:[#allocation526_spill] sm:$0xff] }
 0x3bb   :  { %v21049_v34 = vld [vmem:[#allocation3 + $0x84] sm:$0xff] }
 0x3bc   :  { %14659 = vmatmul.mubr.msk.f32.gmra.mrb[42].mxu0 %vm1147_vm0, %v20425_v7  ;;  %v12999_v7 = vld [vmem:[%s22640_s3 + $0x120] sm:$0xff]  ;;  %23277 = vst [vmem:[#allocation532_spill] sm:$0xff] %v21049_v34 }
 0x3bd   :  { %14661 = vmatprep.mubr.msk.f32.mxu0 %vm1147_vm0, %v20435_v20  ;;  %v13000_v20 = vld [vmem:[%s22640_s3 + $0x128] sm:$0xff] }
 0x3c0   :  { %14662 = vmatmul.mubr.msk.f32.gmra.mrb[44].mxu0 %vm1147_vm0, %v20905_v52 }
 0x3c1   :  { %14664 = vmatprep.mubr.msk.f32.mxu0 %vm1147_vm0, %v20476_v22  ;;  %v15356_v22 = vpack.c.bf16 %v13000_v20, %v12999_v7  ;;  %v13039_v7 = vld [vmem:[%s22640_s3 + $0x160] sm:$0xff]  ;;  %v13040_v20 = vld [vmem:[%s22640_s3 + $0x168] sm:$0xff] }
 0x3c4   :  { %14665 = vmatmul.mubr.msk.f32.gmra.mrb[46].mxu0 %vm1147_vm0, %v20486_v21  ;;  %v20953_v21 = vld [vmem:[#allocation3 + $0x82] sm:$0xff] }
 0x3c5   :  { %14667 = vmatprep.mubr.msk.f32.mxu0 %vm1147_vm0, %v20496_v32 }
 0x3c8   :  { %14668 = vmatmul.mubr.msk.f32.gmra.mrb[48].mxu0 %vm1147_vm0, %v20506_v60 }
 0x3c9   :  { %14670 = vmatprep.mubr.msk.f32.mxu0 %vm1147_vm0, %v20516_v57 }
 0x3cc   :  { %14671 = vmatmul.mubr.msk.f32.gmra.mrb[50].mxu0 %vm1147_vm0, %v20526_v10 }
 0x3cd   :  { %14673 = vmatprep.mubr.msk.f32.mxu0 %vm1147_vm0, %v20536_v14 }
 0x3d0   :  { %14674 = vmatmul.mubr.msk.f32.gmra.mrb[52].mxu0 %vm1147_vm0, %v20923_v27 }
 0x3d1   :  { %14684 = vmatprep.mubr.msk.f32.mxu0 %vm1147_vm0, %v20628_v43  ;;  %v20971_v43 = vld [vmem:[#allocation3 + $0x142] sm:$0xff] }
 0x3d4   :  { %14685 = vmatmul.mubr.msk.f32.vlgmr.msra.gmra.mrb[38].mxu0 %vm1147_vm0, %v20638_v8 }
 0x3d5   :  { %14687 = vmatprep.mubr.msk.f32.mxu0 %vm1147_vm0, %v20642_v5  ;;  %15351 = vmatpush3.bf16.msra.mxu0 %v15348_v30  ;;  %v21019_v30 = vld [vmem:[#allocation3 + $0x143] sm:$0xff] }
 0x3d6   :  { %15353 = vmatprep.subr.bf16.mxu0 %v15352_v2 }
 0x3d8   :  { %14688 = vmatmul.mubr.msk.f32.gmra.mrb[40].mxu0 %vm1147_vm0, %v20646_v3 }
 0x3d9   :  { %14690 = vmatprep.mubr.msk.f32.mxu0 %vm1147_vm0, %v20650_v1  ;;  %15355 = vmatpush3.bf16.msra.mxu0 %v15352_v2 }
 0x3da   :  { %15357 = vmatprep.subr.bf16.mxu0 %v15356_v22 }
 0x3dc   :  { %14691 = vmatmul.mubr.msk.f32.gmra.mrb[42].mxu0 %vm1147_vm0, %v20654_v17 }
 0x3dd   :  { %14693 = vmatprep.mubr.msk.f32.mxu0 %vm1147_vm0, %v20658_v12 }
 0x3e0   :  { %14694 = vmatmul.mubr.msk.f32.gmra.mrb[44].mxu0 %vm1147_vm0, %v20953_v21 }
 0x3e1   :  { %14696 = vmatprep.mubr.msk.f32.mxu0 %vm1147_vm0, %v20663_v9  ;;  %v13001_v9 = vld [vmem:[%s22640_s3 + $0x130] sm:$0xff] }
 0x3e2   :  { %v15360_v13 = vpack.c.bf16 %v13002_v0, %v13001_v9  ;;  %v23273_v9 = vld [vmem:[#allocation529_spill] sm:$0xff]  ;;  %v23274_v0 = vld [vmem:[#allocation530_spill] sm:$0xff] }
 0x3e4   :  { %14697 = vmatmul.mubr.msk.f32.gmra.mrb[46].mxu0 %vm1147_vm0, %v20667_v26 }
 0x3e5   :  { %14699 = vmatprep.mubr.msk.f32.mxu0 %vm1147_vm0, %v20671_v39 }
 0x3e8   :  { %14700 = vmatmul.mubr.msk.f32.gmra.mrb[48].mxu0 %vm1147_vm0, %v20675_v46 }
 0x3e9   :  { %14702 = vmatprep.mubr.msk.f32.mxu0 %vm1147_vm0, %v20679_v42 }
 0x3ec   :  { %14703 = vmatmul.mubr.msk.f32.gmra.mrb[50].mxu0 %vm1147_vm0, %v20683_v31 }
 0x3ed   :  { %14705 = vmatprep.mubr.msk.f32.mxu0 %vm1147_vm0, %v20687_v59 }
 0x3f0   :  { %14706 = vmatmul.mubr.msk.f32.gmra.mrb[52].mxu0 %vm1147_vm0, %v20971_v43 }
 0x3f1   :  { %14716 = vmatprep.mubr.msk.f32.mxu0 %vm1147_vm0, %v20698_v16  ;;  %v21001_v16 = vld [vmem:[#allocation3 + $0x83] sm:$0xff] }
 0x3f4   :  { %14717 = vmatmul.mubr.msk.f32.vlgmr.msra.gmra.mrb[38].mxu0 %vm1147_vm0, %v20708_v38 }
 0x3f5   :  { %14719 = vmatprep.mubr.msk.f32.mxu0 %vm1147_vm0, %v20712_v44  ;;  %15359 = vmatpush3.bf16.msra.mxu0 %v15356_v22  ;;  %v15372_v22 = vpack.c.bf16 %v13040_v20, %v13039_v7  ;;  %v23283_v7 = vld [vmem:[#allocation538_spill] sm:$0xff]  ;;  %v23284_v20 = vld [vmem:[#allocation531_spill] sm:$0xff] }
 0x3f6   :  { %15361 = vmatprep.subr.bf16.mxu0 %v15360_v13 }
 0x3f8   :  { %14720 = vmatmul.mubr.msk.f32.gmra.mrb[40].mxu0 %vm1147_vm0, %v20716_v48 }
 0x3f9   :  { %14722 = vmatprep.mubr.msk.f32.mxu0 %vm1147_vm0, %v20720_v40  ;;  %15363 = vmatpush3.bf16.msra.mxu0 %v15360_v13  ;;  %v23275_v13 = vld [vmem:[#allocation525_spill] sm:$0xff] }
 0x3fa   :  { %15365 = vmatprep.subr.bf16.mxu0 %v15364_v61 }
 0x3fc   :  { %14723 = vmatmul.mubr.msk.f32.gmra.mrb[42].mxu0 %vm1147_vm0, %v20724_v58 }
 0x3fd   :  { %14725 = vmatprep.mubr.msk.f32.mxu0 %vm1147_vm0, %v20728_v24 }
 0x400   :  { %14726 = vmatmul.mubr.msk.f32.gmra.mrb[44].mxu0 %vm1147_vm0, %v21001_v16 }
 0x401   :  { %14728 = vmatprep.mubr.msk.f32.mxu0 %vm1147_vm0, %v20733_v36  ;;  %v13021_v36 = vld [vmem:[%s22640_s3 + $0x150] sm:$0xff] }
 0x402   :  { %v15368_v2 = vpack.c.bf16 %v13022_v37, %v13021_v36  ;;  %v23279_v36 = vld [vmem:[#allocation534_spill] sm:$0xff]  ;;  %v23280_v37 = vld [vmem:[#allocation527_spill] sm:$0xff] }
 0x404   :  { %14729 = vmatmul.mubr.msk.f32.gmra.mrb[46].mxu0 %vm1147_vm0, %v20737_v47 }
 0x405   :  { %14731 = vmatprep.mubr.msk.f32.mxu0 %vm1147_vm0, %v20741_v29 }
 0x408   :  { %14732 = vmatmul.mubr.msk.f32.gmra.mrb[48].mxu0 %vm1147_vm0, %v20745_v6 }
 0x409   :  { %14734 = vmatprep.mubr.msk.f32.mxu0 %vm1147_vm0, %v20749_v54 }
 0x40c   :  { %14735 = vmatmul.mubr.msk.f32.gmra.mrb[50].mxu0 %vm1147_vm0, %v23271_v28 }
 0x40d   :  { %14737 = vmatprep.mubr.msk.f32.mxu0 %vm1147_vm0, %v20757_v25 }
 0x410   :  { %14738 = vmatmul.mubr.msk.f32.gmra.mrb[52].mxu0 %vm1147_vm0, %v21019_v30 }
 0x411   :  { %14748 = vmatprep.mubr.msk.f32.mxu0 %vm1147_vm0, %v23272_v23  ;;  %v23281_v23 = vld [vmem:[#allocation528_spill] sm:$0xff] }
 0x414   :  { %14749 = vmatmul.mubr.msk.f32.vlgmr.msra.gmra.mrb[38].mxu0 %vm1147_vm0, %v20778_v41 }
 0x415   :  { %14751 = vmatprep.mubr.msk.f32.mxu0 %vm1147_vm0, %v20782_v63  ;;  %15367 = vmatpush3.bf16.msra.mxu0 %v15364_v61  ;;  %v23278_v61 = vld [vmem:[#allocation533_spill] sm:$0xff] }
 0x416   :  { %15369 = vmatprep.subr.bf16.mxu0 %v15368_v2 }
 0x418   :  { %14752 = vmatmul.mubr.msk.f32.gmra.mrb[40].mxu0 %vm1147_vm0, %v23273_v9 }
 0x419   :  { %14754 = vmatprep.mubr.msk.f32.mxu0 %vm1147_vm0, %v23274_v0  ;;  %15371 = vmatpush3.bf16.msra.mxu0 %v15368_v2  ;;  %v23282_v2 = vld [vmem:[#allocation537_spill] sm:$0xff] }
 0x41a   :  { %15373 = vmatprep.subr.bf16.mxu0 %v15372_v22 }
 0x41c   :  { %14755 = vmatmul.mubr.msk.f32.gmra.mrb[42].mxu0 %vm1147_vm0, %v23275_v13 }
 0x41d   :  { %14757 = vmatprep.mubr.msk.f32.mxu0 %vm1147_vm0, %v23276_v50 }
 0x420   :  { %14758 = vmatmul.mubr.msk.f32.gmra.mrb[44].mxu0 %vm1147_vm0, %v21049_v34  ;;  %v21067_v34 = vld [vmem:[#allocation3 + $0x144] sm:$0xff] }
 0x421   :  { %14760 = vmatprep.mubr.msk.f32.mxu0 %vm1147_vm0, %v23278_v61  ;;  %23285 = vst [vmem:[#allocation541_spill] sm:$0xff] %v21067_v34  ;;  %v13041_v61 = vld [vmem:[%s22640_s3 + $0x170] sm:$0xff] }
 0x424   :  { %14761 = vmatmul.mubr.msk.f32.gmra.mrb[46].mxu0 %vm1147_vm0, %v23279_v36 }
 0x425   :  { %14763 = vmatprep.mubr.msk.f32.mxu0 %vm1147_vm0, %v23280_v37  ;;  %v13042_v37 = vld [vmem:[%s22640_s3 + $0x178] sm:$0xff] }
 0x428   :  { %14764 = vmatmul.mubr.msk.f32.gmra.mrb[48].mxu0 %vm1147_vm0, %v23281_v23 }
 0x429   :  { %14766 = vmatprep.mubr.msk.f32.mxu0 %vm1147_vm0, %v23282_v2  ;;  %v13060_v2 = vld [vmem:[%s22640_s3 + $0x188] sm:$0xff] }
 0x42c   :  { %14767 = vmatmul.mubr.msk.f32.gmra.mrb[50].mxu0 %vm1147_vm0, %v23283_v7  ;;  %v15376_v7 = vpack.c.bf16 %v13042_v37, %v13041_v61  ;;  %v21148_v37 = vld [vmem:[#allocation3 + $0x71] sm:$0xff] }
 0x42d   :  { %14769 = vmatprep.mubr.msk.f32.mxu0 %vm1147_vm0, %v23284_v20  ;;  %v13059_v20 = vld [vmem:[%s22640_s3 + $0x180] sm:$0xff] }
 0x430   :  { %14770 = vmatmul.mubr.msk.f32.gmra.mrb[52].mxu0 %vm1147_vm0, %v21067_v34  ;;  %v15380_v34 = vpack.c.bf16 %v13060_v2, %v13059_v20  ;;  %v5911_v2 = vld [vmem:[#allocation3 + $0xe1] sm:$0xff] }
 0x431   :  { %14780 = vmatprep.mubr.msk.f32.mxu0 %vm1147_vm0, %v20565_v53  ;;  %v21097_v53 = vld [vmem:[#allocation3 + $0x90] sm:$0xff] }
 0x434   :  { %14781 = vmatmul.mubr.msk.f32.vlgmr.msra.gmra.mrb[38].mxu0 %vm1147_vm0, %v20571_v55  ;;  %v21115_v55 = vld [vmem:[#allocation3 + $0x150] sm:$0xff] }
 0x435   :  { %14783 = vmatprep.mubr.msk.f32.mxu0 %vm1147_vm0, %v20576_v15  ;;  %15375 = vmatpush3.bf16.msra.mxu0 %v15372_v22  ;;  %v13061_v15 = vld [vmem:[%s22640_s3 + $0x190] sm:$0xff]  ;;  %v21144_v22 = vld [vmem:[#allocation3 + $0x61] sm:$0xff] }
 0x436   :  { %15377 = vmatprep.subr.bf16.mxu0 %v15376_v7 }
 0x438   :  { %14784 = vmatmul.mubr.msk.f32.gmra.mrb[40].mxu0 %vm1147_vm0, %v20580_v33  ;;  %v13062_v33 = vld [vmem:[%s22640_s3 + $0x198] sm:$0xff] }
 0x439   :  { %14786 = vmatprep.mubr.msk.f32.mxu0 %vm1147_vm0, %v20584_v51  ;;  %15379 = vmatpush3.bf16.msra.mxu0 %v15376_v7  ;;  %v5903_v51 = vld [vmem:[#allocation3 + $0x21] sm:$0xff]  ;;  %v21171_v7 = vld [vmem:[#allocation3 + $0x151] sm:$0xff] }
 0x43a   :  { %15381 = vmatprep.subr.bf16.mxu0 %v15380_v34 }
 0x43c   :  { %14787 = vmatmul.mubr.msk.f32.gmra.mrb[42].mxu0 %vm1147_vm0, %v20588_v19  ;;  %v15384_v19 = vpack.c.bf16 %v13062_v33, %v13061_v15  ;;  %v21340_v15 = vld [vmem:[#allocation3 + $0x60] sm:$0xff]  ;;  %v21344_v33 = vld [vmem:[#allocation3 + $0x70] sm:$0xff] }
 0x43d   :  { %14789 = vmatprep.mubr.msk.f32.mxu0 %vm1147_vm0, %v20857_v45 }
 0x440   :  { %14790 = vmatmul.mubr.msk.f32.gmra.mrb[44].mxu0 %vm1147_vm0, %v21097_v53 }
 0x441   :  { %14792 = vmatprep.mubr.msk.f32.mxu0 %vm1147_vm0, %v20597_v62  ;;  %v21126_v62 = vld [vmem:[#allocation3 + $0x31] sm:$0xff] }
 0x444   :  { %14793 = vmatmul.mubr.msk.f32.gmra.mrb[46].mxu0 %vm1147_vm0, %v20601_v11  ;;  %v13079_v11 = vld [vmem:[%s22640_s3 + $0x1a0] sm:$0xff] }
 0x445   :  { %14795 = vmatprep.mubr.msk.f32.mxu0 %vm1147_vm0, %v20605_v35  ;;  %v13080_v35 = vld [vmem:[%s22640_s3 + $0x1a8] sm:$0xff] }
 0x448   :  { %14796 = vmatmul.mubr.msk.f32.gmra.mrb[48].mxu0 %vm1147_vm0, %v20609_v18  ;;  %v21136_v18 = vld [vmem:[#allocation3 + $0x41] sm:$0xff] }
 0x449   :  { %14798 = vmatprep.mubr.msk.f32.mxu0 %vm1147_vm0, %v20613_v56  ;;  %v15388_v56 = vpack.c.bf16 %v13080_v35, %v13079_v11  ;;  %v21357_v11 = vld [vmem:[#allocation3 + $0x100] sm:$0xff]  ;;  %v21361_v35 = vld [vmem:[#allocation3 + $0x110] sm:$0xff] }
 0x44c   :  { %14799 = vmatmul.mubr.msk.f32.gmra.mrb[50].mxu0 %vm1147_vm0, %v20617_v49  ;;  %v21140_v49 = vld [vmem:[#allocation3 + $0x51] sm:$0xff] }
 0x44d   :  { %14801 = vmatprep.mubr.msk.f32.mxu0 %vm1147_vm0, %v20875_v4 }
 0x450   :  { %14802 = vmatmul.mubr.msk.f32.gmra.mrb[52].mxu0 %vm1147_vm0, %v21115_v55 }
 0x451   :  { %14812 = vmatprep.mubr.msk.f32.mxu0 %vm1147_vm0, %v5903_v51  ;;  %v21352_v51 = vld [vmem:[#allocation3 + $0xa0] sm:$0xff] }
 0x454   :  { %14813 = vmatmul.mubr.msk.f32.vlgmr.msra.gmra.mrb[38].mxu0 %vm1147_vm0, %v21126_v62 }
 0x455   :  { %14815 = vmatprep.mubr.msk.f32.mxu0 %vm1147_vm0, %v21136_v18  ;;  %15383 = vmatpush3.bf16.msra.mxu0 %v15380_v34  ;;  %v21154_v34 = vld [vmem:[#allocation3 + $0x91] sm:$0xff] }
 0x456   :  { %15385 = vmatprep.subr.bf16.mxu0 %v15384_v19 }
 0x458   :  { %14816 = vmatmul.mubr.msk.f32.gmra.mrb[40].mxu0 %vm1147_vm0, %v21140_v49 }
 0x459   :  { %14818 = vmatprep.mubr.msk.f32.mxu0 %vm1147_vm0, %v21144_v22  ;;  %15387 = vmatpush3.bf16.msra.mxu0 %v15384_v19  ;;  %v6831_v19 = vld [vmem:[#allocation3 + $0xf0] sm:$0xff] }
 0x45a   :  { %15389 = vmatprep.subr.bf16.mxu0 %v15388_v56 }
 0x45c   :  { %14819 = vmatmul.mubr.msk.f32.gmra.mrb[42].mxu0 %vm1147_vm0, %v21148_v37 }
 0x45d   :  { %14821 = vmatprep.mubr.msk.f32.mxu0 %vm1147_vm0, %v20905_v52 }
 0x460   :  { %14822 = vmatmul.mubr.msk.f32.gmra.mrb[44].mxu0 %vm1147_vm0, %v21154_v34 }
 0x461   :  { %14824 = vmatprep.mubr.msk.f32.mxu0 %vm1147_vm0, %v5911_v2  ;;  %v21377_v2 = vld [vmem:[#allocation3 + $0x160] sm:$0xff] }
 0x464   :  { %14825 = vmatmul.mubr.msk.f32.gmra.mrb[46].mxu0 %vm1147_vm0, %v20496_v32  ;;  %v13081_v32 = vld [vmem:[%s22640_s3 + $0x1b0] sm:$0xff] }
 0x465   :  { %14827 = vmatprep.mubr.msk.f32.mxu0 %vm1147_vm0, %v20506_v60  ;;  %v13082_v60 = vld [vmem:[%s22640_s3 + $0x1b8] sm:$0xff] }
 0x468   :  { %14828 = vmatmul.mubr.msk.f32.gmra.mrb[48].mxu0 %vm1147_vm0, %v20516_v57  ;;  %v15392_v57 = vpack.c.bf16 %v13082_v60, %v13081_v32  ;;  %v13161_v32 = vld [vmem:[%s22640_s3 + $0x230] sm:$0xff]  ;;  %v13162_v60 = vld [vmem:[%s22640_s3 + $0x238] sm:$0xff] }
 0x469   :  { %14830 = vmatprep.mubr.msk.f32.mxu0 %vm1147_vm0, %v20526_v10  ;;  %v13099_v10 = vld [vmem:[%s22640_s3 + $0x1c0] sm:$0xff] }
 0x46c   :  { %14831 = vmatmul.mubr.msk.f32.gmra.mrb[50].mxu0 %vm1147_vm0, %v20536_v14  ;;  %v13100_v14 = vld [vmem:[%s22640_s3 + $0x1c8] sm:$0xff] }
 0x46d   :  { %14833 = vmatprep.mubr.msk.f32.mxu0 %vm1147_vm0, %v20923_v27  ;;  %v15396_v20 = vpack.c.bf16 %v13100_v14, %v13099_v10  ;;  %v13180_v10 = vld [vmem:[%s22640_s3 + $0x248] sm:$0xff] }
 0x470   :  { %14834 = vmatmul.mubr.msk.f32.gmra.mrb[52].mxu0 %vm1147_vm0, %v21171_v7 }
 0x471   :  { %14844 = vmatprep.mubr.msk.f32.mxu0 %vm1147_vm0, %v20638_v8  ;;  %v21201_v8 = vld [vmem:[#allocation3 + $0x92] sm:$0xff] }
 0x474   :  { %14845 = vmatmul.mubr.msk.f32.vlgmr.msra.gmra.mrb[38].mxu0 %vm1147_vm0, %v20642_v5  ;;  %v21219_v5 = vld [vmem:[#allocation3 + $0x152] sm:$0xff] }
 0x475   :  { %14847 = vmatprep.mubr.msk.f32.mxu0 %vm1147_vm0, %v20646_v3  ;;  %15391 = vmatpush3.bf16.msra.mxu0 %v15388_v56  ;;  %v13101_v3 = vld [vmem:[%s22640_s3 + $0x1d0] sm:$0xff] }
 0x476   :  { %15393 = vmatprep.subr.bf16.mxu0 %v15392_v57  ;;  %v21369_v56 = vld [vmem:[#allocation3 + $0x130] sm:$0xff] }
 0x478   :  { %14848 = vmatmul.mubr.msk.f32.gmra.mrb[40].mxu0 %vm1147_vm0, %v20650_v1  ;;  %v13102_v1 = vld [vmem:[%s22640_s3 + $0x1d8] sm:$0xff] }
 0x479   :  { %14850 = vmatprep.mubr.msk.f32.mxu0 %vm1147_vm0, %v20654_v17  ;;  %15395 = vmatpush3.bf16.msra.mxu0 %v15392_v57  ;;  %v15400_v17 = vpack.c.bf16 %v13102_v1, %v13101_v3  ;;  %v13179_v57 = vld [vmem:[%s22640_s3 + $0x240] sm:$0xff]  ;;  %v21416_v1 = vld [vmem:[#allocation3 + $0x111] sm:$0xff] }
 0x47a   :  { %15397 = vmatprep.subr.bf16.mxu0 %v15396_v20  ;;  %v15428_v14 = vpack.c.bf16 %v13180_v10, %v13179_v57  ;;  %v21412_v3 = vld [vmem:[#allocation3 + $0x101] sm:$0xff] }
 0x47b   :  { %v21519_v10 = vld [vmem:[#allocation3 + $0x63] sm:$0xff] }
 0x47c   :  { %14851 = vmatmul.mubr.msk.f32.gmra.mrb[42].mxu0 %vm1147_vm0, %v20658_v12  ;;  %v13119_v12 = vld [vmem:[%s22640_s3 + $0x1e0] sm:$0xff] }
 0x47d   :  { %14853 = vmatprep.mubr.msk.f32.mxu0 %vm1147_vm0, %v20953_v21 }
 0x480   :  { %14854 = vmatmul.mubr.msk.f32.gmra.mrb[44].mxu0 %vm1147_vm0, %v21201_v8 }
 0x481   :  { %14856 = vmatprep.mubr.msk.f32.mxu0 %vm1147_vm0, %v20667_v26  ;;  %v13120_v26 = vld [vmem:[%s22640_s3 + $0x1e8] sm:$0xff] }
 0x484   :  { %14857 = vmatmul.mubr.msk.f32.gmra.mrb[46].mxu0 %vm1147_vm0, %v20671_v39  ;;  %v15404_v39 = vpack.c.bf16 %v13120_v26, %v13119_v12  ;;  %v21432_v12 = vld [vmem:[#allocation3 + $0x161] sm:$0xff]  ;;  %v13181_v26 = vld [vmem:[%s22640_s3 + $0x250] sm:$0xff] }
 0x485   :  { %14859 = vmatprep.mubr.msk.f32.mxu0 %vm1147_vm0, %v20675_v46  ;;  %v21249_v46 = vld [vmem:[#allocation3 + $0x93] sm:$0xff] }
 0x488   :  { %14860 = vmatmul.mubr.msk.f32.gmra.mrb[48].mxu0 %vm1147_vm0, %v20679_v42  ;;  %v21267_v42 = vld [vmem:[#allocation3 + $0x153] sm:$0xff] }
 0x489   :  { %14862 = vmatprep.mubr.msk.f32.mxu0 %vm1147_vm0, %v20683_v31  ;;  %v13121_v31 = vld [vmem:[%s22640_s3 + $0x1f0] sm:$0xff] }
 0x48c   :  { %14863 = vmatmul.mubr.msk.f32.gmra.mrb[50].mxu0 %vm1147_vm0, %v20687_v59  ;;  %v13122_v59 = vld [vmem:[%s22640_s3 + $0x1f8] sm:$0xff] }
 0x48d   :  { %14865 = vmatprep.mubr.msk.f32.mxu0 %vm1147_vm0, %v20971_v43 }
 0x490   :  { %14866 = vmatmul.mubr.msk.f32.gmra.mrb[52].mxu0 %vm1147_vm0, %v21219_v5 }
 0x491   :  { %14876 = vmatprep.mubr.msk.f32.mxu0 %vm1147_vm0, %v20708_v38  ;;  %v15408_v38 = vpack.c.bf16 %v13122_v59, %v13121_v31  ;;  %v7283_v31 = vld [vmem:[#allocation3 + $0x32] sm:$0xff]  ;;  %v21443_v59 = vld [vmem:[#allocation3 + $0x42] sm:$0xff] }
 0x494   :  { %14877 = vmatmul.mubr.msk.f32.vlgmr.msra.gmra.mrb[38].mxu0 %vm1147_vm0, %v20712_v44  ;;  %v13139_v44 = vld [vmem:[%s22640_s3 + $0x200] sm:$0xff] }
 0x495   :  { %14879 = vmatprep.mubr.msk.f32.mxu0 %vm1147_vm0, %v20716_v48  ;;  %15399 = vmatpush3.bf16.msra.mxu0 %v15396_v20  ;;  %v13140_v48 = vld [vmem:[%s22640_s3 + $0x208] sm:$0xff]  ;;  %v7061_v20 = vld [vmem:[#allocation3 + $0xf1] sm:$0xff] }
 0x496   :  { %15401 = vmatprep.subr.bf16.mxu0 %v15400_v17 }
 0x498   :  { %14880 = vmatmul.mubr.msk.f32.gmra.mrb[40].mxu0 %vm1147_vm0, %v20720_v40  ;;  %v15412_v40 = vpack.c.bf16 %v13140_v48, %v13139_v44  ;;  %v13200_v44 = vld [vmem:[%s22640_s3 + $0x268] sm:$0xff]  ;;  %v21453_v48 = vld [vmem:[#allocation3 + $0x52] sm:$0xff] }
 0x499   :  { %14882 = vmatprep.mubr.msk.f32.mxu0 %vm1147_vm0, %v20724_v58  ;;  %15403 = vmatpush3.bf16.msra.mxu0 %v15400_v17  ;;  %v23286_v58 = vld [vmem:[#allocation532_spill] sm:$0xff] }
 0x49a   :  { %15405 = vmatprep.subr.bf16.mxu0 %v15404_v39  ;;  %v21424_v17 = vld [vmem:[#allocation3 + $0x131] sm:$0xff] }
 0x49c   :  { %14883 = vmatmul.mubr.msk.f32.gmra.mrb[42].mxu0 %vm1147_vm0, %v20728_v24  ;;  %v21297_v24 = vld [vmem:[#allocation3 + $0x94] sm:$0xff] }
 0x49d   :  { %14885 = vmatprep.mubr.msk.f32.mxu0 %vm1147_vm0, %v21001_v16 }
 0x4a0   :  { %14886 = vmatmul.mubr.msk.f32.gmra.mrb[44].mxu0 %vm1147_vm0, %v21249_v46 }
 0x4a1   :  { %14888 = vmatprep.mubr.msk.f32.mxu0 %vm1147_vm0, %v20737_v47  ;;  %v23287_v47 = vld [vmem:[#allocation527_spill] sm:$0xff] }
 0x4a4   :  { %14889 = vmatmul.mubr.msk.f32.gmra.mrb[46].mxu0 %vm1147_vm0, %v20741_v29  ;;  %v23288_v29 = vld [vmem:[#allocation537_spill] sm:$0xff] }
 0x4a5   :  { %14891 = vmatprep.mubr.msk.f32.mxu0 %vm1147_vm0, %v20745_v6  ;;  %v23289_v6 = vld [vmem:[#allocation538_spill] sm:$0xff] }
 0x4a8   :  { %14892 = vmatmul.mubr.msk.f32.gmra.mrb[48].mxu0 %vm1147_vm0, %v20749_v54  ;;  %v23290_v54 = vld [vmem:[#allocation531_spill] sm:$0xff] }
 0x4a9   :  { %14894 = vmatprep.mubr.msk.f32.mxu0 %vm1147_vm0, %v23271_v28  ;;  %v13142_v28 = vld [vmem:[%s22640_s3 + $0x218] sm:$0xff] }
 0x4ac   :  { %14895 = vmatmul.mubr.msk.f32.gmra.mrb[50].mxu0 %vm1147_vm0, %v20757_v25  ;;  %v21315_v25 = vld [vmem:[#allocation3 + $0x154] sm:$0xff] }
 0x4ad   :  { %14897 = vmatprep.mubr.msk.f32.mxu0 %vm1147_vm0, %v21019_v30  ;;  %23292 = vst [vmem:[#allocation542_spill] sm:$0xff] %v21315_v25 }
 0x4b0   :  { %14898 = vmatmul.mubr.msk.f32.gmra.mrb[52].mxu0 %vm1147_vm0, %v21267_v42 }
 0x4b1   :  { %14908 = vmatprep.mubr.msk.f32.mxu0 %vm1147_vm0, %v20778_v41  ;;  %v23291_v41 = vld [vmem:[#allocation541_spill] sm:$0xff] }
 0x4b4   :  { %14909 = vmatmul.mubr.msk.f32.vlgmr.msra.gmra.mrb[38].mxu0 %vm1147_vm0, %v20782_v63  ;;  %v13141_v63 = vld [vmem:[%s22640_s3 + $0x210] sm:$0xff] }
 0x4b5   :  { %14911 = vmatprep.mubr.msk.f32.mxu0 %vm1147_vm0, %v23273_v9  ;;  %15407 = vmatpush3.bf16.msra.mxu0 %v15404_v39  ;;  %v6823_v9 = vld [vmem:[#allocation3 + $0x30] sm:$0xff]  ;;  %v13182_v39 = vld [vmem:[%s22640_s3 + $0x258] sm:$0xff] }
 0x4b6   :  { %15409 = vmatprep.subr.bf16.mxu0 %v15408_v38 }
 0x4b8   :  { %14912 = vmatmul.mubr.msk.f32.gmra.mrb[40].mxu0 %vm1147_vm0, %v23274_v0  ;;  %v15416_v0 = vpack.c.bf16 %v13142_v28, %v13141_v63  ;;  %v21474_v63 = vld [vmem:[#allocation3 + $0x102] sm:$0xff]  ;;  %v21478_v28 = vld [vmem:[#allocation3 + $0x112] sm:$0xff] }
 0x4b9   :  { %14914 = vmatprep.mubr.msk.f32.mxu0 %vm1147_vm0, %v23275_v13  ;;  %15411 = vmatpush3.bf16.msra.mxu0 %v15408_v38  ;;  %v21326_v13 = vld [vmem:[#allocation3 + $0x40] sm:$0xff] }
 0x4ba   :  { %15413 = vmatprep.subr.bf16.mxu0 %v15412_v40  ;;  %v13199_v38 = vld [vmem:[%s22640_s3 + $0x260] sm:$0xff] }
 0x4bc   :  { %14915 = vmatmul.mubr.msk.f32.gmra.mrb[42].mxu0 %vm1147_vm0, %v23276_v50  ;;  %v13159_v50 = vld [vmem:[%s22640_s3 + $0x220] sm:$0xff] }
 0x4bd   :  { %14917 = vmatprep.mubr.msk.f32.mxu0 %vm1147_vm0, %v23286_v58 }
 0x4c0   :  { %14918 = vmatmul.mubr.msk.f32.gmra.mrb[44].mxu0 %vm1147_vm0, %v21297_v24 }
 0x4c1   :  { %14920 = vmatprep.mubr.msk.f32.mxu0 %vm1147_vm0, %v23279_v36  ;;  %v13160_v36 = vld [vmem:[%s22640_s3 + $0x228] sm:$0xff] }
 0x4c2   :  { %v15420_v61 = vpack.c.bf16 %v13160_v36, %v13159_v50  ;;  %v13201_v50 = vld [vmem:[%s22640_s3 + $0x270] sm:$0xff]  ;;  %v13202_v36 = vld [vmem:[%s22640_s3 + $0x278] sm:$0xff] }
 0x4c4   :  { %14921 = vmatmul.mubr.msk.f32.gmra.mrb[46].mxu0 %vm1147_vm0, %v23287_v47  ;;  %v21457_v47 = vld [vmem:[#allocation3 + $0x62] sm:$0xff] }
 0x4c5   :  { %14923 = vmatprep.mubr.msk.f32.mxu0 %vm1147_vm0, %v23281_v23  ;;  %v21336_v23 = vld [vmem:[#allocation3 + $0x50] sm:$0xff] }
 0x4c8   :  { %14924 = vmatmul.mubr.msk.f32.gmra.mrb[48].mxu0 %vm1147_vm0, %v23288_v29  ;;  %v21461_v29 = vld [vmem:[#allocation3 + $0x72] sm:$0xff] }
 0x4c9   :  { %14926 = vmatprep.mubr.msk.f32.mxu0 %vm1147_vm0, %v23289_v6  ;;  %v21469_v6 = vld [vmem:[#allocation3 + $0xa2] sm:$0xff] }
 0x4cc   :  { %14927 = vmatmul.mubr.msk.f32.gmra.mrb[50].mxu0 %vm1147_vm0, %v23290_v54  ;;  %v7291_v54 = vld [vmem:[#allocation3 + $0xf2] sm:$0xff] }
 0x4cd   :  { %14929 = vmatprep.mubr.msk.f32.mxu0 %vm1147_vm0, %v23291_v41 }
 0x4d0   :  { %14930 = vmatmul.mubr.msk.f32.gmra.mrb[52].mxu0 %vm1147_vm0, %v21315_v25 }
 0x4d1   :  { %14940 = vmatprep.mubr.msk.f32.mxu0 %vm1147_vm0, %v6823_v9  ;;  %v21486_v9 = vld [vmem:[#allocation3 + $0x132] sm:$0xff] }
 0x4d4   :  { %14941 = vmatmul.mubr.msk.f32.vlgmr.msra.gmra.mrb[38].mxu0 %vm1147_vm0, %v21326_v13 }
 0x4d5   :  { %14943 = vmatprep.mubr.msk.f32.mxu0 %vm1147_vm0, %v21336_v23  ;;  %15415 = vmatpush3.bf16.msra.mxu0 %v15412_v40  ;;  %v15436_v40 = vpack.c.bf16 %v13200_v44, %v13199_v38  ;;  %v21556_v38 = vld [vmem:[#allocation3 + $0x163] sm:$0xff]  ;;  %v13221_v44 = vld [vmem:[%s22640_s3 + $0x290] sm:$0xff] }
 0x4d6   :  { %15417 = vmatprep.subr.bf16.mxu0 %v15416_v0 }
 0x4d8   :  { %14944 = vmatmul.mubr.msk.f32.gmra.mrb[40].mxu0 %vm1147_vm0, %v21340_v15 }
 0x4d9   :  { %14946 = vmatprep.mubr.msk.f32.mxu0 %vm1147_vm0, %v21344_v33  ;;  %15419 = vmatpush3.bf16.msra.mxu0 %v15416_v0  ;;  %v21494_v0 = vld [vmem:[#allocation3 + $0x162] sm:$0xff] }
 0x4da   :  { %15421 = vmatprep.subr.bf16.mxu0 %v15420_v61 }
 0x4dc   :  { %14947 = vmatmul.mubr.msk.f32.gmra.mrb[42].mxu0 %vm1147_vm0, %v20857_v45  ;;  %v21365_v45 = vld [vmem:[#allocation3 + $0x120] sm:$0xff] }
 0x4dd   :  { %14949 = vmatprep.mubr.msk.f32.mxu0 %vm1147_vm0, %v21097_v53 }
 0x4e0   :  { %14950 = vmatmul.mubr.msk.f32.gmra.mrb[44].mxu0 %vm1147_vm0, %v21352_v51 }
 0x4e1   :  { %14952 = vmatprep.mubr.msk.f32.mxu0 %vm1147_vm0, %v6831_v19  ;;  %v21505_v19 = vld [vmem:[#allocation3 + $0x43] sm:$0xff] }
 0x4e4   :  { %14953 = vmatmul.mubr.msk.f32.gmra.mrb[46].mxu0 %vm1147_vm0, %v21357_v11 }
 0x4e5   :  { %14955 = vmatprep.mubr.msk.f32.mxu0 %vm1147_vm0, %v21361_v35 }
 0x4e8   :  { %14956 = vmatmul.mubr.msk.f32.gmra.mrb[48].mxu0 %vm1147_vm0, %v21365_v45 }
 0x4e9   :  { %14958 = vmatprep.mubr.msk.f32.mxu0 %vm1147_vm0, %v21369_v56 }
 0x4ec   :  { %14959 = vmatmul.mubr.msk.f32.gmra.mrb[50].mxu0 %vm1147_vm0, %v20875_v4  ;;  %v15424_v4 = vpack.c.bf16 %v13162_v60, %v13161_v32  ;;  %v13219_v32 = vld [vmem:[%s22640_s3 + $0x280] sm:$0xff]  ;;  %v13220_v60 = vld [vmem:[%s22640_s3 + $0x288] sm:$0xff] }
 0x4ed   :  { %14961 = vmatprep.mubr.msk.f32.mxu0 %vm1147_vm0, %v21115_v55  ;;  %v15444_v57 = vpack.c.bf16 %v13220_v60, %v13219_v32  ;;  %v21581_v60 = vld [vmem:[#allocation3 + $0x64] sm:$0xff] }
 0x4f0   :  { %14962 = vmatmul.mubr.msk.f32.gmra.mrb[52].mxu0 %vm1147_vm0, %v21377_v2 }
 0x4f1   :  { %14972 = vmatprep.mubr.msk.f32.mxu0 %vm1147_vm0, %v21126_v62  ;;  %v21407_v62 = vld [vmem:[#allocation3 + $0xa1] sm:$0xff] }
 0x4f4   :  { %14973 = vmatmul.mubr.msk.f32.vlgmr.msra.gmra.mrb[38].mxu0 %vm1147_vm0, %v21136_v18 }
 0x4f5   :  { %14975 = vmatprep.mubr.msk.f32.mxu0 %vm1147_vm0, %v21140_v49  ;;  %15423 = vmatpush3.bf16.msra.mxu0 %v15420_v61  ;;  %v7513_v61 = vld [vmem:[#allocation3 + $0x33] sm:$0xff] }
 0x4f6   :  { %15425 = vmatprep.subr.bf16.mxu0 %v15424_v4 }
 0x4f8   :  { %14976 = vmatmul.mubr.msk.f32.gmra.mrb[40].mxu0 %vm1147_vm0, %v21144_v22 }
 0x4f9   :  { %14978 = vmatprep.mubr.msk.f32.mxu0 %vm1147_vm0, %v21148_v37  ;;  %15427 = vmatpush3.bf16.msra.mxu0 %v15424_v4  ;;  %v21515_v4 = vld [vmem:[#allocation3 + $0x53] sm:$0xff] }
 0x4fa   :  { %15429 = vmatprep.subr.bf16.mxu0 %v15428_v14 }
 0x4fc   :  { %14979 = vmatmul.mubr.msk.f32.gmra.mrb[42].mxu0 %vm1147_vm0, %v20905_v52  ;;  %v21420_v52 = vld [vmem:[#allocation3 + $0x121] sm:$0xff] }
 0x4fd   :  { %14981 = vmatprep.mubr.msk.f32.mxu0 %vm1147_vm0, %v21154_v34 }
 0x500   :  { %14982 = vmatmul.mubr.msk.f32.gmra.mrb[44].mxu0 %vm1147_vm0, %v21407_v62 }
 0x501   :  { %14984 = vmatprep.mubr.msk.f32.mxu0 %vm1147_vm0, %v7061_v20  ;;  %v21531_v20 = vld [vmem:[#allocation3 + $0xa3] sm:$0xff] }
 0x504   :  { %14985 = vmatmul.mubr.msk.f32.gmra.mrb[46].mxu0 %vm1147_vm0, %v21412_v3 }
 0x505   :  { %14987 = vmatprep.mubr.msk.f32.mxu0 %vm1147_vm0, %v21416_v1 }
 0x508   :  { %14988 = vmatmul.mubr.msk.f32.gmra.mrb[48].mxu0 %vm1147_vm0, %v21420_v52 }
 0x509   :  { %14990 = vmatprep.mubr.msk.f32.mxu0 %vm1147_vm0, %v21424_v17 }
 0x50c   :  { %14991 = vmatmul.mubr.msk.f32.gmra.mrb[50].mxu0 %vm1147_vm0, %v20923_v27  ;;  %v15432_v27 = vpack.c.bf16 %v13182_v39, %v13181_v26  ;;  %v7521_v26 = vld [vmem:[#allocation3 + $0xf3] sm:$0xff]  ;;  %v21536_v39 = vld [vmem:[#allocation3 + $0x103] sm:$0xff] }
 0x50d   :  { %14993 = vmatprep.mubr.msk.f32.mxu0 %vm1147_vm0, %v21171_v7 }
 0x510   :  { %14994 = vmatmul.mubr.msk.f32.gmra.mrb[52].mxu0 %vm1147_vm0, %v21432_v12 }
 0x511   :  { %15004 = vmatprep.mubr.msk.f32.mxu0 %vm1147_vm0, %v7283_v31  ;;  %v21540_v31 = vld [vmem:[#allocation3 + $0x113] sm:$0xff] }
 0x514   :  { %15005 = vmatmul.mubr.msk.f32.vlgmr.msra.gmra.mrb[38].mxu0 %vm1147_vm0, %v21443_v59 }
 0x515   :  { %15007 = vmatprep.mubr.msk.f32.mxu0 %vm1147_vm0, %v21453_v48  ;;  %15431 = vmatpush3.bf16.msra.mxu0 %v15428_v14  ;;  %v21523_v14 = vld [vmem:[#allocation3 + $0x73] sm:$0xff] }
 0x516   :  { %15433 = vmatprep.subr.bf16.mxu0 %v15432_v27 }
 0x518   :  { %15008 = vmatmul.mubr.msk.f32.gmra.mrb[40].mxu0 %vm1147_vm0, %v21457_v47 }
 0x519   :  { %15010 = vmatprep.mubr.msk.f32.mxu0 %vm1147_vm0, %v21461_v29  ;;  %15435 = vmatpush3.bf16.msra.mxu0 %v15432_v27  ;;  %v21548_v27 = vld [vmem:[#allocation3 + $0x133] sm:$0xff] }
 0x51a   :  { %15437 = vmatprep.subr.bf16.mxu0 %v15436_v40 }
 0x51c   :  { %15011 = vmatmul.mubr.msk.f32.gmra.mrb[42].mxu0 %vm1147_vm0, %v20953_v21  ;;  %v21482_v21 = vld [vmem:[#allocation3 + $0x122] sm:$0xff] }
 0x51d   :  { %15013 = vmatprep.mubr.msk.f32.mxu0 %vm1147_vm0, %v21201_v8 }
 0x520   :  { %15014 = vmatmul.mubr.msk.f32.gmra.mrb[44].mxu0 %vm1147_vm0, %v21469_v6 }
 0x521   :  { %15016 = vmatprep.mubr.msk.f32.mxu0 %vm1147_vm0, %v7291_v54  ;;  %v7743_v54 = vld [vmem:[#allocation3 + $0x34] sm:$0xff] }
 0x524   :  { %15017 = vmatmul.mubr.msk.f32.gmra.mrb[46].mxu0 %vm1147_vm0, %v21474_v63 }
 0x525   :  { %15019 = vmatprep.mubr.msk.f32.mxu0 %vm1147_vm0, %v21478_v28 }
 0x528   :  { %15020 = vmatmul.mubr.msk.f32.gmra.mrb[48].mxu0 %vm1147_vm0, %v21482_v21 }
 0x529   :  { %15022 = vmatprep.mubr.msk.f32.mxu0 %vm1147_vm0, %v21486_v9 }
 0x52c   :  { %15023 = vmatmul.mubr.msk.f32.gmra.mrb[50].mxu0 %vm1147_vm0, %v20971_v43  ;;  %v15440_v43 = vpack.c.bf16 %v13202_v36, %v13201_v50  ;;  %v21567_v50 = vld [vmem:[#allocation3 + $0x44] sm:$0xff] }
 0x52d   :  { %15025 = vmatprep.mubr.msk.f32.mxu0 %vm1147_vm0, %v21219_v5  ;;  %v13239_v36 = vld [vmem:[%s22640_s3 + $0x2a0] sm:$0xff] }
 0x530   :  { %15026 = vmatmul.mubr.msk.f32.gmra.mrb[52].mxu0 %vm1147_vm0, %v21494_v0 }
 0x531   :  { %15036 = vmatprep.mubr.msk.f32.mxu0 %vm1147_vm0, %v7513_v61  ;;  %v13240_v61 = vld [vmem:[%s22640_s3 + $0x2a8] sm:$0xff] }
 0x532   :  { %v15452_v32 = vpack.c.bf16 %v13240_v61, %v13239_v36  ;;  %v21618_v36 = vld [vmem:[#allocation3 + $0x164] sm:$0xff]  ;;  %v13241_v61 = vld [vmem:[%s22640_s3 + $0x2b0] sm:$0xff] }
 0x533   :  { %23294 = vst [vmem:[#allocation536_spill] sm:$0xff] %v21618_v36 }
 0x534   :  { %15037 = vmatmul.mubr.msk.f32.vlgmr.msra.gmra.mrb[38].mxu0 %vm1147_vm0, %v21505_v19 }
 0x535   :  { %15039 = vmatprep.mubr.msk.f32.mxu0 %vm1147_vm0, %v21515_v4  ;;  %15439 = vmatpush3.bf16.msra.mxu0 %v15436_v40  ;;  %v13222_v40 = vld [vmem:[%s22640_s3 + $0x298] sm:$0xff] }
 0x536   :  { %15441 = vmatprep.subr.bf16.mxu0 %v15440_v43 }
 0x538   :  { %15040 = vmatmul.mubr.msk.f32.gmra.mrb[40].mxu0 %vm1147_vm0, %v21519_v10 }
 0x539   :  { %15042 = vmatprep.mubr.msk.f32.mxu0 %vm1147_vm0, %v21523_v14  ;;  %15443 = vmatpush3.bf16.msra.mxu0 %v15440_v43  ;;  %v21577_v43 = vld [vmem:[#allocation3 + $0x54] sm:$0xff] }
 0x53a   :  { %15445 = vmatprep.subr.bf16.mxu0 %v15444_v57 }
 0x53c   :  { %15043 = vmatmul.mubr.msk.f32.gmra.mrb[42].mxu0 %vm1147_vm0, %v21001_v16  ;;  %v21544_v16 = vld [vmem:[#allocation3 + $0x123] sm:$0xff] }
 0x53d   :  { %15045 = vmatprep.mubr.msk.f32.mxu0 %vm1147_vm0, %v21249_v46 }
 0x540   :  { %15046 = vmatmul.mubr.msk.f32.gmra.mrb[44].mxu0 %vm1147_vm0, %v21531_v20 }
 0x541   :  { %15048 = vmatprep.mubr.msk.f32.mxu0 %vm1147_vm0, %v7521_v26  ;;  %v21585_v26 = vld [vmem:[#allocation3 + $0x74] sm:$0xff] }
 0x544   :  { %15049 = vmatmul.mubr.msk.f32.gmra.mrb[46].mxu0 %vm1147_vm0, %v21536_v39 }
 0x545   :  { %15051 = vmatprep.mubr.msk.f32.mxu0 %vm1147_vm0, %v21540_v31 }
 0x548   :  { %15052 = vmatmul.mubr.msk.f32.gmra.mrb[48].mxu0 %vm1147_vm0, %v21544_v16 }
 0x549   :  { %15054 = vmatprep.mubr.msk.f32.mxu0 %vm1147_vm0, %v21548_v27 }
 0x54c   :  { %15055 = vmatmul.mubr.msk.f32.gmra.mrb[50].mxu0 %vm1147_vm0, %v21019_v30  ;;  %v15448_v30 = vpack.c.bf16 %v13222_v40, %v13221_v44  ;;  %v7751_v44 = vld [vmem:[#allocation3 + $0xf4] sm:$0xff]  ;;  %v21598_v40 = vld [vmem:[#allocation3 + $0x104] sm:$0xff] }
 0x54d   :  { %15057 = vmatprep.mubr.msk.f32.mxu0 %vm1147_vm0, %v21267_v42 }
 0x550   :  { %15058 = vmatmul.mubr.msk.f32.gmra.mrb[52].mxu0 %vm1147_vm0, %v21556_v38 }
 0x551   :  { %15068 = vmatprep.mubr.msk.f32.mxu0 %vm1147_vm0, %v7743_v54  ;;  %v21602_v54 = vld [vmem:[#allocation3 + $0x114] sm:$0xff] }
 0x554   :  { %15069 = vmatmul.mubr.msk.f32.vlgmr.msra.gmra.mrb[38].mxu0 %vm1147_vm0, %v21567_v50 }
 0x555   :  { %15071 = vmatprep.mubr.msk.f32.mxu0 %vm1147_vm0, %v21577_v43  ;;  %15447 = vmatpush3.bf16.msra.mxu0 %v15444_v57  ;;  %v21593_v57 = vld [vmem:[#allocation3 + $0xa4] sm:$0xff] }
 0x556   :  { %15449 = vmatprep.subr.bf16.mxu0 %v15448_v30 }
 0x558   :  { %15072 = vmatmul.mubr.msk.f32.gmra.mrb[40].mxu0 %vm1147_vm0, %v21581_v60 }
 0x559   :  { %15074 = vmatprep.mubr.msk.f32.mxu0 %vm1147_vm0, %v21585_v26  ;;  %15451 = vmatpush3.bf16.msra.mxu0 %v15448_v30  ;;  %v21610_v30 = vld [vmem:[#allocation3 + $0x134] sm:$0xff] }
 0x55a   :  { %15453 = vmatprep.subr.bf16.mxu0 %v15452_v32  ;;  %23293 = vst [vmem:[#allocation535_spill] sm:$0xff] %v21610_v30 }
 0x55c   :  { %15075 = vmatmul.mubr.msk.f32.gmra.mrb[42].mxu0 %vm1147_vm0, %v23286_v58  ;;  %v21606_v58 = vld [vmem:[#allocation3 + $0x124] sm:$0xff] }
 0x55d   :  { %15077 = vmatprep.mubr.msk.f32.mxu0 %vm1147_vm0, %v21297_v24 }
 0x560   :  { %15078 = vmatmul.mubr.msk.f32.gmra.mrb[44].mxu0 %vm1147_vm0, %v21593_v57 }
 0x561   :  { %15080 = vmatprep.mubr.msk.f32.mxu0 %vm1147_vm0, %v7751_v44  ;;  %v13242_v44 = vld [vmem:[%s22640_s3 + $0x2b8] sm:$0xff] }
 0x564   :  { %15081 = vmatmul.mubr.msk.f32.gmra.mrb[46].mxu0 %vm1147_vm0, %v21598_v40 }
 0x565   :  { %15083 = vmatprep.mubr.msk.f32.mxu0 %vm1147_vm0, %v21602_v54 }
 0x568   :  { %15084 = vmatmul.mubr.msk.f32.gmra.mrb[48].mxu0 %vm1147_vm0, %v21606_v58 }
 0x569   :  { %15086 = vmatprep.mubr.msk.f32.mxu0 %vm1147_vm0, %v21610_v30  ;;  %v13260_v30 = vld [vmem:[%s22640_s3 + $0x2c8] sm:$0xff] }
 0x56c   :  { %15087 = vmatmul.mubr.msk.f32.gmra.mrb[50].mxu0 %vm1147_vm0, %v23291_v41  ;;  %v15456_v41 = vpack.c.bf16 %v13242_v44, %v13241_v61 }
 0x56d   :  { %15089 = vmatprep.mubr.msk.f32.mxu0 %vm1147_vm0, %v21315_v25  ;;  %v13259_v25 = vld [vmem:[%s22640_s3 + $0x2c0] sm:$0xff] }
 0x570   :  { %15090 = vmatmul.mubr.msk.f32.gmra.mrb[52].mxu0 %vm1147_vm0, %v21618_v36  ;;  %v15460_v36 = vpack.c.bf16 %v13260_v30, %v13259_v25  ;;  %v7985_v25 = vld [vmem:[#allocation3 + $0x140] sm:$0xff] }
 0x571   :  { %15100 = vmatprep.mubr.msk.f32.mxu0 %vm1147_vm0, %v21326_v13  ;;  %v7977_v13 = vld [vmem:[#allocation3 + $0x80] sm:$0xff] }
 0x574   :  { %15101 = vmatmul.mubr.msk.f32.vlgmr.msra.gmra.mrb[38].mxu0 %vm1147_vm0, %v21336_v23  ;;  %v7980_v23 = vld [vmem:[#allocation3 + $0xb0] sm:$0xff] }
 0x575   :  { %15103 = vmatprep.mubr.msk.f32.mxu0 %vm1147_vm0, %v21340_v15  ;;  %15455 = vmatpush3.bf16.msra.mxu0 %v15452_v32  ;;  %v13261_v15 = vld [vmem:[%s22640_s3 + $0x2d0] sm:$0xff] }
 0x576   :  { %15457 = vmatprep.subr.bf16.mxu0 %v15456_v41 }
 0x578   :  { %15104 = vmatmul.mubr.msk.f32.gmra.mrb[40].mxu0 %vm1147_vm0, %v21344_v33  ;;  %v13262_v33 = vld [vmem:[%s22640_s3 + $0x2d8] sm:$0xff] }
 0x579   :  { %15106 = vmatprep.mubr.msk.f32.mxu0 %vm1147_vm0, %v7977_v13  ;;  %15459 = vmatpush3.bf16.msra.mxu0 %v15456_v41 }
 0x57a   :  { %15461 = vmatprep.subr.bf16.mxu0 %v15460_v36 }
 0x57c   :  { %15107 = vmatmul.mubr.msk.f32.gmra.mrb[42].mxu0 %vm1147_vm0, %v21097_v53  ;;  %v7988_v53 = vld [vmem:[#allocation3 + $0x170] sm:$0xff] }
 0x57d   :  { %15109 = vmatprep.mubr.msk.f32.mxu0 %vm1147_vm0, %v21352_v51  ;;  %v15464_v51 = vpack.c.bf16 %v13262_v33, %v13261_v15 }
 0x580   :  { %15110 = vmatmul.mubr.msk.f32.gmra.mrb[44].mxu0 %vm1147_vm0, %v7980_v23 }
 0x581   :  { %15112 = vmatprep.mubr.msk.f32.mxu0 %vm1147_vm0, %v21357_v11  ;;  %v13280_v11 = vld [vmem:[%s22640_s3 + $0x2e8] sm:$0xff] }
 0x584   :  { %15113 = vmatmul.mubr.msk.f32.gmra.mrb[46].mxu0 %vm1147_vm0, %v21361_v35 }
 0x585   :  { %15115 = vmatprep.mubr.msk.f32.mxu0 %vm1147_vm0, %v21365_v45  ;;  %v13282_v45 = vld [vmem:[%s22640_s3 + $0x2f8] sm:$0xff] }
 0x588   :  { %15116 = vmatmul.mubr.msk.f32.gmra.mrb[48].mxu0 %vm1147_vm0, %v21369_v56 }
 0x589   :  { %15118 = vmatprep.mubr.msk.f32.mxu0 %vm1147_vm0, %v7985_v25 }
 0x58c   :  { %15119 = vmatmul.mubr.msk.f32.gmra.mrb[50].mxu0 %vm1147_vm0, %v21115_v55  ;;  %v13279_v55 = vld [vmem:[%s22640_s3 + $0x2e0] sm:$0xff] }
 0x58d   :  { %15121 = vmatprep.mubr.msk.f32.mxu0 %vm1147_vm0, %v21377_v2  ;;  %v15468_v35 = vpack.c.bf16 %v13280_v11, %v13279_v55  ;;  %v13300_v2 = vld [vmem:[%s22640_s3 + $0x308] sm:$0xff] }
 0x590   :  { %15122 = vmatmul.mubr.msk.f32.gmra.mrb[52].mxu0 %vm1147_vm0, %v7988_v53 }
 0x591   :  { %15132 = vmatprep.mubr.msk.f32.mxu0 %vm1147_vm0, %v21136_v18  ;;  %v8207_v18 = vld [vmem:[#allocation3 + $0x81] sm:$0xff] }
 0x594   :  { %15133 = vmatmul.mubr.msk.f32.vlgmr.msra.gmra.mrb[38].mxu0 %vm1147_vm0, %v21140_v49  ;;  %v8210_v49 = vld [vmem:[#allocation3 + $0xb1] sm:$0xff] }
 0x595   :  { %15135 = vmatprep.mubr.msk.f32.mxu0 %vm1147_vm0, %v21144_v22  ;;  %15463 = vmatpush3.bf16.msra.mxu0 %v15460_v36  ;;  %v8215_v22 = vld [vmem:[#allocation3 + $0x141] sm:$0xff] }
 0x596   :  { %15465 = vmatprep.subr.bf16.mxu0 %v15464_v51 }
 0x598   :  { %15136 = vmatmul.mubr.msk.f32.gmra.mrb[40].mxu0 %vm1147_vm0, %v21148_v37  ;;  %v8218_v37 = vld [vmem:[#allocation3 + $0x171] sm:$0xff] }
 0x599   :  { %15138 = vmatprep.mubr.msk.f32.mxu0 %vm1147_vm0, %v8207_v18  ;;  %15467 = vmatpush3.bf16.msra.mxu0 %v15464_v51 }
 0x59a   :  { %15469 = vmatprep.subr.bf16.mxu0 %v15468_v35 }
 0x59c   :  { %15139 = vmatmul.mubr.msk.f32.gmra.mrb[42].mxu0 %vm1147_vm0, %v21154_v34  ;;  %v13281_v34 = vld [vmem:[%s22640_s3 + $0x2f0] sm:$0xff] }
 0x59d   :  { %15141 = vmatprep.mubr.msk.f32.mxu0 %vm1147_vm0, %v21407_v62  ;;  %v15472_v56 = vpack.c.bf16 %v13282_v45, %v13281_v34 }
 0x5a0   :  { %15142 = vmatmul.mubr.msk.f32.gmra.mrb[44].mxu0 %vm1147_vm0, %v8210_v49 }
 0x5a1   :  { %15144 = vmatprep.mubr.msk.f32.mxu0 %vm1147_vm0, %v21412_v3  ;;  %v8437_v3 = vld [vmem:[#allocation3 + $0x82] sm:$0xff] }
 0x5a4   :  { %15145 = vmatmul.mubr.msk.f32.gmra.mrb[46].mxu0 %vm1147_vm0, %v21416_v1  ;;  %v8440_v1 = vld [vmem:[#allocation3 + $0xb2] sm:$0xff] }
 0x5a5   :  { %15147 = vmatprep.mubr.msk.f32.mxu0 %vm1147_vm0, %v21420_v52  ;;  %v8445_v52 = vld [vmem:[#allocation3 + $0x142] sm:$0xff] }
 0x5a8   :  { %15148 = vmatmul.mubr.msk.f32.gmra.mrb[48].mxu0 %vm1147_vm0, %v21424_v17  ;;  %v13301_v17 = vld [vmem:[%s22640_s3 + $0x310] sm:$0xff] }
 0x5a9   :  { %15150 = vmatprep.mubr.msk.f32.mxu0 %vm1147_vm0, %v8215_v22 }
 0x5ac   :  { %15151 = vmatmul.mubr.msk.f32.gmra.mrb[50].mxu0 %vm1147_vm0, %v21171_v7  ;;  %v13299_v7 = vld [vmem:[%s22640_s3 + $0x300] sm:$0xff] }
 0x5ad   :  { %15153 = vmatprep.mubr.msk.f32.mxu0 %vm1147_vm0, %v21432_v12  ;;  %v15476_v62 = vpack.c.bf16 %v13300_v2, %v13299_v7  ;;  %v13302_v12 = vld [vmem:[%s22640_s3 + $0x318] sm:$0xff] }
 0x5b0   :  { %15154 = vmatmul.mubr.msk.f32.gmra.mrb[52].mxu0 %vm1147_vm0, %v8218_v37 }
 0x5b1   :  { %15164 = vmatprep.mubr.msk.f32.mxu0 %vm1147_vm0, %v21443_v59  ;;  %v15480_v59 = vpack.c.bf16 %v13302_v12, %v13301_v17  ;;  %v23299_v17 = vld [vmem:[#allocation48_spill] sm:$0xff] }
 0x5b4   :  { %15165 = vmatmul.mubr.msk.f32.vlgmr.msra.gmra.mrb[38].mxu0 %vm1147_vm0, %v21453_v48  ;;  %v8670_v48 = vld [vmem:[#allocation3 + $0xb3] sm:$0xff] }
 0x5b5   :  { %15167 = vmatprep.mubr.msk.f32.mxu0 %vm1147_vm0, %v21457_v47  ;;  %15471 = vmatpush3.bf16.msra.mxu0 %v15468_v35  ;;  %v8675_v47 = vld [vmem:[#allocation3 + $0x143] sm:$0xff] }
 0x5b6   :  { %15473 = vmatprep.subr.bf16.mxu0 %v15472_v56 }
 0x5b8   :  { %15168 = vmatmul.mubr.msk.f32.gmra.mrb[40].mxu0 %vm1147_vm0, %v21461_v29  ;;  %v8897_v29 = vld [vmem:[#allocation3 + $0x84] sm:$0xff] }
 0x5b9   :  { %15170 = vmatprep.mubr.msk.f32.mxu0 %vm1147_vm0, %v8437_v3  ;;  %15475 = vmatpush3.bf16.msra.mxu0 %v15472_v56 }
 0x5ba   :  { %15477 = vmatprep.subr.bf16.mxu0 %v15476_v62 }
 0x5bc   :  { %15171 = vmatmul.mubr.msk.f32.gmra.mrb[42].mxu0 %vm1147_vm0, %v21201_v8  ;;  %v8448_v8 = vld [vmem:[#allocation3 + $0x172] sm:$0xff] }
 0x5bd   :  { %15173 = vmatprep.mubr.msk.f32.mxu0 %vm1147_vm0, %v21469_v6  ;;  %v23295_v6 = vld [vmem:[#allocation535_spill] sm:$0xff] }
 0x5c0   :  { %15174 = vmatmul.mubr.msk.f32.gmra.mrb[44].mxu0 %vm1147_vm0, %v8440_v1 }
 0x5c1   :  { %15176 = vmatprep.mubr.msk.f32.mxu0 %vm1147_vm0, %v21474_v63  ;;  %v8905_v63 = vld [vmem:[#allocation3 + $0x144] sm:$0xff] }
 0x5c4   :  { %15177 = vmatmul.mubr.msk.f32.gmra.mrb[46].mxu0 %vm1147_vm0, %v21478_v28  ;;  %v23297_v28 = vld [vmem:[#allocation536_spill] sm:$0xff] }
 0x5c5   :  { %15179 = vmatprep.mubr.msk.f32.mxu0 %vm1147_vm0, %v21482_v21  ;;  %v8908_v21 = vld [vmem:[#allocation3 + $0x174] sm:$0xff] }
 0x5c8   :  { %15180 = vmatmul.mubr.msk.f32.gmra.mrb[48].mxu0 %vm1147_vm0, %v21486_v9  ;;  %v13319_v9 = vld [vmem:[%s22641_s4] ss:$0 sm:$0xff] }
 0x5c9   :  { %15182 = vmatprep.mubr.msk.f32.mxu0 %vm1147_vm0, %v8445_v52 }
 0x5cc   :  { %15183 = vmatmul.mubr.msk.f32.gmra.mrb[50].mxu0 %vm1147_vm0, %v21219_v5  ;;  %v8667_v5 = vld [vmem:[#allocation3 + $0x83] sm:$0xff] }
 0x5cd   :  { %15185 = vmatprep.mubr.msk.f32.mxu0 %vm1147_vm0, %v21494_v0 }
 0x5d0   :  { %15186 = vmatmul.mubr.msk.f32.gmra.mrb[52].mxu0 %vm1147_vm0, %v8448_v8  ;;  %v23298_v8 = vld [vmem:[#allocation44_spill] sm:$0xff] }
 0x5d1   :  { %15196 = vmatprep.mubr.msk.f32.mxu0 %vm1147_vm0, %v21505_v19  ;;  %v15484_v12 = vpack.c.bf16 %v23299_v17, %v23298_v8 }
 0x5d4   :  { %15197 = vmatmul.mubr.msk.f32.vlgmr.msra.gmra.mrb[38].mxu0 %vm1147_vm0, %v21515_v4 }
 0x5d5   :  { %15199 = vmatprep.mubr.msk.f32.mxu0 %vm1147_vm0, %v21519_v10  ;;  %15479 = vmatpush3.bf16.msra.mxu0 %v15476_v62 }
 0x5d6   :  { %15481 = vmatprep.subr.bf16.mxu0 %v15480_v59 }
 0x5d8   :  { %15200 = vmatmul.mubr.msk.f32.gmra.mrb[40].mxu0 %vm1147_vm0, %v21523_v14 }
 0x5d9   :  { %15202 = vmatprep.mubr.msk.f32.mxu0 %vm1147_vm0, %v8667_v5  ;;  %15483 = vmatpush3.bf16.msra.mxu0 %v15480_v59  ;;  %v23300_v59 = vld [vmem:[#allocation43_spill] sm:$0xff] }
 0x5da   :  { %v23301_v5 = vld [vmem:[#allocation47_spill] sm:$0xff] }
 0x5dc   :  { %15203 = vmatmul.mubr.msk.f32.gmra.mrb[42].mxu0 %vm1147_vm0, %v21249_v46  ;;  %v8678_v46 = vld [vmem:[#allocation3 + $0x173] sm:$0xff] }
 0x5dd   :  { %15205 = vmatprep.mubr.msk.f32.mxu0 %vm1147_vm0, %v21531_v20 }
 0x5e0   :  { %15206 = vmatmul.mubr.msk.f32.gmra.mrb[44].mxu0 %vm1147_vm0, %v8670_v48  ;;  %v15486_v48 = vpack.c.bf16 %v23301_v5, %v23300_v59 }
 0x5e1   :  { %15208 = vmatprep.mubr.msk.f32.mxu0 %vm1147_vm0, %v21536_v39 }
 0x5e4   :  { %15209 = vmatmul.mubr.msk.f32.gmra.mrb[46].mxu0 %vm1147_vm0, %v21540_v31 }
 0x5e5   :  { %15211 = vmatprep.mubr.msk.f32.mxu0 %vm1147_vm0, %v21544_v16 }
 0x5e8   :  { %15212 = vmatmul.mubr.msk.f32.gmra.mrb[48].mxu0 %vm1147_vm0, %v21548_v27 }
 0x5e9   :  { %15214 = vmatprep.mubr.msk.f32.mxu0 %vm1147_vm0, %v8675_v47 }
 0x5ec   :  { %15215 = vmatmul.mubr.msk.f32.gmra.mrb[50].mxu0 %vm1147_vm0, %v21267_v42  ;;  %v8900_v42 = vld [vmem:[#allocation3 + $0xb4] sm:$0xff] }
 0x5ed   :  { %15217 = vmatprep.mubr.msk.f32.mxu0 %vm1147_vm0, %v21556_v38 }
 0x5f0   :  { %15218 = vmatmul.mubr.msk.f32.gmra.mrb[52].mxu0 %vm1147_vm0, %v8678_v46 }
 0x5f1   :  { %15228 = vmatprep.mubr.msk.f32.mxu0 %vm1147_vm0, %v21567_v50 }
 0x5f4   :  { %15229 = vmatmul.mubr.msk.f32.vlgmr.msra.gmra.mrb[38].mxu0 %vm1147_vm0, %v21577_v43 }
 0x5f5   :  { %15231 = vmatprep.mubr.msk.f32.mxu0 %vm1147_vm0, %v21581_v60 }
 0x5f8   :  { %15232 = vmatmul.mubr.msk.f32.gmra.mrb[40].mxu0 %vm1147_vm0, %v21585_v26 }
 0x5f9   :  { %15234 = vmatprep.mubr.msk.f32.mxu0 %vm1147_vm0, %v8897_v29 }
 0x5fc   :  { %15235 = vmatmul.mubr.msk.f32.gmra.mrb[42].mxu0 %vm1147_vm0, %v21297_v24  ;;  %v23296_v24 = vld [vmem:[#allocation542_spill] sm:$0xff] }
 0x5fd   :  { %15237 = vmatprep.mubr.msk.f32.mxu0 %vm1147_vm0, %v21593_v57 }
 0x600   :  { %15238 = vmatmul.mubr.msk.f32.gmra.mrb[44].mxu0 %vm1147_vm0, %v8900_v42 }
 0x601   :  { %15240 = vmatprep.mubr.msk.f32.mxu0 %vm1147_vm0, %v21598_v40 }
 0x604   :  { %15241 = vmatmul.mubr.msk.f32.gmra.mrb[46].mxu0 %vm1147_vm0, %v21602_v54 }
 0x605   :  { %15243 = vmatprep.mubr.msk.f32.mxu0 %vm1147_vm0, %v21606_v58 }
 0x608   :  { %15244 = vmatmul.mubr.msk.f32.gmra.mrb[48].mxu0 %vm1147_vm0, %v23295_v6 }
 0x609   :  { %15246 = vmatprep.mubr.msk.f32.mxu0 %vm1147_vm0, %v8905_v63 }
 0x60c   :  { %15247 = vmatmul.mubr.msk.f32.gmra.mrb[50].mxu0 %vm1147_vm0, %v23296_v24 }
 0x60d   :  { %15249 = vmatprep.mubr.msk.f32.mxu0 %vm1147_vm0, %v23297_v28 }
 0x610   :  { %15250 = vmatmul.mubr.msk.f32.gmra.mrb[52].mxu0 %vm1147_vm0, %v8908_v21 }
 0x6c7   :  { %v15230_v0 = vpop.f32.mrb[38].mxu0 }
 0x6c8   :  { %v9131_v19 = vadd.f32 %v15230_v0, %v13319_v9  ;;  %v9028_v4 = vpop.f32.mrb[39].mxu0 }
 0x6c9   :  { %v9130_v10 = vadd.f32 %v13319_v9, %v9028_v4 }
 0x6ca   :  { %v9147_v14 = vmax.f32 %v9131_v19, 0.0 }
 0x6cb   :  { %v9146_v20 = vmax.f32 %v9130_v10, 0.0  ;;  %v15233_v39 = vpop.f32.mrb[40].mxu0 }
 0x6cc   :  { %9165 = vst.msk [vmem:[#allocation4 + $0x8] sm:$0xff] %vm9162_vm1, %v9147_v14  ;;  %v9133_v31 = vadd.f32 %v15233_v39, %v13319_v9  ;;  %v9038_v16 = vpop.f32.mrb[41].mxu0 }
 0x6cd   :  { %9163 = vst.msk [vmem:[#allocation4] sm:$0xff] %vm9162_vm1, %v9146_v20  ;;  %v9132_v27 = vadd.f32 %v13319_v9, %v9038_v16 }
 0x6ce   :  { %v9149_v38 = vmax.f32 %v9133_v31, 0.0 }
 0x6cf   :  { %v9148_v50 = vmax.f32 %v9132_v27, 0.0  ;;  %v15236_v43 = vpop.f32.mrb[42].mxu0 }
 0x6d0   :  { %9169 = vst.msk [vmem:[#allocation4 + $0x18] sm:$0xff] %vm9162_vm1, %v9149_v38  ;;  %v9135_v32 = vadd.f32 %v15236_v43, %v13319_v9  ;;  %v9048_v60 = vpop.f32.mrb[43].mxu0 }
 0x6d1   :  { %9167 = vst.msk [vmem:[#allocation4 + $0x10] sm:$0xff] %vm9162_vm1, %v9148_v50  ;;  %v9134_v26 = vadd.f32 %v13319_v9, %v9048_v60 }
 0x6d2   :  { %v9151_v57 = vmax.f32 %v9135_v32, 0.0 }
 0x6d3   :  { %v9150_v40 = vmax.f32 %v9134_v26, 0.0  ;;  %v15239_v54 = vpop.f32.mrb[44].mxu0 }
 0x6d4   :  { %9173 = vst.msk [vmem:[#allocation4 + $0x28] sm:$0xff] %vm9162_vm1, %v9151_v57  ;;  %v9137_v58 = vadd.f32 %v15239_v54, %v13319_v9  ;;  %v9058_v30 = vpop.f32.mrb[45].mxu0 }
 0x6d5   :  { %9171 = vst.msk [vmem:[#allocation4 + $0x20] sm:$0xff] %vm9162_vm1, %v9150_v40  ;;  %v9136_v36 = vadd.f32 %v13319_v9, %v9058_v30 }
 0x6d6   :  { %v9153_v61 = vmax.f32 %v9137_v58, 0.0 }
 0x6d7   :  { %v9152_v44 = vmax.f32 %v9136_v36, 0.0  ;;  %v15242_v41 = vpop.f32.mrb[46].mxu0 }
 0x6d8   :  { %9177 = vst.msk [vmem:[#allocation4 + $0x38] sm:$0xff] %vm9162_vm1, %v9153_v61  ;;  %v9139_v13 = vadd.f32 %v15242_v41, %v13319_v9  ;;  %v9068_v23 = vpop.f32.mrb[47].mxu0 }
 0x6d9   :  { %9175 = vst.msk [vmem:[#allocation4 + $0x30] sm:$0xff] %vm9162_vm1, %v9152_v44  ;;  %v9138_v25 = vadd.f32 %v13319_v9, %v9068_v23 }
 0x6da   :  { %v9155_v53 = vmax.f32 %v9139_v13, 0.0 }
 0x6db   :  { %v9154_v15 = vmax.f32 %v9138_v25, 0.0  ;;  %v15245_v33 = vpop.f32.mrb[48].mxu0 }
 0x6dc   :  { %9181 = vst.msk [vmem:[#allocation4 + $0x48] sm:$0xff] %vm9162_vm1, %v9155_v53  ;;  %v9141_v51 = vadd.f32 %v15245_v33, %v13319_v9  ;;  %v9078_v55 = vpop.f32.mrb[49].mxu0 }
 0x6dd   :  { %9179 = vst.msk [vmem:[#allocation4 + $0x40] sm:$0xff] %vm9162_vm1, %v9154_v15  ;;  %v9140_v11 = vadd.f32 %v13319_v9, %v9078_v55 }
 0x6de   :  { %v9157_v35 = vmax.f32 %v9141_v51, 0.0 }
 0x6df   :  { %v9156_v18 = vmax.f32 %v9140_v11, 0.0  ;;  %v15248_v49 = vpop.f32.mrb[50].mxu0 }
 0x6e0   :  { %9185 = vst.msk [vmem:[#allocation4 + $0x58] sm:$0xff] %vm9162_vm1, %v9157_v35  ;;  %v9143_v22 = vadd.f32 %v15248_v49, %v13319_v9  ;;  %v9088_v37 = vpop.f32.mrb[51].mxu0 }
 0x6e1   :  { %9183 = vst.msk [vmem:[#allocation4 + $0x50] sm:$0xff] %vm9162_vm1, %v9156_v18  ;;  %v9142_v34 = vadd.f32 %v13319_v9, %v9088_v37 }
 0x6e2   :  { %v9159_v45 = vmax.f32 %v9143_v22, 0.0 }
 0x6e3   :  { %v9158_v56 = vmax.f32 %v9142_v34, 0.0  ;;  %v15251_v7 = vpop.f32.mrb[52].mxu0 }
 0x6e4   :  { %9189 = vst.msk [vmem:[#allocation4 + $0x68] sm:$0xff] %vm9162_vm1, %v9159_v45  ;;  %v9145_v2 = vadd.f32 %v15251_v7, %v13319_v9  ;;  %v9098_v62 = vpop.f32.mrb[53].mxu0 }
 0x6e5   :  { %9187 = vst.msk [vmem:[#allocation4 + $0x60] sm:$0xff] %vm9162_vm1, %v9158_v56  ;;  %v9144_v3 = vadd.f32 %v13319_v9, %v9098_v62 }
 0x6e6   :  { %v9161_v1 = vmax.f32 %v9145_v2, 0.0 }
 0x6e7   :  { %v9160_v52 = vmax.f32 %v9144_v3, 0.0 }
 0x6e8   :  { %9193 = vst.msk [vmem:[#allocation4 + $0x78] sm:$0xff] %vm9162_vm1, %v9161_v1 }
 0x6e9   :  { %9191 = vst.msk [vmem:[#allocation4 + $0x70] sm:$0xff] %vm9162_vm1, %v9160_v52 }
 0x6ea   :  { %16532 = dma.done.wait [#allocation5], 65536 }
 0x6eb   :  { %16533 = vsyncadd [#allocation5], 4294901760  ;;  %v23302_v47 = vld [vmem:[#allocation52_spill] sm:$0xff]  ;;  %15485 = vmatprep.subr.bf16.mxu1 %v15484_v12  ;;  %v23304_v42 = vld [vmem:[#allocation51_spill] sm:$0xff]  ;;  %v16536_v24 = vmov 0.0   ;;  %vm9293_vm2 = vcmask 1041409  }
 0x6ec   :  { %v23303_v46 = vld [vmem:[#allocation56_spill] sm:$0xff]  ;;  %15487 = vmatpush1.bf16.msra.mxu1 %v15486_v48  ;;  %v23305_v6 = vld [vmem:[#allocation55_spill] sm:$0xff]  ;;  %9361 = vmatprep.mubr.f32.mxu1 %v16536_v24  ;;  %v23314_v36 = vld [vmem:[#allocation46_spill] sm:$0xff]  ;;  %s16537_s24 = smov [#allocation6]   ;;  %vm12600_vm3 = vcmask 74752  }
 0x6ed   :  { %v15488_v29 = vpack.c.bf16 %v23303_v46, %v23302_v47  ;;  %v15490_v63 = vpack.c.bf16 %v23305_v6, %v23304_v42  ;;  %v23306_v28 = vld [vmem:[#allocation60_spill] sm:$0xff]  ;;  %v23308_v0 = vld [vmem:[#allocation59_spill] sm:$0xff]  ;;  %v23315_v61 = vld [vmem:[#allocation50_spill] sm:$0xff]  ;;  %s12608_s25 = sshll.u32 %s16537_s24, 4  ;;  %s12609_s25 = int_to_ptr.vmem [resolvable:$true] %s12608_s25 }
 0x6ee   :  { %v23307_v21 = vld [vmem:[#allocation64_spill] sm:$0xff]  ;;  %v23309_v19 = vld [vmem:[#allocation63_spill] sm:$0xff]  ;;  %v15500_v44 = vpack.c.bf16 %v23315_v61, %v23314_v36  ;;  %v23316_v25 = vld [vmem:[#allocation45_spill] sm:$0xff]  ;;  %p16515_p1 = scmp.lt.s32.totalorder %s12609_s25, %s12609_s25 }
 0x6ef   :  { %15489 = vmatprep.subr.bf16.mxu1 %v15488_v29  ;;  %v15492_v9 = vpack.c.bf16 %v23307_v21, %v23306_v28  ;;  %v15494_v4 = vpack.c.bf16 %v23309_v19, %v23308_v0  ;;  %v9244_v10 = vld [vmem:[#allocation4 + $0x2] sm:$0x1]  ;;  %v9246_v20 = vld [vmem:[#allocation4 + $0x3] sm:$0x1]  ;;  %v23310_v39 = vld [vmem:[#allocation68_spill] sm:$0xff] }
 0x6f0   :  { %15491 = vmatpush1.bf16.msra.mxu1 %v15490_v63  ;;  %v9245_v14 = vld [vmem:[#allocation4 + $0x42] sm:$0x1]  ;;  %v23311_v31 = vld [vmem:[#allocation72_spill] sm:$0xff]  ;;  %v9247_v27 = vld [vmem:[#allocation4 + $0x43] sm:$0x1]  ;;  %v9248_v38 = vmax.f32 %v9244_v10, %v9246_v20 }
 0x6f1   :  { %15493 = vmatprep.subr.bf16.mxu1 %v15492_v9  ;;  %v15496_v16 = vpack.c.bf16 %v23311_v31, %v23310_v39  ;;  %v9250_v50 = vld [vmem:[#allocation4 + $0xa] sm:$0x1]  ;;  %v9249_v32 = vmax.f32 %v9245_v14, %v9247_v27  ;;  %v9252_v60 = vld [vmem:[#allocation4 + $0xb] sm:$0x1]  ;;  %v23312_v54 = vld [vmem:[#allocation67_spill] sm:$0xff] }
 0x6f2   :  { %v9251_v43 = vld [vmem:[#allocation4 + $0x4a] sm:$0x1]  ;;  %v9253_v26 = vld [vmem:[#allocation4 + $0x4b] sm:$0x1]  ;;  %v9254_v57 = vmax.f32 %v9250_v50, %v9252_v60  ;;  %v23313_v58 = vld [vmem:[#allocation71_spill] sm:$0xff] }
 0x6f3   :  { %v9255_v40 = vmax.f32 %v9251_v43, %v9253_v26  ;;  %v15498_v30 = vpack.c.bf16 %v23313_v58, %v23312_v54  ;;  %v23317_v53 = vld [vmem:[#allocation49_spill] sm:$0xff]  ;;  %v23318_v51 = vld [vmem:[#allocation54_spill] sm:$0xff]  ;;  %v23330_v17 = vld [vmem:[#allocation12_spill] sm:$0xff] }
 0x6f4   :  { %15495 = vmatpush1.bf16.msra.mxu1 %v15494_v4  ;;  %v9256_v41 = vmax.f32 %v9248_v38, %v9254_v57  ;;  %v15502_v15 = vpack.c.bf16 %v23317_v53, %v23316_v25  ;;  %v23319_v55 = vld [vmem:[#allocation58_spill] sm:$0xff]  ;;  %v23320_v35 = vld [vmem:[#allocation53_spill] sm:$0xff]  ;;  %v23331_v12 = vld [vmem:[#allocation16_spill] sm:$0xff] }
 0x6f5   :  { %15497 = vmatprep.subr.bf16.mxu1 %v15496_v16  ;;  %v9257_v13 = vmax.f32 %v9249_v32, %v9255_v40  ;;  %v15504_v11 = vpack.c.bf16 %v23319_v55, %v23318_v51  ;;  %v23321_v18 = vld [vmem:[#allocation57_spill] sm:$0xff]  ;;  %v23322_v22 = vld [vmem:[#allocation62_spill] sm:$0xff]  ;;  %v15516_v59 = vpack.c.bf16 %v23331_v12, %v23330_v17  ;;  %v23332_v5 = vld [vmem:[#allocation11_spill] sm:$0xff] }
 0x6f6   :  { %v15506_v49 = vpack.c.bf16 %v23321_v18, %v23320_v35  ;;  %v23323_v37 = vld [vmem:[#allocation66_spill] sm:$0xff]  ;;  %v23324_v45 = vld [vmem:[#allocation61_spill] sm:$0xff]  ;;  %v23333_v48 = vld [vmem:[#allocation15_spill] sm:$0xff] }
 0x6f7   :  { %v9292_v23 = vrot.slane %v9257_v13, 7  ;;  %v15508_v34 = vpack.c.bf16 %v23323_v37, %v23322_v22  ;;  %v23325_v56 = vld [vmem:[#allocation65_spill] sm:$0xff]  ;;  %v23326_v2 = vld [vmem:[#allocation70_spill] sm:$0xff]  ;;  %v15518_v47 = vpack.c.bf16 %v23333_v48, %v23332_v5  ;;  %v23334_v29 = vld [vmem:[#allocation20_spill] sm:$0xff] }
 0x6f8   :  { %15499 = vmatpush1.bf16.msra.mxu1 %v15498_v30  ;;  %v15510_v7 = vpack.c.bf16 %v23325_v56, %v23324_v45  ;;  %v23327_v62 = vld [vmem:[#allocation74_spill] sm:$0xff]  ;;  %v23328_v1 = vld [vmem:[#allocation69_spill] sm:$0xff]  ;;  %v23335_v42 = vld [vmem:[#allocation24_spill] sm:$0xff] }
 0x6f9   :  { %15501 = vmatprep.subr.bf16.mxu1 %v15500_v44  ;;  %v9294_v33 = vsel %vm9293_vm2, %v9292_v23, %v9256_v41  ;;  %v15512_v3 = vpack.c.bf16 %v23327_v62, %v23326_v2  ;;  %v23329_v52 = vld [vmem:[#allocation73_spill] sm:$0xff]  ;;  %v9199_v46 = vld [vmem:[#allocation4 + $0x40] sm:$0x1]  ;;  %v15520_v6 = vpack.c.bf16 %v23335_v42, %v23334_v29  ;;  %v9201_v63 = vld [vmem:[#allocation4 + $0x41] sm:$0x1] }
 0x6fa   :  { %v15514_v8 = vpack.c.bf16 %v23329_v52, %v23328_v1  ;;  %v9205_v28 = vld [vmem:[#allocation4 + $0x48] sm:$0x1]  ;;  %v9207_v21 = vld [vmem:[#allocation4 + $0x49] sm:$0x1]  ;;  %v9198_v4 = vld [vmem:[#allocation4] sm:$0x1]  ;;  %v9203_v10 = vmax.f32 %v9199_v46, %v9201_v63 }
 0x6fb   :  { %13320 = vmatmul.mubr.msk.f32.vlgmr.msra.gmra.mrb[154].mxu1 %vm9162_vm1, %v9294_v33  ;;  %v23336_v9 = vld [vmem:[#allocation19_spill] sm:$0xff]  ;;  %v9209_v14 = vmax.f32 %v9205_v28, %v9207_v21  ;;  %v23338_v20 = vld [vmem:[#allocation28_spill] sm:$0xff]  ;;  %v9200_v16 = vld [vmem:[#allocation4 + $0x1] sm:$0x1] }
 0x6fc   :  { %15503 = vmatpush1.bf16.msra.mxu1 %v15502_v15  ;;  %9432 = vmatprep.mubr.f32.mxu1 %v16536_v24  ;;  %v23337_v0 = vld [vmem:[#allocation23_spill] sm:$0xff]  ;;  %v23339_v39 = vld [vmem:[#allocation32_spill] sm:$0xff]  ;;  %v9202_v60 = vmax.f32 %v9198_v4, %v9200_v16  ;;  %v23346_v13 = vld [vmem:[#allocation14_spill] sm:$0xff] }
 0x6fd   :  { %15505 = vmatprep.subr.bf16.mxu1 %v15504_v11  ;;  %v15522_v19 = vpack.c.bf16 %v23337_v0, %v23336_v9  ;;  %v15524_v31 = vpack.c.bf16 %v23339_v39, %v23338_v20  ;;  %v9204_v27 = vld [vmem:[#allocation4 + $0x8] sm:$0x1]  ;;  %v9206_v38 = vld [vmem:[#allocation4 + $0x9] sm:$0x1]  ;;  %v9211_v57 = vmax.f32 %v9203_v10, %v9209_v14  ;;  %v23342_v40 = vld [vmem:[#allocation36_spill] sm:$0xff] }
 0x6fe   :  { %v23340_v50 = vld [vmem:[#allocation27_spill] sm:$0xff]  ;;  %v9208_v26 = vmax.f32 %v9204_v27, %v9206_v38  ;;  %v23343_v54 = vld [vmem:[#allocation40_spill] sm:$0xff]  ;;  %v23347_v23 = vld [vmem:[#allocation18_spill] sm:$0xff] }
 0x6ff   :  { %v23341_v43 = vld [vmem:[#allocation31_spill] sm:$0xff]  ;;  %v15528_v58 = vpack.c.bf16 %v23343_v54, %v23342_v40  ;;  %v9441_v41 = vrot.slane %v9211_v57, 7  ;;  %v15532_v25 = vpack.c.bf16 %v23347_v23, %v23346_v13  ;;  %v23348_v15 = vld [vmem:[#allocation13_spill] sm:$0xff]  ;;  %v23350_v55 = vld [vmem:[#allocation22_spill] sm:$0xff] }
 0x700   :  { %15507 = vmatpush1.bf16.msra.mxu1 %v15506_v49  ;;  %v15526_v32 = vpack.c.bf16 %v23341_v43, %v23340_v50  ;;  %v23344_v30 = vld [vmem:[#allocation35_spill] sm:$0xff]  ;;  %v9210_v44 = vmax.f32 %v9202_v60, %v9208_v26  ;;  %v23351_v11 = vld [vmem:[#allocation26_spill] sm:$0xff]  ;;  %v23352_v18 = vld [vmem:[#allocation21_spill] sm:$0xff] }
 0x701   :  { %15509 = vmatprep.subr.bf16.mxu1 %v15508_v34  ;;  %v23345_v36 = vld [vmem:[#allocation39_spill] sm:$0xff]  ;;  %v15536_v35 = vpack.c.bf16 %v23351_v11, %v23350_v55  ;;  %v23353_v49 = vld [vmem:[#allocation25_spill] sm:$0xff]  ;;  %v23354_v37 = vld [vmem:[#allocation30_spill] sm:$0xff] }
 0x702   :  { %v15530_v61 = vpack.c.bf16 %v23345_v36, %v23344_v30  ;;  %v9442_v53 = vsel %vm9293_vm2, %v9441_v41, %v9210_v44  ;;  %v15538_v22 = vpack.c.bf16 %v23353_v49, %v23352_v18  ;;  %v23355_v34 = vld [vmem:[#allocation34_spill] sm:$0xff]  ;;  %v23356_v56 = vld [vmem:[#allocation29_spill] sm:$0xff]  ;;  %v23362_v12 = vld [vmem:[#allocation76_spill] sm:$0xff] }
 0x703   :  { %v15540_v45 = vpack.c.bf16 %v23355_v34, %v23354_v37  ;;  %v23358_v62 = vld [vmem:[#allocation38_spill] sm:$0xff]  ;;  %v23360_v52 = vld [vmem:[#allocation37_spill] sm:$0xff]  ;;  %v23364_v48 = vld [vmem:[#allocation75_spill] sm:$0xff] }
 0x704   :  { %15511 = vmatpush1.bf16.msra.mxu1 %v15510_v7  ;;  %v23357_v7 = vld [vmem:[#allocation33_spill] sm:$0xff]  ;;  %v9588_v29 = vld [vmem:[#allocation4 + $0x44] sm:$0x1]  ;;  %v23366_v42 = vld [vmem:[#allocation84_spill] sm:$0xff] }
 0x705   :  { %15513 = vmatprep.subr.bf16.mxu1 %v15512_v3  ;;  %v15542_v2 = vpack.c.bf16 %v23357_v7, %v23356_v56  ;;  %v23359_v3 = vld [vmem:[#allocation42_spill] sm:$0xff]  ;;  %v9590_v28 = vld [vmem:[#allocation4 + $0x45] sm:$0x1]  ;;  %v9594_v21 = vld [vmem:[#allocation4 + $0x4c] sm:$0x1] }
 0x706   :  { %v15544_v1 = vpack.c.bf16 %v23359_v3, %v23358_v62  ;;  %v9596_v9 = vld [vmem:[#allocation4 + $0x4d] sm:$0x1]  ;;  %v23368_v0 = vld [vmem:[#allocation83_spill] sm:$0xff]  ;;  %v9592_v14 = vmax.f32 %v9588_v29, %v9590_v28  ;;  %v9593_v38 = vld [vmem:[#allocation4 + $0xc] sm:$0x1] }
 0x707   :  { %v9587_v10 = vld [vmem:[#allocation4 + $0x4] sm:$0x1]  ;;  %v9598_v20 = vmax.f32 %v9594_v21, %v9596_v9  ;;  %v23370_v39 = vld [vmem:[#allocation92_spill] sm:$0xff]  ;;  %v9589_v27 = vld [vmem:[#allocation4 + $0x5] sm:$0x1] }
 0x708   :  { %15515 = vmatpush1.bf16.msra.mxu1 %v15514_v8  ;;  %v23361_v8 = vld [vmem:[#allocation41_spill] sm:$0xff]  ;;  %v9595_v50 = vld [vmem:[#allocation4 + $0xd] sm:$0x1]  ;;  %v23372_v43 = vld [vmem:[#allocation91_spill] sm:$0xff]  ;;  %v9591_v26 = vmax.f32 %v9587_v10, %v9589_v27 }
 0x709   :  { %15517 = vmatprep.subr.bf16.mxu1 %v15516_v59  ;;  %v15546_v17 = vpack.c.bf16 %v23361_v8, %v23360_v52  ;;  %v23363_v59 = vld [vmem:[#allocation80_spill] sm:$0xff]  ;;  %v9597_v57 = vmax.f32 %v9593_v38, %v9595_v50  ;;  %v9600_v40 = vmax.f32 %v9592_v14, %v9598_v20  ;;  %v23376_v36 = vld [vmem:[#allocation99_spill] sm:$0xff]  ;;  %v23378_v23 = vld [vmem:[#allocation78_spill] sm:$0xff] }
 0x70a   :  { %v15548_v5 = vpack.c.bf16 %v23363_v59, %v23362_v12  ;;  %v23374_v54 = vld [vmem:[#allocation100_spill] sm:$0xff]  ;;  %v23382_v11 = vld [vmem:[#allocation86_spill] sm:$0xff]  ;;  %v23384_v49 = vld [vmem:[#allocation85_spill] sm:$0xff] }
 0x70b   :  { %13321 = vmatmul.mubr.msk.f32.vlgmr.msra.gmra.mrb[156].mxu1 %vm9162_vm1, %v9294_v33  ;;  %v23349_v33 = vld [vmem:[#allocation17_spill] sm:$0xff]  ;;  %v9599_v41 = vmax.f32 %v9591_v26, %v9597_v57  ;;  %v9635_v13 = vrot.slane %v9600_v40, 7  ;;  %v23386_v34 = vld [vmem:[#allocation94_spill] sm:$0xff]  ;;  %v23394_v59 = vld [vmem:[#allocation108_spill] sm:$0xff] }
 0x70c   :  { %15519 = vmatpush1.bf16.msra.mxu1 %v15518_v47  ;;  %9509 = vmatprep.mubr.f32.mxu1 %v16536_v24  ;;  %v15534_v51 = vpack.c.bf16 %v23349_v33, %v23348_v15  ;;  %v23365_v47 = vld [vmem:[#allocation79_spill] sm:$0xff]  ;;  %v23380_v33 = vld [vmem:[#allocation77_spill] sm:$0xff]  ;;  %v23390_v3 = vld [vmem:[#allocation102_spill] sm:$0xff] }
 0x70d   :  { %15521 = vmatprep.subr.bf16.mxu1 %v15520_v6  ;;  %v15550_v46 = vpack.c.bf16 %v23365_v47, %v23364_v48  ;;  %v23367_v6 = vld [vmem:[#allocation88_spill] sm:$0xff]  ;;  %v9636_v15 = vsel %vm9293_vm2, %v9635_v13, %v9599_v41  ;;  %v23388_v7 = vld [vmem:[#allocation93_spill] sm:$0xff]  ;;  %v23396_v47 = vld [vmem:[#allocation107_spill] sm:$0xff] }
 0x70e   :  { %v15552_v63 = vpack.c.bf16 %v23367_v6, %v23366_v42  ;;  %v23392_v8 = vld [vmem:[#allocation101_spill] sm:$0xff]  ;;  %v9786_v42 = vld [vmem:[#allocation4 + $0x46] sm:$0x1]  ;;  %v23398_v6 = vld [vmem:[#allocation116_spill] sm:$0xff] }
 0x70f   :  { %v9788_v21 = vld [vmem:[#allocation4 + $0x47] sm:$0x1]  ;;  %v9792_v9 = vld [vmem:[#allocation4 + $0x4e] sm:$0x1]  ;;  %v9785_v14 = vld [vmem:[#allocation4 + $0x6] sm:$0x1] }
 0x710   :  { %15523 = vmatpush1.bf16.msra.mxu1 %v15522_v19  ;;  %v23369_v19 = vld [vmem:[#allocation87_spill] sm:$0xff]  ;;  %v9790_v20 = vmax.f32 %v9786_v42, %v9788_v21  ;;  %v9791_v50 = vld [vmem:[#allocation4 + $0xe] sm:$0x1] }
 0x711   :  { %15525 = vmatprep.subr.bf16.mxu1 %v15524_v31  ;;  %v15554_v4 = vpack.c.bf16 %v23369_v19, %v23368_v0  ;;  %v23371_v31 = vld [vmem:[#allocation96_spill] sm:$0xff]  ;;  %v23400_v19 = vld [vmem:[#allocation115_spill] sm:$0xff] }
 0x712   :  { %v15556_v16 = vpack.c.bf16 %v23371_v31, %v23370_v39  ;;  %v9794_v0 = vld [vmem:[#allocation4 + $0x4f] sm:$0x1]  ;;  %v9787_v38 = vld [vmem:[#allocation4 + $0x7] sm:$0x1] }
 0x713   :  { %v9796_v39 = vmax.f32 %v9792_v9, %v9794_v0  ;;  %v23402_v31 = vld [vmem:[#allocation124_spill] sm:$0xff]  ;;  %v9789_v57 = vmax.f32 %v9785_v14, %v9787_v38  ;;  %v9990_v0 = vld [vmem:[#allocation4 + $0x58] sm:$0x1] }
 0x714   :  { %15527 = vmatpush1.bf16.msra.mxu1 %v15526_v32  ;;  %v23373_v32 = vld [vmem:[#allocation95_spill] sm:$0xff]  ;;  %v9986_v9 = vld [vmem:[#allocation4 + $0x51] sm:$0x1] }
 0x715   :  { %15529 = vmatprep.subr.bf16.mxu1 %v15528_v58  ;;  %v15558_v60 = vpack.c.bf16 %v23373_v32, %v23372_v43  ;;  %v23375_v58 = vld [vmem:[#allocation104_spill] sm:$0xff]  ;;  %v23404_v32 = vld [vmem:[#allocation123_spill] sm:$0xff] }
 0x716   :  { %v15560_v30 = vpack.c.bf16 %v23375_v58, %v23374_v54  ;;  %v9793_v43 = vld [vmem:[#allocation4 + $0xf] sm:$0x1]  ;;  %v9798_v54 = vmax.f32 %v9790_v20, %v9796_v39  ;;  %v9983_v20 = vld [vmem:[#allocation4 + $0x10] sm:$0x1] }
 0x717   :  { %v9795_v40 = vmax.f32 %v9791_v50, %v9793_v43  ;;  %v23406_v58 = vld [vmem:[#allocation132_spill] sm:$0xff]  ;;  %v9989_v43 = vld [vmem:[#allocation4 + $0x18] sm:$0x1] }
 0x718   :  { %15531 = vmatpush1.bf16.msra.mxu1 %v15530_v61  ;;  %v23377_v61 = vld [vmem:[#allocation103_spill] sm:$0xff]  ;;  %v9985_v50 = vld [vmem:[#allocation4 + $0x11] sm:$0x1] }
 0x719   :  { %15533 = vmatprep.subr.bf16.mxu1 %v15532_v25  ;;  %v15562_v44 = vpack.c.bf16 %v23377_v61, %v23376_v36  ;;  %v23379_v25 = vld [vmem:[#allocation82_spill] sm:$0xff]  ;;  %v23408_v61 = vld [vmem:[#allocation131_spill] sm:$0xff]  ;;  %v9797_v13 = vmax.f32 %v9789_v57, %v9795_v40  ;;  %v9987_v40 = vmax.f32 %v9983_v20, %v9985_v50 }
 0x71b   :  { %13322 = vmatmul.mubr.msk.f32.vlgmr.msra.gmra.mrb[154].mxu1 %vm9162_vm1, %v9442_v53 }
 0x71c   :  { %15535 = vmatpush1.bf16.msra.mxu1 %v15534_v51  ;;  %9580 = vmatprep.mubr.f32.mxu1 %v16536_v24  ;;  %v23381_v51 = vld [vmem:[#allocation81_spill] sm:$0xff] }
 0x71d   :  { %15537 = vmatprep.subr.bf16.mxu1 %v15536_v35  ;;  %v15566_v55 = vpack.c.bf16 %v23381_v51, %v23380_v33  ;;  %v23383_v35 = vld [vmem:[#allocation90_spill] sm:$0xff]  ;;  %v23412_v51 = vld [vmem:[#allocation109_spill] sm:$0xff] }
 0x71e   :  { %v15568_v18 = vpack.c.bf16 %v23383_v35, %v23382_v11  ;;  %v23414_v35 = vld [vmem:[#allocation118_spill] sm:$0xff] }
 0x720   :  { %15539 = vmatpush1.bf16.msra.mxu1 %v15538_v22  ;;  %v23385_v22 = vld [vmem:[#allocation89_spill] sm:$0xff] }
 0x721   :  { %15541 = vmatprep.subr.bf16.mxu1 %v15540_v45  ;;  %v15570_v37 = vpack.c.bf16 %v23385_v22, %v23384_v49  ;;  %v23387_v45 = vld [vmem:[#allocation98_spill] sm:$0xff]  ;;  %v23416_v22 = vld [vmem:[#allocation117_spill] sm:$0xff] }
 0x722   :  { %v15572_v56 = vpack.c.bf16 %v23387_v45, %v23386_v34  ;;  %v23418_v45 = vld [vmem:[#allocation126_spill] sm:$0xff] }
 0x724   :  { %15543 = vmatpush1.bf16.msra.mxu1 %v15542_v2  ;;  %v23389_v2 = vld [vmem:[#allocation97_spill] sm:$0xff] }
 0x725   :  { %15545 = vmatprep.subr.bf16.mxu1 %v15544_v1  ;;  %v15574_v62 = vpack.c.bf16 %v23389_v2, %v23388_v7  ;;  %v23391_v1 = vld [vmem:[#allocation106_spill] sm:$0xff]  ;;  %v23420_v2 = vld [vmem:[#allocation125_spill] sm:$0xff] }
 0x726   :  { %v15576_v52 = vpack.c.bf16 %v23391_v1, %v23390_v3  ;;  %v23422_v1 = vld [vmem:[#allocation134_spill] sm:$0xff] }
 0x728   :  { %15547 = vmatpush1.bf16.msra.mxu1 %v15546_v17  ;;  %v23393_v17 = vld [vmem:[#allocation105_spill] sm:$0xff] }
 0x729   :  { %15549 = vmatprep.subr.bf16.mxu1 %v15548_v5  ;;  %v15578_v12 = vpack.c.bf16 %v23393_v17, %v23392_v8  ;;  %v23395_v5 = vld [vmem:[#allocation112_spill] sm:$0xff]  ;;  %v23424_v17 = vld [vmem:[#allocation133_spill] sm:$0xff] }
 0x72a   :  { %v15580_v48 = vpack.c.bf16 %v23395_v5, %v23394_v59  ;;  %v23426_v5 = vld [vmem:[#allocation140_spill] sm:$0xff] }
 0x72b   :  { %13323 = vmatmul.mubr.msk.f32.vlgmr.msra.gmra.mrb[156].mxu1 %vm9162_vm1, %v9442_v53  ;;  %v15564_v53 = vpack.c.bf16 %v23379_v25, %v23378_v23  ;;  %v9833_v23 = vrot.slane %v9798_v54, 7  ;;  %v23410_v25 = vld [vmem:[#allocation110_spill] sm:$0xff] }
 0x72c   :  { %15551 = vmatpush1.bf16.msra.mxu1 %v15550_v46  ;;  %9703 = vmatprep.mubr.f32.mxu1 %v16536_v24  ;;  %v23397_v46 = vld [vmem:[#allocation111_spill] sm:$0xff] }
 0x72d   :  { %15553 = vmatprep.subr.bf16.mxu1 %v15552_v63  ;;  %v15582_v29 = vpack.c.bf16 %v23397_v46, %v23396_v47  ;;  %v23399_v63 = vld [vmem:[#allocation120_spill] sm:$0xff]  ;;  %v9834_v33 = vsel %vm9293_vm2, %v9833_v23, %v9797_v13  ;;  %v23428_v46 = vld [vmem:[#allocation139_spill] sm:$0xff] }
 0x72e   :  { %v15584_v28 = vpack.c.bf16 %v23399_v63, %v23398_v6  ;;  %v9984_v6 = vld [vmem:[#allocation4 + $0x50] sm:$0x1] }
 0x72f   :  { %v23430_v63 = vld [vmem:[#allocation148_spill] sm:$0xff]  ;;  %v9988_v39 = vmax.f32 %v9984_v6, %v9986_v9 }
 0x730   :  { %15555 = vmatpush1.bf16.msra.mxu1 %v15554_v4  ;;  %v23401_v4 = vld [vmem:[#allocation119_spill] sm:$0xff] }
 0x731   :  { %15557 = vmatprep.subr.bf16.mxu1 %v15556_v16  ;;  %v15586_v10 = vpack.c.bf16 %v23401_v4, %v23400_v19  ;;  %v23403_v16 = vld [vmem:[#allocation128_spill] sm:$0xff]  ;;  %v9992_v19 = vld [vmem:[#allocation4 + $0x59] sm:$0x1]  ;;  %v23432_v4 = vld [vmem:[#allocation147_spill] sm:$0xff] }
 0x732   :  { %v15588_v27 = vpack.c.bf16 %v23403_v16, %v23402_v31  ;;  %v9994_v31 = vmax.f32 %v9990_v0, %v9992_v19  ;;  %v23434_v16 = vld [vmem:[#allocation156_spill] sm:$0xff]  ;;  %v10184_v0 = vld [vmem:[#allocation4 + $0x53] sm:$0x1]  ;;  %v10188_v19 = vld [vmem:[#allocation4 + $0x5a] sm:$0x1] }
 0x734   :  { %15559 = vmatpush1.bf16.msra.mxu1 %v15558_v60  ;;  %v23405_v60 = vld [vmem:[#allocation127_spill] sm:$0xff] }
 0x735   :  { %15561 = vmatprep.subr.bf16.mxu1 %v15560_v30  ;;  %v15590_v26 = vpack.c.bf16 %v23405_v60, %v23404_v32  ;;  %v23407_v30 = vld [vmem:[#allocation136_spill] sm:$0xff]  ;;  %v9991_v32 = vld [vmem:[#allocation4 + $0x19] sm:$0x1]  ;;  %v23436_v60 = vld [vmem:[#allocation155_spill] sm:$0xff] }
 0x736   :  { %v15592_v36 = vpack.c.bf16 %v23407_v30, %v23406_v58  ;;  %v9993_v54 = vmax.f32 %v9989_v43, %v9991_v32  ;;  %v9996_v58 = vmax.f32 %v9988_v39, %v9994_v31  ;;  %v23438_v30 = vld [vmem:[#allocation164_spill] sm:$0xff]  ;;  %v10181_v39 = vld [vmem:[#allocation4 + $0x12] sm:$0x1]  ;;  %v10183_v43 = vld [vmem:[#allocation4 + $0x13] sm:$0x1] }
 0x737   :  { %v10187_v32 = vld [vmem:[#allocation4 + $0x1a] sm:$0x1] }
 0x738   :  { %15563 = vmatpush1.bf16.msra.mxu1 %v15562_v44  ;;  %v23409_v44 = vld [vmem:[#allocation135_spill] sm:$0xff]  ;;  %v9995_v23 = vmax.f32 %v9987_v40, %v9993_v54  ;;  %v10185_v54 = vmax.f32 %v10181_v39, %v10183_v43 }
 0x739   :  { %15565 = vmatprep.subr.bf16.mxu1 %v15564_v53  ;;  %v15594_v41 = vpack.c.bf16 %v23409_v44, %v23408_v61  ;;  %v23411_v53 = vld [vmem:[#allocation114_spill] sm:$0xff]  ;;  %v23440_v44 = vld [vmem:[#allocation163_spill] sm:$0xff] }
 0x73b   :  { %13324 = vmatmul.mubr.msk.f32.vlgmr.msra.gmra.mrb[154].mxu1 %vm9162_vm1, %v9636_v15 }
 0x73c   :  { %15567 = vmatpush1.bf16.msra.mxu1 %v15566_v55  ;;  %9774 = vmatprep.mubr.f32.mxu1 %v16536_v24  ;;  %v23413_v55 = vld [vmem:[#allocation113_spill] sm:$0xff] }
 0x73d   :  { %15569 = vmatprep.subr.bf16.mxu1 %v15568_v18  ;;  %v15598_v11 = vpack.c.bf16 %v23413_v55, %v23412_v51  ;;  %v23415_v18 = vld [vmem:[#allocation122_spill] sm:$0xff]  ;;  %v23444_v55 = vld [vmem:[#allocation141_spill] sm:$0xff] }
 0x73e   :  { %v15600_v49 = vpack.c.bf16 %v23415_v18, %v23414_v35  ;;  %v23446_v18 = vld [vmem:[#allocation150_spill] sm:$0xff] }
 0x740   :  { %15571 = vmatpush1.bf16.msra.mxu1 %v15570_v37  ;;  %v23417_v37 = vld [vmem:[#allocation121_spill] sm:$0xff] }
 0x741   :  { %15573 = vmatprep.subr.bf16.mxu1 %v15572_v56  ;;  %v15602_v34 = vpack.c.bf16 %v23417_v37, %v23416_v22  ;;  %v23419_v56 = vld [vmem:[#allocation130_spill] sm:$0xff]  ;;  %v23448_v37 = vld [vmem:[#allocation149_spill] sm:$0xff] }
 0x742   :  { %v15604_v7 = vpack.c.bf16 %v23419_v56, %v23418_v45  ;;  %v23450_v56 = vld [vmem:[#allocation158_spill] sm:$0xff] }
 0x744   :  { %15575 = vmatpush1.bf16.msra.mxu1 %v15574_v62  ;;  %v23421_v62 = vld [vmem:[#allocation129_spill] sm:$0xff] }
 0x745   :  { %15577 = vmatprep.subr.bf16.mxu1 %v15576_v52  ;;  %v15606_v3 = vpack.c.bf16 %v23421_v62, %v23420_v2  ;;  %v23423_v52 = vld [vmem:[#allocation138_spill] sm:$0xff]  ;;  %v23452_v62 = vld [vmem:[#allocation157_spill] sm:$0xff] }
 0x746   :  { %v15608_v8 = vpack.c.bf16 %v23423_v52, %v23422_v1  ;;  %v23454_v52 = vld [vmem:[#allocation166_spill] sm:$0xff] }
 0x748   :  { %15579 = vmatpush1.bf16.msra.mxu1 %v15578_v12  ;;  %v23425_v12 = vld [vmem:[#allocation137_spill] sm:$0xff] }
 0x749   :  { %15581 = vmatprep.subr.bf16.mxu1 %v15580_v48  ;;  %v15610_v59 = vpack.c.bf16 %v23425_v12, %v23424_v17  ;;  %v23427_v48 = vld [vmem:[#allocation144_spill] sm:$0xff]  ;;  %v23456_v12 = vld [vmem:[#allocation165_spill] sm:$0xff] }
 0x74a   :  { %v15612_v47 = vpack.c.bf16 %v23427_v48, %v23426_v5  ;;  %v23458_v48 = vld [vmem:[#allocation172_spill] sm:$0xff] }
 0x74b   :  { %13325 = vmatmul.mubr.msk.f32.vlgmr.msra.gmra.mrb[156].mxu1 %vm9162_vm1, %v9636_v15  ;;  %v15596_v15 = vpack.c.bf16 %v23411_v53, %v23410_v25  ;;  %v10031_v25 = vrot.slane %v9996_v58, 7  ;;  %v23442_v53 = vld [vmem:[#allocation142_spill] sm:$0xff] }
 0x74c   :  { %15583 = vmatpush1.bf16.msra.mxu1 %v15582_v29  ;;  %9901 = vmatprep.mubr.f32.mxu1 %v16536_v24  ;;  %v23429_v29 = vld [vmem:[#allocation143_spill] sm:$0xff] }
 0x74d   :  { %15585 = vmatprep.subr.bf16.mxu1 %v15584_v28  ;;  %v15614_v42 = vpack.c.bf16 %v23429_v29, %v23428_v46  ;;  %v23431_v28 = vld [vmem:[#allocation152_spill] sm:$0xff]  ;;  %v10032_v51 = vsel %vm9293_vm2, %v10031_v25, %v9995_v23  ;;  %v23460_v29 = vld [vmem:[#allocation171_spill] sm:$0xff] }
 0x74e   :  { %v15616_v21 = vpack.c.bf16 %v23431_v28, %v23430_v63  ;;  %v10182_v63 = vld [vmem:[#allocation4 + $0x52] sm:$0x1]  ;;  %v23462_v28 = vld [vmem:[#allocation180_spill] sm:$0xff] }
 0x74f   :  { %v10186_v31 = vmax.f32 %v10182_v63, %v10184_v0 }
 0x750   :  { %15587 = vmatpush1.bf16.msra.mxu1 %v15586_v10  ;;  %v23433_v10 = vld [vmem:[#allocation151_spill] sm:$0xff] }
 0x751   :  { %15589 = vmatprep.subr.bf16.mxu1 %v15588_v27  ;;  %v15618_v14 = vpack.c.bf16 %v23433_v10, %v23432_v4  ;;  %v23435_v27 = vld [vmem:[#allocation160_spill] sm:$0xff]  ;;  %v10190_v4 = vld [vmem:[#allocation4 + $0x5b] sm:$0x1]  ;;  %v23464_v10 = vld [vmem:[#allocation179_spill] sm:$0xff] }
 0x752   :  { %v15620_v38 = vpack.c.bf16 %v23435_v27, %v23434_v16  ;;  %v10192_v16 = vmax.f32 %v10188_v19, %v10190_v4  ;;  %v23466_v27 = vld [vmem:[#allocation188_spill] sm:$0xff]  ;;  %v10382_v19 = vld [vmem:[#allocation4 + $0x55] sm:$0x1]  ;;  %v10386_v4 = vld [vmem:[#allocation4 + $0x5c] sm:$0x1] }
 0x754   :  { %15591 = vmatpush1.bf16.msra.mxu1 %v15590_v26  ;;  %v23437_v26 = vld [vmem:[#allocation159_spill] sm:$0xff] }
 0x755   :  { %15593 = vmatprep.subr.bf16.mxu1 %v15592_v36  ;;  %v15622_v57 = vpack.c.bf16 %v23437_v26, %v23436_v60  ;;  %v23439_v36 = vld [vmem:[#allocation168_spill] sm:$0xff]  ;;  %v10189_v60 = vld [vmem:[#allocation4 + $0x1b] sm:$0x1]  ;;  %v23468_v26 = vld [vmem:[#allocation187_spill] sm:$0xff] }
 0x756   :  { %v15624_v61 = vpack.c.bf16 %v23439_v36, %v23438_v30  ;;  %v10191_v58 = vmax.f32 %v10187_v32, %v10189_v60  ;;  %v10194_v30 = vmax.f32 %v10186_v31, %v10192_v16  ;;  %v23470_v36 = vld [vmem:[#allocation196_spill] sm:$0xff]  ;;  %v10379_v31 = vld [vmem:[#allocation4 + $0x14] sm:$0x1]  ;;  %v10381_v32 = vld [vmem:[#allocation4 + $0x15] sm:$0x1] }
 0x757   :  { %v10385_v60 = vld [vmem:[#allocation4 + $0x1c] sm:$0x1] }
 0x758   :  { %15595 = vmatpush1.bf16.msra.mxu1 %v15594_v41  ;;  %v23441_v41 = vld [vmem:[#allocation167_spill] sm:$0xff]  ;;  %v10193_v25 = vmax.f32 %v10185_v54, %v10191_v58  ;;  %v10383_v58 = vmax.f32 %v10379_v31, %v10381_v32 }
 0x759   :  { %15597 = vmatprep.subr.bf16.mxu1 %v15596_v15  ;;  %v15626_v13 = vpack.c.bf16 %v23441_v41, %v23440_v44  ;;  %v23443_v15 = vld [vmem:[#allocation146_spill] sm:$0xff]  ;;  %v23472_v41 = vld [vmem:[#allocation195_spill] sm:$0xff] }
 0x75b   :  { %13326 = vmatmul.mubr.msk.f32.vlgmr.msra.gmra.mrb[154].mxu1 %vm9162_vm1, %v9834_v33 }
 0x75c   :  { %15599 = vmatpush1.bf16.msra.mxu1 %v15598_v11  ;;  %9972 = vmatprep.mubr.f32.mxu1 %v16536_v24  ;;  %v23445_v11 = vld [vmem:[#allocation145_spill] sm:$0xff] }
 0x75d   :  { %15601 = vmatprep.subr.bf16.mxu1 %v15600_v49  ;;  %v15630_v35 = vpack.c.bf16 %v23445_v11, %v23444_v55  ;;  %v23447_v49 = vld [vmem:[#allocation154_spill] sm:$0xff]  ;;  %v23476_v11 = vld [vmem:[#allocation173_spill] sm:$0xff] }
 0x75e   :  { %v15632_v22 = vpack.c.bf16 %v23447_v49, %v23446_v18  ;;  %v23478_v49 = vld [vmem:[#allocation182_spill] sm:$0xff] }
 0x760   :  { %15603 = vmatpush1.bf16.msra.mxu1 %v15602_v34  ;;  %v23449_v34 = vld [vmem:[#allocation153_spill] sm:$0xff] }
 0x761   :  { %15605 = vmatprep.subr.bf16.mxu1 %v15604_v7  ;;  %v15634_v45 = vpack.c.bf16 %v23449_v34, %v23448_v37  ;;  %v23451_v7 = vld [vmem:[#allocation162_spill] sm:$0xff]  ;;  %v23480_v34 = vld [vmem:[#allocation181_spill] sm:$0xff] }
 0x762   :  { %v15636_v2 = vpack.c.bf16 %v23451_v7, %v23450_v56  ;;  %v23482_v7 = vld [vmem:[#allocation190_spill] sm:$0xff] }
 0x764   :  { %15607 = vmatpush1.bf16.msra.mxu1 %v15606_v3  ;;  %v23453_v3 = vld [vmem:[#allocation161_spill] sm:$0xff] }
 0x765   :  { %15609 = vmatprep.subr.bf16.mxu1 %v15608_v8  ;;  %v15638_v1 = vpack.c.bf16 %v23453_v3, %v23452_v62  ;;  %v23455_v8 = vld [vmem:[#allocation170_spill] sm:$0xff]  ;;  %v23484_v3 = vld [vmem:[#allocation189_spill] sm:$0xff] }
 0x766   :  { %v15640_v17 = vpack.c.bf16 %v23455_v8, %v23454_v52  ;;  %v23486_v8 = vld [vmem:[#allocation198_spill] sm:$0xff] }
 0x768   :  { %15611 = vmatpush1.bf16.msra.mxu1 %v15610_v59  ;;  %v23457_v59 = vld [vmem:[#allocation169_spill] sm:$0xff] }
 0x769   :  { %15613 = vmatprep.subr.bf16.mxu1 %v15612_v47  ;;  %v15642_v5 = vpack.c.bf16 %v23457_v59, %v23456_v12  ;;  %v23459_v47 = vld [vmem:[#allocation176_spill] sm:$0xff]  ;;  %v23488_v59 = vld [vmem:[#allocation197_spill] sm:$0xff] }
 0x76a   :  { %v15644_v46 = vpack.c.bf16 %v23459_v47, %v23458_v48  ;;  %v23490_v47 = vld [vmem:[#allocation204_spill] sm:$0xff] }
 0x76b   :  { %13327 = vmatmul.mubr.msk.f32.vlgmr.msra.gmra.mrb[156].mxu1 %vm9162_vm1, %v9834_v33  ;;  %v15628_v33 = vpack.c.bf16 %v23443_v15, %v23442_v53  ;;  %v10229_v53 = vrot.slane %v10194_v30, 7  ;;  %v23474_v15 = vld [vmem:[#allocation174_spill] sm:$0xff] }
 0x76c   :  { %15615 = vmatpush1.bf16.msra.mxu1 %v15614_v42  ;;  %10099 = vmatprep.mubr.f32.mxu1 %v16536_v24  ;;  %v23461_v42 = vld [vmem:[#allocation175_spill] sm:$0xff] }
 0x76d   :  { %15617 = vmatprep.subr.bf16.mxu1 %v15616_v21  ;;  %v15646_v6 = vpack.c.bf16 %v23461_v42, %v23460_v29  ;;  %v23463_v21 = vld [vmem:[#allocation184_spill] sm:$0xff]  ;;  %v10230_v55 = vsel %vm9293_vm2, %v10229_v53, %v10193_v25  ;;  %v23492_v42 = vld [vmem:[#allocation203_spill] sm:$0xff] }
 0x76e   :  { %v15648_v9 = vpack.c.bf16 %v23463_v21, %v23462_v28  ;;  %v10380_v28 = vld [vmem:[#allocation4 + $0x54] sm:$0x1]  ;;  %v23494_v21 = vld [vmem:[#allocation212_spill] sm:$0xff] }
 0x76f   :  { %v10384_v16 = vmax.f32 %v10380_v28, %v10382_v19 }
 0x770   :  { %15619 = vmatpush1.bf16.msra.mxu1 %v15618_v14  ;;  %v23465_v14 = vld [vmem:[#allocation183_spill] sm:$0xff] }
 0x771   :  { %15621 = vmatprep.subr.bf16.mxu1 %v15620_v38  ;;  %v15650_v20 = vpack.c.bf16 %v23465_v14, %v23464_v10  ;;  %v23467_v38 = vld [vmem:[#allocation192_spill] sm:$0xff]  ;;  %v10388_v10 = vld [vmem:[#allocation4 + $0x5d] sm:$0x1]  ;;  %v23496_v14 = vld [vmem:[#allocation211_spill] sm:$0xff] }
 0x772   :  { %v15652_v50 = vpack.c.bf16 %v23467_v38, %v23466_v27  ;;  %v10390_v27 = vmax.f32 %v10386_v4, %v10388_v10  ;;  %v23498_v38 = vld [vmem:[#allocation220_spill] sm:$0xff]  ;;  %v10580_v4 = vld [vmem:[#allocation4 + $0x57] sm:$0x1]  ;;  %v10584_v10 = vld [vmem:[#allocation4 + $0x5e] sm:$0x1] }
 0x774   :  { %15623 = vmatpush1.bf16.msra.mxu1 %v15622_v57  ;;  %v23469_v57 = vld [vmem:[#allocation191_spill] sm:$0xff] }
 0x775   :  { %15625 = vmatprep.subr.bf16.mxu1 %v15624_v61  ;;  %v15654_v40 = vpack.c.bf16 %v23469_v57, %v23468_v26  ;;  %v23471_v61 = vld [vmem:[#allocation200_spill] sm:$0xff]  ;;  %v10387_v26 = vld [vmem:[#allocation4 + $0x1d] sm:$0x1]  ;;  %v23500_v57 = vld [vmem:[#allocation219_spill] sm:$0xff] }
 0x776   :  { %v15656_v44 = vpack.c.bf16 %v23471_v61, %v23470_v36  ;;  %v10389_v30 = vmax.f32 %v10385_v60, %v10387_v26  ;;  %v10392_v36 = vmax.f32 %v10384_v16, %v10390_v27  ;;  %v23502_v61 = vld [vmem:[#allocation228_spill] sm:$0xff]  ;;  %v10577_v16 = vld [vmem:[#allocation4 + $0x16] sm:$0x1]  ;;  %v10579_v60 = vld [vmem:[#allocation4 + $0x17] sm:$0x1] }
 0x777   :  { %v10583_v26 = vld [vmem:[#allocation4 + $0x1e] sm:$0x1] }
 0x778   :  { %15627 = vmatpush1.bf16.msra.mxu1 %v15626_v13  ;;  %v23473_v13 = vld [vmem:[#allocation199_spill] sm:$0xff]  ;;  %v10391_v53 = vmax.f32 %v10383_v58, %v10389_v30  ;;  %v10581_v30 = vmax.f32 %v10577_v16, %v10579_v60 }
 0x779   :  { %15629 = vmatprep.subr.bf16.mxu1 %v15628_v33  ;;  %v15658_v23 = vpack.c.bf16 %v23473_v13, %v23472_v41  ;;  %v23475_v33 = vld [vmem:[#allocation178_spill] sm:$0xff]  ;;  %v23504_v13 = vld [vmem:[#allocation227_spill] sm:$0xff] }
 0x77b   :  { %13328 = vmatmul.mubr.msk.f32.vlgmr.msra.gmra.mrb[154].mxu1 %vm9162_vm1, %v10032_v51 }
 0x77c   :  { %15631 = vmatpush1.bf16.msra.mxu1 %v15630_v35  ;;  %10170 = vmatprep.mubr.f32.mxu1 %v16536_v24  ;;  %v23477_v35 = vld [vmem:[#allocation177_spill] sm:$0xff] }
 0x77d   :  { %15633 = vmatprep.subr.bf16.mxu1 %v15632_v22  ;;  %v15662_v18 = vpack.c.bf16 %v23477_v35, %v23476_v11  ;;  %v23479_v22 = vld [vmem:[#allocation186_spill] sm:$0xff]  ;;  %v23508_v35 = vld [vmem:[#allocation205_spill] sm:$0xff] }
 0x77e   :  { %v15664_v37 = vpack.c.bf16 %v23479_v22, %v23478_v49  ;;  %v23510_v22 = vld [vmem:[#allocation214_spill] sm:$0xff] }
 0x780   :  { %15635 = vmatpush1.bf16.msra.mxu1 %v15634_v45  ;;  %v23481_v45 = vld [vmem:[#allocation185_spill] sm:$0xff] }
 0x781   :  { %15637 = vmatprep.subr.bf16.mxu1 %v15636_v2  ;;  %v15666_v56 = vpack.c.bf16 %v23481_v45, %v23480_v34  ;;  %v23483_v2 = vld [vmem:[#allocation194_spill] sm:$0xff]  ;;  %v23512_v45 = vld [vmem:[#allocation213_spill] sm:$0xff] }
 0x782   :  { %v15668_v62 = vpack.c.bf16 %v23483_v2, %v23482_v7  ;;  %v23514_v2 = vld [vmem:[#allocation222_spill] sm:$0xff] }
 0x784   :  { %15639 = vmatpush1.bf16.msra.mxu1 %v15638_v1  ;;  %v23485_v1 = vld [vmem:[#allocation193_spill] sm:$0xff] }
 0x785   :  { %15641 = vmatprep.subr.bf16.mxu1 %v15640_v17  ;;  %v15670_v52 = vpack.c.bf16 %v23485_v1, %v23484_v3  ;;  %v23487_v17 = vld [vmem:[#allocation202_spill] sm:$0xff]  ;;  %v23516_v1 = vld [vmem:[#allocation221_spill] sm:$0xff] }
 0x786   :  { %v15672_v12 = vpack.c.bf16 %v23487_v17, %v23486_v8  ;;  %v23518_v17 = vld [vmem:[#allocation230_spill] sm:$0xff] }
 0x788   :  { %15643 = vmatpush1.bf16.msra.mxu1 %v15642_v5  ;;  %v23489_v5 = vld [vmem:[#allocation201_spill] sm:$0xff] }
 0x789   :  { %15645 = vmatprep.subr.bf16.mxu1 %v15644_v46  ;;  %v15674_v48 = vpack.c.bf16 %v23489_v5, %v23488_v59  ;;  %v23491_v46 = vld [vmem:[#allocation208_spill] sm:$0xff]  ;;  %v23520_v5 = vld [vmem:[#allocation229_spill] sm:$0xff] }
 0x78a   :  { %v15676_v29 = vpack.c.bf16 %v23491_v46, %v23490_v47  ;;  %v23522_v46 = vld [vmem:[#allocation236_spill] sm:$0xff] }
 0x78b   :  { %13329 = vmatmul.mubr.msk.f32.vlgmr.msra.gmra.mrb[156].mxu1 %vm9162_vm1, %v10032_v51  ;;  %v15660_v51 = vpack.c.bf16 %v23475_v33, %v23474_v15  ;;  %v10427_v15 = vrot.slane %v10392_v36, 7  ;;  %v23506_v33 = vld [vmem:[#allocation206_spill] sm:$0xff] }
 0x78c   :  { %15647 = vmatpush1.bf16.msra.mxu1 %v15646_v6  ;;  %10297 = vmatprep.mubr.f32.mxu1 %v16536_v24  ;;  %v23493_v6 = vld [vmem:[#allocation207_spill] sm:$0xff] }
 0x78d   :  { %15649 = vmatprep.subr.bf16.mxu1 %v15648_v9  ;;  %v15678_v63 = vpack.c.bf16 %v23493_v6, %v23492_v42  ;;  %v23495_v9 = vld [vmem:[#allocation216_spill] sm:$0xff]  ;;  %v10428_v11 = vsel %vm9293_vm2, %v10427_v15, %v10391_v53  ;;  %v23524_v6 = vld [vmem:[#allocation235_spill] sm:$0xff] }
 0x78e   :  { %v15680_v0 = vpack.c.bf16 %v23495_v9, %v23494_v21  ;;  %v10578_v21 = vld [vmem:[#allocation4 + $0x56] sm:$0x1]  ;;  %v23526_v9 = vld [vmem:[#allocation244_spill] sm:$0xff] }
 0x78f   :  { %v10582_v27 = vmax.f32 %v10578_v21, %v10580_v4 }
 0x790   :  { %15651 = vmatpush1.bf16.msra.mxu1 %v15650_v20  ;;  %v23497_v20 = vld [vmem:[#allocation215_spill] sm:$0xff] }
 0x791   :  { %15653 = vmatprep.subr.bf16.mxu1 %v15652_v50  ;;  %v15682_v39 = vpack.c.bf16 %v23497_v20, %v23496_v14  ;;  %v23499_v50 = vld [vmem:[#allocation224_spill] sm:$0xff]  ;;  %v10586_v14 = vld [vmem:[#allocation4 + $0x5f] sm:$0x1]  ;;  %v23528_v20 = vld [vmem:[#allocation243_spill] sm:$0xff] }
 0x792   :  { %v15684_v43 = vpack.c.bf16 %v23499_v50, %v23498_v38  ;;  %v10588_v38 = vmax.f32 %v10584_v10, %v10586_v14  ;;  %v23530_v50 = vld [vmem:[#allocation252_spill] sm:$0xff]  ;;  %v10778_v10 = vld [vmem:[#allocation4 + $0x61] sm:$0x1]  ;;  %v10782_v14 = vld [vmem:[#allocation4 + $0x68] sm:$0x1] }
 0x794   :  { %15655 = vmatpush1.bf16.msra.mxu1 %v15654_v40  ;;  %v23501_v40 = vld [vmem:[#allocation223_spill] sm:$0xff] }
 0x795   :  { %15657 = vmatprep.subr.bf16.mxu1 %v15656_v44  ;;  %v15686_v54 = vpack.c.bf16 %v23501_v40, %v23500_v57  ;;  %v23503_v44 = vld [vmem:[#allocation232_spill] sm:$0xff]  ;;  %v10585_v57 = vld [vmem:[#allocation4 + $0x1f] sm:$0x1]  ;;  %v23532_v40 = vld [vmem:[#allocation251_spill] sm:$0xff] }
 0x796   :  { %v15688_v41 = vpack.c.bf16 %v23503_v44, %v23502_v61  ;;  %v10587_v36 = vmax.f32 %v10583_v26, %v10585_v57  ;;  %v10590_v61 = vmax.f32 %v10582_v27, %v10588_v38  ;;  %v23534_v44 = vld [vmem:[#allocation260_spill] sm:$0xff]  ;;  %v10775_v27 = vld [vmem:[#allocation4 + $0x20] sm:$0x1]  ;;  %v10777_v26 = vld [vmem:[#allocation4 + $0x21] sm:$0x1] }
 0x797   :  { %v10781_v57 = vld [vmem:[#allocation4 + $0x28] sm:$0x1] }
 0x798   :  { %15659 = vmatpush1.bf16.msra.mxu1 %v15658_v23  ;;  %v23505_v23 = vld [vmem:[#allocation231_spill] sm:$0xff]  ;;  %v10589_v15 = vmax.f32 %v10581_v30, %v10587_v36  ;;  %v10779_v36 = vmax.f32 %v10775_v27, %v10777_v26 }
 0x799   :  { %15661 = vmatprep.subr.bf16.mxu1 %v15660_v51  ;;  %v15690_v25 = vpack.c.bf16 %v23505_v23, %v23504_v13  ;;  %v23507_v51 = vld [vmem:[#allocation210_spill] sm:$0xff]  ;;  %v23536_v23 = vld [vmem:[#allocation259_spill] sm:$0xff] }
 0x79b   :  { %13330 = vmatmul.mubr.msk.f32.vlgmr.msra.gmra.mrb[154].mxu1 %vm9162_vm1, %v10230_v55 }
 0x79c   :  { %15663 = vmatpush1.bf16.msra.mxu1 %v15662_v18  ;;  %10368 = vmatprep.mubr.f32.mxu1 %v16536_v24  ;;  %v23509_v18 = vld [vmem:[#allocation209_spill] sm:$0xff] }
 0x79d   :  { %15665 = vmatprep.subr.bf16.mxu1 %v15664_v37  ;;  %v15694_v49 = vpack.c.bf16 %v23509_v18, %v23508_v35  ;;  %v23511_v37 = vld [vmem:[#allocation218_spill] sm:$0xff]  ;;  %v23540_v18 = vld [vmem:[#allocation237_spill] sm:$0xff] }
 0x79e   :  { %v15696_v34 = vpack.c.bf16 %v23511_v37, %v23510_v22  ;;  %v23542_v37 = vld [vmem:[#allocation246_spill] sm:$0xff] }
 0x7a0   :  { %15667 = vmatpush1.bf16.msra.mxu1 %v15666_v56  ;;  %v23513_v56 = vld [vmem:[#allocation217_spill] sm:$0xff] }
 0x7a1   :  { %15669 = vmatprep.subr.bf16.mxu1 %v15668_v62  ;;  %v15698_v7 = vpack.c.bf16 %v23513_v56, %v23512_v45  ;;  %v23515_v62 = vld [vmem:[#allocation226_spill] sm:$0xff]  ;;  %v23544_v56 = vld [vmem:[#allocation245_spill] sm:$0xff] }
 0x7a2   :  { %v15700_v3 = vpack.c.bf16 %v23515_v62, %v23514_v2  ;;  %v23546_v62 = vld [vmem:[#allocation254_spill] sm:$0xff] }
 0x7a4   :  { %15671 = vmatpush1.bf16.msra.mxu1 %v15670_v52  ;;  %v23517_v52 = vld [vmem:[#allocation225_spill] sm:$0xff] }
 0x7a5   :  { %15673 = vmatprep.subr.bf16.mxu1 %v15672_v12  ;;  %v15702_v8 = vpack.c.bf16 %v23517_v52, %v23516_v1  ;;  %v23519_v12 = vld [vmem:[#allocation234_spill] sm:$0xff]  ;;  %v23548_v52 = vld [vmem:[#allocation253_spill] sm:$0xff] }
 0x7a6   :  { %v15704_v59 = vpack.c.bf16 %v23519_v12, %v23518_v17  ;;  %v23550_v12 = vld [vmem:[#allocation262_spill] sm:$0xff] }
 0x7a8   :  { %15675 = vmatpush1.bf16.msra.mxu1 %v15674_v48  ;;  %v23521_v48 = vld [vmem:[#allocation233_spill] sm:$0xff] }
 0x7a9   :  { %15677 = vmatprep.subr.bf16.mxu1 %v15676_v29  ;;  %v15706_v47 = vpack.c.bf16 %v23521_v48, %v23520_v5  ;;  %v23523_v29 = vld [vmem:[#allocation240_spill] sm:$0xff]  ;;  %v23552_v48 = vld [vmem:[#allocation261_spill] sm:$0xff] }
 0x7aa   :  { %v15708_v42 = vpack.c.bf16 %v23523_v29, %v23522_v46  ;;  %v23554_v29 = vld [vmem:[#allocation268_spill] sm:$0xff] }
 0x7ab   :  { %13331 = vmatmul.mubr.msk.f32.vlgmr.msra.gmra.mrb[156].mxu1 %vm9162_vm1, %v10230_v55  ;;  %v15692_v55 = vpack.c.bf16 %v23507_v51, %v23506_v33  ;;  %v10625_v33 = vrot.slane %v10590_v61, 7  ;;  %v23538_v51 = vld [vmem:[#allocation238_spill] sm:$0xff] }
 0x7ac   :  { %15679 = vmatpush1.bf16.msra.mxu1 %v15678_v63  ;;  %10495 = vmatprep.mubr.f32.mxu1 %v16536_v24  ;;  %v23525_v63 = vld [vmem:[#allocation239_spill] sm:$0xff] }
 0x7ad   :  { %15681 = vmatprep.subr.bf16.mxu1 %v15680_v0  ;;  %v15710_v28 = vpack.c.bf16 %v23525_v63, %v23524_v6  ;;  %v23527_v0 = vld [vmem:[#allocation248_spill] sm:$0xff]  ;;  %v10626_v35 = vsel %vm9293_vm2, %v10625_v33, %v10589_v15  ;;  %v23556_v63 = vld [vmem:[#allocation267_spill] sm:$0xff] }
 0x7ae   :  { %v15712_v19 = vpack.c.bf16 %v23527_v0, %v23526_v9  ;;  %v10776_v9 = vld [vmem:[#allocation4 + $0x60] sm:$0x1]  ;;  %v23558_v0 = vld [vmem:[#allocation276_spill] sm:$0xff] }
 0x7af   :  { %v10780_v38 = vmax.f32 %v10776_v9, %v10778_v10 }
 0x7b0   :  { %15683 = vmatpush1.bf16.msra.mxu1 %v15682_v39  ;;  %v23529_v39 = vld [vmem:[#allocation247_spill] sm:$0xff] }
 0x7b1   :  { %15685 = vmatprep.subr.bf16.mxu1 %v15684_v43  ;;  %v15714_v31 = vpack.c.bf16 %v23529_v39, %v23528_v20  ;;  %v23531_v43 = vld [vmem:[#allocation256_spill] sm:$0xff]  ;;  %v10784_v20 = vld [vmem:[#allocation4 + $0x69] sm:$0x1] }
 0x7b2   :  { %v15716_v32 = vpack.c.bf16 %v23531_v43, %v23530_v50  ;;  %v23560_v39 = vld [vmem:[#allocation275_spill] sm:$0xff]  ;;  %v10786_v50 = vmax.f32 %v10782_v14, %v10784_v20  ;;  %v23562_v43 = vld [vmem:[#allocation284_spill] sm:$0xff] }
 0x7b3   :  { %v10976_v14 = vld [vmem:[#allocation4 + $0x63] sm:$0x1]  ;;  %v10980_v20 = vld [vmem:[#allocation4 + $0x6a] sm:$0x1] }
 0x7b4   :  { %15687 = vmatpush1.bf16.msra.mxu1 %v15686_v54  ;;  %v23533_v54 = vld [vmem:[#allocation255_spill] sm:$0xff] }
 0x7b5   :  { %15689 = vmatprep.subr.bf16.mxu1 %v15688_v41  ;;  %v15718_v58 = vpack.c.bf16 %v23533_v54, %v23532_v40  ;;  %v23535_v41 = vld [vmem:[#allocation264_spill] sm:$0xff]  ;;  %v10783_v40 = vld [vmem:[#allocation4 + $0x29] sm:$0x1] }
 0x7b6   :  { %v15720_v13 = vpack.c.bf16 %v23535_v41, %v23534_v44  ;;  %v23564_v54 = vld [vmem:[#allocation283_spill] sm:$0xff]  ;;  %v10785_v61 = vmax.f32 %v10781_v57, %v10783_v40  ;;  %v10788_v44 = vmax.f32 %v10780_v38, %v10786_v50  ;;  %v23566_v41 = vld [vmem:[#allocation292_spill] sm:$0xff] }
 0x7b7   :  { %v10973_v38 = vld [vmem:[#allocation4 + $0x22] sm:$0x1]  ;;  %v10975_v57 = vld [vmem:[#allocation4 + $0x23] sm:$0x1]  ;;  %v10979_v40 = vld [vmem:[#allocation4 + $0x2a] sm:$0x1] }
 0x7b8   :  { %15691 = vmatpush1.bf16.msra.mxu1 %v15690_v25  ;;  %v23537_v25 = vld [vmem:[#allocation263_spill] sm:$0xff]  ;;  %v10787_v33 = vmax.f32 %v10779_v36, %v10785_v61  ;;  %v10977_v61 = vmax.f32 %v10973_v38, %v10975_v57 }
 0x7b9   :  { %15693 = vmatprep.subr.bf16.mxu1 %v15692_v55  ;;  %v15722_v53 = vpack.c.bf16 %v23537_v25, %v23536_v23  ;;  %v23539_v55 = vld [vmem:[#allocation242_spill] sm:$0xff]  ;;  %v23568_v25 = vld [vmem:[#allocation291_spill] sm:$0xff] }
 0x7bb   :  { %13332 = vmatmul.mubr.msk.f32.vlgmr.msra.gmra.mrb[154].mxu1 %vm9162_vm1, %v10428_v11 }
 0x7bc   :  { %15695 = vmatpush1.bf16.msra.mxu1 %v15694_v49  ;;  %10566 = vmatprep.mubr.f32.mxu1 %v16536_v24  ;;  %v23541_v49 = vld [vmem:[#allocation241_spill] sm:$0xff] }
 0x7bd   :  { %15697 = vmatprep.subr.bf16.mxu1 %v15696_v34  ;;  %v15726_v22 = vpack.c.bf16 %v23541_v49, %v23540_v18  ;;  %v23543_v34 = vld [vmem:[#allocation250_spill] sm:$0xff]  ;;  %v23572_v49 = vld [vmem:[#allocation269_spill] sm:$0xff] }
 0x7be   :  { %v15728_v45 = vpack.c.bf16 %v23543_v34, %v23542_v37  ;;  %v23574_v34 = vld [vmem:[#allocation278_spill] sm:$0xff] }
 0x7c0   :  { %15699 = vmatpush1.bf16.msra.mxu1 %v15698_v7  ;;  %v23545_v7 = vld [vmem:[#allocation249_spill] sm:$0xff] }
 0x7c1   :  { %15701 = vmatprep.subr.bf16.mxu1 %v15700_v3  ;;  %v15730_v2 = vpack.c.bf16 %v23545_v7, %v23544_v56  ;;  %v23547_v3 = vld [vmem:[#allocation258_spill] sm:$0xff]  ;;  %v23576_v7 = vld [vmem:[#allocation277_spill] sm:$0xff] }
 0x7c2   :  { %v15732_v1 = vpack.c.bf16 %v23547_v3, %v23546_v62  ;;  %v23578_v3 = vld [vmem:[#allocation286_spill] sm:$0xff] }
 0x7c4   :  { %15703 = vmatpush1.bf16.msra.mxu1 %v15702_v8  ;;  %v23549_v8 = vld [vmem:[#allocation257_spill] sm:$0xff] }
 0x7c5   :  { %15705 = vmatprep.subr.bf16.mxu1 %v15704_v59  ;;  %v15734_v17 = vpack.c.bf16 %v23549_v8, %v23548_v52  ;;  %v23551_v59 = vld [vmem:[#allocation266_spill] sm:$0xff]  ;;  %v23580_v8 = vld [vmem:[#allocation285_spill] sm:$0xff] }
 0x7c6   :  { %v15736_v5 = vpack.c.bf16 %v23551_v59, %v23550_v12  ;;  %v23582_v59 = vld [vmem:[#allocation294_spill] sm:$0xff] }
 0x7c8   :  { %15707 = vmatpush1.bf16.msra.mxu1 %v15706_v47  ;;  %v23553_v47 = vld [vmem:[#allocation265_spill] sm:$0xff] }
 0x7c9   :  { %15709 = vmatprep.subr.bf16.mxu1 %v15708_v42  ;;  %v15738_v46 = vpack.c.bf16 %v23553_v47, %v23552_v48  ;;  %v23555_v42 = vld [vmem:[#allocation272_spill] sm:$0xff]  ;;  %v23584_v47 = vld [vmem:[#allocation293_spill] sm:$0xff] }
 0x7ca   :  { %v15740_v6 = vpack.c.bf16 %v23555_v42, %v23554_v29  ;;  %v23586_v42 = vld [vmem:[#allocation300_spill] sm:$0xff] }
 0x7cb   :  { %13333 = vmatmul.mubr.msk.f32.vlgmr.msra.gmra.mrb[156].mxu1 %vm9162_vm1, %v10428_v11  ;;  %v15724_v11 = vpack.c.bf16 %v23539_v55, %v23538_v51  ;;  %v10823_v51 = vrot.slane %v10788_v44, 7  ;;  %v23570_v55 = vld [vmem:[#allocation270_spill] sm:$0xff] }
 0x7cc   :  { %15711 = vmatpush1.bf16.msra.mxu1 %v15710_v28  ;;  %10693 = vmatprep.mubr.f32.mxu1 %v16536_v24  ;;  %v23557_v28 = vld [vmem:[#allocation271_spill] sm:$0xff] }
 0x7cd   :  { %15713 = vmatprep.subr.bf16.mxu1 %v15712_v19  ;;  %v15742_v21 = vpack.c.bf16 %v23557_v28, %v23556_v63  ;;  %v23559_v19 = vld [vmem:[#allocation280_spill] sm:$0xff]  ;;  %v10824_v18 = vsel %vm9293_vm2, %v10823_v51, %v10787_v33  ;;  %v23588_v28 = vld [vmem:[#allocation299_spill] sm:$0xff] }
 0x7ce   :  { %v15744_v4 = vpack.c.bf16 %v23559_v19, %v23558_v0  ;;  %v10974_v0 = vld [vmem:[#allocation4 + $0x62] sm:$0x1]  ;;  %v23590_v19 = vld [vmem:[#allocation308_spill] sm:$0xff] }
 0x7cf   :  { %v10978_v50 = vmax.f32 %v10974_v0, %v10976_v14 }
 0x7d0   :  { %15715 = vmatpush1.bf16.msra.mxu1 %v15714_v31  ;;  %v23561_v31 = vld [vmem:[#allocation279_spill] sm:$0xff] }
 0x7d1   :  { %15717 = vmatprep.subr.bf16.mxu1 %v15716_v32  ;;  %v15746_v16 = vpack.c.bf16 %v23561_v31, %v23560_v39  ;;  %v23563_v32 = vld [vmem:[#allocation288_spill] sm:$0xff]  ;;  %v23592_v31 = vld [vmem:[#allocation307_spill] sm:$0xff] }
 0x7d2   :  { %v15748_v60 = vpack.c.bf16 %v23563_v32, %v23562_v43  ;;  %v10982_v39 = vld [vmem:[#allocation4 + $0x6b] sm:$0x1] }
 0x7d3   :  { %v10984_v43 = vmax.f32 %v10980_v20, %v10982_v39  ;;  %v23594_v32 = vld [vmem:[#allocation316_spill] sm:$0xff]  ;;  %v11174_v20 = vld [vmem:[#allocation4 + $0x65] sm:$0x1] }
 0x7d4   :  { %15719 = vmatpush1.bf16.msra.mxu1 %v15718_v58  ;;  %v23565_v58 = vld [vmem:[#allocation287_spill] sm:$0xff]  ;;  %v11178_v39 = vld [vmem:[#allocation4 + $0x6c] sm:$0x1] }
 0x7d5   :  { %15721 = vmatprep.subr.bf16.mxu1 %v15720_v13  ;;  %v15750_v30 = vpack.c.bf16 %v23565_v58, %v23564_v54  ;;  %v23567_v13 = vld [vmem:[#allocation296_spill] sm:$0xff]  ;;  %v23596_v58 = vld [vmem:[#allocation315_spill] sm:$0xff] }
 0x7d6   :  { %v15752_v23 = vpack.c.bf16 %v23567_v13, %v23566_v41  ;;  %v10981_v54 = vld [vmem:[#allocation4 + $0x2b] sm:$0x1]  ;;  %v10986_v41 = vmax.f32 %v10978_v50, %v10984_v43  ;;  %v11171_v50 = vld [vmem:[#allocation4 + $0x24] sm:$0x1] }
 0x7d7   :  { %v10983_v44 = vmax.f32 %v10979_v40, %v10981_v54  ;;  %v23598_v13 = vld [vmem:[#allocation324_spill] sm:$0xff]  ;;  %v11173_v40 = vld [vmem:[#allocation4 + $0x25] sm:$0x1] }
 0x7d8   :  { %15723 = vmatpush1.bf16.msra.mxu1 %v15722_v53  ;;  %v23569_v53 = vld [vmem:[#allocation295_spill] sm:$0xff]  ;;  %v11177_v54 = vld [vmem:[#allocation4 + $0x2c] sm:$0x1] }
 0x7d9   :  { %15725 = vmatprep.subr.bf16.mxu1 %v15724_v11  ;;  %v15754_v15 = vpack.c.bf16 %v23569_v53, %v23568_v25  ;;  %v23571_v11 = vld [vmem:[#allocation274_spill] sm:$0xff]  ;;  %v23600_v53 = vld [vmem:[#allocation323_spill] sm:$0xff]  ;;  %v10985_v51 = vmax.f32 %v10977_v61, %v10983_v44  ;;  %v11175_v44 = vmax.f32 %v11171_v50, %v11173_v40 }
 0x7db   :  { %13334 = vmatmul.mubr.msk.f32.vlgmr.msra.gmra.mrb[154].mxu1 %vm9162_vm1, %v10626_v35 }
 0x7dc   :  { %15727 = vmatpush1.bf16.msra.mxu1 %v15726_v22  ;;  %10764 = vmatprep.mubr.f32.mxu1 %v16536_v24  ;;  %v23573_v22 = vld [vmem:[#allocation273_spill] sm:$0xff] }
 0x7dd   :  { %15729 = vmatprep.subr.bf16.mxu1 %v15728_v45  ;;  %v15758_v37 = vpack.c.bf16 %v23573_v22, %v23572_v49  ;;  %v23575_v45 = vld [vmem:[#allocation282_spill] sm:$0xff]  ;;  %v23604_v22 = vld [vmem:[#allocation301_spill] sm:$0xff] }
 0x7de   :  { %v15760_v56 = vpack.c.bf16 %v23575_v45, %v23574_v34  ;;  %v23606_v45 = vld [vmem:[#allocation310_spill] sm:$0xff] }
 0x7e0   :  { %15731 = vmatpush1.bf16.msra.mxu1 %v15730_v2  ;;  %v23577_v2 = vld [vmem:[#allocation281_spill] sm:$0xff] }
 0x7e1   :  { %15733 = vmatprep.subr.bf16.mxu1 %v15732_v1  ;;  %v15762_v62 = vpack.c.bf16 %v23577_v2, %v23576_v7  ;;  %v23579_v1 = vld [vmem:[#allocation290_spill] sm:$0xff]  ;;  %v23608_v2 = vld [vmem:[#allocation309_spill] sm:$0xff] }
 0x7e2   :  { %v15764_v52 = vpack.c.bf16 %v23579_v1, %v23578_v3  ;;  %v23610_v1 = vld [vmem:[#allocation318_spill] sm:$0xff] }
 0x7e4   :  { %15735 = vmatpush1.bf16.msra.mxu1 %v15734_v17  ;;  %v23581_v17 = vld [vmem:[#allocation289_spill] sm:$0xff] }
 0x7e5   :  { %15737 = vmatprep.subr.bf16.mxu1 %v15736_v5  ;;  %v15766_v12 = vpack.c.bf16 %v23581_v17, %v23580_v8  ;;  %v23583_v5 = vld [vmem:[#allocation298_spill] sm:$0xff]  ;;  %v23612_v17 = vld [vmem:[#allocation317_spill] sm:$0xff] }
 0x7e6   :  { %v15768_v48 = vpack.c.bf16 %v23583_v5, %v23582_v59  ;;  %v23614_v5 = vld [vmem:[#allocation326_spill] sm:$0xff] }
 0x7e8   :  { %15739 = vmatpush1.bf16.msra.mxu1 %v15738_v46  ;;  %v23585_v46 = vld [vmem:[#allocation297_spill] sm:$0xff] }
 0x7e9   :  { %15741 = vmatprep.subr.bf16.mxu1 %v15740_v6  ;;  %v15770_v29 = vpack.c.bf16 %v23585_v46, %v23584_v47  ;;  %v23587_v6 = vld [vmem:[#allocation304_spill] sm:$0xff]  ;;  %v23616_v46 = vld [vmem:[#allocation325_spill] sm:$0xff] }
 0x7ea   :  { %v15772_v63 = vpack.c.bf16 %v23587_v6, %v23586_v42  ;;  %v23618_v6 = vld [vmem:[#allocation332_spill] sm:$0xff] }
 0x7eb   :  { %13335 = vmatmul.mubr.msk.f32.vlgmr.msra.gmra.mrb[156].mxu1 %vm9162_vm1, %v10626_v35  ;;  %v15756_v35 = vpack.c.bf16 %v23571_v11, %v23570_v55  ;;  %v11021_v55 = vrot.slane %v10986_v41, 7  ;;  %v23602_v11 = vld [vmem:[#allocation302_spill] sm:$0xff] }
 0x7ec   :  { %15743 = vmatpush1.bf16.msra.mxu1 %v15742_v21  ;;  %10891 = vmatprep.mubr.f32.mxu1 %v16536_v24  ;;  %v23589_v21 = vld [vmem:[#allocation303_spill] sm:$0xff] }
 0x7ed   :  { %15745 = vmatprep.subr.bf16.mxu1 %v15744_v4  ;;  %v15774_v9 = vpack.c.bf16 %v23589_v21, %v23588_v28  ;;  %v23591_v4 = vld [vmem:[#allocation312_spill] sm:$0xff]  ;;  %v11022_v49 = vsel %vm9293_vm2, %v11021_v55, %v10985_v51  ;;  %v23620_v21 = vld [vmem:[#allocation331_spill] sm:$0xff] }
 0x7ee   :  { %v15776_v10 = vpack.c.bf16 %v23591_v4, %v23590_v19  ;;  %v11172_v19 = vld [vmem:[#allocation4 + $0x64] sm:$0x1]  ;;  %v23622_v4 = vld [vmem:[#allocation340_spill] sm:$0xff] }
 0x7ef   :  { %v11176_v43 = vmax.f32 %v11172_v19, %v11174_v20 }
 0x7f0   :  { %15747 = vmatpush1.bf16.msra.mxu1 %v15746_v16  ;;  %v23593_v16 = vld [vmem:[#allocation311_spill] sm:$0xff] }
 0x7f1   :  { %15749 = vmatprep.subr.bf16.mxu1 %v15748_v60  ;;  %v15778_v27 = vpack.c.bf16 %v23593_v16, %v23592_v31  ;;  %v23595_v60 = vld [vmem:[#allocation320_spill] sm:$0xff]  ;;  %v23624_v16 = vld [vmem:[#allocation339_spill] sm:$0xff] }
 0x7f2   :  { %v15780_v26 = vpack.c.bf16 %v23595_v60, %v23594_v32  ;;  %v11180_v31 = vld [vmem:[#allocation4 + $0x6d] sm:$0x1] }
 0x7f3   :  { %v11182_v32 = vmax.f32 %v11178_v39, %v11180_v31  ;;  %v23626_v60 = vld [vmem:[#allocation348_spill] sm:$0xff]  ;;  %v11372_v39 = vld [vmem:[#allocation4 + $0x67] sm:$0x1] }
 0x7f4   :  { %15751 = vmatpush1.bf16.msra.mxu1 %v15750_v30  ;;  %v23597_v30 = vld [vmem:[#allocation319_spill] sm:$0xff]  ;;  %v11376_v31 = vld [vmem:[#allocation4 + $0x6e] sm:$0x1] }
 0x7f5   :  { %15753 = vmatprep.subr.bf16.mxu1 %v15752_v23  ;;  %v15782_v36 = vpack.c.bf16 %v23597_v30, %v23596_v58  ;;  %v23599_v23 = vld [vmem:[#allocation328_spill] sm:$0xff]  ;;  %v23628_v30 = vld [vmem:[#allocation347_spill] sm:$0xff] }
 0x7f6   :  { %v15784_v25 = vpack.c.bf16 %v23599_v23, %v23598_v13  ;;  %v11179_v58 = vld [vmem:[#allocation4 + $0x2d] sm:$0x1]  ;;  %v11184_v13 = vmax.f32 %v11176_v43, %v11182_v32  ;;  %v11369_v43 = vld [vmem:[#allocation4 + $0x26] sm:$0x1] }
 0x7f7   :  { %v11181_v41 = vmax.f32 %v11177_v54, %v11179_v58  ;;  %v23630_v23 = vld [vmem:[#allocation356_spill] sm:$0xff]  ;;  %v11371_v54 = vld [vmem:[#allocation4 + $0x27] sm:$0x1] }
 0x7f8   :  { %15755 = vmatpush1.bf16.msra.mxu1 %v15754_v15  ;;  %v23601_v15 = vld [vmem:[#allocation327_spill] sm:$0xff]  ;;  %v11375_v58 = vld [vmem:[#allocation4 + $0x2e] sm:$0x1] }
 0x7f9   :  { %15757 = vmatprep.subr.bf16.mxu1 %v15756_v35  ;;  %v15786_v33 = vpack.c.bf16 %v23601_v15, %v23600_v53  ;;  %v23603_v35 = vld [vmem:[#allocation306_spill] sm:$0xff]  ;;  %v23632_v15 = vld [vmem:[#allocation355_spill] sm:$0xff]  ;;  %v11183_v55 = vmax.f32 %v11175_v44, %v11181_v41  ;;  %v11373_v41 = vmax.f32 %v11369_v43, %v11371_v54 }
 0x7fb   :  { %13336 = vmatmul.mubr.msk.f32.vlgmr.msra.gmra.mrb[154].mxu1 %vm9162_vm1, %v10824_v18 }
 0x7fc   :  { %15759 = vmatpush1.bf16.msra.mxu1 %v15758_v37  ;;  %10962 = vmatprep.mubr.f32.mxu1 %v16536_v24  ;;  %v23605_v37 = vld [vmem:[#allocation305_spill] sm:$0xff] }
 0x7fd   :  { %15761 = vmatprep.subr.bf16.mxu1 %v15760_v56  ;;  %v15790_v34 = vpack.c.bf16 %v23605_v37, %v23604_v22  ;;  %v23607_v56 = vld [vmem:[#allocation314_spill] sm:$0xff]  ;;  %v23636_v37 = vld [vmem:[#allocation333_spill] sm:$0xff] }
 0x7fe   :  { %v15792_v7 = vpack.c.bf16 %v23607_v56, %v23606_v45  ;;  %v23638_v56 = vld [vmem:[#allocation342_spill] sm:$0xff] }
 0x800   :  { %15763 = vmatpush1.bf16.msra.mxu1 %v15762_v62  ;;  %v23609_v62 = vld [vmem:[#allocation313_spill] sm:$0xff] }
 0x801   :  { %15765 = vmatprep.subr.bf16.mxu1 %v15764_v52  ;;  %v15794_v3 = vpack.c.bf16 %v23609_v62, %v23608_v2  ;;  %v23611_v52 = vld [vmem:[#allocation322_spill] sm:$0xff]  ;;  %v23640_v62 = vld [vmem:[#allocation341_spill] sm:$0xff] }
 0x802   :  { %v15796_v8 = vpack.c.bf16 %v23611_v52, %v23610_v1  ;;  %v23642_v52 = vld [vmem:[#allocation350_spill] sm:$0xff] }
 0x804   :  { %15767 = vmatpush1.bf16.msra.mxu1 %v15766_v12  ;;  %v23613_v12 = vld [vmem:[#allocation321_spill] sm:$0xff] }
 0x805   :  { %15769 = vmatprep.subr.bf16.mxu1 %v15768_v48  ;;  %v15798_v59 = vpack.c.bf16 %v23613_v12, %v23612_v17  ;;  %v23615_v48 = vld [vmem:[#allocation330_spill] sm:$0xff]  ;;  %v23644_v12 = vld [vmem:[#allocation349_spill] sm:$0xff] }
 0x806   :  { %v15800_v47 = vpack.c.bf16 %v23615_v48, %v23614_v5  ;;  %v23646_v48 = vld [vmem:[#allocation358_spill] sm:$0xff] }
 0x808   :  { %15771 = vmatpush1.bf16.msra.mxu1 %v15770_v29  ;;  %v23617_v29 = vld [vmem:[#allocation329_spill] sm:$0xff] }
 0x809   :  { %15773 = vmatprep.subr.bf16.mxu1 %v15772_v63  ;;  %v15802_v42 = vpack.c.bf16 %v23617_v29, %v23616_v46  ;;  %v23619_v63 = vld [vmem:[#allocation336_spill] sm:$0xff]  ;;  %v23648_v29 = vld [vmem:[#allocation357_spill] sm:$0xff] }
 0x80a   :  { %v15804_v28 = vpack.c.bf16 %v23619_v63, %v23618_v6  ;;  %v23650_v63 = vld [vmem:[#allocation364_spill] sm:$0xff] }
 0x80b   :  { %13337 = vmatmul.mubr.msk.f32.vlgmr.msra.gmra.mrb[156].mxu1 %vm9162_vm1, %v10824_v18  ;;  %v15788_v18 = vpack.c.bf16 %v23603_v35, %v23602_v11  ;;  %v11219_v11 = vrot.slane %v11184_v13, 7  ;;  %v23634_v35 = vld [vmem:[#allocation334_spill] sm:$0xff] }
 0x80c   :  { %15775 = vmatpush1.bf16.msra.mxu1 %v15774_v9  ;;  %11089 = vmatprep.mubr.f32.mxu1 %v16536_v24  ;;  %v23621_v9 = vld [vmem:[#allocation335_spill] sm:$0xff] }
 0x80d   :  { %15777 = vmatprep.subr.bf16.mxu1 %v15776_v10  ;;  %v15806_v0 = vpack.c.bf16 %v23621_v9, %v23620_v21  ;;  %v23623_v10 = vld [vmem:[#allocation344_spill] sm:$0xff]  ;;  %v11220_v22 = vsel %vm9293_vm2, %v11219_v11, %v11183_v55  ;;  %v23652_v9 = vld [vmem:[#allocation363_spill] sm:$0xff] }
 0x80e   :  { %v15808_v14 = vpack.c.bf16 %v23623_v10, %v23622_v4  ;;  %v11370_v4 = vld [vmem:[#allocation4 + $0x66] sm:$0x1]  ;;  %v23654_v10 = vld [vmem:[#allocation372_spill] sm:$0xff] }
 0x80f   :  { %v11374_v32 = vmax.f32 %v11370_v4, %v11372_v39 }
 0x810   :  { %15779 = vmatpush1.bf16.msra.mxu1 %v15778_v27  ;;  %v23625_v27 = vld [vmem:[#allocation343_spill] sm:$0xff] }
 0x811   :  { %15781 = vmatprep.subr.bf16.mxu1 %v15780_v26  ;;  %v15810_v38 = vpack.c.bf16 %v23625_v27, %v23624_v16  ;;  %v23627_v26 = vld [vmem:[#allocation352_spill] sm:$0xff]  ;;  %v23656_v27 = vld [vmem:[#allocation371_spill] sm:$0xff] }
 0x812   :  { %v15812_v57 = vpack.c.bf16 %v23627_v26, %v23626_v60  ;;  %v11378_v16 = vld [vmem:[#allocation4 + $0x6f] sm:$0x1] }
 0x813   :  { %v11380_v60 = vmax.f32 %v11376_v31, %v11378_v16  ;;  %v23658_v26 = vld [vmem:[#allocation380_spill] sm:$0xff]  ;;  %v11574_v16 = vld [vmem:[#allocation4 + $0x78] sm:$0x1] }
 0x814   :  { %15783 = vmatpush1.bf16.msra.mxu1 %v15782_v36  ;;  %v23629_v36 = vld [vmem:[#allocation351_spill] sm:$0xff]  ;;  %v11570_v31 = vld [vmem:[#allocation4 + $0x71] sm:$0x1] }
 0x815   :  { %15785 = vmatprep.subr.bf16.mxu1 %v15784_v25  ;;  %v15814_v61 = vpack.c.bf16 %v23629_v36, %v23628_v30  ;;  %v23631_v25 = vld [vmem:[#allocation360_spill] sm:$0xff]  ;;  %v23660_v36 = vld [vmem:[#allocation379_spill] sm:$0xff] }
 0x816   :  { %v15816_v53 = vpack.c.bf16 %v23631_v25, %v23630_v23  ;;  %v11377_v30 = vld [vmem:[#allocation4 + $0x2f] sm:$0x1]  ;;  %v11382_v23 = vmax.f32 %v11374_v32, %v11380_v60  ;;  %v11567_v32 = vld [vmem:[#allocation4 + $0x30] sm:$0x1] }
 0x817   :  { %v11379_v13 = vmax.f32 %v11375_v58, %v11377_v30  ;;  %v23662_v25 = vld [vmem:[#allocation388_spill] sm:$0xff]  ;;  %v11573_v30 = vld [vmem:[#allocation4 + $0x38] sm:$0x1] }
 0x818   :  { %15787 = vmatpush1.bf16.msra.mxu1 %v15786_v33  ;;  %v23633_v33 = vld [vmem:[#allocation359_spill] sm:$0xff]  ;;  %v11569_v58 = vld [vmem:[#allocation4 + $0x31] sm:$0x1] }
 0x819   :  { %15789 = vmatprep.subr.bf16.mxu1 %v15788_v18  ;;  %v15818_v51 = vpack.c.bf16 %v23633_v33, %v23632_v15  ;;  %v23635_v18 = vld [vmem:[#allocation338_spill] sm:$0xff]  ;;  %v23664_v33 = vld [vmem:[#allocation387_spill] sm:$0xff]  ;;  %v11381_v11 = vmax.f32 %v11373_v41, %v11379_v13  ;;  %v11571_v13 = vmax.f32 %v11567_v32, %v11569_v58 }
 0x81b   :  { %13338 = vmatmul.mubr.msk.f32.vlgmr.msra.gmra.mrb[154].mxu1 %vm9162_vm1, %v11022_v49 }
 0x81c   :  { %15791 = vmatpush1.bf16.msra.mxu1 %v15790_v34  ;;  %11160 = vmatprep.mubr.f32.mxu1 %v16536_v24  ;;  %v23637_v34 = vld [vmem:[#allocation337_spill] sm:$0xff] }
 0x81d   :  { %15793 = vmatprep.subr.bf16.mxu1 %v15792_v7  ;;  %v15822_v45 = vpack.c.bf16 %v23637_v34, %v23636_v37  ;;  %v23639_v7 = vld [vmem:[#allocation346_spill] sm:$0xff]  ;;  %v23668_v34 = vld [vmem:[#allocation365_spill] sm:$0xff] }
 0x81e   :  { %v15824_v2 = vpack.c.bf16 %v23639_v7, %v23638_v56  ;;  %v23670_v7 = vld [vmem:[#allocation374_spill] sm:$0xff] }
 0x820   :  { %15795 = vmatpush1.bf16.msra.mxu1 %v15794_v3  ;;  %v23641_v3 = vld [vmem:[#allocation345_spill] sm:$0xff] }
 0x821   :  { %15797 = vmatprep.subr.bf16.mxu1 %v15796_v8  ;;  %v15826_v1 = vpack.c.bf16 %v23641_v3, %v23640_v62  ;;  %v23643_v8 = vld [vmem:[#allocation354_spill] sm:$0xff]  ;;  %v23672_v3 = vld [vmem:[#allocation373_spill] sm:$0xff] }
 0x822   :  { %v15828_v17 = vpack.c.bf16 %v23643_v8, %v23642_v52  ;;  %v23674_v8 = vld [vmem:[#allocation382_spill] sm:$0xff] }
 0x824   :  { %15799 = vmatpush1.bf16.msra.mxu1 %v15798_v59  ;;  %v23645_v59 = vld [vmem:[#allocation353_spill] sm:$0xff] }
 0x825   :  { %15801 = vmatprep.subr.bf16.mxu1 %v15800_v47  ;;  %v15830_v5 = vpack.c.bf16 %v23645_v59, %v23644_v12  ;;  %v23647_v47 = vld [vmem:[#allocation362_spill] sm:$0xff]  ;;  %v23676_v59 = vld [vmem:[#allocation381_spill] sm:$0xff] }
 0x826   :  { %v15832_v46 = vpack.c.bf16 %v23647_v47, %v23646_v48  ;;  %v23678_v47 = vld [vmem:[#allocation390_spill] sm:$0xff] }
 0x828   :  { %15803 = vmatpush1.bf16.msra.mxu1 %v15802_v42  ;;  %v23649_v42 = vld [vmem:[#allocation361_spill] sm:$0xff] }
 0x829   :  { %15805 = vmatprep.subr.bf16.mxu1 %v15804_v28  ;;  %v15834_v6 = vpack.c.bf16 %v23649_v42, %v23648_v29  ;;  %v23651_v28 = vld [vmem:[#allocation368_spill] sm:$0xff]  ;;  %v23680_v42 = vld [vmem:[#allocation389_spill] sm:$0xff] }
 0x82a   :  { %v15836_v21 = vpack.c.bf16 %v23651_v28, %v23650_v63  ;;  %v23682_v28 = vld [vmem:[#allocation396_spill] sm:$0xff] }
 0x82b   :  { %13339 = vmatmul.mubr.msk.f32.vlgmr.msra.gmra.mrb[156].mxu1 %vm9162_vm1, %v11022_v49  ;;  %v15820_v49 = vpack.c.bf16 %v23635_v18, %v23634_v35  ;;  %v11417_v35 = vrot.slane %v11382_v23, 7  ;;  %v23666_v18 = vld [vmem:[#allocation366_spill] sm:$0xff] }
 0x82c   :  { %15807 = vmatpush1.bf16.msra.mxu1 %v15806_v0  ;;  %11287 = vmatprep.mubr.f32.mxu1 %v16536_v24  ;;  %v23653_v0 = vld [vmem:[#allocation367_spill] sm:$0xff] }
 0x82d   :  { %15809 = vmatprep.subr.bf16.mxu1 %v15808_v14  ;;  %v15838_v19 = vpack.c.bf16 %v23653_v0, %v23652_v9  ;;  %v23655_v14 = vld [vmem:[#allocation376_spill] sm:$0xff]  ;;  %v11418_v37 = vsel %vm9293_vm2, %v11417_v35, %v11381_v11  ;;  %v23684_v0 = vld [vmem:[#allocation395_spill] sm:$0xff] }
 0x82e   :  { %v15840_v20 = vpack.c.bf16 %v23655_v14, %v23654_v10  ;;  %v11568_v10 = vld [vmem:[#allocation4 + $0x70] sm:$0x1] }
 0x82f   :  { %v23686_v14 = vld [vmem:[#allocation404_spill] sm:$0xff]  ;;  %v11572_v60 = vmax.f32 %v11568_v10, %v11570_v31 }
 0x830   :  { %15811 = vmatpush1.bf16.msra.mxu1 %v15810_v38  ;;  %v23657_v38 = vld [vmem:[#allocation375_spill] sm:$0xff] }
 0x831   :  { %15813 = vmatprep.subr.bf16.mxu1 %v15812_v57  ;;  %v15842_v50 = vpack.c.bf16 %v23657_v38, %v23656_v27  ;;  %v23659_v57 = vld [vmem:[#allocation384_spill] sm:$0xff]  ;;  %v11576_v27 = vld [vmem:[#allocation4 + $0x79] sm:$0x1]  ;;  %v23688_v38 = vld [vmem:[#allocation403_spill] sm:$0xff] }
 0x832   :  { %v15844_v40 = vpack.c.bf16 %v23659_v57, %v23658_v26  ;;  %v11578_v26 = vmax.f32 %v11574_v16, %v11576_v27  ;;  %v23690_v57 = vld [vmem:[#allocation412_spill] sm:$0xff]  ;;  %v11768_v16 = vld [vmem:[#allocation4 + $0x73] sm:$0x1]  ;;  %v11772_v27 = vld [vmem:[#allocation4 + $0x7a] sm:$0x1] }
 0x834   :  { %15815 = vmatpush1.bf16.msra.mxu1 %v15814_v61  ;;  %v23661_v61 = vld [vmem:[#allocation383_spill] sm:$0xff] }
 0x835   :  { %15817 = vmatprep.subr.bf16.mxu1 %v15816_v53  ;;  %v15846_v44 = vpack.c.bf16 %v23661_v61, %v23660_v36  ;;  %v23663_v53 = vld [vmem:[#allocation392_spill] sm:$0xff]  ;;  %v11575_v36 = vld [vmem:[#allocation4 + $0x39] sm:$0x1]  ;;  %v23692_v61 = vld [vmem:[#allocation411_spill] sm:$0xff] }
 0x836   :  { %v15848_v15 = vpack.c.bf16 %v23663_v53, %v23662_v25  ;;  %v11577_v23 = vmax.f32 %v11573_v30, %v11575_v36  ;;  %v11580_v25 = vmax.f32 %v11572_v60, %v11578_v26  ;;  %v23694_v53 = vld [vmem:[#allocation420_spill] sm:$0xff]  ;;  %v11765_v60 = vld [vmem:[#allocation4 + $0x32] sm:$0x1]  ;;  %v11767_v30 = vld [vmem:[#allocation4 + $0x33] sm:$0x1] }
 0x837   :  { %v11771_v36 = vld [vmem:[#allocation4 + $0x3a] sm:$0x1] }
 0x838   :  { %15819 = vmatpush1.bf16.msra.mxu1 %v15818_v51  ;;  %v23665_v51 = vld [vmem:[#allocation391_spill] sm:$0xff]  ;;  %v11579_v35 = vmax.f32 %v11571_v13, %v11577_v23  ;;  %v11769_v23 = vmax.f32 %v11765_v60, %v11767_v30 }
 0x839   :  { %15821 = vmatprep.subr.bf16.mxu1 %v15820_v49  ;;  %v15850_v55 = vpack.c.bf16 %v23665_v51, %v23664_v33  ;;  %v23667_v49 = vld [vmem:[#allocation370_spill] sm:$0xff]  ;;  %v23696_v51 = vld [vmem:[#allocation419_spill] sm:$0xff] }
 0x83b   :  { %13340 = vmatmul.mubr.msk.f32.vlgmr.msra.gmra.mrb[154].mxu1 %vm9162_vm1, %v11220_v22 }
 0x83c   :  { %15823 = vmatpush1.bf16.msra.mxu1 %v15822_v45  ;;  %11358 = vmatprep.mubr.f32.mxu1 %v16536_v24  ;;  %v23669_v45 = vld [vmem:[#allocation369_spill] sm:$0xff] }
 0x83d   :  { %15825 = vmatprep.subr.bf16.mxu1 %v15824_v2  ;;  %v15854_v56 = vpack.c.bf16 %v23669_v45, %v23668_v34  ;;  %v23671_v2 = vld [vmem:[#allocation378_spill] sm:$0xff]  ;;  %v23700_v45 = vld [vmem:[#allocation397_spill] sm:$0xff] }
 0x83e   :  { %v15856_v62 = vpack.c.bf16 %v23671_v2, %v23670_v7  ;;  %v23702_v2 = vld [vmem:[#allocation406_spill] sm:$0xff] }
 0x840   :  { %15827 = vmatpush1.bf16.msra.mxu1 %v15826_v1  ;;  %v23673_v1 = vld [vmem:[#allocation377_spill] sm:$0xff] }
 0x841   :  { %15829 = vmatprep.subr.bf16.mxu1 %v15828_v17  ;;  %v15858_v52 = vpack.c.bf16 %v23673_v1, %v23672_v3  ;;  %v23675_v17 = vld [vmem:[#allocation386_spill] sm:$0xff]  ;;  %v23704_v1 = vld [vmem:[#allocation405_spill] sm:$0xff] }
 0x842   :  { %v15860_v12 = vpack.c.bf16 %v23675_v17, %v23674_v8  ;;  %v23706_v17 = vld [vmem:[#allocation414_spill] sm:$0xff] }
 0x844   :  { %15831 = vmatpush1.bf16.msra.mxu1 %v15830_v5  ;;  %v23677_v5 = vld [vmem:[#allocation385_spill] sm:$0xff] }
 0x845   :  { %15833 = vmatprep.subr.bf16.mxu1 %v15832_v46  ;;  %v15862_v48 = vpack.c.bf16 %v23677_v5, %v23676_v59  ;;  %v23679_v46 = vld [vmem:[#allocation394_spill] sm:$0xff]  ;;  %v23708_v5 = vld [vmem:[#allocation413_spill] sm:$0xff] }
 0x846   :  { %v15864_v29 = vpack.c.bf16 %v23679_v46, %v23678_v47  ;;  %v23710_v46 = vld [vmem:[#allocation422_spill] sm:$0xff] }
 0x848   :  { %15835 = vmatpush1.bf16.msra.mxu1 %v15834_v6  ;;  %v23681_v6 = vld [vmem:[#allocation393_spill] sm:$0xff] }
 0x849   :  { %15837 = vmatprep.subr.bf16.mxu1 %v15836_v21  ;;  %v15866_v63 = vpack.c.bf16 %v23681_v6, %v23680_v42  ;;  %v23683_v21 = vld [vmem:[#allocation400_spill] sm:$0xff]  ;;  %v23712_v6 = vld [vmem:[#allocation421_spill] sm:$0xff] }
 0x84a   :  { %v15868_v9 = vpack.c.bf16 %v23683_v21, %v23682_v28  ;;  %v23714_v21 = vld [vmem:[#allocation428_spill] sm:$0xff] }
 0x84b   :  { %13341 = vmatmul.mubr.msk.f32.vlgmr.msra.gmra.mrb[156].mxu1 %vm9162_vm1, %v11220_v22  ;;  %v15852_v22 = vpack.c.bf16 %v23667_v49, %v23666_v18  ;;  %v11615_v18 = vrot.slane %v11580_v25, 7  ;;  %v23698_v49 = vld [vmem:[#allocation398_spill] sm:$0xff] }
 0x84c   :  { %15839 = vmatpush1.bf16.msra.mxu1 %v15838_v19  ;;  %11485 = vmatprep.mubr.f32.mxu1 %v16536_v24  ;;  %v23685_v19 = vld [vmem:[#allocation399_spill] sm:$0xff] }
 0x84d   :  { %15841 = vmatprep.subr.bf16.mxu1 %v15840_v20  ;;  %v15870_v4 = vpack.c.bf16 %v23685_v19, %v23684_v0  ;;  %v23687_v20 = vld [vmem:[#allocation408_spill] sm:$0xff]  ;;  %v11616_v34 = vsel %vm9293_vm2, %v11615_v18, %v11579_v35  ;;  %v23716_v19 = vld [vmem:[#allocation427_spill] sm:$0xff] }
 0x84e   :  { %v15872_v39 = vpack.c.bf16 %v23687_v20, %v23686_v14  ;;  %v11766_v14 = vld [vmem:[#allocation4 + $0x72] sm:$0x1]  ;;  %v23718_v20 = vld [vmem:[#allocation436_spill] sm:$0xff] }
 0x84f   :  { %v11770_v26 = vmax.f32 %v11766_v14, %v11768_v16 }
 0x850   :  { %15843 = vmatpush1.bf16.msra.mxu1 %v15842_v50  ;;  %v23689_v50 = vld [vmem:[#allocation407_spill] sm:$0xff] }
 0x851   :  { %15845 = vmatprep.subr.bf16.mxu1 %v15844_v40  ;;  %v15874_v43 = vpack.c.bf16 %v23689_v50, %v23688_v38  ;;  %v23691_v40 = vld [vmem:[#allocation416_spill] sm:$0xff]  ;;  %v11774_v38 = vld [vmem:[#allocation4 + $0x7b] sm:$0x1]  ;;  %v23720_v50 = vld [vmem:[#allocation435_spill] sm:$0xff] }
 0x852   :  { %v15876_v54 = vpack.c.bf16 %v23691_v40, %v23690_v57  ;;  %v11776_v57 = vmax.f32 %v11772_v27, %v11774_v38  ;;  %v23722_v40 = vld [vmem:[#allocation444_spill] sm:$0xff]  ;;  %v11966_v27 = vld [vmem:[#allocation4 + $0x75] sm:$0x1]  ;;  %v11970_v38 = vld [vmem:[#allocation4 + $0x7c] sm:$0x1] }
 0x854   :  { %15847 = vmatpush1.bf16.msra.mxu1 %v15846_v44  ;;  %v23693_v44 = vld [vmem:[#allocation415_spill] sm:$0xff] }
 0x855   :  { %15849 = vmatprep.subr.bf16.mxu1 %v15848_v15  ;;  %v15878_v41 = vpack.c.bf16 %v23693_v44, %v23692_v61  ;;  %v23695_v15 = vld [vmem:[#allocation424_spill] sm:$0xff]  ;;  %v11773_v61 = vld [vmem:[#allocation4 + $0x3b] sm:$0x1]  ;;  %v23724_v44 = vld [vmem:[#allocation443_spill] sm:$0xff] }
 0x856   :  { %v15880_v33 = vpack.c.bf16 %v23695_v15, %v23694_v53  ;;  %v11775_v25 = vmax.f32 %v11771_v36, %v11773_v61  ;;  %v11778_v53 = vmax.f32 %v11770_v26, %v11776_v57  ;;  %v23726_v15 = vld [vmem:[#allocation452_spill] sm:$0xff]  ;;  %v11963_v26 = vld [vmem:[#allocation4 + $0x34] sm:$0x1]  ;;  %v11965_v36 = vld [vmem:[#allocation4 + $0x35] sm:$0x1] }
 0x857   :  { %v11969_v61 = vld [vmem:[#allocation4 + $0x3c] sm:$0x1] }
 0x858   :  { %15851 = vmatpush1.bf16.msra.mxu1 %v15850_v55  ;;  %v23697_v55 = vld [vmem:[#allocation423_spill] sm:$0xff]  ;;  %v11777_v18 = vmax.f32 %v11769_v23, %v11775_v25  ;;  %v11967_v25 = vmax.f32 %v11963_v26, %v11965_v36 }
 0x859   :  { %15853 = vmatprep.subr.bf16.mxu1 %v15852_v22  ;;  %v15882_v11 = vpack.c.bf16 %v23697_v55, %v23696_v51  ;;  %v23699_v22 = vld [vmem:[#allocation402_spill] sm:$0xff]  ;;  %v23728_v55 = vld [vmem:[#allocation451_spill] sm:$0xff] }
 0x85b   :  { %13342 = vmatmul.mubr.msk.f32.vlgmr.msra.gmra.mrb[154].mxu1 %vm9162_vm1, %v11418_v37 }
 0x85c   :  { %15855 = vmatpush1.bf16.msra.mxu1 %v15854_v56  ;;  %11556 = vmatprep.mubr.f32.mxu1 %v16536_v24  ;;  %v23701_v56 = vld [vmem:[#allocation401_spill] sm:$0xff] }
 0x85d   :  { %15857 = vmatprep.subr.bf16.mxu1 %v15856_v62  ;;  %v15886_v7 = vpack.c.bf16 %v23701_v56, %v23700_v45  ;;  %v23703_v62 = vld [vmem:[#allocation410_spill] sm:$0xff]  ;;  %v23732_v56 = vld [vmem:[#allocation429_spill] sm:$0xff] }
 0x85e   :  { %v15888_v3 = vpack.c.bf16 %v23703_v62, %v23702_v2  ;;  %v23734_v62 = vld [vmem:[#allocation438_spill] sm:$0xff] }
 0x860   :  { %15859 = vmatpush1.bf16.msra.mxu1 %v15858_v52  ;;  %v23705_v52 = vld [vmem:[#allocation409_spill] sm:$0xff] }
 0x861   :  { %15861 = vmatprep.subr.bf16.mxu1 %v15860_v12  ;;  %v15890_v8 = vpack.c.bf16 %v23705_v52, %v23704_v1  ;;  %v23707_v12 = vld [vmem:[#allocation418_spill] sm:$0xff]  ;;  %v23736_v52 = vld [vmem:[#allocation437_spill] sm:$0xff] }
 0x862   :  { %v15892_v59 = vpack.c.bf16 %v23707_v12, %v23706_v17  ;;  %v23738_v12 = vld [vmem:[#allocation446_spill] sm:$0xff] }
 0x864   :  { %15863 = vmatpush1.bf16.msra.mxu1 %v15862_v48  ;;  %v23709_v48 = vld [vmem:[#allocation417_spill] sm:$0xff] }
 0x865   :  { %15865 = vmatprep.subr.bf16.mxu1 %v15864_v29  ;;  %v15894_v47 = vpack.c.bf16 %v23709_v48, %v23708_v5  ;;  %v23711_v29 = vld [vmem:[#allocation426_spill] sm:$0xff]  ;;  %v23740_v48 = vld [vmem:[#allocation445_spill] sm:$0xff] }
 0x866   :  { %v15896_v42 = vpack.c.bf16 %v23711_v29, %v23710_v46  ;;  %v23742_v29 = vld [vmem:[#allocation454_spill] sm:$0xff] }
 0x868   :  { %15867 = vmatpush1.bf16.msra.mxu1 %v15866_v63  ;;  %v23713_v63 = vld [vmem:[#allocation425_spill] sm:$0xff] }
 0x869   :  { %15869 = vmatprep.subr.bf16.mxu1 %v15868_v9  ;;  %v15898_v28 = vpack.c.bf16 %v23713_v63, %v23712_v6  ;;  %v23715_v9 = vld [vmem:[#allocation432_spill] sm:$0xff]  ;;  %v23744_v63 = vld [vmem:[#allocation453_spill] sm:$0xff] }
 0x86a   :  { %v15900_v0 = vpack.c.bf16 %v23715_v9, %v23714_v21  ;;  %v23746_v9 = vld [vmem:[#allocation460_spill] sm:$0xff] }
 0x86b   :  { %13343 = vmatmul.mubr.msk.f32.vlgmr.msra.gmra.mrb[156].mxu1 %vm9162_vm1, %v11418_v37  ;;  %v15884_v37 = vpack.c.bf16 %v23699_v22, %v23698_v49  ;;  %v11813_v49 = vrot.slane %v11778_v53, 7  ;;  %v23730_v22 = vld [vmem:[#allocation430_spill] sm:$0xff] }
 0x86c   :  { %15871 = vmatpush1.bf16.msra.mxu1 %v15870_v4  ;;  %11683 = vmatprep.mubr.f32.mxu1 %v16536_v24  ;;  %v23717_v4 = vld [vmem:[#allocation431_spill] sm:$0xff] }
 0x86d   :  { %15873 = vmatprep.subr.bf16.mxu1 %v15872_v39  ;;  %v15902_v10 = vpack.c.bf16 %v23717_v4, %v23716_v19  ;;  %v23719_v39 = vld [vmem:[#allocation440_spill] sm:$0xff]  ;;  %v11814_v45 = vsel %vm9293_vm2, %v11813_v49, %v11777_v18  ;;  %v23748_v4 = vld [vmem:[#allocation459_spill] sm:$0xff] }
 0x86e   :  { %v15904_v31 = vpack.c.bf16 %v23719_v39, %v23718_v20  ;;  %v11964_v20 = vld [vmem:[#allocation4 + $0x74] sm:$0x1]  ;;  %v23750_v39 = vld [vmem:[#allocation468_spill] sm:$0xff] }
 0x86f   :  { %v11968_v57 = vmax.f32 %v11964_v20, %v11966_v27 }
 0x870   :  { %15875 = vmatpush1.bf16.msra.mxu1 %v15874_v43  ;;  %v23721_v43 = vld [vmem:[#allocation439_spill] sm:$0xff] }
 0x871   :  { %15877 = vmatprep.subr.bf16.mxu1 %v15876_v54  ;;  %v15906_v32 = vpack.c.bf16 %v23721_v43, %v23720_v50  ;;  %v23723_v54 = vld [vmem:[#allocation448_spill] sm:$0xff]  ;;  %v11972_v50 = vld [vmem:[#allocation4 + $0x7d] sm:$0x1]  ;;  %v23752_v43 = vld [vmem:[#allocation467_spill] sm:$0xff] }
 0x872   :  { %v15908_v58 = vpack.c.bf16 %v23723_v54, %v23722_v40  ;;  %v11974_v40 = vmax.f32 %v11970_v38, %v11972_v50  ;;  %v23754_v54 = vld [vmem:[#allocation476_spill] sm:$0xff]  ;;  %v12164_v38 = vld [vmem:[#allocation4 + $0x77] sm:$0x1]  ;;  %v12168_v50 = vld [vmem:[#allocation4 + $0x7e] sm:$0x1] }
 0x874   :  { %15879 = vmatpush1.bf16.msra.mxu1 %v15878_v41  ;;  %v23725_v41 = vld [vmem:[#allocation447_spill] sm:$0xff] }
 0x875   :  { %15881 = vmatprep.subr.bf16.mxu1 %v15880_v33  ;;  %v15910_v13 = vpack.c.bf16 %v23725_v41, %v23724_v44  ;;  %v23727_v33 = vld [vmem:[#allocation456_spill] sm:$0xff]  ;;  %v11971_v44 = vld [vmem:[#allocation4 + $0x3d] sm:$0x1]  ;;  %v23756_v41 = vld [vmem:[#allocation475_spill] sm:$0xff] }
 0x876   :  { %v15912_v51 = vpack.c.bf16 %v23727_v33, %v23726_v15  ;;  %v11973_v53 = vmax.f32 %v11969_v61, %v11971_v44  ;;  %v11976_v15 = vmax.f32 %v11968_v57, %v11974_v40  ;;  %v23758_v33 = vld [vmem:[#allocation484_spill] sm:$0xff]  ;;  %v12161_v57 = vld [vmem:[#allocation4 + $0x36] sm:$0x1]  ;;  %v12163_v61 = vld [vmem:[#allocation4 + $0x37] sm:$0x1] }
 0x877   :  { %v12167_v44 = vld [vmem:[#allocation4 + $0x3e] sm:$0x1] }
 0x878   :  { %15883 = vmatpush1.bf16.msra.mxu1 %v15882_v11  ;;  %v23729_v11 = vld [vmem:[#allocation455_spill] sm:$0xff]  ;;  %v11975_v49 = vmax.f32 %v11967_v25, %v11973_v53  ;;  %v12165_v53 = vmax.f32 %v12161_v57, %v12163_v61  ;;  %v12396_v61 = vld [vmem:[%s22644_s7 + $0x38] sm:$0xff] }
 0x879   :  { %15885 = vmatprep.subr.bf16.mxu1 %v15884_v37  ;;  %v15914_v35 = vpack.c.bf16 %v23729_v11, %v23728_v55  ;;  %v23731_v37 = vld [vmem:[#allocation434_spill] sm:$0xff]  ;;  %v23760_v11 = vld [vmem:[#allocation483_spill] sm:$0xff] }
 0x87a   :  { %v12394_v57 = vld [vmem:[%s22644_s7 + $0x28] sm:$0xff] }
 0x87b   :  { %13344 = vmatmul.mubr.msk.f32.vlgmr.msra.gmra.mrb[154].mxu1 %vm9162_vm1, %v11616_v34 }
 0x87c   :  { %15887 = vmatpush1.bf16.msra.mxu1 %v15886_v7  ;;  %11754 = vmatprep.mubr.f32.mxu1 %v16536_v24  ;;  %v23733_v7 = vld [vmem:[#allocation433_spill] sm:$0xff] }
 0x87d   :  { %15889 = vmatprep.subr.bf16.mxu1 %v15888_v3  ;;  %v15918_v2 = vpack.c.bf16 %v23733_v7, %v23732_v56  ;;  %v23735_v3 = vld [vmem:[#allocation442_spill] sm:$0xff]  ;;  %v23764_v7 = vld [vmem:[#allocation461_spill] sm:$0xff] }
 0x87e   :  { %v15920_v1 = vpack.c.bf16 %v23735_v3, %v23734_v62  ;;  %v23766_v3 = vld [vmem:[#allocation470_spill] sm:$0xff] }
 0x880   :  { %15891 = vmatpush1.bf16.msra.mxu1 %v15890_v8  ;;  %v23737_v8 = vld [vmem:[#allocation441_spill] sm:$0xff] }
 0x881   :  { %15893 = vmatprep.subr.bf16.mxu1 %v15892_v59  ;;  %v15922_v17 = vpack.c.bf16 %v23737_v8, %v23736_v52  ;;  %v23739_v59 = vld [vmem:[#allocation450_spill] sm:$0xff]  ;;  %v23768_v8 = vld [vmem:[#allocation469_spill] sm:$0xff] }
 0x882   :  { %v15924_v5 = vpack.c.bf16 %v23739_v59, %v23738_v12  ;;  %v23770_v59 = vld [vmem:[#allocation478_spill] sm:$0xff] }
 0x884   :  { %15895 = vmatpush1.bf16.msra.mxu1 %v15894_v47  ;;  %v23741_v47 = vld [vmem:[#allocation449_spill] sm:$0xff] }
 0x885   :  { %15897 = vmatprep.subr.bf16.mxu1 %v15896_v42  ;;  %v15926_v46 = vpack.c.bf16 %v23741_v47, %v23740_v48  ;;  %v23743_v42 = vld [vmem:[#allocation458_spill] sm:$0xff]  ;;  %v23772_v47 = vld [vmem:[#allocation477_spill] sm:$0xff] }
 0x886   :  { %v15928_v6 = vpack.c.bf16 %v23743_v42, %v23742_v29  ;;  %v23774_v42 = vld [vmem:[#allocation486_spill] sm:$0xff] }
 0x888   :  { %15899 = vmatpush1.bf16.msra.mxu1 %v15898_v28  ;;  %v23745_v28 = vld [vmem:[#allocation457_spill] sm:$0xff] }
 0x889   :  { %15901 = vmatprep.subr.bf16.mxu1 %v15900_v0  ;;  %v15930_v21 = vpack.c.bf16 %v23745_v28, %v23744_v63  ;;  %v23747_v0 = vld [vmem:[#allocation464_spill] sm:$0xff]  ;;  %v23776_v28 = vld [vmem:[#allocation485_spill] sm:$0xff] }
 0x88a   :  { %v15932_v19 = vpack.c.bf16 %v23747_v0, %v23746_v9  ;;  %v23778_v0 = vld [vmem:[#allocation492_spill] sm:$0xff] }
 0x88b   :  { %13345 = vmatmul.mubr.msk.f32.vlgmr.msra.gmra.mrb[156].mxu1 %vm9162_vm1, %v11616_v34  ;;  %v15916_v34 = vpack.c.bf16 %v23731_v37, %v23730_v22  ;;  %v12011_v22 = vrot.slane %v11976_v15, 7  ;;  %v23762_v37 = vld [vmem:[#allocation462_spill] sm:$0xff] }
 0x88c   :  { %15903 = vmatpush1.bf16.msra.mxu1 %v15902_v10  ;;  %11881 = vmatprep.mubr.f32.mxu1 %v16536_v24  ;;  %v23749_v10 = vld [vmem:[#allocation463_spill] sm:$0xff] }
 0x88d   :  { %15905 = vmatprep.subr.bf16.mxu1 %v15904_v31  ;;  %v15934_v14 = vpack.c.bf16 %v23749_v10, %v23748_v4  ;;  %v23751_v31 = vld [vmem:[#allocation472_spill] sm:$0xff]  ;;  %v12012_v56 = vsel %vm9293_vm2, %v12011_v22, %v11975_v49  ;;  %v23780_v10 = vld [vmem:[#allocation491_spill] sm:$0xff] }
 0x88e   :  { %v15936_v16 = vpack.c.bf16 %v23751_v31, %v23750_v39  ;;  %v12162_v39 = vld [vmem:[#allocation4 + $0x76] sm:$0x1]  ;;  %v23782_v31 = vld [vmem:[#allocation500_spill] sm:$0xff] }
 0x88f   :  { %v12166_v40 = vmax.f32 %v12162_v39, %v12164_v38  ;;  %v12408_v39 = vld [vmem:[%s22644_s7 + $0x98] sm:$0xff] }
 0x890   :  { %15907 = vmatpush1.bf16.msra.mxu1 %v15906_v32  ;;  %v23753_v32 = vld [vmem:[#allocation471_spill] sm:$0xff]  ;;  %v12392_v38 = vld [vmem:[%s22644_s7 + $0x18] sm:$0xff] }
 0x891   :  { %15909 = vmatprep.subr.bf16.mxu1 %v15908_v58  ;;  %v15938_v60 = vpack.c.bf16 %v23753_v32, %v23752_v43  ;;  %v23755_v58 = vld [vmem:[#allocation480_spill] sm:$0xff]  ;;  %v12170_v43 = vld [vmem:[#allocation4 + $0x7f] sm:$0x1]  ;;  %v23784_v32 = vld [vmem:[#allocation499_spill] sm:$0xff] }
 0x892   :  { %v15940_v30 = vpack.c.bf16 %v23755_v58, %v23754_v54  ;;  %v12172_v54 = vmax.f32 %v12168_v50, %v12170_v43  ;;  %v23786_v58 = vld [vmem:[#allocation508_spill] sm:$0xff]  ;;  %v12409_v50 = vld [vmem:[%s22644_s7 + $0xa0] sm:$0xff] }
 0x893   :  { %v12410_v43 = vld [vmem:[%s22644_s7 + $0xa8] sm:$0xff] }
 0x894   :  { %15911 = vmatpush1.bf16.msra.mxu1 %v15910_v13  ;;  %v23757_v13 = vld [vmem:[#allocation479_spill] sm:$0xff] }
 0x895   :  { %15913 = vmatprep.subr.bf16.mxu1 %v15912_v51  ;;  %v15942_v23 = vpack.c.bf16 %v23757_v13, %v23756_v41  ;;  %v23759_v51 = vld [vmem:[#allocation488_spill] sm:$0xff]  ;;  %v12169_v41 = vld [vmem:[#allocation4 + $0x3f] sm:$0x1]  ;;  %v23788_v13 = vld [vmem:[#allocation507_spill] sm:$0xff] }
 0x896   :  { %v15944_v55 = vpack.c.bf16 %v23759_v51, %v23758_v33  ;;  %v12171_v15 = vmax.f32 %v12167_v44, %v12169_v41  ;;  %v12174_v33 = vmax.f32 %v12166_v40, %v12172_v54  ;;  %v23790_v51 = vld [vmem:[#allocation516_spill] sm:$0xff]  ;;  %v12412_v54 = vld [vmem:[%s22644_s7 + $0xb8] sm:$0xff]  ;;  %v12413_v44 = vld [vmem:[%s22644_s7 + $0xc0] sm:$0xff] }
 0x897   :  { %v12411_v40 = vld [vmem:[%s22644_s7 + $0xb0] sm:$0xff]  ;;  %v12414_v41 = vld [vmem:[%s22644_s7 + $0xc8] sm:$0xff] }
 0x898   :  { %15915 = vmatpush1.bf16.msra.mxu1 %v15914_v35  ;;  %v23761_v35 = vld [vmem:[#allocation487_spill] sm:$0xff]  ;;  %v12173_v22 = vmax.f32 %v12165_v53, %v12171_v15  ;;  %v12415_v15 = vld [vmem:[%s22644_s7 + $0xd0] sm:$0xff] }
 0x899   :  { %15917 = vmatprep.subr.bf16.mxu1 %v15916_v34  ;;  %v15946_v18 = vpack.c.bf16 %v23761_v35, %v23760_v11  ;;  %v23763_v34 = vld [vmem:[#allocation466_spill] sm:$0xff]  ;;  %v23792_v35 = vld [vmem:[#allocation515_spill] sm:$0xff] }
 0x89a   :  { %v12398_v53 = vld [vmem:[%s22644_s7 + $0x48] sm:$0xff] }
 0x89b   :  { %13346 = vmatmul.mubr.msk.f32.vlgmr.msra.gmra.mrb[154].mxu1 %vm9162_vm1, %v11814_v45 }
 0x89c   :  { %15919 = vmatpush1.bf16.msra.mxu1 %v15918_v2  ;;  %11952 = vmatprep.mubr.f32.mxu1 %v16536_v24  ;;  %v23765_v2 = vld [vmem:[#allocation465_spill] sm:$0xff] }
 0x89d   :  { %15921 = vmatprep.subr.bf16.mxu1 %v15920_v1  ;;  %v15950_v62 = vpack.c.bf16 %v23765_v2, %v23764_v7  ;;  %v23767_v1 = vld [vmem:[#allocation474_spill] sm:$0xff]  ;;  %v23796_v2 = vld [vmem:[#allocation493_spill] sm:$0xff] }
 0x89e   :  { %v15952_v52 = vpack.c.bf16 %v23767_v1, %v23766_v3  ;;  %v23798_v1 = vld [vmem:[#allocation502_spill] sm:$0xff] }
 0x8a0   :  { %15923 = vmatpush1.bf16.msra.mxu1 %v15922_v17  ;;  %v23769_v17 = vld [vmem:[#allocation473_spill] sm:$0xff] }
 0x8a1   :  { %15925 = vmatprep.subr.bf16.mxu1 %v15924_v5  ;;  %v15954_v12 = vpack.c.bf16 %v23769_v17, %v23768_v8  ;;  %v23771_v5 = vld [vmem:[#allocation482_spill] sm:$0xff]  ;;  %v23800_v17 = vld [vmem:[#allocation501_spill] sm:$0xff] }
 0x8a2   :  { %v15956_v48 = vpack.c.bf16 %v23771_v5, %v23770_v59  ;;  %v23802_v5 = vld [vmem:[#allocation510_spill] sm:$0xff] }
 0x8a4   :  { %15927 = vmatpush1.bf16.msra.mxu1 %v15926_v46  ;;  %v23773_v46 = vld [vmem:[#allocation481_spill] sm:$0xff] }
 0x8a5   :  { %15929 = vmatprep.subr.bf16.mxu1 %v15928_v6  ;;  %v15958_v29 = vpack.c.bf16 %v23773_v46, %v23772_v47  ;;  %v23775_v6 = vld [vmem:[#allocation490_spill] sm:$0xff]  ;;  %v23804_v46 = vld [vmem:[#allocation509_spill] sm:$0xff] }
 0x8a6   :  { %v15960_v63 = vpack.c.bf16 %v23775_v6, %v23774_v42  ;;  %v23806_v6 = vld [vmem:[#allocation518_spill] sm:$0xff] }
 0x8a8   :  { %15931 = vmatpush1.bf16.msra.mxu1 %v15930_v21  ;;  %v23777_v21 = vld [vmem:[#allocation489_spill] sm:$0xff] }
 0x8a9   :  { %15933 = vmatprep.subr.bf16.mxu1 %v15932_v19  ;;  %v15962_v9 = vpack.c.bf16 %v23777_v21, %v23776_v28  ;;  %v23779_v19 = vld [vmem:[#allocation496_spill] sm:$0xff]  ;;  %v12405_v21 = vld [vmem:[%s22644_s7 + $0x80] sm:$0xff] }
 0x8aa   :  { %v15964_v4 = vpack.c.bf16 %v23779_v19, %v23778_v0  ;;  %v23809_v0 = vld [vmem:[#allocation521_spill] sm:$0xff] }
 0x8ab   :  { %13347 = vmatmul.mubr.msk.f32.vlgmr.msra.gmra.mrb[156].mxu1 %vm9162_vm1, %v11814_v45  ;;  %v15948_v45 = vpack.c.bf16 %v23763_v34, %v23762_v37  ;;  %v12209_v37 = vrot.slane %v12174_v33, 7  ;;  %v23794_v34 = vld [vmem:[#allocation494_spill] sm:$0xff] }
 0x8ac   :  { %15935 = vmatpush1.bf16.msra.mxu1 %v15934_v14  ;;  %12079 = vmatprep.mubr.f32.mxu1 %v16536_v24  ;;  %v23781_v14 = vld [vmem:[#allocation495_spill] sm:$0xff]  ;;  %v12416_v33 = vld [vmem:[%s22644_s7 + $0xd8] sm:$0xff] }
 0x8ad   :  { %15937 = vmatprep.subr.bf16.mxu1 %v15936_v16  ;;  %v15966_v20 = vpack.c.bf16 %v23781_v14, %v23780_v10  ;;  %v23783_v16 = vld [vmem:[#allocation504_spill] sm:$0xff]  ;;  %v12210_v7 = vsel %vm9293_vm2, %v12209_v37, %v12173_v22  ;;  %v12389_v10 = vld [vmem:[%s22644_s7] sm:$0xff] }
 0x8ae   :  { %v15968_v27 = vpack.c.bf16 %v23783_v16, %v23782_v31  ;;  %v12390_v14 = vld [vmem:[%s22644_s7 + $0x8] sm:$0xff] }
 0x8af   :  { %v15998_v31 = vpack.c.bf16 %v12390_v14, %v12389_v10 }
 0x8b0   :  { %15939 = vmatpush1.bf16.msra.mxu1 %v15938_v60  ;;  %v23785_v60 = vld [vmem:[#allocation503_spill] sm:$0xff] }
 0x8b1   :  { %15941 = vmatprep.subr.bf16.mxu1 %v15940_v30  ;;  %v15970_v26 = vpack.c.bf16 %v23785_v60, %v23784_v32  ;;  %v23787_v30 = vld [vmem:[#allocation512_spill] sm:$0xff]  ;;  %v16004_v60 = vpack.c.bf16 %v12410_v43, %v12409_v50  ;;  %v12425_v43 = vld [vmem:[%s22644_s7 + $0x120] sm:$0xff] }
 0x8b2   :  { %v15972_v36 = vpack.c.bf16 %v23787_v30, %v23786_v58  ;;  %v16008_v30 = vpack.c.bf16 %v12412_v54, %v12411_v40 }
 0x8b4   :  { %15943 = vmatpush1.bf16.msra.mxu1 %v15942_v23  ;;  %v23789_v23 = vld [vmem:[#allocation511_spill] sm:$0xff] }
 0x8b5   :  { %15945 = vmatprep.subr.bf16.mxu1 %v15944_v55  ;;  %v15974_v25 = vpack.c.bf16 %v23789_v23, %v23788_v13  ;;  %v23791_v55 = vld [vmem:[#allocation520_spill] sm:$0xff]  ;;  %v16012_v23 = vpack.c.bf16 %v12414_v41, %v12413_v44 }
 0x8b6   :  { %v15976_v11 = vpack.c.bf16 %v23791_v55, %v23790_v51  ;;  %v16016_v55 = vpack.c.bf16 %v12416_v33, %v12415_v15  ;;  %v12446_v44 = vld [vmem:[%s22644_s7 + $0x1c8] sm:$0xff] }
 0x8b7   :  { %v12430_v15 = vld [vmem:[%s22644_s7 + $0x148] sm:$0xff] }
 0x8b8   :  { %15947 = vmatpush1.bf16.msra.mxu1 %v15946_v18  ;;  %v23793_v18 = vld [vmem:[#allocation519_spill] sm:$0xff] }
 0x8b9   :  { %15949 = vmatprep.subr.bf16.mxu1 %v15948_v45  ;;  %v15978_v49 = vpack.c.bf16 %v23793_v18, %v23792_v35  ;;  %v23795_v45 = vld [vmem:[#allocation498_spill] sm:$0xff] }
 0x8ba   :  { %v12400_v35 = vld [vmem:[%s22644_s7 + $0x58] sm:$0xff]  ;;  %v12417_v18 = vld [vmem:[%s22644_s7 + $0xe0] sm:$0xff] }
 0x8bb   :  { %13348 = vmatmul.mubr.msk.f32.vlgmr.msra.gmra.mrb[154].mxu1 %vm9162_vm1, %v12012_v56 }
 0x8bc   :  { %15951 = vmatpush1.bf16.msra.mxu1 %v15950_v62  ;;  %12150 = vmatprep.mubr.f32.mxu1 %v16536_v24  ;;  %v23797_v62 = vld [vmem:[#allocation497_spill] sm:$0xff] }
 0x8bd   :  { %15953 = vmatprep.subr.bf16.mxu1 %v15952_v52  ;;  %v15982_v3 = vpack.c.bf16 %v23797_v62, %v23796_v2  ;;  %v23799_v52 = vld [vmem:[#allocation506_spill] sm:$0xff] }
 0x8be   :  { %v15984_v8 = vpack.c.bf16 %v23799_v52, %v23798_v1  ;;  %v12420_v2 = vld [vmem:[%s22644_s7 + $0xf8] sm:$0xff] }
 0x8bf   :  { %v12404_v1 = vld [vmem:[%s22644_s7 + $0x78] sm:$0xff] }
 0x8c0   :  { %15955 = vmatpush1.bf16.msra.mxu1 %v15954_v12  ;;  %v23801_v12 = vld [vmem:[#allocation505_spill] sm:$0xff] }
 0x8c1   :  { %15957 = vmatprep.subr.bf16.mxu1 %v15956_v48  ;;  %v15986_v59 = vpack.c.bf16 %v23801_v12, %v23800_v17  ;;  %v23803_v48 = vld [vmem:[#allocation514_spill] sm:$0xff]  ;;  %v12438_v17 = vld [vmem:[%s22644_s7 + $0x188] sm:$0xff] }
 0x8c2   :  { %v15988_v47 = vpack.c.bf16 %v23803_v48, %v23802_v5 }
 0x8c4   :  { %15959 = vmatpush1.bf16.msra.mxu1 %v15958_v29  ;;  %v23805_v29 = vld [vmem:[#allocation513_spill] sm:$0xff] }
 0x8c5   :  { %15961 = vmatprep.subr.bf16.mxu1 %v15960_v63  ;;  %v15990_v42 = vpack.c.bf16 %v23805_v29, %v23804_v46  ;;  %v23807_v63 = vld [vmem:[#allocation522_spill] sm:$0xff] }
 0x8c6   :  { %v15992_v28 = vpack.c.bf16 %v23807_v63, %v23806_v6 }
 0x8c8   :  { %15963 = vmatpush1.bf16.msra.mxu1 %v15962_v9  ;;  %v23808_v9 = vld [vmem:[#allocation517_spill] sm:$0xff] }
 0x8c9   :  { %15965 = vmatprep.subr.bf16.mxu1 %v15964_v4  ;;  %v15994_v19 = vpack.c.bf16 %v23809_v0, %v23808_v9  ;;  %v12439_v0 = vld [vmem:[%s22644_s7 + $0x190] sm:$0xff] }
 0x8cb   :  { %13349 = vmatmul.mubr.msk.f32.vlgmr.msra.gmra.mrb[156].mxu1 %vm9162_vm1, %v12012_v56  ;;  %v15980_v56 = vpack.c.bf16 %v23795_v45, %v23794_v34  ;;  %v12401_v34 = vld [vmem:[%s22644_s7 + $0x60] sm:$0xff]  ;;  %v12402_v45 = vld [vmem:[%s22644_s7 + $0x68] sm:$0xff] }
 0x8cc   :  { %15967 = vmatpush1.bf16.msra.mxu1 %v15966_v20  ;;  %12277 = vmatprep.mubr.f32.mxu1 %v16536_v24  ;;  %v12407_v20 = vld [vmem:[%s22644_s7 + $0x90] sm:$0xff] }
 0x8cd   :  { %15969 = vmatprep.subr.bf16.mxu1 %v15968_v27  ;;  %v16000_v16 = vpack.c.bf16 %v12408_v39, %v12407_v20  ;;  %v12391_v27 = vld [vmem:[%s22644_s7 + $0x10] sm:$0xff] }
 0x8ce   :  { %v16002_v32 = vpack.c.bf16 %v12392_v38, %v12391_v27  ;;  %v12423_v39 = vld [vmem:[%s22644_s7 + $0x110] sm:$0xff]  ;;  %v12442_v27 = vld [vmem:[%s22644_s7 + $0x1a8] sm:$0xff] }
 0x8d0   :  { %15971 = vmatpush1.bf16.msra.mxu1 %v15970_v26  ;;  %v12393_v26 = vld [vmem:[%s22644_s7 + $0x20] sm:$0xff] }
 0x8d1   :  { %15973 = vmatprep.subr.bf16.mxu1 %v15972_v36  ;;  %v16006_v58 = vpack.c.bf16 %v12394_v57, %v12393_v26  ;;  %v12395_v36 = vld [vmem:[%s22644_s7 + $0x30] sm:$0xff]  ;;  %v12444_v57 = vld [vmem:[%s22644_s7 + $0x1b8] sm:$0xff] }
 0x8d2   :  { %v16010_v13 = vpack.c.bf16 %v12396_v61, %v12395_v36  ;;  %v12443_v26 = vld [vmem:[%s22644_s7 + $0x1b0] sm:$0xff]  ;;  %v12445_v61 = vld [vmem:[%s22644_s7 + $0x1c0] sm:$0xff] }
 0x8d3   :  { %v16040_v54 = vpack.c.bf16 %v12444_v57, %v12443_v26 }
 0x8d4   :  { %15975 = vmatpush1.bf16.msra.mxu1 %v15974_v25  ;;  %v12397_v25 = vld [vmem:[%s22644_s7 + $0x40] sm:$0xff] }
 0x8d5   :  { %15977 = vmatprep.subr.bf16.mxu1 %v15976_v11  ;;  %v16014_v51 = vpack.c.bf16 %v12398_v53, %v12397_v25  ;;  %v12399_v11 = vld [vmem:[%s22644_s7 + $0x50] sm:$0xff]  ;;  %v16044_v25 = vpack.c.bf16 %v12446_v44, %v12445_v61  ;;  %v12429_v53 = vld [vmem:[%s22644_s7 + $0x140] sm:$0xff] }
 0x8d6   :  { %v16018_v22 = vpack.c.bf16 %v12400_v35, %v12399_v11  ;;  %v16046_v35 = vpack.c.bf16 %v12430_v15, %v12429_v53 }
 0x8d8   :  { %15979 = vmatpush1.bf16.msra.mxu1 %v15978_v49  ;;  %v12418_v49 = vld [vmem:[%s22644_s7 + $0xe8] sm:$0xff] }
 0x8d9   :  { %15981 = vmatprep.subr.bf16.mxu1 %v15980_v56  ;;  %v16020_v37 = vpack.c.bf16 %v12418_v49, %v12417_v18  ;;  %v16022_v56 = vpack.c.bf16 %v12402_v45, %v12401_v34  ;;  %v12431_v49 = vld [vmem:[%s22644_s7 + $0x150] sm:$0xff]  ;;  %v12450_v34 = vld [vmem:[%s22644_s7 + $0x1e8] sm:$0xff] }
 0x8db   :  { %13350 = vmatmul.mubr.msk.f32.vlgmr.msra.gmra.mrb[154].mxu1 %vm9162_vm1, %v12210_v7 }
 0x8dc   :  { %15983 = vmatpush1.bf16.msra.mxu1 %v15982_v3  ;;  %12348 = vmatprep.mubr.f32.mxu1 %v16536_v24  ;;  %v12406_v24 = vld [vmem:[%s22644_s7 + $0x88] sm:$0xff]  ;;  %v12403_v3 = vld [vmem:[%s22644_s7 + $0x70] sm:$0xff] }
 0x8dd   :  { %15985 = vmatprep.subr.bf16.mxu1 %v15984_v8  ;;  %v15996_v4 = vpack.c.bf16 %v12406_v24, %v12405_v21  ;;  %v16026_v52 = vpack.c.bf16 %v12404_v1, %v12403_v3  ;;  %v12437_v8 = vld [vmem:[%s22644_s7 + $0x180] sm:$0xff]  ;;  %v12422_v24 = vld [vmem:[%s22644_s7 + $0x108] sm:$0xff]  ;;  %v12451_v3 = vld [vmem:[%s22644_s7 + $0x1f0] sm:$0xff] }
 0x8de   :  { %v16028_v12 = vpack.c.bf16 %v12438_v17, %v12437_v8  ;;  %v12421_v21 = vld [vmem:[%s22644_s7 + $0x100] sm:$0xff]  ;;  %v12452_v1 = vld [vmem:[%s22644_s7 + $0x1f8] sm:$0xff] }
 0x8df   :  { %v16030_v10 = vpack.c.bf16 %v12422_v24, %v12421_v21  ;;  %v16056_v17 = vpack.c.bf16 %v12452_v1, %v12451_v3 }
 0x8e0   :  { %15987 = vmatpush1.bf16.msra.mxu1 %v15986_v59  ;;  %v12361_v59 = vlaneseq }
 0x8e1   :  { %15989 = vmatprep.subr.bf16.mxu1 %v15988_v47  ;;  %v22523_v47 = vld [vmem:[%s22643_s6] sm:$0xf] }
 0x8e2   :  { %v22517_v5 = vshrl.u32 %v12361_v59, 7  ;;  %v12436_v59 = vld [vmem:[%s22644_s7 + $0x178] sm:$0xff] }
 0x8e4   :  { %15991 = vmatpush1.bf16.msra.mxu1 %v15990_v42  ;;  %v12363_v48 = vsub.s32 0, %v22517_v5  ;;  %v12367_v46 = vsub.s32 1, %v22517_v5 }
 0x8e5   :  { %15993 = vmatprep.subr.bf16.mxu1 %v15992_v28 }
 0x8e6   :  { %v12364_v29 = vrot.slane %v22523_v47, %v12363_v48  ;;  %v12368_v42 = vrot.slane %v22523_v47, %v12367_v46 }
 0x8e8   :  { %15995 = vmatpush1.bf16.msra.mxu1 %v15994_v19  ;;  %v12440_v19 = vld [vmem:[%s22644_s7 + $0x198] sm:$0xff] }
 0x8e9   :  { %15997 = vmatprep.subr.bf16.mxu1 %v15996_v4  ;;  %v16032_v20 = vpack.c.bf16 %v12440_v19, %v12439_v0 }
 0x8eb   :  { %13351 = vmatmul.mubr.msk.f32.vlgmr.msra.gmra.mrb[156].mxu1 %vm9162_vm1, %v12210_v7  ;;  %v12419_v7 = vld [vmem:[%s22644_s7 + $0xf0] sm:$0xff] }
 0x8ec   :  { %15999 = vmatpush3.bf16.msra.mxu1 %v15998_v31  ;;  %v16024_v62 = vpack.c.bf16 %v12420_v2, %v12419_v7  ;;  %v12424_v31 = vld [vmem:[%s22644_s7 + $0x118] sm:$0xff]  ;;  %v12433_v2 = vld [vmem:[%s22644_s7 + $0x160] sm:$0xff] }
 0x8ed   :  { %16001 = vmatprep.subr.bf16.mxu1 %v16000_v16  ;;  %v12441_v16 = vld [vmem:[%s22644_s7 + $0x1a0] sm:$0xff]  ;;  %v16034_v38 = vpack.c.bf16 %v12424_v31, %v12423_v39 }
 0x8ee   :  { %v16036_v50 = vpack.c.bf16 %v12442_v27, %v12441_v16 }
 0x8f0   :  { %16003 = vmatpush3.bf16.msra.mxu1 %v16002_v32  ;;  %v12426_v32 = vld [vmem:[%s22644_s7 + $0x128] sm:$0xff] }
 0x8f1   :  { %16005 = vmatprep.subr.bf16.mxu1 %v16004_v60  ;;  %v12375_v60 = vsub.s32 3, %v22517_v5  ;;  %v16038_v40 = vpack.c.bf16 %v12426_v32, %v12425_v43 }
 0x8f3   :  { %v12376_v36 = vrot.slane %v22523_v47, %v12375_v60 }
 0x8f4   :  { %16007 = vmatpush3.bf16.msra.mxu1 %v16006_v58  ;;  %v12427_v58 = vld [vmem:[%s22644_s7 + $0x130] sm:$0xff] }
 0x8f5   :  { %16009 = vmatprep.subr.bf16.mxu1 %v16008_v30  ;;  %v12428_v30 = vld [vmem:[%s22644_s7 + $0x138] sm:$0xff] }
 0x8f8   :  { %16011 = vmatpush3.bf16.msra.mxu1 %v16010_v13  ;;  %v16042_v13 = vpack.c.bf16 %v12428_v30, %v12427_v58 }
 0x8f9   :  { %16013 = vmatprep.subr.bf16.mxu1 %v16012_v23 }
 0x8fc   :  { %16015 = vmatpush3.bf16.msra.mxu1 %v16014_v51  ;;  %v12447_v51 = vld [vmem:[%s22644_s7 + $0x1d0] sm:$0xff] }
 0x8fd   :  { %16017 = vmatprep.subr.bf16.mxu1 %v16016_v55  ;;  %v12448_v55 = vld [vmem:[%s22644_s7 + $0x1d8] sm:$0xff] }
 0x8fe   :  { %v16048_v18 = vpack.c.bf16 %v12448_v55, %v12447_v51 }
 0x900   :  { %16019 = vmatpush3.bf16.msra.mxu1 %v16018_v22  ;;  %v12432_v22 = vld [vmem:[%s22644_s7 + $0x158] sm:$0xff] }
 0x901   :  { %16021 = vmatprep.subr.bf16.mxu1 %v16020_v37  ;;  %v12449_v37 = vld [vmem:[%s22644_s7 + $0x1e0] sm:$0xff]  ;;  %v16050_v45 = vpack.c.bf16 %v12432_v22, %v12431_v49 }
 0x902   :  { %v16052_v7 = vpack.c.bf16 %v12450_v34, %v12449_v37 }
 0x904   :  { %16023 = vmatpush3.bf16.msra.mxu1 %v16022_v56  ;;  %v12371_v56 = vsub.s32 2, %v22517_v5 }
 0x905   :  { %16025 = vmatprep.subr.bf16.mxu1 %v16024_v62  ;;  %v12434_v62 = vld [vmem:[%s22644_s7 + $0x168] sm:$0xff] }
 0x906   :  { %v12372_v8 = vrot.slane %v22523_v47, %v12371_v56 }
 0x908   :  { %16027 = vmatpush3.bf16.msra.mxu1 %v16026_v52  ;;  %v16054_v52 = vpack.c.bf16 %v12434_v62, %v12433_v2 }
 0x909   :  { %16029 = vmatprep.subr.bf16.mxu1 %v16028_v12  ;;  %v12435_v12 = vld [vmem:[%s22644_s7 + $0x170] sm:$0xff]  ;;  %s16510_s7 = scalar_lea.vmem %s12609_s25, 32 }
 0x90a   :  { %v16058_v5 = vpack.c.bf16 %v12436_v59, %v12435_v12  ;;  %p16511_p0 = scmp.ne.s32.totalorder %s12609_s25, %s16510_s7  ;;  %p16516_p2 = scmp.lt.s32.totalorder %s16510_s7, %s16510_s7 }
 0x90c   :  { %p16517_p3 = por %p16516_p2, %p16515_p1 }
 0x90e   :  { %p16518_p4 = pnand %p16517_p3, %p16511_p0 }
 0x9ae   :  { %v12279_v6 = vpop.f32.mrb[154].mxu1 }
 0x9af   :  { %v12381_v63 = vadd.f32 %v12364_v29, %v12279_v6  ;;  %v12281_v28 = vpop.f32.mrb[155].mxu1  ;;  %v13352_v6 = vld [vmem:[%s22645_s8] ss:$0 sm:$0xff] }
 0x9b0   :  { %v12382_v9 = vadd.f32 %v12368_v42, %v12281_v28 }
 0x9b1   :  { %v12385_v14 = vmax.f32 %v12381_v63, 0.0 }
 0x9b2   :  { %v12386_v4 = vmax.f32 %v12382_v9, 0.0 }
 0x9b4   :  { %12524 = vmatprep.mubr.f32.mxu1 %v12386_v4 }
 0x9b5   :  { %12525 = vmatmul.mubr.f32.vlgmr.msra.gmra.mrb[158].mxu1 %v12385_v14 }
 0x9b6   :  { %16031 = vmatpush3.bf16.msra.mxu1 %v16030_v10 }
 0x9b7   :  { %16033 = vmatprep.subr.bf16.mxu1 %v16032_v20 }
 0x9ba   :  { %16035 = vmatpush3.bf16.msra.mxu1 %v16034_v38 }
 0x9bb   :  { %16037 = vmatprep.subr.bf16.mxu1 %v16036_v50 }
 0x9be   :  { %16039 = vmatpush3.bf16.msra.mxu1 %v16038_v40  ;;  %v12350_v41 = vpop.f32.mrb[156].mxu1 }
 0x9bf   :  { %v12352_v23 = vpop.f32.mrb[157].mxu1  ;;  %16041 = vmatprep.subr.bf16.mxu1 %v16040_v54  ;;  %v12383_v48 = vadd.f32 %v12372_v8, %v12350_v41 }
 0x9c0   :  { %v12384_v33 = vadd.f32 %v12376_v36, %v12352_v23 }
 0x9c1   :  { %v12387_v46 = vmax.f32 %v12383_v48, 0.0 }
 0x9c2   :  { %v12388_v11 = vmax.f32 %v12384_v33, 0.0  ;;  %16043 = vmatpush3.bf16.msra.mxu1 %v16042_v13 }
 0x9c3   :  { %16045 = vmatprep.subr.bf16.mxu1 %v16044_v25 }
 0x9c4   :  { %12594 = vmatprep.mubr.f32.mxu1 %v12388_v11 }
 0x9c6   :  { %16047 = vmatpush3.bf16.msra.mxu1 %v16046_v35 }
 0x9c7   :  { %16049 = vmatprep.subr.bf16.mxu1 %v16048_v18 }
 0x9ca   :  { %16051 = vmatpush3.bf16.msra.mxu1 %v16050_v45 }
 0x9cb   :  { %16053 = vmatprep.subr.bf16.mxu1 %v16052_v7 }
 0x9ce   :  { %16055 = vmatpush3.bf16.msra.mxu1 %v16054_v52 }
 0x9cf   :  { %16057 = vmatprep.subr.bf16.mxu1 %v16056_v17 }
 0x9d2   :  { %16059 = vmatpush3.bf16.msra.mxu1 %v16058_v5 }
 0x9d5   :  { %12595 = vmatmul.mubr.f32.vlgmr.msra.gmra.mrb[160].mxu1 %v12387_v46 }
 0xa88   :  { %v14094_v29 = vpop.f32.mrb[158].mxu1 }
 0xa89   :  { %v14095_v42 = vpop.f32.mrb[159].mxu1 }
 0xa8a   :  { %v14096_v47 = vadd.f32 %v14095_v42, %v14094_v29 }
 0xa8c   :  { %v12527_v21 = vadd.f32 %v14096_v47, %v13352_v6 }
 0xaa8   :  { %v14129_v63 = vpop.f32.mrb[160].mxu1 }
 0xaa9   :  { %v14130_v28 = vpop.f32.mrb[161].mxu1 }
 0xaaa   :  { %v14131_v24 = vadd.f32 %v14130_v28, %v14129_v63 }
 0xaac   :  { %v12597_v9 = vadd.f32 %v14131_v24, %v12527_v21 }
 0xaae   :  { %12601 = vst.msk [vmem:[#allocation6] sm:$0x3] %vm12600_vm3, %v12597_v9 }
 0xaaf   :  { %16521 = shalt.err (!%p16518_p4)
}
 0xab0   :  { %s16522_s8 = scalar_lea.hbm %s22646_s9, 32 }
 0xab1   :  { %p16523_p5 = scmp.ne.s32.totalorder %s22646_s9, %s16522_s8  ;;  %p16526_p6 = scmp.lt.u32.totalorder %s16522_s8, %s22646_s9 }
 0xab3   :  { %p16528_p7 = pnand %p16526_p6, %p16523_p5 }
 0xab5   :  { %16531 = shalt.err (!%p16528_p7)
}
 0xab6   :  { %12611 = dma.vmem_to_hbm [thread:$0]  %s12609_s25, 32, %s22646_s9, [#allocation7]  }
 0xab7   :  { %16534 = dma.done.wait [#allocation7], 32  }
 0xab8   :  { %16535 = vsyncadd [#allocation7], 4294967264 }
 0xab9   :  { %12615 = vsyncpa [#allocation7], 1 }
 0xaba   :  { %12616 = vsyncmov [#allocation5] }
 0xabd   :  { %s12617_s11 = vpop.sfrf %12616 }
 0xabe   :  { %p13353_p8 = scmp.ne.s32.totalorder %s12617_s11, 0 }
 0xac0   :  { %12621 = shalt.err (%p13353_p8)  }

</bundles_post_ra>
